<compile_context>
chip_gen: v7x
topology: tpu7x:2x2x1
jax: 0.10.0
libtpu: 0.0.40
codegen_flags: <defaults>
</compile_context>

<pallas_src>
import functools

import jax
import jax.numpy as jnp
import numpy as np
from jax.experimental import pallas as pl
from jax.experimental.pallas import tpu as pltpu

PAD = 6      # max dilation among the ASPP branches -> single shared halo pad
LANE = 128   # TPU lane width


def _rup(v, m):
    return ((v + m - 1) // m) * m


def _prelu(v, a):
    # a is a scalar (SMEM read) -> broadcasts against v
    return jnp.where(v > 0, v, a * v)


def _mm(a, b):
    return jax.lax.dot_general(a, b, (((1,), (0,)), ((), ())),
                               preferred_element_type=jnp.float32)


def _aspp_kernel(alphas_ref,                     # SMEM (6,) f32 PReLU slopes
                 xpad_ref,                       # (1, Hp, Wp, Cp) bf16
                 w1_ref, b1_ref,                 # (Cp, Cdp) bf16, (1, Cdp) f32
                 w2_ref, b2_ref,                 # (3, 3*Cp, Cdp) bf16, (1, Cdp) f32
                 w3_ref, b3_ref,
                 w4_ref, b4_ref,
                 w5_ref, b5_ref,                 # (Cp, Cdp) f32, (1, Cdp) f32
                 wf4_ref, wf5_ref, bf_ref,       # (4*Cdp, Cp) bf16, (Cdp, Cp) f32, (1, Cp) f32
                 o_ref,                          # (1, TH, W, Cp) f32
                 acc_ref, cat_ref,               # scratch: f32 (THW, Cdp), bf16 (THW, 4*Cdp)
                 *, H, W, TH):
    Cp = xpad_ref.shape[-1]
    Cdp = w1_ref.shape[-1]
    THW = TH * W
    row0 = pl.multiple_of(pl.program_id(1) * TH, TH)   # first output row of this tile

    # ---- branch 1: 1x1 conv (+folded BN) + PReLU -> cat slab 0 ------------
    xc = xpad_ref[0, pl.ds(row0 + PAD, TH), pl.ds(PAD, W), :].reshape(THW, Cp)
    c1 = _prelu(_mm(xc, w1_ref[...]) + b1_ref[...], alphas_ref[0])
    cat_ref[:, 0:Cdp] = c1.astype(jnp.bfloat16)

    # ---- branches 2-4: dilated 3x3 conv == 3 wide GEMMs (kw taps im2col'd) -
    def dil_branch(w_ref, b_ref, d, a, slab):
        off = PAD - d
        for kh in range(3):
            r = row0 + off + kh * d
            taps = [xpad_ref[0, pl.ds(r, TH), pl.ds(off + kw * d, W), :]
                    for kw in range(3)]
            patch = jnp.concatenate(taps, axis=-1).reshape(THW, 3 * Cp)
            term = _mm(patch, w_ref[kh])          # (THW, Cdp) f32
            if kh == 0:
                acc_ref[...] = term
            else:
                acc_ref[...] += term
        cat_ref[:, slab * Cdp:(slab + 1) * Cdp] = _prelu(
            acc_ref[...] + b_ref[...], a).astype(jnp.bfloat16)

    dil_branch(w2_ref, b2_ref, 2, alphas_ref[1], 1)
    dil_branch(w3_ref, b3_ref, 4, alphas_ref[2], 2)
    dil_branch(w4_ref, b4_ref, 6, alphas_ref[3], 3)

    # ---- branch 5: global avg pool -> 1x1 conv -> PReLU --------------------
    # (bilinear upsample of a 1x1 map with align_corners=True is a broadcast)
    xfull = xpad_ref[0, PAD:PAD + H, PAD:PAD + W, :].reshape(H * W, Cp)
    gap = jnp.mean(xfull.astype(jnp.float32), axis=0, keepdims=True)   # (1, Cp)
    c5 = _prelu(_mm(gap, w5_ref[...]) + b5_ref[...], alphas_ref[4])    # (1, Cdp)

    # ---- fuse: concat + 1x1 conv == one wide GEMM + broadcast c5/bias row --
    row_bias = bf_ref[...] + _mm(c5, wf5_ref[...])                     # (1, Cp)
    fuse = _mm(cat_ref[...], wf4_ref[...]) + row_bias                  # (THW, Cp)
    out = _prelu(fuse, alphas_ref[5])
    o_ref[0] = out.reshape(TH, W, Cp).astype(o_ref.dtype)


def aspp_forward(x_nchw, params, *, tile_h=8):
    """x_nchw: [N, Cin, H, W] float32 (PyTorch layout). Returns same layout."""
    N, Cin, H, W = x_nchw.shape
    alphas, w1, b1, w2, b2, w3, b3, w4, b4, w5, b5, wf, bf = params
    Cd = w1.shape[1]

    Cp = _rup(Cin, LANE)                 # lane-dense channel count
    Cdp = _rup(Cd, LANE)
    TH = tile_h if (H % tile_h == 0 and H >= tile_h) else H
    Hp = H + 2 * PAD
    Wp = _rup(W + 2 * PAD, 16)           # keep rows 16-sublane aligned for bf16
    THW = TH * W

    # ---- layout / dtype prep (lane-dense channels, bf16 matmul operands) ---
    x = jnp.transpose(x_nchw, (0, 2, 3, 1))                           # NHWC
    xpad = jnp.pad(x, ((0, 0), (PAD, PAD), (PAD, Wp - W - PAD),
                       (0, Cp - Cin))).astype(jnp.bfloat16)

    def pad1x1(w, dtype):                # (Cin, Cd) -> (Cp, Cdp)
        return jnp.pad(w, ((0, Cp - Cin), (0, Cdp - Cd))).astype(dtype)

    def pad3x3(w):                       # (3,3,Cin,Cd) -> (3, 3*Cp, Cdp), kw-major rows
        wp = jnp.pad(w, ((0, 0), (0, 0), (0, Cp - Cin), (0, Cdp - Cd)))
        return wp.reshape(3, 3 * Cp, Cdp).astype(jnp.bfloat16)

    def padb(b, width, full):            # (1, full) -> (1, width) f32
        return jnp.pad(b, ((0, 0), (0, width - full))).astype(jnp.float32)

    w1p = pad1x1(w1, jnp.bfloat16); b1p = padb(b1, Cdp, Cd)
    w2p = pad3x3(w2);               b2p = padb(b2, Cdp, Cd)
    w3p = pad3x3(w3);               b3p = padb(b3, Cdp, Cd)
    w4p = pad3x3(w4);               b4p = padb(b4, Cdp, Cd)
    w5p = pad1x1(w5, jnp.float32);  b5p = padb(b5, Cdp, Cd)

    wfp = jnp.pad(wf, ((0, 0), (0, Cdp - Cd), (0, Cp - Cin)))         # (5, Cdp, Cp)
    wf4p = wfp[:4].reshape(4 * Cdp, Cp).astype(jnp.bfloat16)
    wf5p = wfp[4].astype(jnp.float32)
    bfp = padb(bf, Cp, Cin)
    alphas_f = jnp.reshape(alphas, (-1,)).astype(jnp.float32)         # (6,) -> SMEM

    # ---- specs -------------------------------------------------------------
    def rep(arr):                        # constant-index (weight/bias) operand
        zeros = (0,) * arr.ndim
        return pl.BlockSpec(arr.shape, lambda n, h: zeros)

    in_specs = [
        pl.BlockSpec(memory_space=pltpu.MemorySpace.SMEM),            # alphas
        pl.BlockSpec((1, Hp, Wp, Cp), lambda n, h: (n, 0, 0, 0)),     # xpad (per n)
        rep(w1p), rep(b1p), rep(w2p), rep(b2p), rep(w3p), rep(b3p),
        rep(w4p), rep(b4p), rep(w5p), rep(b5p),
        rep(wf4p), rep(wf5p), rep(bfp),
    ]
    out_spec = pl.BlockSpec((1, TH, W, Cp), lambda n, h: (n, h, 0, 0))

    scratch = [pltpu.VMEM((THW, Cdp), jnp.float32),        # branch accumulator
               pltpu.VMEM((THW, 4 * Cdp), jnp.bfloat16)]   # concat buffer

    # ---- explicit scoped-VMEM budget (double-buffered blocks + scratch) ----
    def nbytes(a):
        return int(np.prod(a.shape)) * jnp.dtype(a.dtype).itemsize
    block_bytes = Hp * Wp * Cp * 2 + TH * W * Cp * 4
    weight_bytes = sum(nbytes(a) for a in (w1p, b1p, w2p, b2p, w3p, b3p,
                                           w4p, b4p, w5p, b5p, wf4p, wf5p, bfp))
    scratch_bytes = THW * Cdp * 4 + THW * 4 * Cdp * 2
    temps_bytes = 8 * THW * Cp * 4                  # patch / branch temporaries
    est = 2 * (block_bytes + weight_bytes) + scratch_bytes + temps_bytes
    vmem_limit = int(min(max(2 * est, 32 << 20), 100 << 20))

    kernel = functools.partial(_aspp_kernel, H=H, W=W, TH=TH)
    y = pl.pallas_call(
        kernel,
        out_shape=jax.ShapeDtypeStruct((N, H, W, Cp), jnp.float32),
        grid_spec=pltpu.PrefetchScalarGridSpec(
            num_scalar_prefetch=0,
            grid=(N, H // TH),
            in_specs=in_specs,
            out_specs=out_spec,
            scratch_shapes=scratch),
        compiler_params=pltpu.CompilerParams(
            dimension_semantics=("parallel", "parallel"),
            vmem_limit_bytes=vmem_limit),
    )(alphas_f, xpad, w1p, b1p, w2p, b2p, w3p, b3p, w4p, b4p,
      w5p, b5p, wf4p, wf5p, bfp)

    return jnp.transpose(y[..., :Cin], (0, 3, 1, 2))                  # NCHW


# ----------------------- parameter construction ---------------------------
def init_params(key, in_dim):
    """Deterministic synthetic parameters. BN (eval mode) folded into convs."""
    down = in_dim // 2
    eps = 1e-5
    k1, k2, k3, k4, k5, k6 = jax.random.split(key, 6)

    def bn_fold(cout, k):
        ka, kb, kc, kd = jax.random.split(k, 4)
        gamma = 1.0 + 0.1 * jax.random.normal(ka, (cout,), jnp.float32)
        beta = 0.1 * jax.random.normal(kb, (cout,), jnp.float32)
        mean = 0.1 * jax.random.normal(kc, (cout,), jnp.float32)
        var = 1.0 + 0.1 * jax.random.uniform(kd, (cout,), jnp.float32)
        scale = gamma / jnp.sqrt(var + eps)
        shift = beta - mean * scale
        return scale, shift

    def conv1x1(cin, cout, k):
        ka, kb, kc = jax.random.split(k, 3)
        w = 0.2 * jax.random.normal(ka, (cin, cout), jnp.float32)
        b = 0.1 * jax.random.normal(kb, (cout,), jnp.float32)
        scale, shift = bn_fold(cout, kc)
        return w * scale[None, :], ((b * scale + shift)[None, :])

    def conv3x3(cin, cout, k):
        ka, kb, kc = jax.random.split(k, 3)
        w = 0.2 * jax.random.normal(ka, (3, 3, cin, cout), jnp.float32)
        b = 0.1 * jax.random.normal(kb, (cout,), jnp.float32)
        scale, shift = bn_fold(cout, kc)
        return w * scale[None, None, None, :], ((b * scale + shift)[None, :])

    w1, b1 = conv1x1(in_dim, down, k1)
    w2, b2 = conv3x3(in_dim, down, k2)
    w3, b3 = conv3x3(in_dim, down, k3)
    w4, b4 = conv3x3(in_dim, down, k4)
    w5, b5 = conv1x1(in_dim, down, k5)
    wf_full, bf = conv1x1(5 * down, in_dim, k6)
    wf = wf_full.reshape(5, down, in_dim)       # split per concatenated branch

    # per-module PReLU slopes (learned parameters; varied for a stronger check)
    alphas = 0.25 + 0.05 * jnp.arange(6, dtype=jnp.float32)
    return (alphas, w1, b1, w2, b2, w3, b3, w4, b4, w5, b5, wf, bf)


# ----------------------- pure-JAX f32 reference (for checking) ------------
def aspp_reference(x_nchw, params):
    alphas, w1, b1, w2, b2, w3, b3, w4, b4, w5, b5, wf, bf = params
    N, Cin, H, W = x_nchw.shape
    Cd = w1.shape[1]
    x = jnp.transpose(x_nchw, (0, 2, 3, 1)).astype(jnp.float32)
    dn = ('NHWC', 'HWIO', 'NHWC')

    def prelu(v, a):
        return jnp.where(v > 0, v, a * v)

    def conv(inp, w, b, d=1):
        if w.ndim == 2:
            w = w[None, None]
        pad = ((d, d), (d, d)) if w.shape[0] == 3 else ((0, 0), (0, 0))
        y = jax.lax.conv_general_dilated(inp, w, (1, 1), pad,
                                         rhs_dilation=(d, d),
                                         dimension_numbers=dn)
        return y + b.reshape(1, 1, 1, -1)

    c1 = prelu(conv(x, w1, b1[0]), alphas[0])
    c2 = prelu(conv(x, w2, b2[0], 2), alphas[1])
    c3 = prelu(conv(x, w3, b3[0], 4), alphas[2])
    c4 = prelu(conv(x, w4, b4[0], 6), alphas[3])
    gap = jnp.mean(x, axis=(1, 2), keepdims=True)
    c5 = prelu(conv(gap, w5, b5[0]), alphas[4])
    c5u = jnp.broadcast_to(c5, (N, H, W, Cd))   # bilinear upsample of 1x1 map
    cat = jnp.concatenate([c1, c2, c3, c4, c5u], axis=-1)
    out = prelu(conv(cat, wf.reshape(5 * Cd, Cin), bf[0]), alphas[5])
    return jnp.transpose(out, (0, 3, 1, 2))


if __name__ == "__main__":
    key = jax.random.PRNGKey(0)
    kx, kp = jax.random.split(key)

    N, in_dim, H, W = 2, 8, 16, 16
    x = jax.random.normal(kx, (N, in_dim, H, W), jnp.float32)
    params = init_params(kp, in_dim)

    y = jax.jit(aspp_forward)(x, params)
    y = jax.block_until_ready(y)

    y_ref = aspp_reference(x, params)
    # bf16 matmul path -> bf16-appropriate tolerances vs. the f32 reference
    np.testing.assert_allclose(np.asarray(y), np.asarray(y_ref),
                               rtol=5e-2, atol=5e-2)
    print("KERNEL_OK")
</pallas_src>

<mosaic_0001>
module attributes {stable_mosaic.version = 11 : i64} {
  func.func @_aspp_kernel(%arg0: i32, %arg1: i32, %arg2: memref<6xf32, #tpu.memory_space<smem>>, %arg3: memref<1x28x32x128xbf16, #tpu.memory_space<vmem>>, %arg4: memref<128x128xbf16, #tpu.memory_space<vmem>>, %arg5: memref<1x128xf32, #tpu.memory_space<vmem>>, %arg6: memref<3x384x128xbf16, #tpu.memory_space<vmem>>, %arg7: memref<1x128xf32, #tpu.memory_space<vmem>>, %arg8: memref<3x384x128xbf16, #tpu.memory_space<vmem>>, %arg9: memref<1x128xf32, #tpu.memory_space<vmem>>, %arg10: memref<3x384x128xbf16, #tpu.memory_space<vmem>>, %arg11: memref<1x128xf32, #tpu.memory_space<vmem>>, %arg12: memref<128x128xf32, #tpu.memory_space<vmem>>, %arg13: memref<1x128xf32, #tpu.memory_space<vmem>>, %arg14: memref<512x128xbf16, #tpu.memory_space<vmem>>, %arg15: memref<128x128xf32, #tpu.memory_space<vmem>>, %arg16: memref<1x128xf32, #tpu.memory_space<vmem>>, %arg17: memref<1x8x16x128xf32, #tpu.memory_space<vmem>>, %arg18: memref<128x128xf32, #tpu.memory_space<vmem>>, %arg19: memref<128x512xbf16, #tpu.memory_space<vmem>>) attributes {dimension_semantics = [#tpu.dimension_semantics<parallel>, #tpu.dimension_semantics<parallel>], iteration_bounds = array<i64: 2, 2>, scalar_prefetch = 0 : i64, scratch_operands = 2 : i64, tpu.core_type = #tpu.core_type<tc>, window_params = [{transform_indices = @transform_0, window_bounds = array<i64: 6>}, {transform_indices = @transform_1, window_bounds = array<i64: 1, 28, 32, 128>}, {pipeline_mode = #tpu.pipeline_mode<synchronous>, transform_indices = @transform_2, window_bounds = array<i64: 128, 128>}, {pipeline_mode = #tpu.pipeline_mode<synchronous>, transform_indices = @transform_3, window_bounds = array<i64: 1, 128>}, {pipeline_mode = #tpu.pipeline_mode<synchronous>, transform_indices = @transform_4, window_bounds = array<i64: 3, 384, 128>}, {pipeline_mode = #tpu.pipeline_mode<synchronous>, transform_indices = @transform_5, window_bounds = array<i64: 1, 128>}, {pipeline_mode = #tpu.pipeline_mode<synchronous>, transform_indices = @transform_6, window_bounds = array<i64: 3, 384, 128>}, {pipeline_mode = #tpu.pipeline_mode<synchronous>, transform_indices = @transform_7, window_bounds = array<i64: 1, 128>}, {pipeline_mode = #tpu.pipeline_mode<synchronous>, transform_indices = @transform_8, window_bounds = array<i64: 3, 384, 128>}, {pipeline_mode = #tpu.pipeline_mode<synchronous>, transform_indices = @transform_9, window_bounds = array<i64: 1, 128>}, {pipeline_mode = #tpu.pipeline_mode<synchronous>, transform_indices = @transform_10, window_bounds = array<i64: 128, 128>}, {pipeline_mode = #tpu.pipeline_mode<synchronous>, transform_indices = @transform_11, window_bounds = array<i64: 1, 128>}, {pipeline_mode = #tpu.pipeline_mode<synchronous>, transform_indices = @transform_12, window_bounds = array<i64: 512, 128>}, {pipeline_mode = #tpu.pipeline_mode<synchronous>, transform_indices = @transform_13, window_bounds = array<i64: 128, 128>}, {pipeline_mode = #tpu.pipeline_mode<synchronous>, transform_indices = @transform_14, window_bounds = array<i64: 1, 128>}, {transform_indices = @transform_15, window_bounds = array<i64: 1, 8, 16, 128>}]} {
    %c8_i32 = arith.constant 8 : i32
    %0 = arith.muli %arg1, %c8_i32 : i32
    %1 = tpu.assume_multiple %0, 8 : i32
    %c6_i32 = arith.constant 6 : i32
    %2 = arith.addi %1, %c6_i32 : i32
    %c0 = arith.constant 0 : index
    %3 = arith.index_cast %2 : i32 to index
    %c6 = arith.constant 6 : index
    %c0_0 = arith.constant 0 : index
    %4 = vector.load %arg3[%c0, %3, %c6, %c0_0] : memref<1x28x32x128xbf16, #tpu.memory_space<vmem>>, vector<1x8x16x128xbf16>
    %5 = vector.shape_cast %4 : vector<1x8x16x128xbf16> to vector<8x16x128xbf16>
    %6 = vector.shape_cast %5 : vector<8x16x128xbf16> to vector<128x128xbf16>
    %c0_1 = arith.constant 0 : index
    %c0_2 = arith.constant 0 : index
    %7 = vector.load %arg4[%c0_1, %c0_2] : memref<128x128xbf16, #tpu.memory_space<vmem>>, vector<128x128xbf16>
    %cst = arith.constant dense<0.000000e+00> : vector<128x128xf32>
    %8 = tpu.matmul %6, %7, %cst {dimension_numbers = #tpu.dot_dimension_numbers<[1], [0], [0], [1], [0, 0, 1, 1], [], []>} : vector<128x128xbf16>, vector<128x128xbf16>, vector<128x128xf32> -> vector<128x128xf32>
    %c0_3 = arith.constant 0 : index
    %c0_4 = arith.constant 0 : index
    %9 = vector.load %arg5[%c0_3, %c0_4] : memref<1x128xf32, #tpu.memory_space<vmem>>, vector<1x128xf32>
    %10 = vector.broadcast %9 : vector<1x128xf32> to vector<128x128xf32>
    %11 = arith.addf %8, %10 : vector<128x128xf32>
    %c0_5 = arith.constant 0 : index
    %12 = memref.load %arg2[%c0_5] : memref<6xf32, #tpu.memory_space<smem>>
    %cst_6 = arith.constant 0.000000e+00 : f32
    %13 = vector.broadcast %cst_6 : f32 to vector<128x128xf32>
    %14 = arith.cmpf ogt, %11, %13 : vector<128x128xf32>
    %15 = vector.broadcast %12 : f32 to vector<128x128xf32>
    %16 = arith.mulf %15, %11 : vector<128x128xf32>
    %17 = arith.select %14, %11, %16 : vector<128x128xi1>, vector<128x128xf32>
    %18 = arith.truncf %17 : vector<128x128xf32> to vector<128x128xbf16>
    %c0_7 = arith.constant 0 : index
    %c0_8 = arith.constant 0 : index
    %19 = vector.load %arg19[%c0_7, %c0_8] : memref<128x512xbf16, #tpu.memory_space<vmem>>, vector<128x128xbf16>
    tpu.vector_store %arg19[%c0_7, %c0_8], %18 {strides = array<i32>} : memref<128x512xbf16, #tpu.memory_space<vmem>>, vector<128x128xbf16>,
    %c1 = arith.constant 1 : index
    %20 = memref.load %arg2[%c1] : memref<6xf32, #tpu.memory_space<smem>>
    %c4_i32 = arith.constant 4 : i32
    %21 = arith.addi %1, %c4_i32 : i32
    %c0_i32 = arith.constant 0 : i32
    %22 = arith.addi %21, %c0_i32 : i32
    %c0_9 = arith.constant 0 : index
    %23 = arith.index_cast %22 : i32 to index
    %c4 = arith.constant 4 : index
    %c0_10 = arith.constant 0 : index
    %24 = vector.load %arg3[%c0_9, %23, %c4, %c0_10] : memref<1x28x32x128xbf16, #tpu.memory_space<vmem>>, vector<1x8x16x128xbf16>
    %25 = vector.shape_cast %24 : vector<1x8x16x128xbf16> to vector<8x16x128xbf16>
    %c0_11 = arith.constant 0 : index
    %26 = arith.index_cast %22 : i32 to index
    %c6_12 = arith.constant 6 : index
    %c0_13 = arith.constant 0 : index
    %27 = vector.load %arg3[%c0_11, %26, %c6_12, %c0_13] : memref<1x28x32x128xbf16, #tpu.memory_space<vmem>>, vector<1x8x16x128xbf16>
    %28 = vector.shape_cast %27 : vector<1x8x16x128xbf16> to vector<8x16x128xbf16>
    %c0_14 = arith.constant 0 : index
    %29 = arith.index_cast %22 : i32 to index
    %c8 = arith.constant 8 : index
    %c0_15 = arith.constant 0 : index
    %30 = vector.load %arg3[%c0_14, %29, %c8, %c0_15] : memref<1x28x32x128xbf16, #tpu.memory_space<vmem>>, vector<1x8x16x128xbf16>
    %31 = vector.shape_cast %30 : vector<1x8x16x128xbf16> to vector<8x16x128xbf16>
    %32 = tpu.concatenate %25, %28, %31 in 2 : vector<8x16x128xbf16>, vector<8x16x128xbf16>, vector<8x16x128xbf16> -> vector<8x16x384xbf16>
    %33 = vector.shape_cast %32 : vector<8x16x384xbf16> to vector<128x384xbf16>
    %c0_16 = arith.constant 0 : index
    %c0_17 = arith.constant 0 : index
    %c0_18 = arith.constant 0 : index
    %34 = vector.load %arg6[%c0_16, %c0_17, %c0_18] : memref<3x384x128xbf16, #tpu.memory_space<vmem>>, vector<1x384x128xbf16>
    %35 = vector.shape_cast %34 : vector<1x384x128xbf16> to vector<384x128xbf16>
    %cst_19 = arith.constant dense<0.000000e+00> : vector<128x128xf32>
    %36 = tpu.matmul %33, %35, %cst_19 {dimension_numbers = #tpu.dot_dimension_numbers<[1], [0], [0], [1], [0, 0, 1, 1], [], []>} : vector<128x384xbf16>, vector<384x128xbf16>, vector<128x128xf32> -> vector<128x128xf32>
    %c0_20 = arith.constant 0 : index
    %c0_21 = arith.constant 0 : index
    %37 = vector.load %arg18[%c0_20, %c0_21] : memref<128x128xf32, #tpu.memory_space<vmem>>, vector<128x128xf32>
    tpu.vector_store %arg18[%c0_20, %c0_21], %36 {strides = array<i32>} : memref<128x128xf32, #tpu.memory_space<vmem>>, vector<128x128xf32>,
    %c4_i32_22 = arith.constant 4 : i32
    %38 = arith.addi %1, %c4_i32_22 : i32
    %c2_i32 = arith.constant 2 : i32
    %39 = arith.addi %38, %c2_i32 : i32
    %c0_23 = arith.constant 0 : index
    %40 = arith.index_cast %39 : i32 to index
    %c4_24 = arith.constant 4 : index
    %c0_25 = arith.constant 0 : index
    %41 = vector.load %arg3[%c0_23, %40, %c4_24, %c0_25] : memref<1x28x32x128xbf16, #tpu.memory_space<vmem>>, vector<1x8x16x128xbf16>
    %42 = vector.shape_cast %41 : vector<1x8x16x128xbf16> to vector<8x16x128xbf16>
    %c0_26 = arith.constant 0 : index
    %43 = arith.index_cast %39 : i32 to index
    %c6_27 = arith.constant 6 : index
    %c0_28 = arith.constant 0 : index
    %44 = vector.load %arg3[%c0_26, %43, %c6_27, %c0_28] : memref<1x28x32x128xbf16, #tpu.memory_space<vmem>>, vector<1x8x16x128xbf16>
    %45 = vector.shape_cast %44 : vector<1x8x16x128xbf16> to vector<8x16x128xbf16>
    %c0_29 = arith.constant 0 : index
    %46 = arith.index_cast %39 : i32 to index
    %c8_30 = arith.constant 8 : index
    %c0_31 = arith.constant 0 : index
    %47 = vector.load %arg3[%c0_29, %46, %c8_30, %c0_31] : memref<1x28x32x128xbf16, #tpu.memory_space<vmem>>, vector<1x8x16x128xbf16>
    %48 = vector.shape_cast %47 : vector<1x8x16x128xbf16> to vector<8x16x128xbf16>
    %49 = tpu.concatenate %42, %45, %48 in 2 : vector<8x16x128xbf16>, vector<8x16x128xbf16>, vector<8x16x128xbf16> -> vector<8x16x384xbf16>
    %50 = vector.shape_cast %49 : vector<8x16x384xbf16> to vector<128x384xbf16>
    %c1_32 = arith.constant 1 : index
    %c0_33 = arith.constant 0 : index
    %c0_34 = arith.constant 0 : index
    %51 = vector.load %arg6[%c1_32, %c0_33, %c0_34] : memref<3x384x128xbf16, #tpu.memory_space<vmem>>, vector<1x384x128xbf16>
    %52 = vector.shape_cast %51 : vector<1x384x128xbf16> to vector<384x128xbf16>
    %cst_35 = arith.constant dense<0.000000e+00> : vector<128x128xf32>
    %53 = tpu.matmul %50, %52, %cst_35 {dimension_numbers = #tpu.dot_dimension_numbers<[1], [0], [0], [1], [0, 0, 1, 1], [], []>} : vector<128x384xbf16>, vector<384x128xbf16>, vector<128x128xf32> -> vector<128x128xf32>
    %c0_36 = arith.constant 0 : index
    %c0_37 = arith.constant 0 : index
    %54 = vector.load %arg18[%c0_36, %c0_37] : memref<128x128xf32, #tpu.memory_space<vmem>>, vector<128x128xf32>
    %55 = arith.addf %54, %53 : vector<128x128xf32>
    %c0_38 = arith.constant 0 : index
    %c0_39 = arith.constant 0 : index
    %56 = vector.load %arg18[%c0_38, %c0_39] : memref<128x128xf32, #tpu.memory_space<vmem>>, vector<128x128xf32>
    tpu.vector_store %arg18[%c0_38, %c0_39], %55 {strides = array<i32>} : memref<128x128xf32, #tpu.memory_space<vmem>>, vector<128x128xf32>,
    %c4_i32_40 = arith.constant 4 : i32
    %57 = arith.addi %1, %c4_i32_40 : i32
    %c4_i32_41 = arith.constant 4 : i32
    %58 = arith.addi %57, %c4_i32_41 : i32
    %c0_42 = arith.constant 0 : index
    %59 = arith.index_cast %58 : i32 to index
    %c4_43 = arith.constant 4 : index
    %c0_44 = arith.constant 0 : index
    %60 = vector.load %arg3[%c0_42, %59, %c4_43, %c0_44] : memref<1x28x32x128xbf16, #tpu.memory_space<vmem>>, vector<1x8x16x128xbf16>
    %61 = vector.shape_cast %60 : vector<1x8x16x128xbf16> to vector<8x16x128xbf16>
    %c0_45 = arith.constant 0 : index
    %62 = arith.index_cast %58 : i32 to index
    %c6_46 = arith.constant 6 : index
    %c0_47 = arith.constant 0 : index
    %63 = vector.load %arg3[%c0_45, %62, %c6_46, %c0_47] : memref<1x28x32x128xbf16, #tpu.memory_space<vmem>>, vector<1x8x16x128xbf16>
    %64 = vector.shape_cast %63 : vector<1x8x16x128xbf16> to vector<8x16x128xbf16>
    %c0_48 = arith.constant 0 : index
    %65 = arith.index_cast %58 : i32 to index
    %c8_49 = arith.constant 8 : index
    %c0_50 = arith.constant 0 : index
    %66 = vector.load %arg3[%c0_48, %65, %c8_49, %c0_50] : memref<1x28x32x128xbf16, #tpu.memory_space<vmem>>, vector<1x8x16x128xbf16>
    %67 = vector.shape_cast %66 : vector<1x8x16x128xbf16> to vector<8x16x128xbf16>
    %68 = tpu.concatenate %61, %64, %67 in 2 : vector<8x16x128xbf16>, vector<8x16x128xbf16>, vector<8x16x128xbf16> -> vector<8x16x384xbf16>
    %69 = vector.shape_cast %68 : vector<8x16x384xbf16> to vector<128x384xbf16>
    %c2 = arith.constant 2 : index
    %c0_51 = arith.constant 0 : index
    %c0_52 = arith.constant 0 : index
    %70 = vector.load %arg6[%c2, %c0_51, %c0_52] : memref<3x384x128xbf16, #tpu.memory_space<vmem>>, vector<1x384x128xbf16>
    %71 = vector.shape_cast %70 : vector<1x384x128xbf16> to vector<384x128xbf16>
    %cst_53 = arith.constant dense<0.000000e+00> : vector<128x128xf32>
    %72 = tpu.matmul %69, %71, %cst_53 {dimension_numbers = #tpu.dot_dimension_numbers<[1], [0], [0], [1], [0, 0, 1, 1], [], []>} : vector<128x384xbf16>, vector<384x128xbf16>, vector<128x128xf32> -> vector<128x128xf32>
    %c0_54 = arith.constant 0 : index
    %c0_55 = arith.constant 0 : index
    %73 = vector.load %arg18[%c0_54, %c0_55] : memref<128x128xf32, #tpu.memory_space<vmem>>, vector<128x128xf32>
    %74 = arith.addf %73, %72 : vector<128x128xf32>
    %c0_56 = arith.constant 0 : index
    %c0_57 = arith.constant 0 : index
    %75 = vector.load %arg18[%c0_56, %c0_57] : memref<128x128xf32, #tpu.memory_space<vmem>>, vector<128x128xf32>
    tpu.vector_store %arg18[%c0_56, %c0_57], %74 {strides = array<i32>} : memref<128x128xf32, #tpu.memory_space<vmem>>, vector<128x128xf32>,
    %c0_58 = arith.constant 0 : index
    %c0_59 = arith.constant 0 : index
    %76 = vector.load %arg18[%c0_58, %c0_59] : memref<128x128xf32, #tpu.memory_space<vmem>>, vector<128x128xf32>
    %c0_60 = arith.constant 0 : index
    %c0_61 = arith.constant 0 : index
    %77 = vector.load %arg7[%c0_60, %c0_61] : memref<1x128xf32, #tpu.memory_space<vmem>>, vector<1x128xf32>
    %78 = vector.broadcast %77 : vector<1x128xf32> to vector<128x128xf32>
    %79 = arith.addf %76, %78 : vector<128x128xf32>
    %cst_62 = arith.constant 0.000000e+00 : f32
    %80 = vector.broadcast %cst_62 : f32 to vector<128x128xf32>
    %81 = arith.cmpf ogt, %79, %80 : vector<128x128xf32>
    %82 = vector.broadcast %20 : f32 to vector<128x128xf32>
    %83 = arith.mulf %82, %79 : vector<128x128xf32>
    %84 = arith.select %81, %79, %83 : vector<128x128xi1>, vector<128x128xf32>
    %85 = arith.truncf %84 : vector<128x128xf32> to vector<128x128xbf16>
    %c0_63 = arith.constant 0 : index
    %c128 = arith.constant 128 : index
    %86 = vector.load %arg19[%c0_63, %c128] : memref<128x512xbf16, #tpu.memory_space<vmem>>, vector<128x128xbf16>
    tpu.vector_store %arg19[%c0_63, %c128], %85 {strides = array<i32>} : memref<128x512xbf16, #tpu.memory_space<vmem>>, vector<128x128xbf16>,
    %c2_64 = arith.constant 2 : index
    %87 = memref.load %arg2[%c2_64] : memref<6xf32, #tpu.memory_space<smem>>
    %c2_i32_65 = arith.constant 2 : i32
    %88 = arith.addi %1, %c2_i32_65 : i32
    %c0_i32_66 = arith.constant 0 : i32
    %89 = arith.addi %88, %c0_i32_66 : i32
    %c0_67 = arith.constant 0 : index
    %90 = arith.index_cast %89 : i32 to index
    %c2_68 = arith.constant 2 : index
    %c0_69 = arith.constant 0 : index
    %91 = vector.load %arg3[%c0_67, %90, %c2_68, %c0_69] : memref<1x28x32x128xbf16, #tpu.memory_space<vmem>>, vector<1x8x16x128xbf16>
    %92 = vector.shape_cast %91 : vector<1x8x16x128xbf16> to vector<8x16x128xbf16>
    %c0_70 = arith.constant 0 : index
    %93 = arith.index_cast %89 : i32 to index
    %c6_71 = arith.constant 6 : index
    %c0_72 = arith.constant 0 : index
    %94 = vector.load %arg3[%c0_70, %93, %c6_71, %c0_72] : memref<1x28x32x128xbf16, #tpu.memory_space<vmem>>, vector<1x8x16x128xbf16>
    %95 = vector.shape_cast %94 : vector<1x8x16x128xbf16> to vector<8x16x128xbf16>
    %c0_73 = arith.constant 0 : index
    %96 = arith.index_cast %89 : i32 to index
    %c10 = arith.constant 10 : index
    %c0_74 = arith.constant 0 : index
    %97 = vector.load %arg3[%c0_73, %96, %c10, %c0_74] : memref<1x28x32x128xbf16, #tpu.memory_space<vmem>>, vector<1x8x16x128xbf16>
    %98 = vector.shape_cast %97 : vector<1x8x16x128xbf16> to vector<8x16x128xbf16>
    %99 = tpu.concatenate %92, %95, %98 in 2 : vector<8x16x128xbf16>, vector<8x16x128xbf16>, vector<8x16x128xbf16> -> vector<8x16x384xbf16>
    %100 = vector.shape_cast %99 : vector<8x16x384xbf16> to vector<128x384xbf16>
    %c0_75 = arith.constant 0 : index
    %c0_76 = arith.constant 0 : index
    %c0_77 = arith.constant 0 : index
    %101 = vector.load %arg8[%c0_75, %c0_76, %c0_77] : memref<3x384x128xbf16, #tpu.memory_space<vmem>>, vector<1x384x128xbf16>
    %102 = vector.shape_cast %101 : vector<1x384x128xbf16> to vector<384x128xbf16>
    %cst_78 = arith.constant dense<0.000000e+00> : vector<128x128xf32>
    %103 = tpu.matmul %100, %102, %cst_78 {dimension_numbers = #tpu.dot_dimension_numbers<[1], [0], [0], [1], [0, 0, 1, 1], [], []>} : vector<128x384xbf16>, vector<384x128xbf16>, vector<128x128xf32> -> vector<128x128xf32>
    %c0_79 = arith.constant 0 : index
    %c0_80 = arith.constant 0 : index
    %104 = vector.load %arg18[%c0_79, %c0_80] : memref<128x128xf32, #tpu.memory_space<vmem>>, vector<128x128xf32>
    tpu.vector_store %arg18[%c0_79, %c0_80], %103 {strides = array<i32>} : memref<128x128xf32, #tpu.memory_space<vmem>>, vector<128x128xf32>,
    %c2_i32_81 = arith.constant 2 : i32
    %105 = arith.addi %1, %c2_i32_81 : i32
    %c4_i32_82 = arith.constant 4 : i32
    %106 = arith.addi %105, %c4_i32_82 : i32
    %c0_83 = arith.constant 0 : index
    %107 = arith.index_cast %106 : i32 to index
    %c2_84 = arith.constant 2 : index
    %c0_85 = arith.constant 0 : index
    %108 = vector.load %arg3[%c0_83, %107, %c2_84, %c0_85] : memref<1x28x32x128xbf16, #tpu.memory_space<vmem>>, vector<1x8x16x128xbf16>
    %109 = vector.shape_cast %108 : vector<1x8x16x128xbf16> to vector<8x16x128xbf16>
    %c0_86 = arith.constant 0 : index
    %110 = arith.index_cast %106 : i32 to index
    %c6_87 = arith.constant 6 : index
    %c0_88 = arith.constant 0 : index
    %111 = vector.load %arg3[%c0_86, %110, %c6_87, %c0_88] : memref<1x28x32x128xbf16, #tpu.memory_space<vmem>>, vector<1x8x16x128xbf16>
    %112 = vector.shape_cast %111 : vector<1x8x16x128xbf16> to vector<8x16x128xbf16>
    %c0_89 = arith.constant 0 : index
    %113 = arith.index_cast %106 : i32 to index
    %c10_90 = arith.constant 10 : index
    %c0_91 = arith.constant 0 : index
    %114 = vector.load %arg3[%c0_89, %113, %c10_90, %c0_91] : memref<1x28x32x128xbf16, #tpu.memory_space<vmem>>, vector<1x8x16x128xbf16>
    %115 = vector.shape_cast %114 : vector<1x8x16x128xbf16> to vector<8x16x128xbf16>
    %116 = tpu.concatenate %109, %112, %115 in 2 : vector<8x16x128xbf16>, vector<8x16x128xbf16>, vector<8x16x128xbf16> -> vector<8x16x384xbf16>
    %117 = vector.shape_cast %116 : vector<8x16x384xbf16> to vector<128x384xbf16>
    %c1_92 = arith.constant 1 : index
    %c0_93 = arith.constant 0 : index
    %c0_94 = arith.constant 0 : index
    %118 = vector.load %arg8[%c1_92, %c0_93, %c0_94] : memref<3x384x128xbf16, #tpu.memory_space<vmem>>, vector<1x384x128xbf16>
    %119 = vector.shape_cast %118 : vector<1x384x128xbf16> to vector<384x128xbf16>
    %cst_95 = arith.constant dense<0.000000e+00> : vector<128x128xf32>
    %120 = tpu.matmul %117, %119, %cst_95 {dimension_numbers = #tpu.dot_dimension_numbers<[1], [0], [0], [1], [0, 0, 1, 1], [], []>} : vector<128x384xbf16>, vector<384x128xbf16>, vector<128x128xf32> -> vector<128x128xf32>
    %c0_96 = arith.constant 0 : index
    %c0_97 = arith.constant 0 : index
    %121 = vector.load %arg18[%c0_96, %c0_97] : memref<128x128xf32, #tpu.memory_space<vmem>>, vector<128x128xf32>
    %122 = arith.addf %121, %120 : vector<128x128xf32>
    %c0_98 = arith.constant 0 : index
    %c0_99 = arith.constant 0 : index
    %123 = vector.load %arg18[%c0_98, %c0_99] : memref<128x128xf32, #tpu.memory_space<vmem>>, vector<128x128xf32>
    tpu.vector_store %arg18[%c0_98, %c0_99], %122 {strides = array<i32>} : memref<128x128xf32, #tpu.memory_space<vmem>>, vector<128x128xf32>,
    %c2_i32_100 = arith.constant 2 : i32
    %124 = arith.addi %1, %c2_i32_100 : i32
    %c8_i32_101 = arith.constant 8 : i32
    %125 = arith.addi %124, %c8_i32_101 : i32
    %c0_102 = arith.constant 0 : index
    %126 = arith.index_cast %125 : i32 to index
    %c2_103 = arith.constant 2 : index
    %c0_104 = arith.constant 0 : index
    %127 = vector.load %arg3[%c0_102, %126, %c2_103, %c0_104] : memref<1x28x32x128xbf16, #tpu.memory_space<vmem>>, vector<1x8x16x128xbf16>
    %128 = vector.shape_cast %127 : vector<1x8x16x128xbf16> to vector<8x16x128xbf16>
    %c0_105 = arith.constant 0 : index
    %129 = arith.index_cast %125 : i32 to index
    %c6_106 = arith.constant 6 : index
    %c0_107 = arith.constant 0 : index
    %130 = vector.load %arg3[%c0_105, %129, %c6_106, %c0_107] : memref<1x28x32x128xbf16, #tpu.memory_space<vmem>>, vector<1x8x16x128xbf16>
    %131 = vector.shape_cast %130 : vector<1x8x16x128xbf16> to vector<8x16x128xbf16>
    %c0_108 = arith.constant 0 : index
    %132 = arith.index_cast %125 : i32 to index
    %c10_109 = arith.constant 10 : index
    %c0_110 = arith.constant 0 : index
    %133 = vector.load %arg3[%c0_108, %132, %c10_109, %c0_110] : memref<1x28x32x128xbf16, #tpu.memory_space<vmem>>, vector<1x8x16x128xbf16>
    %134 = vector.shape_cast %133 : vector<1x8x16x128xbf16> to vector<8x16x128xbf16>
    %135 = tpu.concatenate %128, %131, %134 in 2 : vector<8x16x128xbf16>, vector<8x16x128xbf16>, vector<8x16x128xbf16> -> vector<8x16x384xbf16>
    %136 = vector.shape_cast %135 : vector<8x16x384xbf16> to vector<128x384xbf16>
    %c2_111 = arith.constant 2 : index
    %c0_112 = arith.constant 0 : index
    %c0_113 = arith.constant 0 : index
    %137 = vector.load %arg8[%c2_111, %c0_112, %c0_113] : memref<3x384x128xbf16, #tpu.memory_space<vmem>>, vector<1x384x128xbf16>
    %138 = vector.shape_cast %137 : vector<1x384x128xbf16> to vector<384x128xbf16>
    %cst_114 = arith.constant dense<0.000000e+00> : vector<128x128xf32>
    %139 = tpu.matmul %136, %138, %cst_114 {dimension_numbers = #tpu.dot_dimension_numbers<[1], [0], [0], [1], [0, 0, 1, 1], [], []>} : vector<128x384xbf16>, vector<384x128xbf16>, vector<128x128xf32> -> vector<128x128xf32>
    %c0_115 = arith.constant 0 : index
    %c0_116 = arith.constant 0 : index
    %140 = vector.load %arg18[%c0_115, %c0_116] : memref<128x128xf32, #tpu.memory_space<vmem>>, vector<128x128xf32>
    %141 = arith.addf %140, %139 : vector<128x128xf32>
    %c0_117 = arith.constant 0 : index
    %c0_118 = arith.constant 0 : index
    %142 = vector.load %arg18[%c0_117, %c0_118] : memref<128x128xf32, #tpu.memory_space<vmem>>, vector<128x128xf32>
    tpu.vector_store %arg18[%c0_117, %c0_118], %141 {strides = array<i32>} : memref<128x128xf32, #tpu.memory_space<vmem>>, vector<128x128xf32>,
    %c0_119 = arith.constant 0 : index
    %c0_120 = arith.constant 0 : index
    %143 = vector.load %arg18[%c0_119, %c0_120] : memref<128x128xf32, #tpu.memory_space<vmem>>, vector<128x128xf32>
    %c0_121 = arith.constant 0 : index
    %c0_122 = arith.constant 0 : index
    %144 = vector.load %arg9[%c0_121, %c0_122] : memref<1x128xf32, #tpu.memory_space<vmem>>, vector<1x128xf32>
    %145 = vector.broadcast %144 : vector<1x128xf32> to vector<128x128xf32>
    %146 = arith.addf %143, %145 : vector<128x128xf32>
    %cst_123 = arith.constant 0.000000e+00 : f32
    %147 = vector.broadcast %cst_123 : f32 to vector<128x128xf32>
    %148 = arith.cmpf ogt, %146, %147 : vector<128x128xf32>
    %149 = vector.broadcast %87 : f32 to vector<128x128xf32>
    %150 = arith.mulf %149, %146 : vector<128x128xf32>
    %151 = arith.select %148, %146, %150 : vector<128x128xi1>, vector<128x128xf32>
    %152 = arith.truncf %151 : vector<128x128xf32> to vector<128x128xbf16>
    %c0_124 = arith.constant 0 : index
    %c256 = arith.constant 256 : index
    %153 = vector.load %arg19[%c0_124, %c256] : memref<128x512xbf16, #tpu.memory_space<vmem>>, vector<128x128xbf16>
    tpu.vector_store %arg19[%c0_124, %c256], %152 {strides = array<i32>} : memref<128x512xbf16, #tpu.memory_space<vmem>>, vector<128x128xbf16>,
    %c3 = arith.constant 3 : index
    %154 = memref.load %arg2[%c3] : memref<6xf32, #tpu.memory_space<smem>>
    %c0_i32_125 = arith.constant 0 : i32
    %155 = arith.addi %1, %c0_i32_125 : i32
    %c0_i32_126 = arith.constant 0 : i32
    %156 = arith.addi %155, %c0_i32_126 : i32
    %c0_127 = arith.constant 0 : index
    %157 = arith.index_cast %156 : i32 to index
    %c0_128 = arith.constant 0 : index
    %c0_129 = arith.constant 0 : index
    %158 = vector.load %arg3[%c0_127, %157, %c0_128, %c0_129] : memref<1x28x32x128xbf16, #tpu.memory_space<vmem>>, vector<1x8x16x128xbf16>
    %159 = vector.shape_cast %158 : vector<1x8x16x128xbf16> to vector<8x16x128xbf16>
    %c0_130 = arith.constant 0 : index
    %160 = arith.index_cast %156 : i32 to index
    %c6_131 = arith.constant 6 : index
    %c0_132 = arith.constant 0 : index
    %161 = vector.load %arg3[%c0_130, %160, %c6_131, %c0_132] : memref<1x28x32x128xbf16, #tpu.memory_space<vmem>>, vector<1x8x16x128xbf16>
    %162 = vector.shape_cast %161 : vector<1x8x16x128xbf16> to vector<8x16x128xbf16>
    %c0_133 = arith.constant 0 : index
    %163 = arith.index_cast %156 : i32 to index
    %c12 = arith.constant 12 : index
    %c0_134 = arith.constant 0 : index
    %164 = vector.load %arg3[%c0_133, %163, %c12, %c0_134] : memref<1x28x32x128xbf16, #tpu.memory_space<vmem>>, vector<1x8x16x128xbf16>
    %165 = vector.shape_cast %164 : vector<1x8x16x128xbf16> to vector<8x16x128xbf16>
    %166 = tpu.concatenate %159, %162, %165 in 2 : vector<8x16x128xbf16>, vector<8x16x128xbf16>, vector<8x16x128xbf16> -> vector<8x16x384xbf16>
    %167 = vector.shape_cast %166 : vector<8x16x384xbf16> to vector<128x384xbf16>
    %c0_135 = arith.constant 0 : index
    %c0_136 = arith.constant 0 : index
    %c0_137 = arith.constant 0 : index
    %168 = vector.load %arg10[%c0_135, %c0_136, %c0_137] : memref<3x384x128xbf16, #tpu.memory_space<vmem>>, vector<1x384x128xbf16>
    %169 = vector.shape_cast %168 : vector<1x384x128xbf16> to vector<384x128xbf16>
    %cst_138 = arith.constant dense<0.000000e+00> : vector<128x128xf32>
    %170 = tpu.matmul %167, %169, %cst_138 {dimension_numbers = #tpu.dot_dimension_numbers<[1], [0], [0], [1], [0, 0, 1, 1], [], []>} : vector<128x384xbf16>, vector<384x128xbf16>, vector<128x128xf32> -> vector<128x128xf32>
    %c0_139 = arith.constant 0 : index
    %c0_140 = arith.constant 0 : index
    %171 = vector.load %arg18[%c0_139, %c0_140] : memref<128x128xf32, #tpu.memory_space<vmem>>, vector<128x128xf32>
    tpu.vector_store %arg18[%c0_139, %c0_140], %170 {strides = array<i32>} : memref<128x128xf32, #tpu.memory_space<vmem>>, vector<128x128xf32>,
    %c0_i32_141 = arith.constant 0 : i32
    %172 = arith.addi %1, %c0_i32_141 : i32
    %c6_i32_142 = arith.constant 6 : i32
    %173 = arith.addi %172, %c6_i32_142 : i32
    %c0_143 = arith.constant 0 : index
    %174 = arith.index_cast %173 : i32 to index
    %c0_144 = arith.constant 0 : index
    %c0_145 = arith.constant 0 : index
    %175 = vector.load %arg3[%c0_143, %174, %c0_144, %c0_145] : memref<1x28x32x128xbf16, #tpu.memory_space<vmem>>, vector<1x8x16x128xbf16>
    %176 = vector.shape_cast %175 : vector<1x8x16x128xbf16> to vector<8x16x128xbf16>
    %c0_146 = arith.constant 0 : index
    %177 = arith.index_cast %173 : i32 to index
    %c6_147 = arith.constant 6 : index
    %c0_148 = arith.constant 0 : index
    %178 = vector.load %arg3[%c0_146, %177, %c6_147, %c0_148] : memref<1x28x32x128xbf16, #tpu.memory_space<vmem>>, vector<1x8x16x128xbf16>
    %179 = vector.shape_cast %178 : vector<1x8x16x128xbf16> to vector<8x16x128xbf16>
    %c0_149 = arith.constant 0 : index
    %180 = arith.index_cast %173 : i32 to index
    %c12_150 = arith.constant 12 : index
    %c0_151 = arith.constant 0 : index
    %181 = vector.load %arg3[%c0_149, %180, %c12_150, %c0_151] : memref<1x28x32x128xbf16, #tpu.memory_space<vmem>>, vector<1x8x16x128xbf16>
    %182 = vector.shape_cast %181 : vector<1x8x16x128xbf16> to vector<8x16x128xbf16>
    %183 = tpu.concatenate %176, %179, %182 in 2 : vector<8x16x128xbf16>, vector<8x16x128xbf16>, vector<8x16x128xbf16> -> vector<8x16x384xbf16>
    %184 = vector.shape_cast %183 : vector<8x16x384xbf16> to vector<128x384xbf16>
    %c1_152 = arith.constant 1 : index
    %c0_153 = arith.constant 0 : index
    %c0_154 = arith.constant 0 : index
    %185 = vector.load %arg10[%c1_152, %c0_153, %c0_154] : memref<3x384x128xbf16, #tpu.memory_space<vmem>>, vector<1x384x128xbf16>
    %186 = vector.shape_cast %185 : vector<1x384x128xbf16> to vector<384x128xbf16>
    %cst_155 = arith.constant dense<0.000000e+00> : vector<128x128xf32>
    %187 = tpu.matmul %184, %186, %cst_155 {dimension_numbers = #tpu.dot_dimension_numbers<[1], [0], [0], [1], [0, 0, 1, 1], [], []>} : vector<128x384xbf16>, vector<384x128xbf16>, vector<128x128xf32> -> vector<128x128xf32>
    %c0_156 = arith.constant 0 : index
    %c0_157 = arith.constant 0 : index
    %188 = vector.load %arg18[%c0_156, %c0_157] : memref<128x128xf32, #tpu.memory_space<vmem>>, vector<128x128xf32>
    %189 = arith.addf %188, %187 : vector<128x128xf32>
    %c0_158 = arith.constant 0 : index
    %c0_159 = arith.constant 0 : index
    %190 = vector.load %arg18[%c0_158, %c0_159] : memref<128x128xf32, #tpu.memory_space<vmem>>, vector<128x128xf32>
    tpu.vector_store %arg18[%c0_158, %c0_159], %189 {strides = array<i32>} : memref<128x128xf32, #tpu.memory_space<vmem>>, vector<128x128xf32>,
    %c0_i32_160 = arith.constant 0 : i32
    %191 = arith.addi %1, %c0_i32_160 : i32
    %c12_i32 = arith.constant 12 : i32
    %192 = arith.addi %191, %c12_i32 : i32
    %c0_161 = arith.constant 0 : index
    %193 = arith.index_cast %192 : i32 to index
    %c0_162 = arith.constant 0 : index
    %c0_163 = arith.constant 0 : index
    %194 = vector.load %arg3[%c0_161, %193, %c0_162, %c0_163] : memref<1x28x32x128xbf16, #tpu.memory_space<vmem>>, vector<1x8x16x128xbf16>
    %195 = vector.shape_cast %194 : vector<1x8x16x128xbf16> to vector<8x16x128xbf16>
    %c0_164 = arith.constant 0 : index
    %196 = arith.index_cast %192 : i32 to index
    %c6_165 = arith.constant 6 : index
    %c0_166 = arith.constant 0 : index
    %197 = vector.load %arg3[%c0_164, %196, %c6_165, %c0_166] : memref<1x28x32x128xbf16, #tpu.memory_space<vmem>>, vector<1x8x16x128xbf16>
    %198 = vector.shape_cast %197 : vector<1x8x16x128xbf16> to vector<8x16x128xbf16>
    %c0_167 = arith.constant 0 : index
    %199 = arith.index_cast %192 : i32 to index
    %c12_168 = arith.constant 12 : index
    %c0_169 = arith.constant 0 : index
    %200 = vector.load %arg3[%c0_167, %199, %c12_168, %c0_169] : memref<1x28x32x128xbf16, #tpu.memory_space<vmem>>, vector<1x8x16x128xbf16>
    %201 = vector.shape_cast %200 : vector<1x8x16x128xbf16> to vector<8x16x128xbf16>
    %202 = tpu.concatenate %195, %198, %201 in 2 : vector<8x16x128xbf16>, vector<8x16x128xbf16>, vector<8x16x128xbf16> -> vector<8x16x384xbf16>
    %203 = vector.shape_cast %202 : vector<8x16x384xbf16> to vector<128x384xbf16>
    %c2_170 = arith.constant 2 : index
    %c0_171 = arith.constant 0 : index
    %c0_172 = arith.constant 0 : index
    %204 = vector.load %arg10[%c2_170, %c0_171, %c0_172] : memref<3x384x128xbf16, #tpu.memory_space<vmem>>, vector<1x384x128xbf16>
    %205 = vector.shape_cast %204 : vector<1x384x128xbf16> to vector<384x128xbf16>
    %cst_173 = arith.constant dense<0.000000e+00> : vector<128x128xf32>
    %206 = tpu.matmul %203, %205, %cst_173 {dimension_numbers = #tpu.dot_dimension_numbers<[1], [0], [0], [1], [0, 0, 1, 1], [], []>} : vector<128x384xbf16>, vector<384x128xbf16>, vector<128x128xf32> -> vector<128x128xf32>
    %c0_174 = arith.constant 0 : index
    %c0_175 = arith.constant 0 : index
    %207 = vector.load %arg18[%c0_174, %c0_175] : memref<128x128xf32, #tpu.memory_space<vmem>>, vector<128x128xf32>
    %208 = arith.addf %207, %206 : vector<128x128xf32>
    %c0_176 = arith.constant 0 : index
    %c0_177 = arith.constant 0 : index
    %209 = vector.load %arg18[%c0_176, %c0_177] : memref<128x128xf32, #tpu.memory_space<vmem>>, vector<128x128xf32>
    tpu.vector_store %arg18[%c0_176, %c0_177], %208 {strides = array<i32>} : memref<128x128xf32, #tpu.memory_space<vmem>>, vector<128x128xf32>,
    %c0_178 = arith.constant 0 : index
    %c0_179 = arith.constant 0 : index
    %210 = vector.load %arg18[%c0_178, %c0_179] : memref<128x128xf32, #tpu.memory_space<vmem>>, vector<128x128xf32>
    %c0_180 = arith.constant 0 : index
    %c0_181 = arith.constant 0 : index
    %211 = vector.load %arg11[%c0_180, %c0_181] : memref<1x128xf32, #tpu.memory_space<vmem>>, vector<1x128xf32>
    %212 = vector.broadcast %211 : vector<1x128xf32> to vector<128x128xf32>
    %213 = arith.addf %210, %212 : vector<128x128xf32>
    %cst_182 = arith.constant 0.000000e+00 : f32
    %214 = vector.broadcast %cst_182 : f32 to vector<128x128xf32>
    %215 = arith.cmpf ogt, %213, %214 : vector<128x128xf32>
    %216 = vector.broadcast %154 : f32 to vector<128x128xf32>
    %217 = arith.mulf %216, %213 : vector<128x128xf32>
    %218 = arith.select %215, %213, %217 : vector<128x128xi1>, vector<128x128xf32>
    %219 = arith.truncf %218 : vector<128x128xf32> to vector<128x128xbf16>
    %c0_183 = arith.constant 0 : index
    %c384 = arith.constant 384 : index
    %220 = vector.load %arg19[%c0_183, %c384] : memref<128x512xbf16, #tpu.memory_space<vmem>>, vector<128x128xbf16>
    tpu.vector_store %arg19[%c0_183, %c384], %219 {strides = array<i32>} : memref<128x512xbf16, #tpu.memory_space<vmem>>, vector<128x128xbf16>,
    %c0_184 = arith.constant 0 : index
    %c6_185 = arith.constant 6 : index
    %c6_186 = arith.constant 6 : index
    %c0_187 = arith.constant 0 : index
    %221 = vector.load %arg3[%c0_184, %c6_185, %c6_186, %c0_187] : memref<1x28x32x128xbf16, #tpu.memory_space<vmem>>, vector<1x16x16x128xbf16>
    %222 = vector.shape_cast %221 : vector<1x16x16x128xbf16> to vector<16x16x128xbf16>
    %223 = vector.shape_cast %222 : vector<16x16x128xbf16> to vector<256x128xbf16>
    %224 = arith.extf %223 : vector<256x128xbf16> to vector<256x128xf32>
    %cst_188 = arith.constant dense<0.000000e+00> : vector<128xf32>
    %225 = vector.multi_reduction <add>, %224, %cst_188 [0] : vector<256x128xf32> to vector<128xf32>
    %226 = vector.shape_cast %225 : vector<128xf32> to vector<1x128xf32>
    %cst_189 = arith.constant 2.560000e+02 : f32
    %227 = vector.broadcast %cst_189 : f32 to vector<1x128xf32>
    %228 = arith.divf %226, %227 : vector<1x128xf32>
    %c0_190 = arith.constant 0 : index
    %c0_191 = arith.constant 0 : index
    %229 = vector.load %arg12[%c0_190, %c0_191] : memref<128x128xf32, #tpu.memory_space<vmem>>, vector<128x128xf32>
    %cst_192 = arith.constant dense<0.000000e+00> : vector<1x128xf32>
    %230 = tpu.matmul %228, %229, %cst_192 {dimension_numbers = #tpu.dot_dimension_numbers<[1], [0], [0], [1], [0, 0, 1, 1], [], []>} : vector<1x128xf32>, vector<128x128xf32>, vector<1x128xf32> -> vector<1x128xf32>
    %c0_193 = arith.constant 0 : index
    %c0_194 = arith.constant 0 : index
    %231 = vector.load %arg13[%c0_193, %c0_194] : memref<1x128xf32, #tpu.memory_space<vmem>>, vector<1x128xf32>
    %232 = arith.addf %230, %231 : vector<1x128xf32>
    %c4_195 = arith.constant 4 : index
    %233 = memref.load %arg2[%c4_195] : memref<6xf32, #tpu.memory_space<smem>>
    %cst_196 = arith.constant 0.000000e+00 : f32
    %234 = vector.broadcast %cst_196 : f32 to vector<1x128xf32>
    %235 = arith.cmpf ogt, %232, %234 : vector<1x128xf32>
    %236 = vector.broadcast %233 : f32 to vector<1x128xf32>
    %237 = arith.mulf %236, %232 : vector<1x128xf32>
    %238 = arith.select %235, %232, %237 : vector<1x128xi1>, vector<1x128xf32>
    %c0_197 = arith.constant 0 : index
    %c0_198 = arith.constant 0 : index
    %239 = vector.load %arg16[%c0_197, %c0_198] : memref<1x128xf32, #tpu.memory_space<vmem>>, vector<1x128xf32>
    %c0_199 = arith.constant 0 : index
    %c0_200 = arith.constant 0 : index
    %240 = vector.load %arg15[%c0_199, %c0_200] : memref<128x128xf32, #tpu.memory_space<vmem>>, vector<128x128xf32>
    %cst_201 = arith.constant dense<0.000000e+00> : vector<1x128xf32>
    %241 = tpu.matmul %238, %240, %cst_201 {dimension_numbers = #tpu.dot_dimension_numbers<[1], [0], [0], [1], [0, 0, 1, 1], [], []>} : vector<1x128xf32>, vector<128x128xf32>, vector<1x128xf32> -> vector<1x128xf32>
    %242 = arith.addf %239, %241 : vector<1x128xf32>
    %c0_202 = arith.constant 0 : index
    %c0_203 = arith.constant 0 : index
    %243 = vector.load %arg19[%c0_202, %c0_203] : memref<128x512xbf16, #tpu.memory_space<vmem>>, vector<128x512xbf16>
    %c0_204 = arith.constant 0 : index
    %c0_205 = arith.constant 0 : index
    %244 = vector.load %arg14[%c0_204, %c0_205] : memref<512x128xbf16, #tpu.memory_space<vmem>>, vector<512x128xbf16>
    %cst_206 = arith.constant dense<0.000000e+00> : vector<128x128xf32>
    %245 = tpu.matmul %243, %244, %cst_206 {dimension_numbers = #tpu.dot_dimension_numbers<[1], [0], [0], [1], [0, 0, 1, 1], [], []>} : vector<128x512xbf16>, vector<512x128xbf16>, vector<128x128xf32> -> vector<128x128xf32>
    %246 = vector.broadcast %242 : vector<1x128xf32> to vector<128x128xf32>
    %247 = arith.addf %245, %246 : vector<128x128xf32>
    %c5 = arith.constant 5 : index
    %248 = memref.load %arg2[%c5] : memref<6xf32, #tpu.memory_space<smem>>
    %cst_207 = arith.constant 0.000000e+00 : f32
    %249 = vector.broadcast %cst_207 : f32 to vector<128x128xf32>
    %250 = arith.cmpf ogt, %247, %249 : vector<128x128xf32>
    %251 = vector.broadcast %248 : f32 to vector<128x128xf32>
    %252 = arith.mulf %251, %247 : vector<128x128xf32>
    %253 = arith.select %250, %247, %252 : vector<128x128xi1>, vector<128x128xf32>
    %254 = vector.shape_cast %253 : vector<128x128xf32> to vector<8x16x128xf32>
    %c0_208 = arith.constant 0 : index
    %c0_209 = arith.constant 0 : index
    %c0_210 = arith.constant 0 : index
    %c0_211 = arith.constant 0 : index
    %255 = vector.load %arg17[%c0_208, %c0_209, %c0_210, %c0_211] : memref<1x8x16x128xf32, #tpu.memory_space<vmem>>, vector<1x8x16x128xf32>
    %256 = vector.shape_cast %255 : vector<1x8x16x128xf32> to vector<8x16x128xf32>
    %257 = vector.shape_cast %254 : vector<8x16x128xf32> to vector<1x8x16x128xf32>
    tpu.vector_store %arg17[%c0_208, %c0_209, %c0_210, %c0_211], %257 {strides = array<i32>} : memref<1x8x16x128xf32, #tpu.memory_space<vmem>>, vector<1x8x16x128xf32>,
    return
  }
  func.func @transform_0(%arg0: i32, %arg1: i32) -> i32 {
    %c0_i32 = arith.constant 0 : i32
    %c0_i32_0 = arith.constant 0 : i32
    return %c0_i32 : i32
  }
  func.func @transform_1(%arg0: i32, %arg1: i32) -> (i32, i32, i32, i32) {
    %c0_i32 = arith.constant 0 : i32
    %c0_i32_0 = arith.constant 0 : i32
    %c0_i32_1 = arith.constant 0 : i32
    %c0_i32_2 = arith.constant 0 : i32
    return %arg0, %c0_i32, %c0_i32_0, %c0_i32_1 : i32, i32, i32, i32
  }
  func.func @transform_2(%arg0: i32, %arg1: i32) -> (i32, i32) {
    %c0_i32 = arith.constant 0 : i32
    %c0_i32_0 = arith.constant 0 : i32
    %c0_i32_1 = arith.constant 0 : i32
    return %c0_i32, %c0_i32_0 : i32, i32
  }
  func.func @transform_3(%arg0: i32, %arg1: i32) -> (i32, i32) {
    %c0_i32 = arith.constant 0 : i32
    %c0_i32_0 = arith.constant 0 : i32
    %c0_i32_1 = arith.constant 0 : i32
    return %c0_i32, %c0_i32_0 : i32, i32
  }
  func.func @transform_4(%arg0: i32, %arg1: i32) -> (i32, i32, i32) {
    %c0_i32 = arith.constant 0 : i32
    %c0_i32_0 = arith.constant 0 : i32
    %c0_i32_1 = arith.constant 0 : i32
    %c0_i32_2 = arith.constant 0 : i32
    return %c0_i32, %c0_i32_0, %c0_i32_1 : i32, i32, i32
  }
  func.func @transform_5(%arg0: i32, %arg1: i32) -> (i32, i32) {
    %c0_i32 = arith.constant 0 : i32
    %c0_i32_0 = arith.constant 0 : i32
    %c0_i32_1 = arith.constant 0 : i32
    return %c0_i32, %c0_i32_0 : i32, i32
  }
  func.func @transform_6(%arg0: i32, %arg1: i32) -> (i32, i32, i32) {
    %c0_i32 = arith.constant 0 : i32
    %c0_i32_0 = arith.constant 0 : i32
    %c0_i32_1 = arith.constant 0 : i32
    %c0_i32_2 = arith.constant 0 : i32
    return %c0_i32, %c0_i32_0, %c0_i32_1 : i32, i32, i32
  }
  func.func @transform_7(%arg0: i32, %arg1: i32) -> (i32, i32) {
    %c0_i32 = arith.constant 0 : i32
    %c0_i32_0 = arith.constant 0 : i32
    %c0_i32_1 = arith.constant 0 : i32
    return %c0_i32, %c0_i32_0 : i32, i32
  }
  func.func @transform_8(%arg0: i32, %arg1: i32) -> (i32, i32, i32) {
    %c0_i32 = arith.constant 0 : i32
    %c0_i32_0 = arith.constant 0 : i32
    %c0_i32_1 = arith.constant 0 : i32
    %c0_i32_2 = arith.constant 0 : i32
    return %c0_i32, %c0_i32_0, %c0_i32_1 : i32, i32, i32
  }
  func.func @transform_9(%arg0: i32, %arg1: i32) -> (i32, i32) {
    %c0_i32 = arith.constant 0 : i32
    %c0_i32_0 = arith.constant 0 : i32
    %c0_i32_1 = arith.constant 0 : i32
    return %c0_i32, %c0_i32_0 : i32, i32
  }
  func.func @transform_10(%arg0: i32, %arg1: i32) -> (i32, i32) {
    %c0_i32 = arith.constant 0 : i32
    %c0_i32_0 = arith.constant 0 : i32
    %c0_i32_1 = arith.constant 0 : i32
    return %c0_i32, %c0_i32_0 : i32, i32
  }
  func.func @transform_11(%arg0: i32, %arg1: i32) -> (i32, i32) {
    %c0_i32 = arith.constant 0 : i32
    %c0_i32_0 = arith.constant 0 : i32
    %c0_i32_1 = arith.constant 0 : i32
    return %c0_i32, %c0_i32_0 : i32, i32
  }
  func.func @transform_12(%arg0: i32, %arg1: i32) -> (i32, i32) {
    %c0_i32 = arith.constant 0 : i32
    %c0_i32_0 = arith.constant 0 : i32
    %c0_i32_1 = arith.constant 0 : i32
    return %c0_i32, %c0_i32_0 : i32, i32
  }
  func.func @transform_13(%arg0: i32, %arg1: i32) -> (i32, i32) {
    %c0_i32 = arith.constant 0 : i32
    %c0_i32_0 = arith.constant 0 : i32
    %c0_i32_1 = arith.constant 0 : i32
    return %c0_i32, %c0_i32_0 : i32, i32
  }
  func.func @transform_14(%arg0: i32, %arg1: i32) -> (i32, i32) {
    %c0_i32 = arith.constant 0 : i32
    %c0_i32_0 = arith.constant 0 : i32
    %c0_i32_1 = arith.constant 0 : i32
    return %c0_i32, %c0_i32_0 : i32, i32
  }
  func.func @transform_15(%arg0: i32, %arg1: i32) -> (i32, i32, i32, i32) {
    %c0_i32 = arith.constant 0 : i32
    %c0_i32_0 = arith.constant 0 : i32
    %c0_i32_1 = arith.constant 0 : i32
    return %arg0, %arg1, %c0_i32, %c0_i32_0 : i32, i32, i32, i32
  }
}

</mosaic_0001>

<bundles_post_ra>
// kernel: aspp_forward.1
= control target key start
LH: loop header
LB: loop body
LE: loop exit
PB: predicated region body
PF: predicated region fallthrough
CT: control target
= control target key end

     0   :  { %s16670_s0 = inlined_call_operand.vmem [shape: f32[6], index: 0, kind: input, shape index: {}]   ;;  %s16671_s1 = inlined_call_operand.vmem [shape: bf16[2,28,32,128], index: 1, kind: input, shape index: {}]   ;;  %s16672_s2 = inlined_call_operand.vmem [shape: bf16[128,128], index: 2, kind: input, shape index: {}]   ;;  %s16673_s3 = inlined_call_operand.vmem [shape: f32[1,128], index: 3, kind: input, shape index: {}]   ;;  %s16674_s4 = inlined_call_operand.vmem [shape: bf16[3,384,128], index: 4, kind: input, shape index: {}]   ;;  %s16675_s5 = inlined_call_operand.vmem [shape: f32[1,128], index: 5, kind: input, shape index: {}]   ;;  %s16676_s6 = inlined_call_operand.vmem [shape: bf16[3,384,128], index: 6, kind: input, shape index: {}]   ;;  %s16677_s7 = inlined_call_operand.vmem [shape: f32[1,128], index: 7, kind: input, shape index: {}]   ;;  %s16678_s8 = inlined_call_operand.vmem [shape: bf16[3,384,128], index: 8, kind: input, shape index: {}]   ;;  %s16679_s9 = inlined_call_operand.vmem [shape: f32[1,128], index: 9, kind: input, shape index: {}]   ;;  %s16680_s10 = inlined_call_operand.vmem [shape: f32[128,128], index: 10, kind: input, shape index: {}]   ;;  %s16681_s11 = inlined_call_operand.vmem [shape: f32[1,128], index: 11, kind: input, shape index: {}]   ;;  %s16682_s12 = inlined_call_operand.vmem [shape: bf16[512,128], index: 12, kind: input, shape index: {}]   ;;  %s16683_s13 = inlined_call_operand.vmem [shape: f32[128,128], index: 13, kind: input, shape index: {}]   ;;  %s16684_s14 = inlined_call_operand.vmem [shape: f32[1,128], index: 14, kind: input, shape index: {}]   ;;  %s16685_s15 = inlined_call_operand.vmem [shape: f32[2,16,16,128], index: 15, kind: output, shape index: {}]  }
   0x1   :  { %16741 = sst [smem:[#allocation90_spill]] %s16670_s0 }
   0x2   :  { %20 = vsyncpa [#allocation5], 0  ;;  %s13043_s18 = smov 0   ;;  %s13045_s19 = smov 0  }
   0x3   :  { %s13047_s20 = smov 0   ;;  %s13049_s21 = smov 0  }
   0x4   :  { %s13051_s22 = smov 0  }
   0x5 LB: > { %s9076_s23 = sadd.s32 4294967295, %s12957_s22   ;;  %s35_s24 = sadd.s32 1, %s12949_s20  ;;  %s12957_s22 = sphi %s13051_s22, %s26_s22   ;;  %s12953_s21 = sphi %s13049_s21, %s17016_s21   ;;  %s12949_s20 = sphi %s13047_s20, %s17015_s20   ;;  %s12945_s19 = sphi %s13045_s19, %s17014_s19   ;;  %s12941_s18 = sphi %s13043_s18, %s17013_s18  }
   0x6   : > { %p36_p0 = scmp.ge.s32.totalorder %s35_s24, 2  ;;  %s38_s25 = sadd.s32 1, %s12953_s21 }
   0x7   : > { %p9078_p1 = scmp.ge.s32.totalorder %s12957_s22, 1  ;;  %p391_p2 = scmp.lt.s32.totalorder %s12957_s22, 5 }
   0x8   : > { %s17018_s24 = smov (%p36_p0, %s35_s24), 0  ;;  %s17020_s25 = smov (!%p36_p0, %s38_s25), %s12953_s21 }
   0x9   : > { %16742 = sst [smem:[#allocation7_spill]] %s17018_s24  ;;  %p13076_p3 = pnand %p9078_p1, %p391_p2 }
   0xa   : > { %p40_p4 = scmp.ge.s32.totalorder %s17020_s25, 2  ;;  %p13080_p5 = scmp.eq.s32.totalorder %s9076_s23, 0 }
   0xb   : > { %p12207_p6 = pneg %p13076_p3  ;;  %s16745_s0 = sld [smem:[#allocation90_spill]] }
   0xc   : > { %s17022_s25 = smov (%p40_p4, %s17020_s25), 0 }
   0xd   : > { %16746 = sst [smem:[#allocation8_spill]] %s17022_s25  ;;  %p12208_p7 = pnand %p13080_p5, %p12207_p6 }
   0xf   : > { %p12902_p9 = pneg %p12208_p7 }
  0x11   : > { %s404_s30 = sshll.u32 %s16745_s0, 4  ;;  %s405_s30 = int_to_ptr.vmem [resolvable:$true] %s404_s30 }
  0x12   : > { %s12900_s16 = scalar_lea.vmem %s405_s30, 16  ;;  %p12908_p12 = scmp.lt.s32.totalorder %s405_s30, %s405_s30 }
  0x13   : > { %p12901_p8 = scmp.ne.s32.totalorder %s405_s30, %s12900_s16  ;;  %p12909_p13 = scmp.lt.s32.totalorder %s12900_s16, %s12900_s16 }
  0x15   : > { %p12903_p10 = pnand %p12902_p9, %p12901_p8  ;;  %p12910_p0 = por %p12909_p13, %p12908_p12 }
  0x17   : > { %p12904_p11 = pneg %p12903_p10 }
  0x19   : > { %p12911_p1 = pnand %p12910_p0, %p12904_p11 }
  0x1b   : > { %12914 = shalt.err (!%p12911_p1)
}
  0x1c   : > { %s12959_s17 = smov [#allocation4]   ;;  %464 = sbr.rel (%p13076_p3) target bundleno = 1177 (0x499), region = 80 }
  0x1d   : > { %12210 = dma.vmem_to_smem (!%p12208_p7), %s405_s30, 16, %s12959_s17, [#allocation5]  }
  0x23   : > { %12936 = dma.done.wait (%p13080_p5), [#allocation5], 16  }
  0x24   : > { %12938 = vsyncadd (%p13080_p5), [#allocation5], 4294967280 }
  0x25   : > { %470 = sfence }
  0x26   : > { %v12257_v0 = vld [vmem:[%s16672_s2] sm:$0xff]   ;;  %v12260_v3 = vld [vmem:[%s16672_s2 + $0x8] sm:$0xff]   ;;  %v12263_v6 = vld [vmem:[%s16672_s2 + $0x10] sm:$0xff]   ;;  %p518_p2 = scmp.lt.s32.totalorder %s12945_s19, 1  ;;  %s10618_s24 = sshll.u32 %s12941_s18, 7  ;;  %vm588_vm0 = vcmask 1040384  }
  0x27   : > { %v12258_v1 = vld [vmem:[%s16674_s4 + $0x40] sm:$0xff]   ;;  %11524 = vmatprep.subr.bf16.mxu0 %v12257_v0  ;;  %v12261_v4 = vld [vmem:[%s16674_s4 + $0x48] sm:$0xff]   ;;  %v12264_v7 = vld [vmem:[%s16674_s4 + $0x50] sm:$0xff]   ;;  %vm589_vm1 = vcmask 1044484   ;;  %vm1078_vm2 = vcmask 1046528   ;;  %vm1135_vm3 = vcmask 1045504  }
  0x28   : > { %v12259_v2 = vld [vmem:[%s16674_s4] sm:$0xff]   ;;  %10642 = vmatprep.subr.bf16.mxu1 %v12258_v1  ;;  %11525 = vmatpush3.bf16.msra.mxu0 %v12257_v0  ;;  %v12262_v5 = vld [vmem:[%s16674_s4 + $0x8] sm:$0xff]   ;;  %v12265_v8 = vld [vmem:[%s16674_s4 + $0x10] sm:$0xff]   ;;  %s17024_s19 = smov (!%p518_p2, %s12945_s19), 1  ;;  %v16747_v26 = vmov 0  ;;  %s847_s27 = sld [smem:[#allocation4]] }
  0x29   : > { %10643 = vmatpush3.bf16.msra.mxu1 %v12259_v2  ;;  %11526 = vmatprep.subr.bf16.mxu0 %v12260_v3  ;;  %v12266_v9 = vld [vmem:[%s16672_s2 + $0x18] sm:$0xff]   ;;  %v12269_v12 = vld [vmem:[%s16672_s2 + $0x20] sm:$0xff]   ;;  %s12202_s0 = smul.u32 448, %s17024_s19  ;;  %v12272_v15 = vld [vmem:[%s16672_s2 + $0x28] sm:$0xff]   ;;  %vm5833_vm9 = vcmask 1044480   ;;  %s16001_s17 = sld [smem:[#allocation4 + $0x2]] }
  0x2a   : > { %10644 = vmatprep.subr.bf16.mxu1 %v12261_v4  ;;  %v12267_v10 = vld [vmem:[%s16674_s4 + $0x58] sm:$0xff]   ;;  %v12270_v13 = vld [vmem:[%s16674_s4 + $0x60] sm:$0xff]   ;;  %v12273_v16 = vld [vmem:[%s16674_s4 + $0x68] sm:$0xff]   ;;  %s10615_s30 = sld [smem:[#allocation4 + $0x5]] }
  0x2b   : > { %v12268_v11 = vld [vmem:[%s16674_s4 + $0x18] sm:$0xff]   ;;  %v12271_v14 = vld [vmem:[%s16674_s4 + $0x20] sm:$0xff]   ;;  %s13158_s29 = scalar_lea.vmem %s16671_s1, %s12202_s0  ;;  %v12274_v17 = vld [vmem:[%s16674_s4 + $0x28] sm:$0xff]   ;;  %s10582_s0 = sld [smem:[#allocation4 + $0x4]] }
  0x2c   : > { %11527 = vmatpush3.bf16.msra.mxu0 %v12260_v3  ;;  %v12275_v18 = vld [vmem:[%s16672_s2 + $0x30] sm:$0xff]   ;;  %s13171_s25 = scalar_lea.vmem %s13158_s29, %s10618_s24  ;;  %v12278_v21 = vld [vmem:[%s16672_s2 + $0x38] sm:$0xff]   ;;  %vm13186_vm4 = vmor %vm588_vm0, %vm589_vm1  ;;  %s14856_s24 = sld [smem:[#allocation4 + $0x1]] }
  0x2d   : > { %10645 = vmatpush3.bf16.msra.mxu1 %v12262_v5  ;;  %11528 = vmatprep.subr.bf16.mxu0 %v12263_v6  ;;  %v12276_v19 = vld [vmem:[%s16674_s4 + $0x70] sm:$0xff]   ;;  %v9091_v22 = vld [vmem:[%s13171_s25 + $0x60] sm:$0x8]  ;;  %v9092_v23 = vld [vmem:[%s13171_s25 + $0x64] sm:$0xf]  ;;  %v16748_v26 = vsel %vm13186_vm4, 4294967295, %v16747_v26 }
  0x2e   : > { %10646 = vmatprep.subr.bf16.mxu1 %v12264_v7  ;;  %v12277_v20 = vld [vmem:[%s16674_s4 + $0x30] sm:$0xff]   ;;  %v9093_v24 = vld [vmem:[%s13171_s25 + $0x68] sm:$0x7]  ;;  %v12279_v25 = vld [vmem:[%s16674_s4 + $0x78] sm:$0xff]   ;;  %16749 = vst [vmem:[#allocation9_spill] sm:$0xff] %v16748_v26  ;;  %v9115_v27 = vrot.slane %v9091_v22, 11 }
  0x2f   : > { %v593_v28 = vrot.slane %v9092_v23, 7  ;;  %v596_v29 = vrot.slane %v9093_v24, 7  ;;  %v13191_v30 = vld [vmem:[%s13171_s25 + $0x44] sm:$0xf]  ;;  %v12280_v31 = vld [vmem:[%s16674_s4 + $0x38] sm:$0xff]   ;;  %v12288_v61 = vld [vmem:[%s16674_s4 + $0x88] sm:$0xff]  }
  0x30   : > { %11529 = vmatpush3.bf16.msra.mxu0 %v12263_v6  ;;  %v9167_v32 = vld [vmem:[%s13171_s25 + $0x40] sm:$0x8]  ;;  %v9094_v33 = vld [vmem:[%s13171_s25 + $0x70] sm:$0x8]  ;;  %v9095_v38 = vld [vmem:[%s13171_s25 + $0x74] sm:$0xf] }
  0x31   : > { %10647 = vmatpush3.bf16.msra.mxu1 %v12265_v8  ;;  %11530 = vmatprep.subr.bf16.mxu0 %v12266_v9  ;;  %v594_v34 = vsel %vm13186_vm4, %v9115_v27, %v593_v28  ;;  %v595_v35 = vrot.slane %v593_v28, 4  ;;  %v9207_v36 = vcombine.low %v9167_v32, %v13191_v30  ;;  %v12282_v37 = vld [vmem:[%s13171_s25 + $0x48] ss:$0 sps:$4 sm:$0x77]   ;;  %v12285_v39 = vld [vmem:[%s16674_s4 + $0x80] sm:$0xff]   ;;  %v9116_v41 = vrot.slane %v9094_v33, 11 }
  0x32   : > { %10648 = vmatprep.subr.bf16.mxu1 %v12267_v10  ;;  %v9096_v40 = vld [vmem:[%s13171_s25 + $0x78] sm:$0x7]  ;;  %v600_v42 = vrot.slane %v9095_v38, 7  ;;  %v9143_v43 = vld [vmem:[%s13171_s25 + $0x40] sm:$0xc]  ;;  %v1080_v46 = vrot.slane %v12282_v37, 1 }
  0x33   : > { %v597_v44 = vsel %vm13186_vm4, %v595_v35, %v596_v29  ;;  %v1079_v45 = vrot.slane %v9207_v36, 1  ;;  %v603_v47 = vrot.slane %v9096_v40, 7  ;;  %v12286_v48 = vld [vmem:[%s16674_s4 + $0x1c0] sm:$0xff]   ;;  %v9191_v52 = vcombine.low %v9143_v43, %v13191_v30  ;;  %v12284_v53 = vld [vmem:[%s13171_s25 + $0x48] ss:$0 sps:$4 sm:$0x33]  }
  0x34   : > { %11531 = vmatpush3.bf16.msra.mxu0 %v12266_v9  ;;  %v9124_v49 = vcombine.low %v594_v34, %v597_v44  ;;  %v601_v50 = vsel %vm13186_vm4, %v9116_v41, %v600_v42  ;;  %v602_v51 = vrot.slane %v600_v42, 4  ;;  %v1140_v55 = vrot.slane %v1080_v46, 2  ;;  %v12287_v56 = vld [vmem:[%s16674_s4 + $0x180] sm:$0xff]   ;;  %v9099_v3 = vld [vmem:[%s13171_s25 + $0x88] sm:$0x7]  ;;  %v12293_v9 = vld [vmem:[%s16674_s4 + $0x90] sm:$0xff]  }
  0x35   : > { %10649 = vmatpush3.bf16.msra.mxu1 %v12268_v11  ;;  %11532 = vmatprep.subr.bf16.mxu0 %v12269_v12  ;;  %v1081_v54 = vsel %vm1078_vm2, %v1079_v45, %v1080_v46  ;;  %v1136_v59 = vrot.slane %v9191_v52, 2  ;;  %v1137_v60 = vrot.slane %v12284_v53, 2  ;;  %v9097_v1 = vld [vmem:[%s13171_s25 + $0x80] sm:$0x8]  ;;  %v9098_v2 = vld [vmem:[%s13171_s25 + $0x84] sm:$0xf] }
  0x36   : > { %10650 = vmatprep.subr.bf16.mxu1 %v12270_v13  ;;  %11540 = vmatprep.mubr.bf16.mxu0 %v9124_v49  ;;  %v1139_v57 = vrot.slane %v1081_v54, 2  ;;  %v604_v58 = vsel %vm13186_vm4, %v602_v51, %v603_v47  ;;  %v9117_v4 = vrot.slane %v9097_v1, 11  ;;  %v607_v5 = vrot.slane %v9098_v2, 7  ;;  %v13232_v6 = vld [vmem:[%s13171_s25 + $0x54] sm:$0xf]  ;;  %v12295_v24 = vld [vmem:[%s16674_s4 + $0x188] sm:$0xff]  }
  0x37   : > { %v9125_v62 = vcombine.low %v601_v50, %v604_v58  ;;  %v1138_v0 = vsel %vm1135_vm3, %v1136_v59, %v1137_v60  ;;  %v610_v7 = vrot.slane %v9099_v3, 7  ;;  %v9169_v8 = vld [vmem:[%s13171_s25 + $0x50] sm:$0x8]  ;;  %v12290_v13 = vld [vmem:[%s13171_s25 + $0x58] ss:$0 sps:$4 sm:$0x77]  }
  0x38   : > { %11533 = vmatpush3.bf16.msra.mxu0 %v12269_v12  ;;  %v1141_v63 = vsel %vm1135_vm3, %v1139_v57, %v1140_v55  ;;  %v608_v10 = vsel %vm13186_vm4, %v9117_v4, %v607_v5  ;;  %v609_v11 = vrot.slane %v607_v5, 4  ;;  %v9209_v12 = vcombine.low %v9169_v8, %v13232_v6  ;;  %v9146_v23 = vld [vmem:[%s13171_s25 + $0x50] sm:$0xc]  ;;  %v12292_v29 = vld [vmem:[%s13171_s25 + $0x58] ss:$0 sps:$4 sm:$0x33]  }
  0x39   : > { %10651 = vmatpush3.bf16.msra.mxu1 %v12271_v14  ;;  %11534 = vmatprep.subr.bf16.mxu0 %v12272_v15  ;;  %v9100_v14 = vld [vmem:[%s13171_s25 + $0x90] sm:$0x8]  ;;  %v9193_v28 = vcombine.low %v9146_v23, %v13232_v6  ;;  %v1145_v37 = vrot.slane %v12292_v29, 2  ;;  %v12296_v38 = vld [vmem:[%s16674_s4 + $0x98] sm:$0xff]   ;;  %v9103_v43 = vld [vmem:[%s13171_s25 + $0xa0] sm:$0x8] }
  0x3a   : > { %10652 = vmatprep.subr.bf16.mxu1 %v12273_v16  ;;  %1448 = vmatprep.mubr.bf16.mxu1 %v1141_v63  ;;  %v9102_v16 = vld [vmem:[%s13171_s25 + $0x98] sm:$0x7]  ;;  %v9104_v44 = vld [vmem:[%s13171_s25 + $0xa4] sm:$0xf]  ;;  %v9105_v45 = vld [vmem:[%s13171_s25 + $0xa8] sm:$0x7] }
  0x3b   : > { %v617_v27 = vrot.slane %v9102_v16, 7  ;;  %v1144_v36 = vrot.slane %v9193_v28, 2  ;;  %v9119_v46 = vrot.slane %v9103_v43, 11  ;;  %v12301_v47 = vld [vmem:[%s16674_s4 + $0xa0] sm:$0xff]   ;;  %v624_v49 = vrot.slane %v9105_v45, 7  ;;  %v12302_v54 = vld [vmem:[%s16674_s4 + $0x1d0] sm:$0xff]  }
  0x3c   : > { %11535 = vmatpush3.bf16.msra.mxu0 %v12272_v15  ;;  %v9101_v15 = vld [vmem:[%s13171_s25 + $0x94] sm:$0xf]  ;;  %v13273_v50 = vld [vmem:[%s13171_s25 + $0x64] sm:$0xf]  ;;  %v9171_v51 = vld [vmem:[%s13171_s25 + $0x60] sm:$0x8] }
  0x3d   : > { %10653 = vmatpush3.bf16.msra.mxu1 %v12274_v17  ;;  %11536 = vmatprep.subr.bf16.mxu0 %v12275_v18  ;;  %v9118_v17 = vrot.slane %v9100_v14, 11  ;;  %v614_v22 = vrot.slane %v9101_v15, 7  ;;  %v1146_v42 = vsel %vm1135_vm3, %v1144_v36, %v1145_v37  ;;  %v9211_v52 = vcombine.low %v9171_v51, %v13273_v50  ;;  %v12298_v53 = vld [vmem:[%s13171_s25 + $0x68] ss:$0 sps:$4 sm:$0x77]   ;;  %v12303_v59 = vld [vmem:[%s16674_s4 + $0x190] sm:$0xff]  }
  0x3e   : > { %10654 = vmatprep.subr.bf16.mxu1 %v12276_v19  ;;  %v611_v19 = vsel %vm13186_vm4, %v609_v11, %v610_v7  ;;  %v9106_v57 = vld [vmem:[%s13171_s25 + $0xb0] sm:$0x8]  ;;  %v9107_v58 = vld [vmem:[%s13171_s25 + $0xb4] sm:$0xf]  ;;  %v9149_v3 = vld [vmem:[%s13171_s25 + $0x60] sm:$0xc] }
  0x3f   : > { %v615_v33 = vsel %vm13186_vm4, %v9118_v17, %v614_v22  ;;  %v616_v34 = vrot.slane %v614_v22, 4  ;;  %v1085_v60 = vrot.slane %v9211_v52, 1  ;;  %v9120_v63 = vrot.slane %v9106_v57, 11  ;;  %v12304_v4 = vld [vmem:[%s16674_s4 + $0xa8] sm:$0xff]   ;;  %v12309_v15 = vld [vmem:[%s16674_s4 + $0xb0] sm:$0xff]  }
  0x40   : > { %11537 = vmatpush3.bf16.msra.mxu0 %v12275_v18  ;;  %v12294_v18 = vld [vmem:[%s16674_s4 + $0x1c8] sm:$0xff]   ;;  %v9110_v22 = vld [vmem:[%s13171_s25 + $0xc4] sm:$0xf]  ;;  %v13314_v28 = vld [vmem:[%s13171_s25 + $0x74] sm:$0xf] }
  0x41   : > { %10655 = vmatpush3.bf16.msra.mxu1 %v12277_v20  ;;  %11538 = vmatprep.subr.bf16.mxu0 %v12278_v21  ;;  %v1082_v20 = vrot.slane %v9209_v12, 1  ;;  %v12306_v36 = vld [vmem:[%s13171_s25 + $0x78] ss:$0 sps:$4 sm:$0x77]   ;;  %v9112_v37 = vld [vmem:[%s13171_s25 + $0xd0] sm:$0x8] }
  0x42   : > { %10656 = vmatprep.subr.bf16.mxu1 %v12279_v25  ;;  %v9126_v25 = vcombine.low %v608_v10, %v611_v19  ;;  %v12310_v19 = vld [vmem:[%s16674_s4 + $0x1d8] sm:$0xff]  }
  0x43   : > { %v12308_v52 = vld [vmem:[%s13171_s25 + $0x78] ss:$0 sps:$4 sm:$0x33]  }
  0x44   : > { %11539 = vmatpush3.bf16.msra.mxu0 %v12278_v21  ;;  %v1083_v21 = vrot.slane %v12290_v13, 1  ;;  %v9195_v13 = vcombine.low %v9149_v3, %v13273_v50  ;;  %v9183_v3 = vld [vmem:[%s13171_s25 + $0x48] sm:$0xf] }
  0x45   : > { %10657 = vmatpush3.bf16.msra.mxu1 %v12280_v31  ;;  %11556 = vmatprep.subr.bf16.mxu0 %v12285_v39 }
  0x46   : > { %10802 = vmatprep.subr.bf16.mxu1 %v12286_v48  ;;  %v1084_v31 = vsel %vm1078_vm2, %v1082_v20, %v1083_v21  ;;  %v1148_v32 = vrot.slane %v1083_v21, 2  ;;  %v621_v48 = vrot.slane %v9104_v44, 7  ;;  %v9109_v21 = vld [vmem:[%s13171_s25 + $0xc0] sm:$0x8]  ;;  %v1089_v44 = vrot.slane %v12306_v36, 1 }
  0x47   : > { %11541 = vmatmul.mubr.bf16.vlgmr.msra.gmra.mrb[0].mxu0 %v9125_v62  ;;  %v1147_v35 = vrot.slane %v1084_v31, 2  ;;  %v9108_v62 = vld [vmem:[%s13171_s25 + $0xb8] sm:$0x7]  ;;  %v9173_v31 = vld [vmem:[%s13171_s25 + $0x70] sm:$0x8] }
  0x48   : > { %1449 = vmatmul.mubr.bf16.vlgmr.msra.gmra.mrb[0].mxu1 %v1138_v0  ;;  %11557 = vmatpush3.bf16.msra.mxu0 %v12285_v39  ;;  %v618_v39 = vsel %vm13186_vm4, %v616_v34, %v617_v27  ;;  %v622_v55 = vsel %vm13186_vm4, %v9119_v46, %v621_v48  ;;  %v628_v0 = vrot.slane %v9107_v58, 7  ;;  %v631_v2 = vrot.slane %v9108_v62, 7  ;;  %v9152_v46 = vld [vmem:[%s13171_s25 + $0x70] sm:$0xc] }
  0x49   : > { %10803 = vmatpush3.bf16.msra.mxu1 %v12287_v56  ;;  %11558 = vmatprep.subr.bf16.mxu0 %v12288_v61  ;;  %v1149_v40 = vsel %vm1135_vm3, %v1147_v35, %v1148_v32  ;;  %v9127_v41 = vcombine.low %v615_v33, %v618_v39  ;;  %v623_v56 = vrot.slane %v621_v48, 4  ;;  %v635_v27 = vrot.slane %v9110_v22, 7  ;;  %v12311_v32 = vld [vmem:[%s16674_s4 + $0x198] sm:$0xff]  }
  0x4a   : > { %10804 = vmatprep.subr.bf16.mxu1 %v12294_v18  ;;  %11544 = vmatprep.mubr.bf16.mxu0 %v9126_v25  ;;  %v629_v11 = vsel %vm13186_vm4, %v9120_v63, %v628_v0  ;;  %v630_v12 = vrot.slane %v628_v0, 4  ;;  %v1152_v18 = vrot.slane %v9195_v13, 2  ;;  %v9121_v25 = vrot.slane %v9109_v21, 11  ;;  %v9114_v39 = vld [vmem:[%s13171_s25 + $0xd8] sm:$0x7]  ;;  %v12323_v21 = vld [vmem:[%s16674_s4 + $0x108] sm:$0xff]  }
  0x4b   : > { %1456 = vmatprep.mubr.bf16.mxu1 %v1149_v40  ;;  %v625_v1 = vsel %vm13186_vm4, %v623_v56, %v624_v49  ;;  %v637_v34 = vrot.slane %v635_v27, 4  ;;  %v9213_v35 = vcombine.low %v9173_v31, %v13314_v28  ;;  %v9122_v40 = vrot.slane %v9112_v37, 11  ;;  %v12326_v31 = vld [vmem:[%s13171_s25 + $0x98] ss:$0 sps:$4 sm:$0x77]   ;;  %v12332_v37 = vld [vmem:[%s16674_s4 + $0x1e8] sm:$0xff]  }
  0x4c   : > { %11559 = vmatpush3.bf16.msra.mxu0 %v12288_v61  ;;  %v1086_v61 = vrot.slane %v12298_v53, 1  ;;  %v9128_v5 = vcombine.low %v622_v55, %v625_v1  ;;  %v632_v17 = vsel %vm13186_vm4, %v630_v12, %v631_v2  ;;  %v636_v33 = vsel %vm13186_vm4, %v9121_v25, %v635_v27  ;;  %v13349_v1 = vld [vmem:[%s13171_s25 + $0x84] sm:$0xf]  ;;  %v9175_v2 = vld [vmem:[%s13171_s25 + $0x80] sm:$0x8] }
  0x4d   : > { %11560 = vmatprep.subr.bf16.mxu0 %v12293_v9  ;;  %10805 = vmatpush3.bf16.msra.mxu1 %v12295_v24  ;;  %v9129_v20 = vcombine.low %v629_v11, %v632_v17  ;;  %v9111_v24 = vld [vmem:[%s13171_s25 + $0xc8] sm:$0x7]  ;;  %v1088_v43 = vrot.slane %v9213_v35, 1  ;;  %v645_v49 = vrot.slane %v9114_v39, 7  ;;  %v9197_v51 = vcombine.low %v9152_v46, %v13314_v28  ;;  %v12322_v11 = vld [vmem:[%s16674_s4 + $0x1a0] sm:$0xff]  }
  0x4e   : > { %10806 = vmatprep.subr.bf16.mxu1 %v12302_v54  ;;  %v1087_v7 = vsel %vm1078_vm2, %v1085_v60, %v1086_v61  ;;  %v1156_v8 = vrot.slane %v1086_v61, 2  ;;  %v638_v29 = vrot.slane %v9111_v24, 7  ;;  %v1164_v54 = vrot.slane %v1089_v44, 2  ;;  %v12320_v60 = vld [vmem:[%s16674_s4 + $0x1e0] sm:$0xff]   ;;  %v12324_v24 = vld [vmem:[%s16674_s4 + $0xc8] sm:$0xff]  }
  0x4f   : > { %11545 = vmatmul.mubr.bf16.gmra.mrb[4].mxu0 %v9127_v41  ;;  %v1155_v10 = vrot.slane %v1087_v7, 2  ;;  %v12312_v41 = vld [vmem:[%s16674_s4 + $0xb8] sm:$0xff]   ;;  %v1090_v53 = vsel %vm1078_vm2, %v1088_v43, %v1089_v44  ;;  %v1160_v58 = vrot.slane %v9197_v51, 2  ;;  %v9223_v7 = vcombine.low %v13191_v30, %v9183_v3  ;;  %v9177_v25 = vld [vmem:[%s13171_s25 + $0x90] sm:$0x8] }
  0x50   : > { %11561 = vmatpush3.bf16.msra.mxu0 %v12293_v9  ;;  %1457 = vmatmul.mubr.bf16.gmra.mrb[4].mxu1 %v1146_v42  ;;  %v12300_v9 = vld [vmem:[%s13171_s25 + $0x68] ss:$0 sps:$4 sm:$0x33]   ;;  %v639_v42 = vsel %vm13186_vm4, %v637_v34, %v638_v29  ;;  %v1163_v57 = vrot.slane %v1090_v53, 2  ;;  %v12331_v34 = vld [vmem:[%s16674_s4 + $0x110] sm:$0xff]   ;;  %v1095_v39 = vrot.slane %v12326_v31, 1 }
  0x51   : > { %11562 = vmatprep.subr.bf16.mxu0 %v12296_v38  ;;  %10807 = vmatpush3.bf16.msra.mxu1 %v12303_v59  ;;  %v1153_v14 = vrot.slane %v12300_v9, 2  ;;  %v1157_v16 = vsel %vm1135_vm3, %v1155_v10, %v1156_v8  ;;  %v9130_v48 = vcombine.low %v636_v33, %v639_v42  ;;  %v1161_v59 = vrot.slane %v12308_v52, 2  ;;  %v9155_v8 = vld [vmem:[%s13171_s25 + $0x80] sm:$0xc]  ;;  %v9185_v27 = vld [vmem:[%s13171_s25 + $0x68] sm:$0xf] }
  0x52   : > { %11548 = vmatprep.mubr.bf16.mxu0 %v9128_v5  ;;  %1464 = vmatprep.mubr.bf16.mxu1 %v1157_v16  ;;  %v1165_v62 = vsel %vm1135_vm3, %v1163_v57, %v1164_v54  ;;  %v12314_v5 = vld [vmem:[%s13171_s25 + $0x88] ss:$0 sps:$4 sm:$0x77]   ;;  %v9199_v9 = vcombine.low %v9155_v8, %v13349_v1  ;;  %v9158_v33 = vld [vmem:[%s13171_s25 + $0x90] sm:$0xc]  ;;  %v1180_v44 = vrot.slane %v1095_v39, 2 }
  0x53   : > { %v1154_v23 = vsel %vm1135_vm3, %v1152_v18, %v1153_v14  ;;  %10808 = vmatprep.subr.bf16.mxu1 %v12310_v19  ;;  %v1162_v0 = vsel %vm1135_vm3, %v1160_v58, %v1161_v59  ;;  %v12317_v10 = vld [vmem:[%s13171_s25 + $0x88] ss:$0 sps:$4 sm:$0x33]   ;;  %v1092_v13 = vrot.slane %v12314_v5, 1  ;;  %v9184_v14 = vld [vmem:[%s13171_s25 + $0x58] sm:$0xf] }
  0x54   : > { %11563 = vmatpush3.bf16.msra.mxu0 %v12296_v38  ;;  %v9113_v38 = vld [vmem:[%s13171_s25 + $0xd4] sm:$0xf]  ;;  %v1169_v16 = vrot.slane %v12317_v10, 2  ;;  %v9224_v18 = vcombine.low %v13232_v6, %v9184_v14  ;;  %v12321_v19 = vld [vmem:[%s16674_s4 + $0xc0] sm:$0xff]   ;;  %v12336_v51 = vld [vmem:[%s16674_s4 + $0xd8] sm:$0xff]  }
  0x55   : > { %11564 = vmatprep.subr.bf16.mxu0 %v12301_v47  ;;  %10809 = vmatpush3.bf16.msra.mxu1 %v12311_v32  ;;  %v642_v45 = vrot.slane %v9113_v38, 7  ;;  %v1172_v17 = vrot.slane %v1092_v13, 2  ;;  %v13377_v6 = vld [vmem:[%s13171_s25 + $0x94] sm:$0xf]  ;;  %v9225_v32 = vcombine.low %v13273_v50, %v9185_v27  ;;  %v9162_v52 = vld [vmem:[%s13171_s25 + $0xa4] sm:$0xf] }
  0x56   : > { %10810 = vmatprep.subr.bf16.mxu1 %v12320_v60  ;;  %v9217_v29 = vcombine.low %v9177_v25, %v13377_v6  ;;  %v9201_v35 = vcombine.low %v9158_v33, %v13377_v6  ;;  %v12329_v36 = vld [vmem:[%s13171_s25 + $0x98] ss:$0 sps:$4 sm:$0x33]   ;;  %v9179_v53 = vld [vmem:[%s13171_s25 + $0xa0] sm:$0x8]  ;;  %v12346_v10 = vld [vmem:[%s16674_s4 + $0x1b0] sm:$0xff]  }
  0x57   : > { %11549 = vmatmul.mubr.bf16.gmra.mrb[8].mxu0 %v9129_v20  ;;  %v643_v55 = vsel %vm13186_vm4, %v9122_v40, %v642_v45  ;;  %v644_v56 = vrot.slane %v642_v45, 4  ;;  %v9186_v40 = vld [vmem:[%s13171_s25 + $0x78] sm:$0xf]  ;;  %v1177_v42 = vrot.slane %v12329_v36, 2  ;;  %v12333_v45 = vld [vmem:[%s16674_s4 + $0xd0] sm:$0xff]   ;;  %v9219_v54 = vcombine.low %v9179_v53, %v9162_v52  ;;  %v12348_v14 = vld [vmem:[%s16674_s4 + $0xe8] sm:$0xff]  }
  0x58   : > { %11565 = vmatpush3.bf16.msra.mxu0 %v12301_v47  ;;  %1465 = vmatmul.mubr.bf16.gmra.mrb[8].mxu1 %v1154_v23  ;;  %v12319_v47 = vld [vmem:[%s16674_s4 + $0x100] sm:$0xff]   ;;  %v1094_v38 = vrot.slane %v9217_v29, 1  ;;  %v9226_v50 = vcombine.low %v13314_v28, %v9186_v40  ;;  %v9187_v57 = vld [vmem:[%s13171_s25 + $0x88] sm:$0xf]  ;;  %v12356_v29 = vld [vmem:[%s16674_s4 + $0x1f8] sm:$0xff]  }
  0x59   : > { %11566 = vmatprep.subr.bf16.mxu0 %v12304_v4  ;;  %11552 = vmatprep.mubr.bf16.mxu0 %v9130_v48  ;;  %v646_v61 = vsel %vm13186_vm4, %v644_v56, %v645_v49  ;;  %v12335_v49 = vld [vmem:[%s16674_s4 + $0x118] sm:$0xff]   ;;  %v12343_v56 = vld [vmem:[%s16674_s4 + $0x120] sm:$0xff]   ;;  %v1097_v59 = vrot.slane %v9219_v54, 1 }
  0x5a   : > { %v9131_v63 = vcombine.low %v643_v55, %v646_v61  ;;  %1472 = vmatprep.mubr.bf16.mxu1 %v1165_v62  ;;  %10811 = vmatpush3.bf16.msra.mxu1 %v12322_v11  ;;  %v1096_v43 = vsel %vm1078_vm2, %v1094_v38, %v1095_v39  ;;  %v12338_v55 = vld [vmem:[%s13171_s25 + $0xa8] ss:$0 sps:$4 sm:$0x77]   ;;  %v9161_v58 = vld [vmem:[%s13171_s25 + $0xa0] sm:$0xc]  ;;  %v9227_v61 = vcombine.low %v13349_v1, %v9187_v57  ;;  %v12359_v40 = vld [vmem:[%s16674_s4 + $0x138] sm:$0xff]  }
  0x5b   : > { %10812 = vmatprep.subr.bf16.mxu1 %v12332_v37  ;;  %v1179_v46 = vrot.slane %v1096_v43, 2  ;;  %v1098_v60 = vrot.slane %v12338_v55, 1  ;;  %v9203_v62 = vcombine.low %v9161_v58, %v9162_v52  ;;  %v12353_v25 = vld [vmem:[%s13171_s25 + $0xb8] ss:$0 sps:$4 sm:$0x33]   ;;  %v12373_v57 = vld [vmem:[%s16674_s4 + $0x140] sm:$0xff]  }
  0x5c   : > { %11567 = vmatpush3.bf16.msra.mxu0 %v12304_v4  ;;  %v9215_v4 = vcombine.low %v9175_v2, %v13349_v1  ;;  %v9188_v2 = vld [vmem:[%s13171_s25 + $0x98] sm:$0xf]  ;;  %v12345_v1 = vld [vmem:[%s16674_s4 + $0xe0] sm:$0xff]  }
  0x5d   : > { %11568 = vmatprep.subr.bf16.mxu0 %v12309_v15  ;;  %v1181_v48 = vsel %vm1135_vm3, %v1179_v46, %v1180_v44  ;;  %v1099_v3 = vsel %vm1078_vm2, %v1097_v59, %v1098_v60  ;;  %v1184_v5 = vrot.slane %v9203_v62, 2  ;;  %v12358_v37 = vld [vmem:[%s16674_s4 + $0x1b8] sm:$0xff]   ;;  %v9434_v43 = vld [vmem:[%s13171_s25 + $0x84] sm:$0xf]  ;;  %v9457_v46 = vld [vmem:[%s13171_s25 + $0x80] sm:$0x8] }
  0x5e   : > { %v1091_v12 = vrot.slane %v9215_v4, 1  ;;  %v1188_v4 = vrot.slane %v1098_v60, 2  ;;  %v1187_v8 = vrot.slane %v1099_v3, 2  ;;  %v9433_v60 = vld [vmem:[%s13171_s25 + $0x80] sm:$0xc] }
  0x5f   : > { %11553 = vmatmul.mubr.bf16.gmra.mrb[12].mxu0 %v9131_v63  ;;  %v12341_v63 = vld [vmem:[%s13171_s25 + $0xa8] ss:$0 sps:$4 sm:$0x33]  }
  0x60   : > { %11569 = vmatpush3.bf16.msra.mxu0 %v12309_v15  ;;  %1473 = vmatmul.mubr.bf16.gmra.mrb[12].mxu1 %v1162_v0  ;;  %v1168_v15 = vrot.slane %v9199_v9, 2  ;;  %v1093_v30 = vsel %vm1078_vm2, %v1091_v12, %v1092_v13  ;;  %v12344_v0 = vld [vmem:[%s16674_s4 + $0x1f0] sm:$0xff]   ;;  %v9228_v9 = vcombine.low %v13377_v6, %v9188_v2  ;;  %v1189_v12 = vsel %vm1135_vm3, %v1187_v8, %v1188_v4  ;;  %v12347_v13 = vld [vmem:[%s16674_s4 + $0x128] sm:$0xff]   ;;  %v12370_v8 = vld [vmem:[%s16676_s6] sm:$0xff]  }
  0x61   : > { %11570 = vmatprep.subr.bf16.mxu0 %v12312_v41  ;;  %11572 = vmatprep.mubr.bf16.mxu0 %v9223_v7  ;;  %v1171_v20 = vrot.slane %v1093_v30, 2  ;;  %v1185_v7 = vrot.slane %v12341_v63, 2  ;;  %v12368_v2 = vld [vmem:[%s13171_s25 + $0x88] ss:$0 sps:$4 sm:$0x33]  }
  0x62   : > { %v1170_v22 = vsel %vm1135_vm3, %v1168_v15, %v1169_v16  ;;  %v9165_v15 = vld [vmem:[%s13171_s25 + $0xb4] sm:$0xf]  ;;  %v9181_v16 = vld [vmem:[%s13171_s25 + $0xb0] sm:$0x8] }
  0x63   : > { %v1173_v23 = vsel %vm1135_vm3, %v1171_v20, %v1172_v17  ;;  %v1186_v11 = vsel %vm1135_vm3, %v1184_v5, %v1185_v7  ;;  %v9221_v30 = vcombine.low %v9181_v16, %v9165_v15  ;;  %v12350_v17 = vld [vmem:[%s13171_s25 + $0xb8] ss:$0 sps:$4 sm:$0x77]   ;;  %v9481_v5 = vcombine.low %v9433_v60, %v9434_v43 }
  0x64   : > { %11571 = vmatpush3.bf16.msra.mxu0 %v12312_v41  ;;  %1480 = vmatprep.mubr.bf16.mxu1 %v1173_v23  ;;  %v1176_v41 = vrot.slane %v9201_v35, 2  ;;  %v12357_v35 = vld [vmem:[%s16674_s4 + $0xf0] sm:$0xff]   ;;  %v12372_v16 = vld [vmem:[%s13171_s25 + $0x78] ss:$0 sps:$4 sm:$0x77]  }
  0x65   : > { %10722 = vmatprep.subr.bf16.mxu0 %v12319_v47  ;;  %v12334_v47 = vld [vmem:[%s16674_s4 + $0x1a8] sm:$0xff]   ;;  %v1100_v23 = vrot.slane %v9221_v30, 1 }
  0x66   : > { %v1178_v28 = vsel %vm1135_vm3, %v1176_v41, %v1177_v42  ;;  %10813 = vmatpush3.bf16.msra.mxu1 %v12334_v47  ;;  %v12360_v41 = vld [vmem:[%s16674_s4 + $0xf8] sm:$0xff]   ;;  %v13469_v42 = vld [vmem:[%s13171_s25 + $0x64] sm:$0xf]  ;;  %v12380_v30 = vld [vmem:[%s16676_s6 + $0x48] sm:$0xff]  }
  0x67   : > { %11573 = vmatmul.mubr.bf16.vlgmr.msra.gmra.mrb[16].mxu0 %v9224_v18  ;;  %10814 = vmatprep.subr.bf16.mxu1 %v12344_v0  ;;  %v9189_v18 = vld [vmem:[%s13171_s25 + $0xa8] sm:$0xf]  ;;  %v12369_v47 = vld [vmem:[%s16676_s6 + $0x40] sm:$0xff]  }
  0x68   : > { %1481 = vmatmul.mubr.bf16.gmra.mrb[16].mxu1 %v1170_v22  ;;  %10723 = vmatpush3.bf16.msra.mxu0 %v12321_v19  ;;  %v12355_v19 = vld [vmem:[%s16674_s4 + $0x130] sm:$0xff]   ;;  %v9229_v20 = vcombine.low %v9162_v52, %v9189_v18  ;;  %v9190_v22 = vld [vmem:[%s13171_s25 + $0xb8] sm:$0xf]  ;;  %v9263_v52 = vld [vmem:[%s13171_s25 + $0x60] sm:$0xc] }
  0x69   : > { %10724 = vmatprep.subr.bf16.mxu0 %v12323_v21  ;;  %11576 = vmatprep.mubr.bf16.mxu0 %v9225_v32  ;;  %v9164_v21 = vld [vmem:[%s13171_s25 + $0xb0] sm:$0xc]  ;;  %v9230_v27 = vcombine.low %v9165_v15, %v9190_v22  ;;  %v9311_v55 = vcombine.low %v9263_v52, %v13469_v42  ;;  %v9437_v18 = vld [vmem:[%s13171_s25 + $0x94] sm:$0xf]  ;;  %v12402_v52 = vld [vmem:[%s16676_s6 + $0x58] sm:$0xff]  }
  0x6a   : > { %1488 = vmatprep.mubr.bf16.mxu1 %v1181_v48  ;;  %10815 = vmatpush3.bf16.msra.mxu1 %v12346_v10  ;;  %v9205_v6 = vcombine.low %v9164_v21, %v9165_v15  ;;  %v12364_v48 = vld [vmem:[%s13171_s25 + $0x88] ss:$0 sps:$4 sm:$0x77]   ;;  %v1790_v21 = vrot.slane %v12372_v16, 1  ;;  %v9459_v22 = vld [vmem:[%s13171_s25 + $0x90] sm:$0x8] }
  0x6b   : > { %10816 = vmatprep.subr.bf16.mxu1 %v12356_v29  ;;  %v2530_v54 = vrot.slane %v12364_v48, 1  ;;  %v1842_v0 = vrot.slane %v9311_v55, 2  ;;  %v12383_v55 = vld [vmem:[%s13171_s25 + $0x88] ss:$0 sps:$4 sm:$0x77]  }
  0x6c   : > { %10725 = vmatpush3.bf16.msra.mxu0 %v12324_v24  ;;  %v1101_v24 = vrot.slane %v12350_v17, 1  ;;  %v1192_v33 = vrot.slane %v9205_v6, 2  ;;  %v9266_v6 = vld [vmem:[%s13171_s25 + $0x70] sm:$0xc]  ;;  %v1854_v29 = vrot.slane %v1790_v21, 2  ;;  %v1793_v60 = vrot.slane %v12383_v55, 1 }
  0x6d   : > { %10726 = vmatprep.subr.bf16.mxu0 %v12331_v34  ;;  %v1193_v34 = vrot.slane %v12353_v25, 2  ;;  %v2589_v63 = vrot.slane %v2530_v54, 2  ;;  %v12391_v25 = vld [vmem:[%s16676_s6 + $0x50] sm:$0xff]  }
  0x6e   : > { %v1102_v31 = vsel %vm1078_vm2, %v1100_v23, %v1101_v24  ;;  %v1196_v32 = vrot.slane %v1101_v24, 2  ;;  %10817 = vmatpush3.bf16.msra.mxu1 %v12358_v37  ;;  %v9499_v23 = vcombine.low %v9459_v22, %v9437_v18  ;;  %v12375_v24 = vld [vmem:[%s13171_s25 + $0x98] ss:$0 sps:$4 sm:$0x77]   ;;  %v12392_v37 = vld [vmem:[%s16676_s6 + $0x10] sm:$0xff]  }
  0x6f   : > { %11577 = vmatmul.mubr.bf16.gmra.mrb[20].mxu0 %v9226_v50  ;;  %v1195_v36 = vrot.slane %v1102_v31, 2  ;;  %v1194_v38 = vsel %vm1135_vm3, %v1192_v33, %v1193_v34  ;;  %v9287_v50 = vld [vmem:[%s13171_s25 + $0x60] sm:$0x8]  ;;  %10882 = vmatprep.subr.bf16.mxu1 %v12369_v47 }
  0x70   : > { %10727 = vmatpush3.bf16.msra.mxu0 %v12333_v45  ;;  %1489 = vmatmul.mubr.bf16.gmra.mrb[20].mxu1 %v1178_v28  ;;  %v9327_v44 = vcombine.low %v9287_v50, %v13469_v42  ;;  %v12362_v45 = vld [vmem:[%s13171_s25 + $0x68] ss:$0 sps:$4 sm:$0x77]   ;;  %v9497_v28 = vcombine.low %v9457_v46, %v9434_v43  ;;  %v2532_v34 = vrot.slane %v9499_v23, 1  ;;  %v13566_v23 = vld [vmem:[%s13171_s25 + $0x94] sm:$0xf] }
  0x71   : > { %10728 = vmatprep.subr.bf16.mxu0 %v12335_v49  ;;  %11580 = vmatprep.mubr.bf16.mxu0 %v9227_v61  ;;  %v1197_v39 = vsel %vm1135_vm3, %v1195_v36, %v1196_v32  ;;  %v12377_v32 = vld [vmem:[%s13171_s25 + $0x78] ss:$0 sps:$4 sm:$0x33]   ;;  %v9436_v36 = vld [vmem:[%s13171_s25 + $0x90] sm:$0xc] }
  0x72   : > { %1496 = vmatprep.mubr.bf16.mxu1 %v1189_v12  ;;  %v1786_v49 = vrot.slane %v9327_v44, 1  ;;  %v2529_v53 = vrot.slane %v9497_v28, 1  ;;  %v13497_v12 = vld [vmem:[%s13171_s25 + $0x74] sm:$0xf] }
  0x73   : > { %v9313_v31 = vcombine.low %v9266_v6, %v13497_v12  ;;  %v12414_v6 = vld [vmem:[%s16676_s6 + $0x20] sm:$0xff]  }
  0x74   : > { %10729 = vmatpush3.bf16.msra.mxu0 %v12336_v51  ;;  %v1787_v51 = vrot.slane %v12362_v45, 1  ;;  %v2531_v62 = vsel %vm1078_vm2, %v2529_v53, %v2530_v54  ;;  %v12379_v45 = vld [vmem:[%s13171_s25 + $0x98] ss:$0 sps:$4 sm:$0x33]  }
  0x75   : > { %10730 = vmatprep.subr.bf16.mxu0 %v12343_v56  ;;  %v12366_v56 = vld [vmem:[%s13171_s25 + $0x68] ss:$0 sps:$4 sm:$0x33]   ;;  %v2588_v3 = vrot.slane %v2531_v62, 2  ;;  %v2594_v48 = vrot.slane %v12379_v45, 2 }
  0x76   : > { %v1788_v58 = vsel %vm1078_vm2, %v1786_v49, %v1787_v51  ;;  %v1846_v59 = vrot.slane %v1787_v51, 2  ;;  %v1843_v4 = vrot.slane %v12366_v56, 2  ;;  %v13534_v49 = vld [vmem:[%s13171_s25 + $0x84] sm:$0xf]  ;;  %v9291_v51 = vld [vmem:[%s13171_s25 + $0x80] sm:$0x8] }
  0x77   : > { %11581 = vmatmul.mubr.bf16.gmra.mrb[24].mxu0 %v9228_v9  ;;  %v1845_v61 = vrot.slane %v1788_v58, 2  ;;  %v2590_v9 = vsel %vm1135_vm3, %v2588_v3, %v2589_v63  ;;  %v9331_v54 = vcombine.low %v9291_v51, %v13534_v49  ;;  %v12403_v56 = vld [vmem:[%s16676_s6 + $0x18] sm:$0xff]   ;;  %v9440_v58 = vld [vmem:[%s13171_s25 + $0xa4] sm:$0xf] }
  0x78   : > { %10731 = vmatpush3.bf16.msra.mxu0 %v12345_v1  ;;  %1497 = vmatmul.mubr.bf16.gmra.mrb[24].mxu1 %v1186_v11  ;;  %v2586_v1 = vrot.slane %v12368_v2, 2  ;;  %v1844_v10 = vsel %vm1135_vm3, %v1842_v0, %v1843_v4  ;;  %v2585_v11 = vrot.slane %v9481_v5, 2  ;;  %v12386_v63 = vld [vmem:[%s13171_s25 + $0xa8] ss:$0 sps:$4 sm:$0x77]   ;;  %v12406_v2 = vld [vmem:[%s16674_s4 + $0x158] sm:$0xff]  }
  0x79   : > { %10732 = vmatprep.subr.bf16.mxu0 %v12347_v13  ;;  %11584 = vmatprep.mubr.bf16.mxu0 %v9229_v20  ;;  %v1847_v7 = vsel %vm1135_vm3, %v1845_v61, %v1846_v59  ;;  %v9289_v13 = vld [vmem:[%s13171_s25 + $0x70] sm:$0x8]  ;;  %v1792_v59 = vrot.slane %v9331_v54, 1  ;;  %v9461_v61 = vld [vmem:[%s13171_s25 + $0xa0] sm:$0x8]  ;;  %v1862_v4 = vrot.slane %v1793_v60, 2 }
  0x7a   : > { %1504 = vmatprep.mubr.bf16.mxu1 %v1197_v39  ;;  %v9329_v15 = vcombine.low %v9289_v13, %v13497_v12  ;;  %v2587_v17 = vsel %vm1135_vm3, %v2585_v11, %v2586_v1  ;;  %v1850_v39 = vrot.slane %v9313_v31, 2  ;;  %v9501_v62 = vcombine.low %v9461_v61, %v9440_v58  ;;  %v9269_v0 = vld [vmem:[%s13171_s25 + $0x80] sm:$0xc] }
  0x7b   : > { %v1794_v3 = vsel %vm1078_vm2, %v1792_v59, %v1793_v60  ;;  %v9315_v5 = vcombine.low %v9269_v0, %v13534_v49  ;;  %v12413_v11 = vld [vmem:[%s16676_s6 + $0x60] sm:$0xff]   ;;  %v12428_v0 = vld [vmem:[%s16674_s4 + $0x168] sm:$0xff]  }
  0x7c   : > { %10733 = vmatpush3.bf16.msra.mxu0 %v12348_v14  ;;  %v12384_v14 = vld [vmem:[%s16674_s4 + $0x148] sm:$0xff]   ;;  %v1789_v20 = vrot.slane %v9329_v15, 1  ;;  %v1861_v1 = vrot.slane %v1794_v3, 2  ;;  %v12417_v31 = vld [vmem:[%s16674_s4 + $0x160] sm:$0xff]  }
  0x7d   : > { %10734 = vmatprep.subr.bf16.mxu0 %v12355_v19  ;;  %v12381_v19 = vld [vmem:[%s16676_s6 + $0x8] sm:$0xff]   ;;  %v1858_v13 = vrot.slane %v9315_v5, 2  ;;  %v12435_v5 = vld [vmem:[%s16676_s6 + $0x70] sm:$0xff]  }
  0x7e   : > { %v1863_v16 = vsel %vm1135_vm3, %v1861_v1, %v1862_v4  ;;  %v12405_v4 = vld [vmem:[%s13171_s25 + $0xa8] ss:$0 sps:$4 sm:$0x77]   ;;  %v13616_v1 = vld [vmem:[%s13171_s25 + $0xc4] sm:$0xf] }
  0x7f   : > { %11585 = vmatmul.mubr.bf16.gmra.mrb[28].mxu0 %v9230_v27  ;;  %v1791_v27 = vsel %vm1078_vm2, %v1789_v20, %v1790_v21 }
  0x80   : > { %10735 = vmatpush3.bf16.msra.mxu0 %v12357_v35  ;;  %1505 = vmatmul.mubr.bf16.gmra.mrb[28].mxu1 %v1194_v38  ;;  %v1853_v33 = vrot.slane %v1791_v27, 2  ;;  %v2533_v35 = vrot.slane %v12375_v24, 1  ;;  %v12395_v38 = vld [vmem:[%s16674_s4 + $0x150] sm:$0xff]  }
  0x81   : > { %10736 = vmatprep.subr.bf16.mxu0 %v12359_v40  ;;  %2155 = vmatprep.mubr.bf16.mxu0 %v1847_v7  ;;  %v1851_v40 = vrot.slane %v12377_v32, 2  ;;  %v12388_v7 = vld [vmem:[%s13171_s25 + $0x88] ss:$0 sps:$4 sm:$0x33]   ;;  %v9293_v24 = vld [vmem:[%s13171_s25 + $0x90] sm:$0x8] }
  0x82   : > { %2898 = vmatprep.mubr.bf16.mxu1 %v2590_v9  ;;  %v1855_v50 = vsel %vm1135_vm3, %v1853_v33, %v1854_v29  ;;  %v2534_v43 = vsel %vm1078_vm2, %v2532_v34, %v2533_v35  ;;  %v2597_v44 = vrot.slane %v2533_v35, 2  ;;  %v2536_v9 = vrot.slane %v12386_v63, 1  ;;  %v12394_v29 = vld [vmem:[%s13171_s25 + $0x98] ss:$0 sps:$4 sm:$0x77]  }
  0x83   : > { %v2596_v46 = vrot.slane %v2534_v43, 2  ;;  %v1852_v47 = vsel %vm1135_vm3, %v1850_v39, %v1851_v40  ;;  %v9333_v27 = vcombine.low %v9293_v24, %v13566_v23  ;;  %v13580_v33 = vld [vmem:[%s13171_s25 + $0xb4] sm:$0xf]  ;;  %v1796_v35 = vrot.slane %v12394_v29, 1  ;;  %v9272_v39 = vld [vmem:[%s13171_s25 + $0x90] sm:$0xc] }
  0x84   : > { %10737 = vmatpush3.bf16.msra.mxu0 %v12360_v41  ;;  %v9483_v41 = vcombine.low %v9436_v36, %v9437_v18  ;;  %v12390_v18 = vld [vmem:[%s13171_s25 + $0xa8] ss:$0 sps:$4 sm:$0x33]   ;;  %v9463_v36 = vld [vmem:[%s13171_s25 + $0xb0] sm:$0x8]  ;;  %v9317_v43 = vcombine.low %v9272_v39, %v13566_v23 }
  0x85   : > { %11588 = vmatprep.subr.bf16.mxu0 %v12373_v57  ;;  %v2598_v53 = vsel %vm1135_vm3, %v2596_v46, %v2597_v44  ;;  %v2602_v22 = vrot.slane %v12390_v18, 2  ;;  %v1795_v34 = vrot.slane %v9333_v27, 1  ;;  %v12424_v40 = vld [vmem:[%s16676_s6 + $0x68] sm:$0xff]   ;;  %v12399_v44 = vld [vmem:[%s13171_s25 + $0x98] ss:$0 sps:$4 sm:$0x33]  }
  0x86   : > { %v2593_v28 = vrot.slane %v9483_v41, 2  ;;  %v1866_v51 = vrot.slane %v9317_v43, 2  ;;  %v9295_v63 = vld [vmem:[%s13171_s25 + $0xa0] sm:$0x8]  ;;  %v12439_v24 = vld [vmem:[%s16674_s4 + $0x170] sm:$0xff]  }
  0x87   : > { %2156 = vmatmul.mubr.bf16.vlgmr.msra.gmra.mrb[32].mxu0 %v1844_v10  ;;  %v9439_v10 = vld [vmem:[%s13171_s25 + $0xa0] sm:$0xc]  ;;  %v1797_v41 = vsel %vm1078_vm2, %v1795_v34, %v1796_v35  ;;  %v12410_v18 = vld [vmem:[%s13171_s25 + $0xa8] ss:$0 sps:$4 sm:$0x33]  }
  0x88   : > { %11589 = vmatpush3.bf16.msra.mxu0 %v12373_v57  ;;  %2899 = vmatmul.mubr.bf16.vlgmr.msra.gmra.mrb[32].mxu1 %v2587_v17  ;;  %v2595_v57 = vsel %vm1135_vm3, %v2593_v28, %v2594_v48  ;;  %v9485_v15 = vcombine.low %v9439_v10, %v9440_v58  ;;  %v2605_v17 = vrot.slane %v2536_v9, 2  ;;  %v1869_v45 = vrot.slane %v1797_v41, 2  ;;  %v9442_v28 = vld [vmem:[%s13171_s25 + $0xb0] sm:$0xc]  ;;  %v12425_v48 = vld [vmem:[%s16676_s6 + $0x28] sm:$0xff]   ;;  %v12446_v41 = vld [vmem:[%s16676_s6 + $0x78] sm:$0xff]  }
  0x89   : > { %11590 = vmatprep.subr.bf16.mxu0 %v12384_v14  ;;  %10883 = vmatpush3.bf16.msra.mxu1 %v12370_v8  ;;  %v2535_v8 = vrot.slane %v9501_v62, 1  ;;  %v13602_v62 = vld [vmem:[%s13171_s25 + $0xa4] sm:$0xf]  ;;  %v9465_v10 = vld [vmem:[%s13171_s25 + $0xc0] sm:$0x8] }
  0x8a   : > { %10884 = vmatprep.subr.bf16.mxu1 %v12380_v30  ;;  %2163 = vmatprep.mubr.bf16.mxu0 %v1855_v50  ;;  %v2601_v21 = vrot.slane %v9485_v15, 2  ;;  %v1870_v50 = vrot.slane %v1796_v35, 2  ;;  %v9335_v3 = vcombine.low %v9295_v63, %v13602_v62  ;;  %v12436_v15 = vld [vmem:[%s16676_s6 + $0x30] sm:$0xff]   ;;  %v12412_v34 = vld [vmem:[%s13171_s25 + $0xc8] ss:$0 sps:$4 sm:$0x33]  }
  0x8b   : > { %2906 = vmatprep.mubr.bf16.mxu1 %v2598_v53  ;;  %v2537_v30 = vsel %vm1078_vm2, %v2535_v8, %v2536_v9  ;;  %v9487_v53 = vcombine.low %v9442_v28, %v13580_v33  ;;  %v1799_v9 = vrot.slane %v12405_v4, 1  ;;  %v13638_v39 = vld [vmem:[%s13171_s25 + $0xb4] sm:$0xf] }
  0x8c   : > { %11591 = vmatpush3.bf16.msra.mxu0 %v12384_v14  ;;  %v1859_v14 = vrot.slane %v12388_v7, 2  ;;  %v2603_v32 = vsel %vm1135_vm3, %v2601_v21, %v2602_v22  ;;  %v1871_v54 = vsel %vm1135_vm3, %v1869_v45, %v1870_v50  ;;  %v1798_v8 = vrot.slane %v9335_v3, 1  ;;  %v9445_v22 = vld [vmem:[%s13171_s25 + $0xc0] sm:$0xc]  ;;  %v12447_v45 = vld [vmem:[%s16676_s6 + $0x38] sm:$0xff]  }
  0x8d   : > { %10885 = vmatpush3.bf16.msra.mxu1 %v12381_v19  ;;  %11592 = vmatprep.subr.bf16.mxu0 %v12395_v38  ;;  %v2604_v19 = vrot.slane %v2537_v30, 2  ;;  %v2609_v60 = vrot.slane %v9487_v53, 2  ;;  %v1878_v30 = vrot.slane %v1799_v9, 2  ;;  %v9489_v27 = vcombine.low %v9445_v22, %v13616_v1  ;;  %v12419_v53 = vld [vmem:[%s13171_s25 + $0xd8] ss:$0 sps:$4 sm:$0x77]  }
  0x8e   : > { %10886 = vmatprep.subr.bf16.mxu1 %v12391_v25  ;;  %v1860_v20 = vsel %vm1135_vm3, %v1858_v13, %v1859_v14  ;;  %v12408_v13 = vld [vmem:[%s13171_s25 + $0xc8] ss:$0 sps:$4 sm:$0x77]   ;;  %v9275_v14 = vld [vmem:[%s13171_s25 + $0xa0] sm:$0xc]  ;;  %v2545_v63 = vrot.slane %v12419_v53, 1 }
  0x8f   : > { %2164 = vmatmul.mubr.bf16.gmra.mrb[36].mxu0 %v1852_v47  ;;  %v2606_v25 = vsel %vm1135_vm3, %v2604_v19, %v2605_v17  ;;  %v9319_v17 = vcombine.low %v9275_v14, %v13602_v62  ;;  %v2542_v21 = vrot.slane %v12408_v13, 1  ;;  %v13688_v22 = vld [vmem:[%s13171_s25 + $0xe4] sm:$0xf] }
  0x90   : > { %11593 = vmatpush3.bf16.msra.mxu0 %v12395_v38  ;;  %2907 = vmatmul.mubr.bf16.gmra.mrb[36].mxu1 %v2595_v57  ;;  %v12397_v38 = vld [vmem:[%s13171_s25 + $0xb8] ss:$0 sps:$4 sm:$0x77]  }
  0x91   : > { %10887 = vmatpush3.bf16.msra.mxu1 %v12392_v37  ;;  %11594 = vmatprep.subr.bf16.mxu0 %v12406_v2  ;;  %v9503_v37 = vcombine.low %v9463_v36, %v13580_v33  ;;  %v2539_v47 = vrot.slane %v12397_v38, 1  ;;  %v12401_v57 = vld [vmem:[%s13171_s25 + $0xb8] ss:$0 sps:$4 sm:$0x33]   ;;  %v2618_v38 = vrot.slane %v12412_v34, 2 }
  0x92   : > { %10888 = vmatprep.subr.bf16.mxu1 %v12402_v52  ;;  %2171 = vmatprep.mubr.bf16.mxu0 %v1863_v16  ;;  %v1867_v52 = vrot.slane %v12399_v44, 2  ;;  %v2610_v61 = vrot.slane %v12401_v57, 2  ;;  %v1800_v16 = vsel %vm1078_vm2, %v1798_v8, %v1799_v9  ;;  %v12416_v44 = vld [vmem:[%s13171_s25 + $0xb8] ss:$0 sps:$4 sm:$0x77]   ;;  %v2629_v9 = vrot.slane %v2545_v63, 2 }
  0x93   : > { %2914 = vmatprep.mubr.bf16.mxu1 %v2606_v25  ;;  %v2538_v46 = vrot.slane %v9503_v37, 1  ;;  %v1877_v19 = vrot.slane %v1800_v16, 2  ;;  %v1875_v25 = vrot.slane %v12410_v18, 2  ;;  %v2617_v37 = vrot.slane %v9489_v27, 2  ;;  %v13677_v16 = vld [vmem:[%s13171_s25 + $0xc4] sm:$0xf] }
  0x94   : > { %11595 = vmatpush3.bf16.msra.mxu0 %v12406_v2  ;;  %v1868_v59 = vsel %vm1135_vm3, %v1866_v51, %v1867_v52  ;;  %v2611_v7 = vsel %vm1135_vm3, %v2609_v60, %v2610_v61  ;;  %v9467_v51 = vld [vmem:[%s13171_s25 + $0xd0] sm:$0x8] }
  0x95   : > { %10889 = vmatpush3.bf16.msra.mxu1 %v12403_v56  ;;  %11596 = vmatprep.subr.bf16.mxu0 %v12417_v31  ;;  %v2540_v55 = vsel %vm1078_vm2, %v2538_v46, %v2539_v47  ;;  %v2613_v56 = vrot.slane %v2539_v47, 2  ;;  %v1879_v29 = vsel %vm1135_vm3, %v1877_v19, %v1878_v30  ;;  %v2619_v46 = vsel %vm1135_vm3, %v2617_v37, %v2618_v38  ;;  %v13652_v47 = vld [vmem:[%s13171_s25 + $0xd4] sm:$0xf]  ;;  %v9299_v30 = vld [vmem:[%s13171_s25 + $0xc0] sm:$0x8] }
  0x96   : > { %10890 = vmatprep.subr.bf16.mxu1 %v12413_v11  ;;  %v2612_v58 = vrot.slane %v2540_v55, 2  ;;  %v9505_v11 = vcombine.low %v9465_v10, %v13616_v1  ;;  %v9507_v52 = vcombine.low %v9467_v51, %v13652_v47  ;;  %v12448_v55 = vld [vmem:[%s16674_s4 + $0x178] sm:$0xff]   ;;  %v9339_v19 = vcombine.low %v9299_v30, %v13677_v16  ;;  %v9454_v30 = vld [vmem:[%s13171_s25 + $0xf0] sm:$0xc] }
  0x97   : > { %2172 = vmatmul.mubr.bf16.gmra.mrb[40].mxu0 %v1860_v20  ;;  %v12423_v10 = vld [vmem:[%s13171_s25 + $0xd8] ss:$0 sps:$4 sm:$0x33]  }
  0x98   : > { %2915 = vmatmul.mubr.bf16.gmra.mrb[40].mxu1 %v2603_v32  ;;  %11597 = vmatpush3.bf16.msra.mxu0 %v12417_v31  ;;  %v2614_v2 = vsel %vm1135_vm3, %v2612_v58, %v2613_v56  ;;  %v2541_v20 = vrot.slane %v9505_v11, 1  ;;  %v2621_v32 = vrot.slane %v2542_v21, 2  ;;  %v2544_v61 = vrot.slane %v9507_v52, 1 }
  0x99   : > { %10891 = vmatpush3.bf16.msra.mxu1 %v12414_v6  ;;  %2179 = vmatprep.mubr.bf16.mxu0 %v1871_v54  ;;  %v1874_v6 = vrot.slane %v9319_v17, 2  ;;  %v9278_v54 = vld [vmem:[%s13171_s25 + $0xb0] sm:$0xc]  ;;  %v12456_v17 = vld [vmem:[%s16676_s6 + $0x100] sm:$0xff]  }
  0x9a   : > { %10892 = vmatprep.subr.bf16.mxu1 %v12424_v40  ;;  %2922 = vmatprep.mubr.bf16.mxu1 %v2614_v2  ;;  %v2543_v31 = vsel %vm1078_vm2, %v2541_v20, %v2542_v21  ;;  %v9297_v40 = vld [vmem:[%s13171_s25 + $0xb0] sm:$0x8]  ;;  %v9321_v58 = vcombine.low %v9278_v54, %v13638_v39  ;;  %v13668_v2 = vld [vmem:[%s16674_s4 + $0x200] sm:$0xff]   ;;  %v2546_v8 = vsel %vm1078_vm2, %v2544_v61, %v2545_v63  ;;  %v12427_v20 = vld [vmem:[%s13171_s25 + $0xc8] ss:$0 sps:$4 sm:$0x77]  }
  0x9b   : > { %11598 = vmatprep.subr.bf16.mxu0 %v12428_v0  ;;  %v2620_v35 = vrot.slane %v2543_v31, 2  ;;  %v1876_v36 = vsel %vm1135_vm3, %v1874_v6, %v1875_v25  ;;  %v9337_v43 = vcombine.low %v9297_v40, %v13638_v39  ;;  %v2628_v11 = vrot.slane %v2546_v8, 2  ;;  %v9469_v25 = vld [vmem:[%s13171_s25 + $0xe0] sm:$0x8]  ;;  %v13712_v61 = vld [vmem:[%s13171_s25 + $0xf4] sm:$0xf] }
  0x9c   : > { %11599 = vmatpush3.bf16.msra.mxu0 %v12428_v0  ;;  %v9448_v0 = vld [vmem:[%s13171_s25 + $0xd0] sm:$0xc]  ;;  %v1882_v3 = vrot.slane %v9321_v58, 2  ;;  %v1805_v6 = vrot.slane %v12427_v20, 1  ;;  %v9509_v27 = vcombine.low %v9469_v25, %v13688_v22  ;;  %v9281_v31 = vld [vmem:[%s13171_s25 + $0xc0] sm:$0xc] }
  0x9d   : > { %10893 = vmatpush3.bf16.msra.mxu1 %v12425_v48  ;;  %11600 = vmatprep.subr.bf16.mxu0 %v12439_v24  ;;  %v2622_v50 = vsel %vm1135_vm3, %v2620_v35, %v2621_v32  ;;  %v1801_v28 = vrot.slane %v9337_v43, 1  ;;  %v1802_v48 = vrot.slane %v12416_v44, 1  ;;  %v2630_v18 = vsel %vm1135_vm3, %v2628_v11, %v2629_v9  ;;  %v12443_v11 = vld [vmem:[%s13171_s25 + $0xd8] ss:$0 sps:$4 sm:$0x33]  }
  0x9e   : > { %10894 = vmatprep.subr.bf16.mxu1 %v12435_v5  ;;  %v9491_v5 = vcombine.low %v9448_v0, %v13652_v47  ;;  %v1894_v34 = vrot.slane %v1805_v6, 2  ;;  %v9323_v35 = vcombine.low %v9281_v31, %v13677_v16  ;;  %v2547_v38 = vrot.slane %v9509_v27, 1 }
  0x9f   : > { %2180 = vmatmul.mubr.bf16.gmra.mrb[44].mxu0 %v1868_v59  ;;  %v1803_v56 = vsel %vm1078_vm2, %v1801_v28, %v1802_v48  ;;  %v1886_v57 = vrot.slane %v1802_v48, 2  ;;  %v12421_v59 = vld [vmem:[%s13171_s25 + $0xb8] ss:$0 sps:$4 sm:$0x33]  }
  0xa0   : > { %2923 = vmatmul.mubr.bf16.gmra.mrb[44].mxu1 %v2611_v7  ;;  %2187 = vmatprep.mubr.bf16.mxu0 %v1879_v29  ;;  %v1885_v60 = vrot.slane %v1803_v56, 2  ;;  %v1883_v4 = vrot.slane %v12421_v59, 2  ;;  %v2625_v14 = vrot.slane %v9491_v5, 2  ;;  %v12430_v29 = vld [vmem:[%s13171_s25 + $0xe8] ss:$0 sps:$4 sm:$0x77]  }
  0xa1   : > { %10895 = vmatpush3.bf16.msra.mxu1 %v12436_v15  ;;  %11601 = vmatpush3.bf16.msra.mxu0 %v12439_v24  ;;  %v2626_v15 = vrot.slane %v12423_v10, 2  ;;  %v1804_v24 = vrot.slane %v9339_v19, 1  ;;  %v2548_v40 = vrot.slane %v12430_v29, 1  ;;  %v12434_v48 = vld [vmem:[%s13171_s25 + $0xe8] ss:$0 sps:$4 sm:$0x33]   ;;  %v9495_v19 = vcombine.low %v9454_v30, %v13712_v61 }
  0xa2   : > { %2930 = vmatprep.mubr.bf16.mxu1 %v2622_v50  ;;  %10896 = vmatprep.subr.bf16.mxu1 %v12446_v41  ;;  %v1887_v7 = vsel %vm1135_vm3, %v1885_v60, %v1886_v57  ;;  %v1884_v13 = vsel %vm1135_vm3, %v1882_v3, %v1883_v4  ;;  %v9451_v41 = vld [vmem:[%s13171_s25 + $0xe0] sm:$0xc]  ;;  %v1890_v50 = vrot.slane %v9323_v35, 2  ;;  %v2634_v54 = vrot.slane %v12434_v48, 2  ;;  %v9301_v56 = vld [vmem:[%s13171_s25 + $0xd0] sm:$0x8] }
  0xa3   : > { %11602 = vmatprep.subr.bf16.mxu0 %v12448_v55  ;;  %v2627_v21 = vsel %vm1135_vm3, %v2625_v14, %v2626_v15  ;;  %v1806_v32 = vsel %vm1078_vm2, %v1804_v24, %v1805_v6  ;;  %v9493_v44 = vcombine.low %v9451_v41, %v13688_v22  ;;  %v2637_v28 = vrot.slane %v2548_v40, 2  ;;  %v12438_v59 = vld [vmem:[%s13171_s25 + $0xd8] ss:$0 sps:$4 sm:$0x77]   ;;  %v9471_v3 = vld [vmem:[%s13171_s25 + $0xf0] sm:$0x8] }
  0xa4   : > { %v1893_v37 = vrot.slane %v1806_v32, 2  ;;  %v1808_v0 = vrot.slane %v12438_v59, 1  ;;  %v9511_v4 = vcombine.low %v9471_v3, %v13712_v61  ;;  %v12441_v5 = vld [vmem:[%s13171_s25 + $0xf8] ss:$0 sps:$4 sm:$0x77]   ;;  %v2641_v29 = vrot.slane %v9495_v19, 2 }
  0xa5   : > { %10897 = vmatpush3.bf16.msra.mxu1 %v12447_v45  ;;  %11603 = vmatpush3.bf16.msra.mxu0 %v12448_v55  ;;  %v2633_v53 = vrot.slane %v9493_v44, 2  ;;  %v13704_v55 = vld [vmem:[%s13171_s25 + $0xd4] sm:$0xf]  ;;  %v2551_v15 = vrot.slane %v12441_v5, 1  ;;  %v9606_v35 = vld [vmem:[%s13171_s25 + $0x24] sm:$0xf] }
  0xa6   : > { %11620 = vmatprep.subr.bf16.mxu0 %v13668_v2  ;;  %10962 = vmatprep.subr.bf16.mxu1 %v12456_v17  ;;  %v1895_v45 = vsel %vm1135_vm3, %v1893_v37, %v1894_v34  ;;  %v9341_v58 = vcombine.low %v9301_v56, %v13704_v55  ;;  %v1902_v9 = vrot.slane %v1808_v0, 2  ;;  %v2550_v14 = vrot.slane %v9511_v4, 1  ;;  %v12445_v6 = vld [vmem:[%s13171_s25 + $0xf8] ss:$0 sps:$4 sm:$0x33]   ;;  %v12463_v59 = vld [vmem:[%s16674_s4 + $0x210] sm:$0xff]  }
  0xa7   : > { %2188 = vmatmul.mubr.bf16.gmra.mrb[48].mxu0 %v1876_v36  ;;  %v12432_v36 = vld [vmem:[%s13171_s25 + $0xc8] ss:$0 sps:$4 sm:$0x33]   ;;  %v2635_v60 = vsel %vm1135_vm3, %v2633_v53, %v2634_v54  ;;  %v2645_v24 = vrot.slane %v2551_v15, 2  ;;  %v2642_v31 = vrot.slane %v12445_v6, 2 }
  0xa8   : > { %2931 = vmatmul.mubr.bf16.gmra.mrb[48].mxu1 %v2619_v46  ;;  %2195 = vmatprep.mubr.bf16.mxu0 %v1887_v7  ;;  %v1891_v43 = vrot.slane %v12432_v36, 2  ;;  %v2549_v46 = vsel %vm1078_vm2, %v2547_v38, %v2548_v40  ;;  %v1807_v63 = vrot.slane %v9341_v58, 1  ;;  %v9284_v7 = vld [vmem:[%s13171_s25 + $0xd0] sm:$0xc]  ;;  %v9303_v34 = vld [vmem:[%s13171_s25 + $0x68] sm:$0xf] }
  0xa9   : > { %2938 = vmatprep.mubr.bf16.mxu1 %v2630_v18  ;;  %v2636_v51 = vrot.slane %v2549_v46, 2  ;;  %v9325_v10 = vcombine.low %v9284_v7, %v13704_v55  ;;  %v1899_v18 = vrot.slane %v12443_v11, 2  ;;  %v9629_v36 = vld [vmem:[%s13171_s25 + $0x20] sm:$0x8]  ;;  %v2643_v37 = vsel %vm1135_vm3, %v2641_v29, %v2642_v31  ;;  %v12458_v53 = vld [vmem:[%s16674_s4 + $0x208] sm:$0xff]  }
  0xaa   : > { %v1892_v52 = vsel %vm1135_vm3, %v1890_v50, %v1891_v43  ;;  %v1809_v8 = vsel %vm1078_vm2, %v1807_v63, %v1808_v0  ;;  %v9343_v38 = vcombine.low %v13469_v42, %v9303_v34  ;;  %v9685_v40 = vcombine.low %v9629_v36, %v9606_v35  ;;  %v12451_v41 = vld [vmem:[%s13171_s25 + $0x28] ss:$0 sps:$4 sm:$0x77]   ;;  %v9304_v50 = vld [vmem:[%s13171_s25 + $0x78] sm:$0xf]  ;;  %v12457_v42 = vld [vmem:[%s16676_s6 + $0xc0] sm:$0xff]  }
  0xab   : > { %v2638_v57 = vsel %vm1135_vm3, %v2636_v51, %v2637_v28  ;;  %v1898_v17 = vrot.slane %v9325_v10, 2  ;;  %v3394_v44 = vrot.slane %v12451_v41, 2  ;;  %v9605_v46 = vld [vmem:[%s13171_s25 + $0x20] sm:$0xe]  ;;  %v9305_v58 = vld [vmem:[%s13171_s25 + $0x88] sm:$0xf] }
  0xac   : > { %v3393_v43 = vrot.slane %v9685_v40, 2  ;;  %v9669_v28 = vcombine.low %v9605_v46, %v9606_v35  ;;  %v12455_v48 = vld [vmem:[%s13171_s25 + $0x28] ss:$0 sps:$4 sm:$0x11]   ;;  %v9345_v0 = vcombine.low %v13534_v49, %v9305_v58  ;;  %v9609_v3 = vld [vmem:[%s13171_s25 + $0x34] sm:$0xf] }
  0xad   : > { %v1900_v27 = vsel %vm1135_vm3, %v1898_v17, %v1899_v18  ;;  %v9631_v4 = vld [vmem:[%s13171_s25 + $0x30] sm:$0x8]  ;;  %v12461_v7 = vld [vmem:[%s13171_s25 + $0x38] ss:$0 sps:$4 sm:$0x77]   ;;  %v12478_v46 = vld [vmem:[%s16674_s4 + $0x228] sm:$0xff]  }
  0xae   : > { %v3395_v51 = vsel %vm1135_vm3, %v3393_v43, %v3394_v44  ;;  %v3481_v56 = vrot.slane %v9669_v28, 1  ;;  %v9687_v5 = vcombine.low %v9631_v4, %v9609_v3  ;;  %v9608_v10 = vld [vmem:[%s13171_s25 + $0x30] sm:$0xe]  ;;  %v9612_v6 = vld [vmem:[%s13171_s25 + $0x44] sm:$0xf]  ;;  %v12486_v36 = vld [vmem:[%s16676_s6 + $0x118] sm:$0xff]  }
  0xaf   : > { %2196 = vmatmul.mubr.bf16.gmra.mrb[52].mxu0 %v1884_v13  ;;  %v1901_v13 = vrot.slane %v1809_v8, 2  ;;  %v3484_v54 = vrot.slane %v3395_v51, 1  ;;  %v9306_v8 = vld [vmem:[%s13171_s25 + $0x98] sm:$0xf]  ;;  %v9611_v41 = vld [vmem:[%s13171_s25 + $0x40] sm:$0xe] }
  0xb0   : > { %2939 = vmatmul.mubr.bf16.gmra.mrb[52].mxu1 %v2627_v21  ;;  %2203 = vmatprep.mubr.bf16.mxu0 %v1895_v45  ;;  %v2552_v21 = vsel %vm1078_vm2, %v2550_v14, %v2551_v15  ;;  %v9344_v45 = vcombine.low %v13497_v12, %v9304_v50  ;;  %v3482_v12 = vrot.slane %v12455_v48, 1  ;;  %v3396_v11 = vrot.slane %v9687_v5, 2  ;;  %v12465_v14 = vld [vmem:[%s13171_s25 + $0x38] ss:$0 sps:$4 sm:$0x11]  }
  0xb1   : > { %2946 = vmatprep.mubr.bf16.mxu1 %v2638_v57  ;;  %v1903_v20 = vsel %vm1135_vm3, %v1901_v13, %v1902_v9  ;;  %v2644_v25 = vrot.slane %v2552_v21, 2  ;;  %v12466_v57 = vld [vmem:[%s16676_s6 + $0x108] sm:$0xff]   ;;  %v9346_v49 = vcombine.low %v13566_v23, %v9306_v8  ;;  %v9671_v13 = vcombine.low %v9608_v10, %v9609_v3  ;;  %v12468_v15 = vld [vmem:[%s16674_s4 + $0x218] sm:$0xff]   ;;  %v12476_v23 = vld [vmem:[%s16676_s6 + $0x110] sm:$0xff]  }
  0xb2   : > { %v3483_v63 = vsel %vm1078_vm2, %v3481_v56, %v3482_v12  ;;  %v12467_v9 = vld [vmem:[%s16676_s6 + $0xc8] sm:$0xff]   ;;  %v12477_v21 = vld [vmem:[%s16676_s6 + $0xd0] sm:$0xff]   ;;  %v9673_v43 = vcombine.low %v9611_v41, %v9612_v6  ;;  %v12487_v51 = vld [vmem:[%s16676_s6 + $0xd8] sm:$0xff]  }
  0xb3   : > { %v2646_v32 = vsel %vm1135_vm3, %v2644_v25, %v2645_v24  ;;  %v3490_v18 = vrot.slane %v9671_v13, 1  ;;  %v9307_v24 = vld [vmem:[%s13171_s25 + $0xa8] sm:$0xf]  ;;  %v9633_v25 = vld [vmem:[%s13171_s25 + $0x40] sm:$0x8]  ;;  %v12488_v8 = vld [vmem:[%s16674_s4 + $0x238] sm:$0xff]  }
  0xb4   : > { %v9689_v34 = vcombine.low %v9633_v25, %v9612_v6  ;;  %v12471_v35 = vld [vmem:[%s13171_s25 + $0x48] ss:$0 sps:$4 sm:$0x77]   ;;  %v3499_v48 = vrot.slane %v9673_v43, 1  ;;  %v9615_v56 = vld [vmem:[%s13171_s25 + $0x54] sm:$0xf] }
  0xb5   : > { %v3400_v40 = vrot.slane %v12471_v35, 2  ;;  %v9635_v12 = vld [vmem:[%s13171_s25 + $0x50] sm:$0x8]  ;;  %v9473_v13 = vld [vmem:[%s13171_s25 + $0x88] sm:$0xf] }
  0xb6   : > { %v9691_v58 = vcombine.low %v9635_v12, %v9615_v56  ;;  %v9617_v6 = vld [vmem:[%s13171_s25 + $0x60] sm:$0xe]  ;;  %v12498_v41 = vld [vmem:[%s16676_s6 + $0x88] sm:$0xff]  }
  0xb7   : > { %2204 = vmatmul.mubr.bf16.gmra.mrb[56].mxu0 %v1892_v52  ;;  %v3485_v52 = vrot.slane %v3394_v44, 1  ;;  %v12475_v44 = vld [vmem:[%s13171_s25 + $0x48] ss:$0 sps:$4 sm:$0x11]  }
  0xb8   : > { %2947 = vmatmul.mubr.bf16.gmra.mrb[56].mxu1 %v2635_v60  ;;  %2211 = vmatprep.mubr.bf16.mxu0 %v1903_v20  ;;  %v3491_v20 = vrot.slane %v12465_v14, 1  ;;  %v9618_v14 = vld [vmem:[%s13171_s25 + $0x64] sm:$0xf] }
  0xb9   : > { %2954 = vmatprep.mubr.bf16.mxu1 %v2646_v32  ;;  %v3486_v60 = vsel %vm1078_vm2, %v3484_v54, %v3485_v52  ;;  %v9347_v32 = vcombine.low %v13602_v62, %v9307_v24  ;;  %v9309_v52 = vld [vmem:[%s13171_s25 + $0xc8] sm:$0xf]  ;;  %v9474_v24 = vld [vmem:[%s13171_s25 + $0x98] sm:$0xf] }
  0xba   : > { %v3492_v31 = vsel %vm1078_vm2, %v3490_v18, %v3491_v20  ;;  %v9349_v54 = vcombine.low %v13677_v16, %v9309_v52  ;;  %v3402_v16 = vrot.slane %v9691_v58, 2  ;;  %v12897_v18 = vld [vmem:[%s13171_s25 + $0x84] sm:$0xf]  ;;  %v12491_v20 = vld [vmem:[%s13171_s25 + $0x68] ss:$0 sps:$4 sm:$0x77]  }
  0xbf   : > { %2212 = vmatmul.mubr.bf16.gmra.mrb[60].mxu0 %v1900_v27  ;;  %v12473_v27 = vld [vmem:[%s16674_s4 + $0x220] sm:$0xff]  }
  0xc0   : > { %2955 = vmatmul.mubr.bf16.gmra.mrb[60].mxu1 %v2643_v37  ;;  %11604 = vmatprep.mubr.bf16.mxu0 %v9343_v38  ;;  %v9308_v37 = vld [vmem:[%s13171_s25 + $0xb8] sm:$0xf]  ;;  %v3399_v38 = vrot.slane %v9689_v34, 2  ;;  %v12898_v34 = vld [vmem:[%s13171_s25 + $0x94] sm:$0xf] }
  0xc1   : > { %3801 = vmatprep.mubr.bf16.mxu1 %v3486_v60  ;;  %v9348_v50 = vcombine.low %v13638_v39, %v9308_v37  ;;  %v3500_v39 = vrot.slane %v12475_v44, 1  ;;  %v9310_v60 = vld [vmem:[%s13171_s25 + $0xd8] sm:$0xf]  ;;  %v9514_v35 = vcombine.low %v12898_v34, %v9474_v24  ;;  %v12516_v44 = vld [vmem:[%s16676_s6 + $0x130] sm:$0xff]  }
  0xc2   : > { %v3401_v62 = vsel %vm1135_vm3, %v3399_v38, %v3400_v40  ;;  %v9350_v5 = vcombine.low %v13704_v55, %v9310_v60  ;;  %v12497_v55 = vld [vmem:[%s16676_s6 + $0xe0] sm:$0xff]   ;;  %v12517_v60 = vld [vmem:[%s16676_s6 + $0xf0] sm:$0xff]  }
  0xc3   : > { %v3502_v28 = vrot.slane %v3401_v62, 1  ;;  %v9475_v62 = vld [vmem:[%s13171_s25 + $0xa8] sm:$0xf]  ;;  %v9627_v34 = vld [vmem:[%s13171_s25 + $0x94] sm:$0xf] }
  0xc7   : > { %11605 = vmatmul.mubr.bf16.vlgmr.msra.gmra.mrb[16].mxu0 %v9344_v45  ;;  %v3503_v45 = vrot.slane %v3400_v40, 1 }
  0xc8   : > { %11621 = vmatpush3.bf16.msra.mxu0 %v13668_v2  ;;  %3802 = vmatmul.mubr.bf16.vlgmr.msra.gmra.mrb[64].mxu1 %v3483_v63  ;;  %v3397_v2 = vrot.slane %v12461_v7, 2  ;;  %v12496_v63 = vld [vmem:[%s16676_s6 + $0x120] sm:$0xff]   ;;  %v12485_v7 = vld [vmem:[%s13171_s25 + $0x58] ss:$0 sps:$4 sm:$0x11]  }
  0xc9   : > { %11622 = vmatprep.subr.bf16.mxu0 %v12458_v53  ;;  %11608 = vmatprep.mubr.bf16.mxu0 %v9345_v0  ;;  %v9614_v0 = vld [vmem:[%s13171_s25 + $0x50] sm:$0xe] }
  0xca   : > { %10963 = vmatpush3.bf16.msra.mxu1 %v12457_v42  ;;  %v3398_v30 = vsel %vm1135_vm3, %v3396_v11, %v3397_v2  ;;  %v3494_v17 = vrot.slane %v3397_v2, 1  ;;  %v3504_v42 = vsel %vm1078_vm2, %v3502_v28, %v3503_v45  ;;  %v9675_v4 = vcombine.low %v9614_v0, %v9615_v56  ;;  %v9620_v56 = vld [vmem:[%s13171_s25 + $0x70] sm:$0xe] }
  0xcb   : > { %10964 = vmatprep.subr.bf16.mxu1 %v12466_v57  ;;  %v3493_v19 = vrot.slane %v3398_v30, 1  ;;  %v12483_v57 = vld [vmem:[%s16674_s4 + $0x230] sm:$0xff]  }
  0xcc   : > { %11623 = vmatpush3.bf16.msra.mxu0 %v12458_v53  ;;  %v3501_v53 = vsel %vm1078_vm2, %v3499_v48, %v3500_v39  ;;  %v3508_v11 = vrot.slane %v9675_v4, 1  ;;  %v9621_v48 = vld [vmem:[%s13171_s25 + $0x74] sm:$0xf]  ;;  %v9639_v39 = vld [vmem:[%s13171_s25 + $0x70] sm:$0x8] }
  0xcd   : > { %11624 = vmatprep.subr.bf16.mxu0 %v12463_v59  ;;  %v3495_v29 = vsel %vm1078_vm2, %v3493_v19, %v3494_v17  ;;  %v9695_v52 = vcombine.low %v9639_v39, %v9621_v48  ;;  %v9679_v58 = vcombine.low %v9620_v56, %v9621_v48  ;;  %v12530_v56 = vld [vmem:[%s13171_s25 + $0x2c] ss:$0 sps:$4 sm:$0x11]  }
  0xce   : > { %10965 = vmatpush3.bf16.msra.mxu1 %v12467_v9  ;;  %3809 = vmatprep.mubr.bf16.mxu1 %v3495_v29  ;;  %v9677_v29 = vcombine.low %v9617_v6, %v9618_v14 }
  0xcf   : > { %11609 = vmatmul.mubr.bf16.gmra.mrb[20].mxu0 %v9346_v49  ;;  %10966 = vmatprep.subr.bf16.mxu1 %v12476_v23  ;;  %v3509_v49 = vrot.slane %v12485_v7, 1  ;;  %v9513_v23 = vcombine.low %v12897_v18, %v9473_v13  ;;  %v3408_v12 = vrot.slane %v9695_v52, 2  ;;  %v12514_v18 = vld [vmem:[%s13171_s25 + $0x88] ss:$0 sps:$4 sm:$0x11]  }
  0xd0   : > { %11625 = vmatpush3.bf16.msra.mxu0 %v12463_v59  ;;  %3810 = vmatmul.mubr.bf16.gmra.mrb[68].mxu1 %v3492_v31  ;;  %v12481_v59 = vld [vmem:[%s13171_s25 + $0x58] ss:$0 sps:$4 sm:$0x77]   ;;  %v12494_v31 = vld [vmem:[%s13171_s25 + $0x68] ss:$0 sps:$4 sm:$0x11]  }
  0xd1   : > { %11626 = vmatprep.subr.bf16.mxu0 %v12468_v15  ;;  %11612 = vmatprep.mubr.bf16.mxu0 %v9347_v32  ;;  %v3403_v3 = vrot.slane %v12481_v59, 2  ;;  %v3510_v17 = vsel %vm1078_vm2, %v3508_v11, %v3509_v49  ;;  %v12495_v32 = vld [vmem:[%s16676_s6 + $0x80] sm:$0xff]   ;;  %v3517_v38 = vrot.slane %v9677_v29, 1  ;;  %v3518_v40 = vrot.slane %v12494_v31, 1  ;;  %v9478_v49 = vld [vmem:[%s13171_s25 + $0xd8] sm:$0xf] }
  0xd2   : > { %10967 = vmatpush3.bf16.msra.mxu1 %v12477_v21  ;;  %3817 = vmatprep.mubr.bf16.mxu1 %v3504_v42  ;;  %v12506_v21 = vld [vmem:[%s16676_s6 + $0x128] sm:$0xff]   ;;  %v12501_v42 = vld [vmem:[%s13171_s25 + $0x78] ss:$0 sps:$4 sm:$0x77]   ;;  %v9518_v6 = vcombine.low %v13652_v47, %v9478_v49  ;;  %v12538_v31 = vld [vmem:[%s16678_s8 + $0x40] sm:$0xff]  }
  0xd3   : > { %10968 = vmatprep.subr.bf16.mxu1 %v12486_v36  ;;  %v3404_v9 = vsel %vm1135_vm3, %v3402_v16, %v3403_v3  ;;  %v3512_v10 = vrot.slane %v3403_v3, 1  ;;  %v12504_v59 = vld [vmem:[%s13171_s25 + $0x78] ss:$0 sps:$4 sm:$0x11]   ;;  %v3526_v3 = vrot.slane %v9679_v58, 1 }
  0xd4   : > { %11627 = vmatpush3.bf16.msra.mxu0 %v12468_v15  ;;  %v3511_v2 = vrot.slane %v3404_v9, 1  ;;  %v9637_v15 = vld [vmem:[%s13171_s25 + $0x60] sm:$0x8]  ;;  %v3527_v4 = vrot.slane %v12504_v59, 1  ;;  %v9624_v9 = vld [vmem:[%s13171_s25 + $0x84] sm:$0xf] }
  0xd5   : > { %11628 = vmatprep.subr.bf16.mxu0 %v12473_v27  ;;  %v9693_v19 = vcombine.low %v9637_v15, %v9618_v14  ;;  %v12511_v14 = vld [vmem:[%s13171_s25 + $0x88] ss:$0 sps:$4 sm:$0x77]   ;;  %v9623_v15 = vld [vmem:[%s13171_s25 + $0x80] sm:$0xe] }
  0xd6   : > { %10969 = vmatpush3.bf16.msra.mxu1 %v12487_v51  ;;  %v3513_v30 = vsel %vm1078_vm2, %v3511_v2, %v3512_v10  ;;  %v3519_v51 = vsel %vm1078_vm2, %v3517_v38, %v3518_v40  ;;  %v9641_v2 = vld [vmem:[%s13171_s25 + $0x80] sm:$0x8]  ;;  %v12521_v38 = vld [vmem:[%s13171_s25 + $0x98] ss:$0 sps:$4 sm:$0x77]  }
  0xd7   : > { %11613 = vmatmul.mubr.bf16.gmra.mrb[24].mxu0 %v9348_v50  ;;  %10970 = vmatprep.subr.bf16.mxu1 %v12496_v63  ;;  %v3405_v25 = vrot.slane %v9693_v19, 2  ;;  %v12507_v50 = vld [vmem:[%s16676_s6 + $0xe8] sm:$0xff]   ;;  %v9697_v13 = vcombine.low %v9641_v2, %v9624_v9  ;;  %v3412_v19 = vrot.slane %v12511_v14, 2  ;;  %v9765_v58 = vld [vmem:[%s13171_s25 + $0x60] sm:$0x8] }
  0xd8   : > { %11629 = vmatpush3.bf16.msra.mxu0 %v12473_v27  ;;  %11616 = vmatprep.mubr.bf16.mxu0 %v9349_v54  ;;  %v3406_v27 = vrot.slane %v12491_v20, 2  ;;  %v12505_v54 = vld [vmem:[%s16676_s6 + $0x90] sm:$0xff]   ;;  %v12537_v59 = vld [vmem:[%s16676_s6 + $0x140] sm:$0xff]   ;;  %v12536_v49 = vld [vmem:[%s13171_s25 + $0x68] ss:$0 sps:$4 sm:$0x11]  }
  0xd9   : > { %11630 = vmatprep.subr.bf16.mxu0 %v12478_v46  ;;  %3818 = vmatmul.mubr.bf16.gmra.mrb[72].mxu1 %v3501_v53  ;;  %v9476_v53 = vld [vmem:[%s13171_s25 + $0xb8] sm:$0xf]  ;;  %v3539_v24 = vrot.slane %v3412_v19, 1  ;;  %v12539_v14 = vld [vmem:[%s16678_s8] sm:$0xff]  }
  0xda   : > { %3825 = vmatprep.mubr.bf16.mxu1 %v3513_v30  ;;  %v3407_v36 = vsel %vm1135_vm3, %v3405_v25, %v3406_v27  ;;  %v3521_v37 = vrot.slane %v3406_v27, 1  ;;  %10971 = vmatpush3.bf16.msra.mxu1 %v12497_v55  ;;  %v9516_v63 = vcombine.low %v13580_v33, %v9476_v53  ;;  %v12526_v33 = vld [vmem:[%s16676_s6 + $0x138] sm:$0xff]   ;;  %v3528_v55 = vsel %vm1078_vm2, %v3526_v3, %v3527_v4  ;;  %v12518_v27 = vld [vmem:[%s16676_s6 + $0xa8] sm:$0xff]  }
  0xdb   : > { %v3520_v43 = vrot.slane %v3407_v36, 1  ;;  %10972 = vmatprep.subr.bf16.mxu1 %v12506_v21  ;;  %v12527_v30 = vld [vmem:[%s16676_s6 + $0xf8] sm:$0xff]   ;;  %v3536_v25 = vrot.slane %v12514_v18, 1  ;;  %v4244_v18 = vrot.slane %v12536_v49, 1 }
  0xdc   : > { %11631 = vmatpush3.bf16.msra.mxu0 %v12478_v46  ;;  %v12899_v46 = vld [vmem:[%s13171_s25 + $0xa4] sm:$0xf] }
  0xdd   : > { %11632 = vmatprep.subr.bf16.mxu0 %v12483_v57  ;;  %v3522_v45 = vsel %vm1078_vm2, %v3520_v43, %v3521_v37  ;;  %v9515_v28 = vcombine.low %v12899_v46, %v9475_v62 }
  0xde   : > { %10973 = vmatpush3.bf16.msra.mxu1 %v12507_v50  ;;  %v9626_v50 = vld [vmem:[%s13171_s25 + $0x90] sm:$0xe] }
  0xdf   : > { %11617 = vmatmul.mubr.bf16.gmra.mrb[28].mxu0 %v9350_v5  ;;  %10974 = vmatprep.subr.bf16.mxu1 %v12516_v44  ;;  %v12508_v5 = vld [vmem:[%s16676_s6 + $0x98] sm:$0xff]   ;;  %v3415_v44 = vrot.slane %v12521_v38, 2  ;;  %v9683_v62 = vcombine.low %v9626_v50, %v9627_v34 }
  0xe0   : > { %11633 = vmatpush3.bf16.msra.mxu0 %v12483_v57  ;;  %11636 = vmatprep.mubr.bf16.mxu0 %v9513_v23  ;;  %v3409_v57 = vrot.slane %v12501_v42, 2  ;;  %v3411_v23 = vrot.slane %v9697_v13, 2  ;;  %v12528_v42 = vld [vmem:[%s16676_s6 + $0xb8] sm:$0xff]  }
  0xe1   : > { %11634 = vmatprep.subr.bf16.mxu0 %v12488_v8  ;;  %3826 = vmatmul.mubr.bf16.gmra.mrb[76].mxu1 %v3510_v17  ;;  %v9681_v17 = vcombine.low %v9623_v15, %v9624_v9  ;;  %v3544_v48 = vrot.slane %v9683_v62, 1  ;;  %v12563_v62 = vld [vmem:[%s16678_s8 + $0x10] sm:$0xff]  }
  0xe2   : > { %3833 = vmatprep.mubr.bf16.mxu1 %v3522_v45  ;;  %v3410_v0 = vsel %vm1135_vm3, %v3408_v12, %v3409_v57  ;;  %v3530_v16 = vrot.slane %v3409_v57, 1  ;;  %10975 = vmatpush3.bf16.msra.mxu1 %v12517_v60  ;;  %v3413_v21 = vsel %vm1135_vm3, %v3411_v23, %v3412_v19  ;;  %v12524_v45 = vld [vmem:[%s13171_s25 + $0x98] ss:$0 sps:$4 sm:$0x11]   ;;  %v9742_v12 = vld [vmem:[%s13171_s25 + $0x64] sm:$0xf] }
  0xe3   : > { %v3529_v7 = vrot.slane %v3410_v0, 1  ;;  %10976 = vmatprep.subr.bf16.mxu1 %v12526_v33  ;;  %v3535_v20 = vrot.slane %v9681_v17, 1  ;;  %v3538_v29 = vrot.slane %v3413_v21, 1  ;;  %v3545_v52 = vrot.slane %v12524_v45, 1  ;;  %v12549_v19 = vld [vmem:[%s16676_s6 + $0x150] sm:$0xff]  }
  0xe4   : > { %11635 = vmatpush3.bf16.msra.mxu0 %v12488_v8  ;;  %v9477_v8 = vld [vmem:[%s13171_s25 + $0xc8] sm:$0xf]  ;;  %v3488_v60 = vrot.slane %v12530_v56, 1 }
  0xe5   : > { %11652 = vmatprep.subr.bf16.mxu0 %v12495_v32  ;;  %v3531_v10 = vsel %vm1078_vm2, %v3529_v7, %v3530_v16  ;;  %v9517_v11 = vcombine.low %v13616_v1, %v9477_v8  ;;  %v12515_v1 = vld [vmem:[%s16676_s6 + $0xa0] sm:$0xff]   ;;  %v3540_v47 = vsel %vm1078_vm2, %v3538_v29, %v3539_v24  ;;  %v3537_v40 = vsel %vm1078_vm2, %v3535_v20, %v3536_v25  ;;  %v12532_v0 = vld [vmem:[%s13171_s25 + $0x68] ss:$0 sps:$4 sm:$0x77]   ;;  %v12533_v16 = vld [vmem:[%s13171_s25 + $0x34] sm:$0xfe]  }
  0xe6   : > { %10977 = vmatpush3.bf16.msra.mxu1 %v12527_v30  ;;  %v3546_v57 = vsel %vm1078_vm2, %v3544_v48, %v3545_v52  ;;  %v12534_v7 = vld [vmem:[%s13171_s25 + $0x3c] ss:$0 sps:$4 sm:$0x11]   ;;  %v3496_v33 = vrot.slane %v12533_v16, 1  ;;  %v9741_v8 = vld [vmem:[%s13171_s25 + $0x60] sm:$0xe] }
  0xe7   : > { %11637 = vmatmul.mubr.bf16.vlgmr.msra.gmra.mrb[16].mxu0 %v9514_v35  ;;  %v9643_v35 = vld [vmem:[%s13171_s25 + $0x90] sm:$0x8]  ;;  %11122 = vmatprep.subr.bf16.mxu1 %v12538_v31  ;;  %v9805_v2 = vcombine.low %v9741_v8, %v9742_v12  ;;  %v12541_v21 = vld [vmem:[%s13171_s25 + $0x44] sm:$0xfe]   ;;  %v9745_v24 = vld [vmem:[%s13171_s25 + $0x74] sm:$0xf] }
  0xe8   : > { %11653 = vmatpush3.bf16.msra.mxu0 %v12495_v32  ;;  %11640 = vmatprep.mubr.bf16.mxu0 %v9515_v28  ;;  %v9479_v32 = vld [vmem:[%s13171_s25 + $0xe8] sm:$0xf]  ;;  %v9699_v37 = vcombine.low %v9643_v35, %v9627_v34  ;;  %v3548_v28 = vrot.slane %v3415_v44, 1  ;;  %v12542_v25 = vld [vmem:[%s13171_s25 + $0x4c] ss:$0 sps:$4 sm:$0x11]  }
  0xe9   : > { %11654 = vmatprep.subr.bf16.mxu0 %v12498_v41  ;;  %3834 = vmatmul.mubr.bf16.gmra.mrb[80].mxu1 %v3519_v51  ;;  %v9519_v36 = vcombine.low %v13688_v22, %v9479_v32  ;;  %v12525_v22 = vld [vmem:[%s16676_s6 + $0xb0] sm:$0xff]   ;;  %v4243_v17 = vrot.slane %v9805_v2, 1  ;;  %v3505_v31 = vrot.slane %v12541_v21, 1  ;;  %v12544_v34 = vld [vmem:[%s13171_s25 + $0x78] ss:$0 sps:$4 sm:$0x77]  }
  0xea   : > { %3841 = vmatprep.mubr.bf16.mxu1 %v3531_v10  ;;  %v3414_v43 = vrot.slane %v9699_v37, 2  ;;  %v12552_v35 = vld [vmem:[%s16676_s6 + $0x158] sm:$0xff]   ;;  %v12562_v37 = vld [vmem:[%s16678_s8 + $0x50] sm:$0xff]   ;;  %v12554_v16 = vld [vmem:[%s13171_s25 + $0x6c] ss:$0 sps:$4 sm:$0x11]  }
  0xeb   : > { %v4245_v20 = vsel %vm1078_vm2, %v4243_v17, %v4244_v18 }
  0xec   : > { %11655 = vmatpush3.bf16.msra.mxu0 %v12498_v41  ;;  %v9480_v41 = vld [vmem:[%s13171_s25 + $0xf8] sm:$0xf]  ;;  %v3416_v46 = vsel %vm1135_vm3, %v3414_v43, %v3415_v44  ;;  %v12546_v43 = vld [vmem:[%s13171_s25 + $0x5c] ss:$0 sps:$4 sm:$0x11]  }
  0xed   : > { %11656 = vmatprep.subr.bf16.mxu0 %v12505_v54  ;;  %v3547_v39 = vrot.slane %v3416_v46, 1  ;;  %v9520_v51 = vcombine.low %v13712_v61, %v9480_v41  ;;  %v12545_v41 = vld [vmem:[%s13171_s25 + $0x54] sm:$0xfe]   ;;  %v9744_v44 = vld [vmem:[%s13171_s25 + $0x70] sm:$0xe]  ;;  %v3515_v52 = vrot.slane %v12546_v43, 1 }
  0xee   : > { %v9807_v48 = vcombine.low %v9744_v44, %v9745_v24 }
  0xef   : > { %11641 = vmatmul.mubr.bf16.gmra.mrb[20].mxu0 %v9516_v63  ;;  %v3549_v53 = vsel %vm1078_vm2, %v3547_v39, %v3548_v28  ;;  %v9821_v63 = vcombine.low %v9765_v58, %v9742_v12  ;;  %v3514_v28 = vrot.slane %v12545_v41, 1  ;;  %v12561_v39 = vld [vmem:[%s16676_s6 + $0x160] sm:$0xff]  }
  0xf0   : > { %11657 = vmatpush3.bf16.msra.mxu0 %v12505_v54  ;;  %11644 = vmatprep.mubr.bf16.mxu0 %v9517_v11  ;;  %v12529_v54 = vld [vmem:[%s13171_s25 + $0x24] sm:$0xfe]   ;;  %v3497_v11 = vrot.slane %v12534_v7, 1 }
  0xf1   : > { %11658 = vmatprep.subr.bf16.mxu0 %v12508_v5  ;;  %3842 = vmatmul.mubr.bf16.gmra.mrb[84].mxu1 %v3528_v55  ;;  %v3487_v61 = vrot.slane %v12529_v54, 1  ;;  %v4155_v4 = vrot.slane %v9821_v63, 2  ;;  %v12540_v55 = vld [vmem:[%s16676_s6 + $0x148] sm:$0xff]   ;;  %v4252_v54 = vrot.slane %v9807_v48, 1 }
  0xf2   : > { %3849 = vmatprep.mubr.bf16.mxu1 %v3540_v47  ;;  %v3498_v30 = vsel %vm1078_vm2, %v3496_v33, %v3497_v11  ;;  %v3524_v33 = vrot.slane %v12554_v16, 1 }
  0xf3   : > { %v3489_v3 = vsel %vm1078_vm2, %v3487_v61, %v3488_v60  ;;  %v12564_v60 = vld [vmem:[%s16676_s6 + $0x168] sm:$0xff]  }
  0xf4   : > { %11659 = vmatpush3.bf16.msra.mxu0 %v12508_v5  ;;  %v4156_v5 = vrot.slane %v12532_v0, 2  ;;  %v12553_v0 = vld [vmem:[%s13171_s25 + $0x64] sm:$0xfe]  }
  0xf5   : > { %11660 = vmatprep.subr.bf16.mxu0 %v12515_v1  ;;  %v3523_v7 = vrot.slane %v12553_v0, 1 }
  0xf6   : > { %v4157_v9 = vsel %vm1135_vm3, %v4155_v4, %v4156_v5  ;;  %v4247_v10 = vrot.slane %v4156_v5, 1  ;;  %v9748_v4 = vld [vmem:[%s13171_s25 + $0x84] sm:$0xf]  ;;  %v9769_v5 = vld [vmem:[%s13171_s25 + $0x80] sm:$0x8] }
  0xf7   : > { %11645 = vmatmul.mubr.bf16.gmra.mrb[24].mxu0 %v9518_v6  ;;  %v4246_v13 = vrot.slane %v4157_v9, 1  ;;  %v12551_v6 = vld [vmem:[%s16678_s8 + $0x8] sm:$0xff]   ;;  %v9825_v8 = vcombine.low %v9769_v5, %v9748_v4  ;;  %v3525_v11 = vsel %vm1078_vm2, %v3523_v7, %v3524_v33 }
  0xf8   : > { %11661 = vmatpush3.bf16.msra.mxu0 %v12515_v1  ;;  %11648 = vmatprep.mubr.bf16.mxu0 %v9519_v36  ;;  %v12550_v1 = vld [vmem:[%s16678_s8 + $0x48] sm:$0xff]   ;;  %v3506_v36 = vrot.slane %v12542_v25, 1 }
  0xf9   : > { %11662 = vmatprep.subr.bf16.mxu0 %v12518_v27  ;;  %3850 = vmatmul.mubr.bf16.gmra.mrb[88].mxu1 %v3537_v40  ;;  %v4248_v23 = vsel %vm1078_vm2, %v4246_v13, %v4247_v10  ;;  %v4159_v40 = vrot.slane %v12544_v34, 2  ;;  %v12556_v9 = vld [vmem:[%s13171_s25 + $0x88] ss:$0 sps:$4 sm:$0x77]   ;;  %v12573_v10 = vld [vmem:[%s16676_s6 + $0x170] sm:$0xff]   ;;  %v4161_v2 = vrot.slane %v9825_v8, 2 }
  0xfa   : > { %3857 = vmatprep.mubr.bf16.mxu1 %v3549_v53  ;;  %v3507_v50 = vsel %vm1078_vm2, %v3505_v31, %v3506_v36  ;;  %v4162_v49 = vrot.slane %v12556_v9, 2  ;;  %v9747_v13 = vld [vmem:[%s13171_s25 + $0x80] sm:$0xe]  ;;  %v14014_v34 = vld [vmem:[%s16673_s3] ss:$0 sm:$0xff] }
  0xfb   : > { %v4256_v46 = vrot.slane %v4159_v40, 1 }
  0xfc   : > { %11663 = vmatpush3.bf16.msra.mxu0 %v12518_v27  ;;  %v9767_v27 = vld [vmem:[%s13171_s25 + $0x70] sm:$0x8]  ;;  %v4163_v17 = vsel %vm1135_vm3, %v4161_v2, %v4162_v49  ;;  %v4265_v18 = vrot.slane %v4162_v49, 1 }
  0xfd   : > { %11664 = vmatprep.subr.bf16.mxu0 %v12525_v22  ;;  %v9823_v32 = vcombine.low %v9767_v27, %v9745_v24 }
  0xff   : > { %11649 = vmatmul.mubr.bf16.gmra.mrb[28].mxu0 %v9520_v51  ;;  %v4158_v38 = vrot.slane %v9823_v32, 2 }
 0x100   : > { %11665 = vmatpush3.bf16.msra.mxu0 %v12525_v22  ;;  %11668 = vmatprep.mubr.bf16.mxu0 %v3489_v3 }
 0x101   : > { %11666 = vmatprep.subr.bf16.mxu0 %v12528_v42  ;;  %3858 = vmatmul.mubr.bf16.gmra.mrb[92].mxu1 %v3546_v57  ;;  %v4160_v22 = vsel %vm1135_vm3, %v4158_v38, %v4159_v40  ;;  %v3516_v57 = vsel %vm1078_vm2, %v3514_v28, %v3515_v52  ;;  %v9751_v38 = vld [vmem:[%s13171_s25 + $0x94] sm:$0xf]  ;;  %v12566_v40 = vld [vmem:[%s13171_s25 + $0x8c] ss:$0 sps:$4 sm:$0x11]  }
 0x102   : > { %4564 = vmatprep.mubr.bf16.mxu1 %v4248_v23  ;;  %v4255_v51 = vrot.slane %v4160_v22, 1  ;;  %v12560_v23 = vld [vmem:[%s13171_s25 + $0x88] ss:$0 sps:$4 sm:$0x11]   ;;  %v3542_v43 = vrot.slane %v12566_v40, 1  ;;  %v14024_v22 = vstv %s847_s27 }
 0x103   : > { %v4262_v25 = vrot.slane %v12560_v23, 1 }
 0x104   : > { %11667 = vmatpush3.bf16.msra.mxu0 %v12528_v42  ;;  %v12548_v42 = vld [vmem:[%s13171_s25 + $0x78] ss:$0 sps:$4 sm:$0x11]   ;;  %v4257_v12 = vsel %vm1078_vm2, %v4255_v51, %v4256_v46 }
 0x105   : > { %11684 = vmatprep.subr.bf16.mxu0 %v12537_v59  ;;  %v4253_v61 = vrot.slane %v12548_v42, 1 }
 0x107   : > { %11669 = vmatmul.mubr.bf16.vlgmr.msra.gmra.mrb[64].mxu0 %v3498_v30  ;;  %v4254_v63 = vsel %vm1078_vm2, %v4252_v54, %v4253_v61  ;;  %v12574_v30 = vld [vmem:[%s16678_s8 + $0x58] sm:$0xff]   ;;  %v9750_v54 = vld [vmem:[%s13171_s25 + $0x90] sm:$0xe] }
 0x108   : > { %11685 = vmatpush3.bf16.msra.mxu0 %v12537_v59  ;;  %11672 = vmatprep.mubr.bf16.mxu0 %v3507_v50  ;;  %v9771_v50 = vld [vmem:[%s13171_s25 + $0x90] sm:$0x8] }
 0x109   : > { %11686 = vmatprep.subr.bf16.mxu0 %v12540_v55  ;;  %4565 = vmatmul.mubr.bf16.vlgmr.msra.gmra.mrb[96].mxu1 %v4245_v20  ;;  %v4264_v20 = vrot.slane %v4163_v17, 1  ;;  %v9827_v44 = vcombine.low %v9771_v50, %v9751_v38  ;;  %v9773_v17 = vld [vmem:[%s13171_s25 + $0xa0] sm:$0x8] }
 0x10a   : > { %11123 = vmatpush3.bf16.msra.mxu1 %v12539_v14  ;;  %4572 = vmatprep.mubr.bf16.mxu1 %v4257_v12  ;;  %v12558_v14 = vld [vmem:[%s13171_s25 + $0x7c] ss:$0 sps:$4 sm:$0x11]   ;;  %v12588_v50 = vld [vmem:[%s16678_s8 + $0x20] sm:$0xff]  }
 0x10b   : > { %11124 = vmatprep.subr.bf16.mxu1 %v12550_v1  ;;  %v3533_v21 = vrot.slane %v12558_v14, 1  ;;  %v4164_v28 = vrot.slane %v9827_v44, 2  ;;  %v12585_v14 = vld [vmem:[%s16676_s6 + $0x1c0] sm:$0xff]  }
 0x10c   : > { %11687 = vmatpush3.bf16.msra.mxu0 %v12540_v55  ;;  %v12557_v55 = vld [vmem:[%s13171_s25 + $0x74] sm:$0xfe]  }
 0x10d   : > { %11688 = vmatprep.subr.bf16.mxu0 %v12549_v19  ;;  %v3532_v1 = vrot.slane %v12557_v55, 1 }
 0x10e   : > { %11125 = vmatpush3.bf16.msra.mxu1 %v12551_v6  ;;  %v12575_v6 = vld [vmem:[%s16678_s8 + $0x18] sm:$0xff]  }
 0x10f   : > { %11126 = vmatprep.subr.bf16.mxu1 %v12562_v37  ;;  %11673 = vmatmul.mubr.bf16.gmra.mrb[68].mxu0 %v3516_v57  ;;  %v3534_v31 = vsel %vm1078_vm2, %v3532_v1, %v3533_v21  ;;  %v12565_v37 = vld [vmem:[%s13171_s25 + $0x84] sm:$0xfe]  }
 0x110   : > { %11689 = vmatpush3.bf16.msra.mxu0 %v12549_v19  ;;  %11676 = vmatprep.mubr.bf16.mxu0 %v3525_v11  ;;  %v3541_v41 = vrot.slane %v12565_v37, 1  ;;  %v12578_v1 = vld [vmem:[%s13171_s25 + $0xa8] ss:$0 sps:$4 sm:$0x77]  }
 0x111   : > { %11690 = vmatprep.subr.bf16.mxu0 %v12552_v35  ;;  %4573 = vmatmul.mubr.bf16.gmra.mrb[100].mxu1 %v4254_v63  ;;  %v4168_v21 = vrot.slane %v12578_v1, 2 }
 0x112   : > { %11127 = vmatpush3.bf16.msra.mxu1 %v12563_v62  ;;  %v12568_v62 = vld [vmem:[%s13171_s25 + $0x98] ss:$0 sps:$4 sm:$0x77]   ;;  %v3543_v46 = vsel %vm1078_vm2, %v3541_v41, %v3542_v43 }
 0x113   : > { %11128 = vmatprep.subr.bf16.mxu1 %v12574_v30  ;;  %v4165_v48 = vrot.slane %v12568_v62, 2  ;;  %v9754_v30 = vld [vmem:[%s13171_s25 + $0xa4] sm:$0xf]  ;;  %v12583_v62 = vld [vmem:[%s13171_s25 + $0x74] sm:$0xfe]  }
 0x114   : > { %11691 = vmatpush3.bf16.msra.mxu0 %v12552_v35 }
 0x115   : > { %11692 = vmatprep.subr.bf16.mxu0 %v12561_v39  ;;  %v4166_v12 = vsel %vm1135_vm3, %v4164_v28, %v4165_v48  ;;  %v4274_v57 = vrot.slane %v4165_v48, 1  ;;  %v4258_v48 = vrot.slane %v12583_v62, 1 }
 0x116   : > { %11129 = vmatpush3.bf16.msra.mxu1 %v12575_v6  ;;  %v4273_v16 = vrot.slane %v4166_v12, 1  ;;  %v9753_v6 = vld [vmem:[%s13171_s25 + $0xa0] sm:$0xe] }
 0x117   : > { %11677 = vmatmul.mubr.bf16.gmra.mrb[72].mxu0 %v3534_v31  ;;  %v4283_v31 = vrot.slane %v4168_v21, 1 }
 0x118   : > { %11693 = vmatpush3.bf16.msra.mxu0 %v12561_v39  ;;  %v12570_v39 = vld [vmem:[%s13171_s25 + $0x9c] ss:$0 sps:$4 sm:$0x11]   ;;  %11680 = vmatprep.mubr.bf16.mxu0 %v3543_v46  ;;  %v12587_v46 = vld [vmem:[%s16676_s6 + $0x180] sm:$0xff]  }
 0x119   : > { %11694 = vmatprep.subr.bf16.mxu0 %v12564_v60  ;;  %v3551_v61 = vrot.slane %v12570_v39, 1 }
 0x11a   : > { %v13976_v53 = vpop.f32.mrb[0].mxu0 }
 0x11b   : > { %v10658_v15 = vpop.f32.mrb[0].mxu1  ;;  %v784_v59 = vpop.f32.mrb[1].mxu0 }
 0x11c   : > { %v10659_v29 = vpop.f32.mrb[1].mxu1  ;;  %v13988_v3 = vpop.f32.mrb[2].mxu0  ;;  %11695 = vmatpush3.bf16.msra.mxu0 %v12564_v60  ;;  %v785_v35 = vadd.f32 %v14014_v34, %v784_v59  ;;  %v9811_v59 = vcombine.low %v9750_v54, %v9751_v38  ;;  %v12572_v60 = vld [vmem:[%s13171_s25 + $0x98] ss:$0 sps:$4 sm:$0x11]  }
 0x11d   : > { %v13959_v47 = vadd.f32 %v10659_v29, %v10658_v15  ;;  %v10661_v45 = vpop.f32.mrb[2].mxu1  ;;  %v9809_v15 = vcombine.low %v9747_v13, %v9748_v4  ;;  %v787_v19 = vpop.f32.mrb[3].mxu0  ;;  %11696 = vmatprep.subr.bf16.mxu0 %v12573_v10  ;;  %v4266_v29 = vsel %vm1078_vm2, %v4264_v20, %v4265_v18  ;;  %v4271_v9 = vrot.slane %v12572_v60, 1  ;;  %v9775_v60 = vld [vmem:[%s13171_s25 + $0xb0] sm:$0x8] }
 0x11e   : > { %v10662_v56 = vpop.f32.mrb[3].mxu1  ;;  %4580 = vmatprep.mubr.bf16.mxu1 %v4266_v29  ;;  %v788_v36 = vadd.f32 %v14014_v34, %v787_v19  ;;  %vm848_vm5 = vcmp.gt.f32.partialorder %v785_v35, 0.0  ;;  %v865_v52 = vmul.f32 %v14024_v22, %v785_v35  ;;  %v4270_v8 = vrot.slane %v9811_v59, 1  ;;  %v12586_v19 = vld [vmem:[%s16678_s8 + $0x60] sm:$0xff]   ;;  %v9757_v59 = vld [vmem:[%s13171_s25 + $0xb4] sm:$0xf] }
 0x11f   : > { %v13980_v58 = vadd.f32 %v10662_v56, %v10661_v45  ;;  %v4261_v24 = vrot.slane %v9809_v15, 1  ;;  %v12569_v45 = vld [vmem:[%s13171_s25 + $0x94] sm:$0xfe]   ;;  %v9829_v18 = vcombine.low %v9773_v17, %v9754_v30  ;;  %11130 = vmatprep.subr.bf16.mxu1 %v12586_v19 }
 0x120   : > { %11697 = vmatpush3.bf16.msra.mxu0 %v12573_v10  ;;  %vm849_vm6 = vcmp.gt.f32.partialorder %v788_v36, 0.0  ;;  %v3550_v42 = vrot.slane %v12569_v45, 1  ;;  %v12576_v56 = vld [vmem:[%s16676_s6 + $0x178] sm:$0xff]   ;;  %v14036_v0 = vsel %vm848_vm5, %v785_v35, %v865_v52  ;;  %v866_v4 = vmul.f32 %v14024_v22, %v788_v36  ;;  %v12582_v35 = vld [vmem:[%s13171_s25 + $0xa8] ss:$0 sps:$4 sm:$0x11]   ;;  %11131 = vmatpush3.bf16.msra.mxu1 %v12588_v50 }
 0x121   : > { %v4263_v32 = vsel %vm1078_vm2, %v4261_v24, %v4262_v25  ;;  %16750 = vst [vmem:[#allocation10_spill] sm:$0xff] %v14036_v0  ;;  %11698 = vmatprep.subr.bf16.mxu0 %v12576_v56  ;;  %v4275_v10 = vsel %vm1078_vm2, %v4273_v16, %v4274_v57  ;;  %v4272_v2 = vsel %vm1078_vm2, %v4270_v8, %v4271_v9  ;;  %v4167_v20 = vrot.slane %v9829_v18, 2  ;;  %v12579_v24 = vld [vmem:[%s13171_s25 + $0x64] sm:$0xfe]   ;;  %v9756_v18 = vld [vmem:[%s13171_s25 + $0xb0] sm:$0xe] }
 0x122   : > { %4581 = vmatmul.mubr.bf16.gmra.mrb[104].mxu1 %v4263_v32  ;;  %v14041_v7 = vpop.f32.mrb[4].mxu0  ;;  %v3552_v33 = vsel %vm1078_vm2, %v3550_v42, %v3551_v61  ;;  %v14046_v11 = vsel %vm849_vm6, %v788_v36, %v866_v4  ;;  %v12580_v25 = vld [vmem:[%s13171_s25 + $0x6c] ss:$0 sps:$4 sm:$0x11]   ;;  %v4249_v32 = vrot.slane %v12579_v24, 1  ;;  %v4280_v41 = vrot.slane %v12582_v35, 1 }
 0x123   : > { %v10664_v27 = vpop.f32.mrb[4].mxu1  ;;  %11681 = vmatmul.mubr.bf16.gmra.mrb[76].mxu0 %v3552_v33  ;;  %16751 = vst [vmem:[#allocation11_spill] sm:$0xff] %v14046_v11  ;;  %4588 = vmatprep.mubr.bf16.mxu1 %v4275_v10  ;;  %v14051_v13 = vpop.f32.mrb[5].mxu0  ;;  %v4169_v29 = vsel %vm1135_vm3, %v4167_v20, %v4168_v21  ;;  %v4250_v38 = vrot.slane %v12580_v25, 1  ;;  %v12589_v42 = vld [vmem:[%s16676_s6 + $0x1c8] sm:$0xff]   ;;  %v9831_v4 = vcombine.low %v9775_v60, %v9757_v59 }
 0x124   : > { %v10665_v51 = vpop.f32.mrb[5].mxu1  ;;  %11699 = vmatpush3.bf16.msra.mxu0 %v12576_v56  ;;  %v14061_v23 = vpop.f32.mrb[6].mxu0  ;;  %v4282_v37 = vrot.slane %v4169_v29, 1  ;;  %v12584_v45 = vld [vmem:[%s13171_s25 + $0x7c] ss:$0 sps:$4 sm:$0x11]   ;;  %v9815_v21 = vcombine.low %v9756_v18, %v9757_v59 }
 0x125   : > { %v10667_v63 = vpop.f32.mrb[6].mxu1  ;;  %v14039_v5 = vadd.f32 %v10665_v51, %v10664_v27  ;;  %11042 = vmatprep.subr.bf16.mxu0 %v12585_v14  ;;  %v9813_v27 = vcombine.low %v9753_v6, %v9754_v30  ;;  %v14071_v36 = vpop.f32.mrb[7].mxu0  ;;  %v4251_v44 = vsel %vm1078_vm2, %v4249_v32, %v4250_v38  ;;  %v4259_v39 = vrot.slane %v12584_v45, 1  ;;  %v12590_v56 = vld [vmem:[%s16676_s6 + $0x188] sm:$0xff]   ;;  %v12599_v30 = vld [vmem:[%s16676_s6 + $0x1d0] sm:$0xff]  }
 0x126   : > { %v10668_v55 = vpop.f32.mrb[7].mxu1  ;;  %v4284_v43 = vsel %vm1078_vm2, %v4282_v37, %v4283_v31  ;;  %11700 = vmatprep.mubr.bf16.mxu0 %v4251_v44  ;;  %v12592_v8 = vld [vmem:[%s13171_s25 + $0xb8] ss:$0 sps:$4 sm:$0x77]   ;;  %v4170_v10 = vrot.slane %v9831_v4, 2  ;;  %v12600_v6 = vld [vmem:[%s16678_s8 + $0x68] sm:$0xff]  }
 0x127   : > { %v14056_v15 = vadd.f32 %v10668_v55, %v10667_v63  ;;  %v4279_v40 = vrot.slane %v9813_v27, 1  ;;  %v4260_v51 = vsel %vm1078_vm2, %v4258_v48, %v4259_v39  ;;  %v4171_v55 = vrot.slane %v12592_v8, 2  ;;  %v12594_v14 = vld [vmem:[%s13171_s25 + $0x8c] ss:$0 sps:$4 sm:$0x11]   ;;  %11132 = vmatprep.subr.bf16.mxu1 %v12600_v6  ;;  %v12604_v48 = vld [vmem:[%s16676_s6 + $0x198] sm:$0xff]  }
 0x128   : > { %v4268_v20 = vrot.slane %v12594_v14, 1  ;;  %v12596_v24 = vld [vmem:[%s13171_s25 + $0xb8] ss:$0 sps:$4 sm:$0x11]   ;;  %v4288_v31 = vrot.slane %v9815_v21, 1  ;;  %v12602_v44 = vld [vmem:[%s16678_s8 + $0x28] sm:$0xff]  }
 0x129   : > { %v4281_v28 = vsel %vm1078_vm2, %v4279_v40, %v4280_v41  ;;  %v4172_v1 = vsel %vm1135_vm3, %v4170_v10, %v4171_v55  ;;  %v4292_v19 = vrot.slane %v4171_v55, 1  ;;  %v4289_v32 = vrot.slane %v12596_v24, 1  ;;  %v12597_v35 = vld [vmem:[%s13171_s25 + $0x94] sm:$0xfe]   ;;  %11133 = vmatpush3.bf16.msra.mxu1 %v12602_v44  ;;  %v12607_v10 = vld [vmem:[%s13171_s25 + $0xa4] sm:$0xfe]  }
 0x12a   : > { %4589 = vmatmul.mubr.bf16.gmra.mrb[108].mxu1 %v4272_v2  ;;  %v14093_v61 = vpop.f32.mrb[8].mxu0  ;;  %v12593_v2 = vld [vmem:[%s13171_s25 + $0x84] sm:$0xfe]   ;;  %v4291_v25 = vrot.slane %v4172_v1, 1  ;;  %v12601_v40 = vld [vmem:[%s16676_s6 + $0x190] sm:$0xff]   ;;  %v4276_v50 = vrot.slane %v12597_v35, 1 }
 0x12b   : > { %4596 = vmatprep.mubr.bf16.mxu1 %v4284_v43  ;;  %v10670_v52 = vpop.f32.mrb[8].mxu1  ;;  %11701 = vmatmul.mubr.bf16.vlgmr.msra.gmra.mrb[64].mxu0 %v4260_v51  ;;  %v14097_v16 = vpop.f32.mrb[9].mxu0  ;;  %v4267_v17 = vrot.slane %v12593_v2, 1  ;;  %v12598_v38 = vld [vmem:[%s13171_s25 + $0x9c] ss:$0 sps:$4 sm:$0x11]   ;;  %v4290_v41 = vsel %vm1078_vm2, %v4288_v31, %v4289_v32 }
 0x12c   : > { %v10671_v54 = vpop.f32.mrb[9].mxu1  ;;  %11043 = vmatpush3.bf16.msra.mxu0 %v12587_v46  ;;  %v14102_v9 = vpop.f32.mrb[10].mxu0  ;;  %v4293_v37 = vsel %vm1078_vm2, %v4291_v25, %v4292_v19  ;;  %v4277_v43 = vrot.slane %v12598_v38, 1  ;;  %v12603_v46 = vld [vmem:[%s16676_s6 + $0x1d8] sm:$0xff]   ;;  %v12613_v14 = vld [vmem:[%s16676_s6 + $0x1e0] sm:$0xff]   ;;  %v12614_v24 = vld [vmem:[%s16678_s8 + $0x70] sm:$0xff]  }
 0x12d   : > { %v14091_v12 = vadd.f32 %v10671_v54, %v10670_v52  ;;  %v10673_v57 = vpop.f32.mrb[10].mxu1  ;;  %11044 = vmatprep.subr.bf16.mxu0 %v12589_v42  ;;  %v14115_v27 = vpop.f32.mrb[11].mxu0  ;;  %v4269_v29 = vsel %vm1078_vm2, %v4267_v17, %v4268_v20  ;;  %v9760_v42 = vld [vmem:[%s13171_s25 + $0xc4] sm:$0xf]  ;;  %v9777_v54 = vld [vmem:[%s13171_s25 + $0xc0] sm:$0x8]  ;;  %11134 = vmatprep.subr.bf16.mxu1 %v12614_v24 }
 0x12e   : > { %v10674_v63 = vpop.f32.mrb[11].mxu1  ;;  %11704 = vmatprep.mubr.bf16.mxu0 %v4269_v29  ;;  %v4278_v62 = vsel %vm1078_vm2, %v4276_v50, %v4277_v43  ;;  %v9833_v59 = vcombine.low %v9777_v54, %v9760_v42  ;;  %v12608_v55 = vld [vmem:[%s13171_s25 + $0xac] ss:$0 sps:$4 sm:$0x11]   ;;  %v9759_v17 = vld [vmem:[%s13171_s25 + $0xc0] sm:$0xe] }
 0x12f   : > { %v14099_v33 = vadd.f32 %v10674_v63, %v10673_v57  ;;  %v12606_v63 = vld [vmem:[%s13171_s25 + $0xc8] ss:$0 sps:$4 sm:$0x77]   ;;  %v4286_v19 = vrot.slane %v12608_v55, 1  ;;  %v9817_v20 = vcombine.low %v9759_v17, %v9760_v42  ;;  %v12611_v35 = vld [vmem:[%s13171_s25 + $0xb4] sm:$0xfe]  }
 0x130   : > { %11045 = vmatpush3.bf16.msra.mxu0 %v12590_v56  ;;  %v4173_v8 = vrot.slane %v9833_v59, 2  ;;  %v4174_v2 = vrot.slane %v12606_v63, 2  ;;  %v12610_v21 = vld [vmem:[%s13171_s25 + $0xc8] ss:$0 sps:$4 sm:$0x11]   ;;  %v4294_v50 = vrot.slane %v12611_v35, 1 }
 0x131   : > { %11046 = vmatprep.subr.bf16.mxu0 %v12599_v30  ;;  %v4285_v30 = vrot.slane %v12607_v10, 1  ;;  %v4297_v31 = vrot.slane %v9817_v20, 1  ;;  %v4298_v32 = vrot.slane %v12610_v21, 1  ;;  %v12612_v38 = vld [vmem:[%s13171_s25 + $0xbc] ss:$0 sps:$4 sm:$0x11]   ;;  %v14197_v20 = vadd.f32 %v13976_v53, %v14014_v34 }
 0x132   : > { %4597 = vmatmul.mubr.bf16.gmra.mrb[112].mxu1 %v4281_v28  ;;  %v14137_v52 = vpop.f32.mrb[12].mxu0  ;;  %v4175_v18 = vsel %vm1135_vm3, %v4173_v8, %v4174_v2  ;;  %v4301_v1 = vrot.slane %v4174_v2, 1  ;;  %v4295_v43 = vrot.slane %v12612_v38, 1  ;;  %v12616_v44 = vld [vmem:[%s16678_s8 + $0x30] sm:$0xff]   ;;  %v12630_v53 = vld [vmem:[%s16678_s8 + $0x38] sm:$0xff]  }
 0x133   : > { %4604 = vmatprep.mubr.bf16.mxu1 %v4293_v37  ;;  %v10676_v45 = vpop.f32.mrb[12].mxu1  ;;  %11705 = vmatmul.mubr.bf16.gmra.mrb[68].mxu0 %v4278_v62  ;;  %v14141_v57 = vpop.f32.mrb[13].mxu0  ;;  %v4300_v6 = vrot.slane %v4175_v18, 1  ;;  %v4287_v29 = vsel %vm1078_vm2, %v4285_v30, %v4286_v19  ;;  %v9763_v54 = vld [vmem:[%s13171_s25 + $0xd4] sm:$0xf]  ;;  %v12628_v19 = vld [vmem:[%s16678_s8 + $0x78] sm:$0xff]  }
 0x134   : > { %11047 = vmatpush3.bf16.msra.mxu0 %v12601_v40  ;;  %v10677_v28 = vpop.f32.mrb[13].mxu1  ;;  %v14146_v4 = vpop.f32.mrb[14].mxu0  ;;  %11708 = vmatprep.mubr.bf16.mxu0 %v4287_v29  ;;  %v12615_v40 = vld [vmem:[%s16676_s6 + $0x1a0] sm:$0xff]   ;;  %v4296_v62 = vsel %vm1078_vm2, %v4294_v50, %v4295_v43  ;;  %v12627_v59 = vld [vmem:[%s16676_s6 + $0x1f0] sm:$0xff]   ;;  %vm850_vm7 = vcmp.gt.f32.partialorder %v14197_v20, 0.0 }
 0x135   : > { %v14135_v39 = vadd.f32 %v10677_v28, %v10676_v45  ;;  %11048 = vmatprep.subr.bf16.mxu0 %v12603_v46  ;;  %v10679_v51 = vpop.f32.mrb[14].mxu1  ;;  %v14159_v25 = vpop.f32.mrb[15].mxu0  ;;  %v4302_v37 = vsel %vm1078_vm2, %v4300_v6, %v4301_v1  ;;  %11135 = vmatpush3.bf16.msra.mxu1 %v12616_v44  ;;  %v12617_v46 = vld [vmem:[%s16676_s6 + $0x1e8] sm:$0xff]   ;;  %v12620_v10 = vld [vmem:[%s13171_s25 + $0xd8] ss:$0 sps:$4 sm:$0x77]  }
 0x136   : > { %v10680_v56 = vpop.f32.mrb[15].mxu1  ;;  %v12621_v30 = vld [vmem:[%s13171_s25 + $0xc4] sm:$0xfe]   ;;  %v9762_v17 = vld [vmem:[%s13171_s25 + $0xd0] sm:$0xe]  ;;  %11136 = vmatprep.subr.bf16.mxu1 %v12628_v19 }
 0x137   : > { %v14143_v60 = vadd.f32 %v10680_v56, %v10679_v51  ;;  %v9779_v56 = vld [vmem:[%s13171_s25 + $0xd0] sm:$0x8]  ;;  %v12622_v18 = vld [vmem:[%s13171_s25 + $0xcc] ss:$0 sps:$4 sm:$0x11]   ;;  %v9819_v1 = vcombine.low %v9762_v17, %v9763_v54  ;;  %v4303_v6 = vrot.slane %v12621_v30, 1  ;;  %v14245_v17 = vadd.f32 %v14014_v34, %v14071_v36 }
 0x138   : > { %11049 = vmatpush3.bf16.msra.mxu0 %v12604_v48  ;;  %v12618_v48 = vld [vmem:[%s16676_s6 + $0x1a8] sm:$0xff]   ;;  %v9835_v8 = vcombine.low %v9779_v56, %v9763_v54  ;;  %v12624_v29 = vld [vmem:[%s13171_s25 + $0xd8] ss:$0 sps:$4 sm:$0x11]   ;;  %v9951_v30 = vld [vmem:[%s13171_s25 + $0xa0] sm:$0x8] }
 0x139   : > { %11050 = vmatprep.subr.bf16.mxu0 %v12613_v14  ;;  %v4177_v14 = vrot.slane %v12620_v10, 2  ;;  %v4306_v38 = vrot.slane %v9819_v1, 1  ;;  %v12625_v44 = vld [vmem:[%s13171_s25 + $0xd4] sm:$0xfe]   ;;  %11137 = vmatpush3.bf16.msra.mxu1 %v12630_v53  ;;  %v14233_v10 = vadd.f32 %v14014_v34, %v14051_v13  ;;  %v5681_v19 = vld [vmem:[%s13171_s25] sm:$0xf]  ;;  %v867_v13 = vmul.f32 %v14024_v22, %v14197_v20 }
 0x13a   : > { %4605 = vmatmul.mubr.bf16.gmra.mrb[116].mxu1 %v4290_v41  ;;  %v4299_v41 = vsel %vm1078_vm2, %v4297_v31, %v4298_v32  ;;  %v4176_v55 = vrot.slane %v9835_v8, 2  ;;  %v12629_v31 = vld [vmem:[%s16676_s6 + $0x1b0] sm:$0xff]   ;;  %v14206_v32 = vadd.f32 %v13988_v3, %v14014_v34  ;;  %v12631_v54 = vld [vmem:[%s16676_s6 + $0x1f8] sm:$0xff]   ;;  %v12634_v1 = vld [vmem:[%s13171_s25 + $0xa8] ss:$0 sps:$4 sm:$0x77]  }
 0x13b   : > { %4612 = vmatprep.mubr.bf16.mxu1 %v4302_v37  ;;  %v10682_v45 = vpop.f32.mrb[16].mxu1  ;;  %11709 = vmatmul.mubr.bf16.gmra.mrb[72].mxu0 %v4296_v62  ;;  %v4310_v24 = vrot.slane %v4177_v14, 1  ;;  %v4304_v37 = vrot.slane %v12622_v18, 1  ;;  %v12626_v62 = vld [vmem:[%s13171_s25 + $0xdc] ss:$0 sps:$4 sm:$0x11]  }
 0x13c   : > { %11051 = vmatpush3.bf16.msra.mxu0 %v12615_v40  ;;  %v10683_v28 = vpop.f32.mrb[17].mxu1  ;;  %v4178_v21 = vsel %vm1135_vm3, %v4176_v55, %v4177_v14  ;;  %v4307_v40 = vrot.slane %v12624_v29, 1  ;;  %vm851_vm8 = vcmp.gt.f32.partialorder %v14206_v32, 0.0  ;;  %v14237_v55 = vadd.f32 %v14061_v23, %v14014_v34  ;;  %v15396_v11 = vld [vmem:[%s13158_s29 + $0xe0] sm:$0x8] }
 0x13d   : > { %v14179_v51 = vadd.f32 %v10683_v28, %v10682_v45  ;;  %11052 = vmatprep.subr.bf16.mxu0 %v12617_v46  ;;  %v10685_v42 = vpop.f32.mrb[18].mxu1  ;;  %v4309_v35 = vrot.slane %v4178_v21, 1  ;;  %v4305_v43 = vsel %vm1078_vm2, %v4303_v6, %v4304_v37  ;;  %v4312_v28 = vrot.slane %v12625_v44, 1  ;;  %v5682_v21 = vld [vmem:[%s13171_s25 + $0x4] sm:$0xf] }
 0x13e   : > { %v10686_v63 = vpop.f32.mrb[19].mxu1  ;;  %11712 = vmatprep.mubr.bf16.mxu0 %v4305_v43  ;;  %v4308_v45 = vsel %vm1078_vm2, %v4306_v38, %v4307_v40  ;;  %v868_v23 = vmul.f32 %v14024_v22, %v14206_v32  ;;  %v4955_v29 = vrot.slane %v12634_v1, 2  ;;  %v12640_v37 = vld [vmem:[%s16678_s8 + $0x80] sm:$0xff]   ;;  %v14265_v38 = vmul.f32 %v14024_v22, %v14233_v10 }
 0x13f   : > { %v14187_v2 = vadd.f32 %v10686_v63, %v10685_v42  ;;  %v4311_v50 = vsel %vm1078_vm2, %v4309_v35, %v4310_v24  ;;  %v12632_v63 = vld [vmem:[%s16676_s6 + $0x1b8] sm:$0xff]   ;;  %v5697_v24 = vld [vmem:[%s13171_s25] sm:$0x8]  ;;  %v12637_v35 = vld [vmem:[%s13171_s25 + $0x8] ss:$0 sps:$4 sm:$0x77]   ;;  %v14269_v53 = vmul.f32 %v14024_v22, %v14237_v55  ;;  %v14273_v40 = vadd.f32 %v14093_v61, %v14014_v34  ;;  %11748 = vmatprep.subr.bf16.mxu1 %v12640_v37 }
 0x140   : > { %11053 = vmatpush3.bf16.msra.mxu0 %v12618_v48  ;;  %v4313_v48 = vrot.slane %v12626_v62, 1  ;;  %vm852_vm10 = vcmp.gt.f32.partialorder %v14233_v10, 0.0  ;;  %vm853_vm11 = vcmp.gt.f32.partialorder %v14245_v17, 0.0  ;;  %v5046_v44 = vrot.slane %v4955_v29, 1 }
 0x141   : > { %11054 = vmatprep.subr.bf16.mxu0 %v12627_v59  ;;  %v14226_v59 = vadd.f32 %v14041_v7, %v14014_v34  ;;  %v9928_v7 = vld [vmem:[%s13171_s25 + $0xa4] sm:$0xf]  ;;  %v14286_v61 = vadd.f32 %v14102_v9, %v14014_v34  ;;  %vm855_vm13 = vcmp.gt.f32.partialorder %v14237_v55, 0.0  ;;  %v14298_v9 = vsel %vm850_vm7, %v14197_v20, %v867_v13 }
 0x142   : > { %4613 = vmatmul.mubr.bf16.gmra.mrb[120].mxu1 %v4299_v41  ;;  %v4314_v42 = vsel %vm1078_vm2, %v4312_v28, %v4313_v48  ;;  %v10007_v18 = vcombine.low %v9951_v30, %v9928_v7  ;;  %v14282_v28 = vadd.f32 %v14014_v34, %v14097_v16  ;;  %v9953_v16 = vld [vmem:[%s13171_s25 + $0xb0] sm:$0x8]  ;;  %16752 = vst [vmem:[#allocation12_spill] sm:$0xff] %v14298_v9  ;;  %v12643_v20 = vld [vmem:[%s16676_s6 + $0x200] sm:$0xff]   ;;  %vm858_vm0 = vcmp.gt.f32.partialorder %v14273_v40, 0.0 }
 0x143   : > { %v10688_v41 = vpop.f32.mrb[20].mxu1  ;;  %4620 = vmatprep.mubr.bf16.mxu1 %v4311_v50  ;;  %11713 = vmatmul.mubr.bf16.gmra.mrb[76].mxu0 %v4314_v42  ;;  %v14257_v6 = vmul.f32 %v14024_v22, %v14226_v59  ;;  %v9927_v50 = vld [vmem:[%s13171_s25 + $0xa0] sm:$0xe]  ;;  %vm854_vm12 = vcmp.gt.f32.partialorder %v14226_v59, 0.0  ;;  %v14317_v13 = vadd.f32 %v14014_v34, %v14115_v27  ;;  %v5684_v27 = vld [vmem:[%s13171_s25 + $0x14] sm:$0xf] }
 0x144   : > { %11055 = vmatpush3.bf16.msra.mxu0 %v12629_v31  ;;  %v10689_v3 = vpop.f32.mrb[21].mxu1  ;;  %v4954_v36 = vrot.slane %v10007_v18, 2  ;;  %v10123_v31 = vcombine.low %v5697_v24, %v5682_v21  ;;  %v9991_v42 = vcombine.low %v9927_v50, %v9928_v7  ;;  %v14303_v7 = vsel %vm851_vm8, %v14206_v32, %v868_v23 }
 0x145   : > { %v14216_v46 = vadd.f32 %v10689_v3, %v10688_v41  ;;  %v10691_v56 = vpop.f32.mrb[22].mxu1  ;;  %11056 = vmatprep.subr.bf16.mxu0 %v12631_v54  ;;  %v10115_v41 = vcombine.low %v5681_v19, %v5682_v21  ;;  %v5835_v3 = vrot.slane %v12637_v35, 3  ;;  %16753 = vst [vmem:[#allocation13_spill] sm:$0xff] %v14303_v7  ;;  %v870_v32 = vmul.f32 %v14024_v22, %v14245_v17  ;;  %v12827_v7 = vld [vmem:[%s13171_s25 + $0xd8] ss:$0 sps:$4 sm:$0x77]  }
 0x146   : > { %v10692_v8 = vpop.f32.mrb[23].mxu1  ;;  %v4956_v43 = vsel %vm1135_vm3, %v4954_v36, %v4955_v29  ;;  %v5834_v62 = vrot.slane %v10123_v31, 3  ;;  %v5042_v1 = vrot.slane %v9991_v42, 1  ;;  %v12642_v36 = vld [vmem:[%s13171_s25 + $0xb8] ss:$0 sps:$4 sm:$0x77]   ;;  %v14341_v42 = vmul.f32 %v14024_v22, %v14286_v61 }
 0x147   : > { %v14239_v14 = vadd.f32 %v10692_v8, %v10691_v56  ;;  %v5045_v48 = vrot.slane %v4956_v43, 1  ;;  %v14289_v56 = vld [vmem:[%s13171_s25 + $0xb4] sm:$0xf]  ;;  %v12649_v29 = vld [vmem:[%s16678_s8 + $0x88] sm:$0xff]   ;;  %vm856_vm14 = vcmp.gt.f32.partialorder %v14282_v28, 0.0  ;;  %vm857_vm15 = vcmp.gt.f32.partialorder %v14317_v13, 0.0 }
 0x148   : > { %11057 = vmatpush3.bf16.msra.mxu0 %v12632_v63  ;;  %v5836_v63 = vsel %vm5833_vm9, %v5834_v62, %v5835_v3  ;;  %v10009_v24 = vcombine.low %v9953_v16, %v14289_v56  ;;  %v14331_v62 = vmul.f32 %v14024_v22, %v14273_v40  ;;  %v14335_v3 = vmul.f32 %v14024_v22, %v14282_v28 }
 0x149   : > { %v5047_v18 = vsel %vm1078_vm2, %v5045_v48, %v5046_v44  ;;  %v4958_v44 = vrot.slane %v12642_v36, 2  ;;  %11716 = vmatprep.subr.bf16.mxu0 %v12643_v20  ;;  %v12645_v48 = vld [vmem:[%s13171_s25 + $0x18] ss:$0 sps:$4 sm:$0x77]   ;;  %vm859_vm1 = vcmp.gt.f32.partialorder %v14286_v61, 0.0 }
 0x14a   : > { %4621 = vmatmul.mubr.bf16.gmra.mrb[124].mxu1 %v4308_v45  ;;  %v12639_v45 = vld [vmem:[%s13171_s25 + $0xa8] ss:$0 sps:$4 sm:$0x11]   ;;  %5363 = vmatprep.mubr.bf16.mxu0 %v5047_v18  ;;  %v4957_v43 = vrot.slane %v10009_v24, 2 }
 0x14b   : > { %v10694_v54 = vpop.f32.mrb[24].mxu1  ;;  %v5043_v8 = vrot.slane %v12639_v45, 1  ;;  %6186 = vmatprep.mubr.bf16.mxu1 %v5836_v63  ;;  %v12647_v36 = vld [vmem:[%s13171_s25 + $0xb8] ss:$0 sps:$4 sm:$0x11]  }
 0x14c   : > { %v10695_v30 = vpop.f32.mrb[25].mxu1  ;;  %v4959_v63 = vsel %vm1135_vm3, %v4957_v43, %v4958_v44 }
 0x14d   : > { %v14306_v19 = vadd.f32 %v10695_v30, %v10694_v54  ;;  %v10697_v21 = vpop.f32.mrb[26].mxu1  ;;  %v5044_v35 = vsel %vm1078_vm2, %v5042_v1, %v5043_v8  ;;  %v14345_v54 = vadd.f32 %v14137_v52, %v14014_v34  ;;  %v5055_v8 = vrot.slane %v4958_v44, 1  ;;  %v9930_v30 = vld [vmem:[%s13171_s25 + $0xb0] sm:$0xe] }
 0x14e   : > { %v10698_v23 = vpop.f32.mrb[27].mxu1  ;;  %5364 = vmatmul.mubr.bf16.vlgmr.msra.gmra.mrb[80].mxu0 %v5044_v35  ;;  %v5054_v18 = vrot.slane %v4959_v63, 1  ;;  %v9993_v24 = vcombine.low %v9930_v30, %v14289_v56  ;;  %v14358_v52 = vadd.f32 %v14146_v4, %v14014_v34  ;;  %v5683_v35 = vld [vmem:[%s13171_s25 + $0x10] sm:$0xf]  ;;  %v14383_v63 = vsel %vm852_vm10, %v14233_v10, %v14265_v38  ;;  %v5686_v38 = vld [vmem:[%s13171_s25 + $0x24] sm:$0xf] }
 0x14f   : > { %v14325_v50 = vadd.f32 %v10698_v23, %v10697_v21  ;;  %11717 = vmatpush3.bf16.msra.mxu0 %v12643_v20  ;;  %v5838_v21 = vrot.slane %v12645_v48, 3  ;;  %v14354_v23 = vadd.f32 %v14014_v34, %v14141_v57  ;;  %v14362_v20 = vadd.f32 %v14014_v34, %v14159_v25  ;;  %v12652_v34 = vld [vmem:[%s16676_s6 + $0x208] sm:$0xff]   ;;  %v9955_v48 = vld [vmem:[%s13171_s25 + $0xc0] sm:$0x8]  ;;  %16754 = vst [vmem:[#allocation14_spill] sm:$0xff] %v14383_v63 }
 0x150   : > { %v5056_v56 = vsel %vm1078_vm2, %v5054_v18, %v5055_v8  ;;  %v5051_v44 = vrot.slane %v9993_v24, 1  ;;  %v10116_v25 = vcombine.low %v5683_v35, %v5684_v27  ;;  %v14388_v8 = vsel %vm853_vm11, %v14245_v17, %v870_v32  ;;  %v12651_v18 = vld [vmem:[%s13171_s25 + $0xc8] ss:$0 sps:$4 sm:$0x77]   ;;  %11718 = vmatprep.subr.bf16.mxu0 %v12652_v34  ;;  %v5701_v24 = vld [vmem:[%s13171_s25 + $0x20] sm:$0x8] }
 0x151   : > { %5371 = vmatprep.mubr.bf16.mxu0 %v5056_v56  ;;  %16755 = vst [vmem:[#allocation15_spill] sm:$0xff] %v14388_v8  ;;  %v874_v10 = vmul.f32 %v14024_v22, %v14317_v13  ;;  %v14404_v17 = vsel %vm854_vm12, %v14226_v59, %v14257_v6  ;;  %v14410_v32 = vsel %vm855_vm13, %v14237_v55, %v14269_v53  ;;  %v4961_v35 = vrot.slane %v12651_v18, 2  ;;  %v12654_v53 = vld [vmem:[%s13171_s25 + $0x28] ss:$0 sps:$4 sm:$0x77]  }
 0x152   : > { %6187 = vmatmul.mubr.bf16.vlgmr.msra.gmra.mrb[128].mxu1 %v10115_v41  ;;  %v5699_v41 = vld [vmem:[%s13171_s25 + $0x10] sm:$0x8]  ;;  %16756 = vst [vmem:[#allocation16_spill] sm:$0xff] %v14404_v17  ;;  %16757 = vst [vmem:[#allocation17_spill] sm:$0xff] %v14410_v32  ;;  %v10127_v56 = vcombine.low %v5701_v24, %v5686_v38  ;;  %vm862_vm5 = vcmp.gt.f32.partialorder %v14345_v54, 0.0  ;;  %v14418_v59 = vmul.f32 %v14024_v22, %v14345_v54  ;;  %vm860_vm6 = vcmp.gt.f32.partialorder %v14354_v23, 0.0 }
 0x153   : > { %11749 = vmatpush3.bf16.msra.mxu1 %v12640_v37  ;;  %v10125_v45 = vcombine.low %v5699_v41, %v5684_v27  ;;  %v10700_v37 = vpop.f32.mrb[28].mxu1  ;;  %v5052_v41 = vrot.slane %v12647_v36, 1  ;;  %11719 = vmatpush3.bf16.msra.mxu0 %v12652_v34  ;;  %v14423_v55 = vmul.f32 %v14024_v22, %v14354_v23  ;;  %vm863_vm7 = vcmp.gt.f32.partialorder %v14358_v52, 0.0 }
 0x154   : > { %11750 = vmatprep.subr.bf16.mxu1 %v12649_v29  ;;  %v10701_v16 = vpop.f32.mrb[29].mxu1  ;;  %v14428_v6 = vmul.f32 %v14024_v22, %v14358_v52  ;;  %vm861_vm8 = vcmp.gt.f32.partialorder %v14362_v20, 0.0  ;;  %v14434_v34 = vmul.f32 %v14024_v22, %v14362_v20  ;;  %v5841_v24 = vrot.slane %v12654_v53, 3 }
 0x155   : > { %v5837_v1 = vrot.slane %v10125_v45, 3  ;;  %v14365_v43 = vadd.f32 %v10701_v16, %v10700_v37  ;;  %v10703_v4 = vpop.f32.mrb[30].mxu1  ;;  %v9934_v45 = vld [vmem:[%s13171_s25 + $0xc4] sm:$0xf]  ;;  %v12658_v37 = vld [vmem:[%s16678_s8 + $0x90] sm:$0xff]   ;;  %v5053_v27 = vsel %vm1078_vm2, %v5051_v44, %v5052_v41  ;;  %v14443_v22 = vsel %vm856_vm14, %v14282_v28, %v14335_v3 }
 0x156   : > { %v10011_v16 = vcombine.low %v9955_v48, %v9934_v45  ;;  %5372 = vmatmul.mubr.bf16.gmra.mrb[84].mxu0 %v5053_v27  ;;  %v5840_v48 = vrot.slane %v10127_v56, 3  ;;  %v12656_v27 = vld [vmem:[%s13171_s25 + $0xc8] ss:$0 sps:$4 sm:$0x11]   ;;  %16758 = vst [vmem:[#allocation18_spill] sm:$0xff] %v14443_v22 }
 0x157   : > { %11751 = vmatpush3.bf16.msra.mxu1 %v12649_v29  ;;  %v5839_v57 = vsel %vm5833_vm9, %v5837_v1, %v5838_v21  ;;  %v10704_v29 = vpop.f32.mrb[31].mxu1  ;;  %v5685_v21 = vld [vmem:[%s13171_s25 + $0x20] sm:$0xf] }
 0x158   : > { %6194 = vmatprep.mubr.bf16.mxu1 %v5839_v57  ;;  %v14391_v30 = vadd.f32 %v10704_v29, %v10703_v4  ;;  %v4960_v36 = vrot.slane %v10011_v16, 2  ;;  %v9933_v57 = vld [vmem:[%s13171_s25 + $0xc0] sm:$0xe]  ;;  %11752 = vmatprep.subr.bf16.mxu1 %v12658_v37  ;;  %v5064_v29 = vrot.slane %v4961_v35, 1 }
 0x159   : > { %v9995_v41 = vcombine.low %v9933_v57, %v9934_v45  ;;  %v10117_v57 = vcombine.low %v5685_v21, %v5686_v38  ;;  %v14453_v21 = vsel %vm857_vm15, %v14317_v13, %v874_v10 }
 0x15a   : > { %v10738_v1 = vpop.f32.mrb[32].mxu0  ;;  %6195 = vmatmul.mubr.bf16.gmra.mrb[132].mxu1 %v10116_v25  ;;  %v4962_v25 = vsel %vm1135_vm3, %v4960_v36, %v4961_v35  ;;  %v5842_v35 = vsel %vm5833_vm9, %v5840_v48, %v5841_v24  ;;  %16759 = vst [vmem:[#allocation19_spill] sm:$0xff] %v14453_v21  ;;  %v5703_v24 = vld [vmem:[%s13171_s25 + $0x30] sm:$0x8] }
 0x15b   : > { %11753 = vmatpush3.bf16.msra.mxu1 %v12658_v37  ;;  %v10818_v4 = vpop.f32.mrb[32].mxu1  ;;  %v10739_v16 = vpop.f32.mrb[33].mxu0  ;;  %v5063_v18 = vrot.slane %v4962_v25, 1  ;;  %v5060_v44 = vrot.slane %v9995_v41, 1  ;;  %v5061_v37 = vrot.slane %v12656_v27, 1  ;;  %6202 = vmatprep.mubr.bf16.mxu1 %v5842_v35 }
 0x15c   : > { %v10740_v31 = vadd.f32 %v10739_v16, %v10738_v1  ;;  %v10819_v45 = vpop.f32.mrb[33].mxu1  ;;  %v10741_v17 = vpop.f32.mrb[34].mxu0  ;;  %v9937_v41 = vld [vmem:[%s13171_s25 + $0xd4] sm:$0xf]  ;;  %v9957_v25 = vld [vmem:[%s13171_s25 + $0xd0] sm:$0x8] }
 0x15d   : > { %v10820_v49 = vadd.f32 %v10819_v45, %v10818_v4  ;;  %v5065_v36 = vsel %vm1078_vm2, %v5063_v18, %v5064_v29  ;;  %v10821_v53 = vpop.f32.mrb[34].mxu1  ;;  %v10742_v1 = vpop.f32.mrb[35].mxu0  ;;  %v5062_v28 = vsel %vm1078_vm2, %v5060_v44, %v5061_v37  ;;  %v10013_v4 = vcombine.low %v9957_v25, %v9937_v41  ;;  %v12660_v29 = vld [vmem:[%s13171_s25 + $0xd8] ss:$0 sps:$4 sm:$0x77]  }
 0x15e   : > { %v11965_v56 = vadd.f32 %v10740_v31, %v13959_v47  ;;  %5379 = vmatprep.mubr.bf16.mxu0 %v5065_v36  ;;  %v10743_v3 = vadd.f32 %v10742_v1, %v10741_v17  ;;  %v10822_v38 = vpop.f32.mrb[35].mxu1  ;;  %v12661_v31 = vld [vmem:[%s16676_s6 + $0x210] sm:$0xff]   ;;  %v14468_v17 = vsel %vm858_vm0, %v14273_v40, %v14331_v62  ;;  %v4964_v16 = vrot.slane %v12660_v29, 2  ;;  %v12663_v37 = vld [vmem:[%s13171_s25 + $0x38] ss:$0 sps:$4 sm:$0x77]  }
 0x15f   : > { %v10823_v47 = vadd.f32 %v10822_v38, %v10821_v53  ;;  %16760 = vst [vmem:[#allocation20_spill] sm:$0xff] %v14468_v17  ;;  %5380 = vmatmul.mubr.bf16.gmra.mrb[88].mxu0 %v5062_v28  ;;  %v4963_v27 = vrot.slane %v10013_v4, 2  ;;  %v5688_v18 = vld [vmem:[%s13171_s25 + $0x34] sm:$0xf]  ;;  %11720 = vmatprep.subr.bf16.mxu0 %v12661_v31  ;;  %v12667_v40 = vld [vmem:[%s16678_s8 + $0x98] sm:$0xff]   ;;  %v5844_v53 = vrot.slane %v12663_v37, 3  ;;  %v14501_v38 = vsel %vm861_vm8, %v14362_v20, %v14434_v34 }
 0x160   : > { %v14460_v13 = vadd.f32 %v11965_v56, %v10820_v49  ;;  %v11971_v44 = vadd.f32 %v10743_v3, %v13980_v58  ;;  %v14477_v49 = vsel %vm859_vm1, %v14286_v61, %v14341_v42  ;;  %v10129_v45 = vcombine.low %v5703_v24, %v5688_v18  ;;  %v9936_v36 = vld [vmem:[%s13171_s25 + $0xd0] sm:$0xe]  ;;  %11721 = vmatpush3.bf16.msra.mxu0 %v12661_v31  ;;  %v12665_v25 = vld [vmem:[%s13171_s25 + $0xd8] ss:$0 sps:$4 sm:$0x11]  }
 0x161   : > { %16761 = vst [vmem:[#allocation21_spill] sm:$0xff] %v14477_v49  ;;  %v4965_v62 = vsel %vm1135_vm3, %v4963_v27, %v4964_v16  ;;  %v9997_v1 = vcombine.low %v9936_v36, %v9937_v41  ;;  %11754 = vmatprep.subr.bf16.mxu1 %v12667_v40  ;;  %v5687_v28 = vld [vmem:[%s13171_s25 + $0x30] sm:$0xf]  ;;  %v14495_v3 = vsel %vm860_vm6, %v14354_v23, %v14423_v55  ;;  %16763 = vst [vmem:[#allocation23_spill] sm:$0xff] %v14501_v38  ;;  %v9940_v31 = vld [vmem:[%s13171_s25 + $0xe4] sm:$0xf] }
 0x162   : > { %6203 = vmatmul.mubr.bf16.gmra.mrb[136].mxu1 %v10117_v57  ;;  %v10744_v48 = vpop.f32.mrb[36].mxu0  ;;  %v5073_v57 = vrot.slane %v4964_v16, 1  ;;  %v14487_v61 = vadd.f32 %v11971_v44, %v10823_v47  ;;  %v5072_v42 = vrot.slane %v4965_v62, 1  ;;  %v5843_v56 = vrot.slane %v10129_v45, 3  ;;  %16762 = vst [vmem:[#allocation22_spill] sm:$0xff] %v14495_v3  ;;  %v12670_v62 = vld [vmem:[%s16676_s6 + $0x218] sm:$0xff]  }
 0x163   : > { %v10824_v35 = vpop.f32.mrb[36].mxu1  ;;  %11755 = vmatpush3.bf16.msra.mxu1 %v12667_v40  ;;  %v14507_v41 = vsel %vm862_vm5, %v14345_v54, %v14418_v59  ;;  %v14513_v4 = vsel %vm863_vm7, %v14358_v52, %v14428_v6  ;;  %v5069_v29 = vrot.slane %v9997_v1, 1  ;;  %v5070_v20 = vrot.slane %v12665_v25, 1  ;;  %v10745_v34 = vpop.f32.mrb[37].mxu0  ;;  %v9959_v52 = vld [vmem:[%s13171_s25 + $0xe0] sm:$0x8]  ;;  %11722 = vmatprep.subr.bf16.mxu0 %v12670_v62 }
 0x164   : > { %16764 = vst [vmem:[#allocation24_spill] sm:$0xff] %v14507_v41  ;;  %16765 = vst [vmem:[#allocation25_spill] sm:$0xff] %v14513_v4  ;;  %v5074_v23 = vsel %vm1078_vm2, %v5072_v42, %v5073_v57  ;;  %v5845_v55 = vsel %vm5833_vm9, %v5843_v56, %v5844_v53  ;;  %v10825_v47 = vpop.f32.mrb[37].mxu1  ;;  %v10118_v54 = vcombine.low %v5687_v28, %v5688_v18  ;;  %v10747_v27 = vpop.f32.mrb[38].mxu0  ;;  %v5690_v42 = vld [vmem:[%s13171_s25 + $0x44] sm:$0xf]  ;;  %11723 = vmatpush3.bf16.msra.mxu0 %v12670_v62 }
 0x165   : > { %5387 = vmatprep.mubr.bf16.mxu0 %v5074_v23  ;;  %6210 = vmatprep.mubr.bf16.mxu1 %v5845_v55  ;;  %v10746_v59 = vadd.f32 %v10745_v34, %v10744_v48  ;;  %v10826_v44 = vadd.f32 %v10825_v47, %v10824_v35  ;;  %v10827_v16 = vpop.f32.mrb[38].mxu1  ;;  %v5071_v6 = vsel %vm1078_vm2, %v5069_v29, %v5070_v20  ;;  %v10748_v24 = vpop.f32.mrb[39].mxu0  ;;  %v12669_v40 = vld [vmem:[%s13171_s25 + $0xe8] ss:$0 sps:$4 sm:$0x77]   ;;  %v12676_v29 = vld [vmem:[%s16678_s8 + $0xa0] sm:$0xff]  }
 0x166   : > { %v10828_v45 = vpop.f32.mrb[39].mxu1  ;;  %v10015_v37 = vcombine.low %v9959_v52, %v9940_v31  ;;  %v10749_v36 = vadd.f32 %v10748_v24, %v10747_v27  ;;  %v4967_v53 = vrot.slane %v12669_v40, 2  ;;  %v5705_v1 = vld [vmem:[%s13171_s25 + $0x40] sm:$0x8]  ;;  %11756 = vmatprep.subr.bf16.mxu1 %v12676_v29 }
 0x167   : > { %5388 = vmatmul.mubr.bf16.gmra.mrb[92].mxu0 %v5071_v6  ;;  %v11962_v57 = vadd.f32 %v10746_v59, %v14039_v5  ;;  %v10829_v35 = vadd.f32 %v10828_v45, %v10827_v16  ;;  %v10131_v28 = vcombine.low %v5705_v1, %v5690_v42  ;;  %v12672_v23 = vld [vmem:[%s13171_s25 + $0x48] ss:$0 sps:$4 sm:$0x77]   ;;  %v9939_v55 = vld [vmem:[%s13171_s25 + $0xe0] sm:$0xe]  ;;  %11757 = vmatpush3.bf16.msra.mxu1 %v12676_v29 }
 0x168   : > { %v4966_v56 = vrot.slane %v10015_v37, 2  ;;  %v11968_v25 = vadd.f32 %v10749_v36, %v14056_v15  ;;  %v5082_v34 = vrot.slane %v4967_v53, 1  ;;  %v9999_v47 = vcombine.low %v9939_v55, %v9940_v31  ;;  %v5689_v16 = vld [vmem:[%s13171_s25 + $0x40] sm:$0xf]  ;;  %v9961_v36 = vld [vmem:[%s13171_s25 + $0xf0] sm:$0x8] }
 0x169   : > { %v14537_v5 = vadd.f32 %v11962_v57, %v10826_v44  ;;  %v5846_v27 = vrot.slane %v10131_v28, 3  ;;  %v5847_v15 = vrot.slane %v12672_v23, 3  ;;  %v10119_v37 = vcombine.low %v5689_v16, %v5690_v42  ;;  %v9943_v57 = vld [vmem:[%s13171_s25 + $0xf4] sm:$0xf]  ;;  %v12679_v29 = vld [vmem:[%s16676_s6 + $0x220] sm:$0xff]  }
 0x16a   : > { %6211 = vmatmul.mubr.bf16.gmra.mrb[140].mxu1 %v10118_v54  ;;  %v4968_v20 = vsel %vm1135_vm3, %v4966_v56, %v4967_v53  ;;  %v12674_v54 = vld [vmem:[%s13171_s25 + $0xe8] ss:$0 sps:$4 sm:$0x11]   ;;  %v10750_v52 = vpop.f32.mrb[40].mxu0  ;;  %v14542_v6 = vadd.f32 %v11968_v25, %v10829_v35  ;;  %v5078_v24 = vrot.slane %v9999_v47, 1  ;;  %v10017_v25 = vcombine.low %v9961_v36, %v9943_v57  ;;  %11724 = vmatprep.subr.bf16.mxu0 %v12679_v29 }
 0x16b   : > { %v5081_v59 = vrot.slane %v4968_v20, 1  ;;  %v5079_v45 = vrot.slane %v12674_v54, 1  ;;  %v5848_v40 = vsel %vm5833_vm9, %v5846_v27, %v5847_v15  ;;  %v10830_v31 = vpop.f32.mrb[40].mxu1  ;;  %v10751_v62 = vpop.f32.mrb[41].mxu0  ;;  %v5707_v16 = vld [vmem:[%s13171_s25 + $0x50] sm:$0x8]  ;;  %11725 = vmatpush3.bf16.msra.mxu0 %v12679_v29 }
 0x16c   : > { %6218 = vmatprep.mubr.bf16.mxu1 %v5848_v40  ;;  %v10752_v35 = vadd.f32 %v10751_v62, %v10750_v52  ;;  %v10831_v53 = vpop.f32.mrb[41].mxu1  ;;  %v10753_v1 = vpop.f32.mrb[42].mxu0  ;;  %v12678_v55 = vld [vmem:[%s13171_s25 + $0xf8] ss:$0 sps:$4 sm:$0x77]   ;;  %v4969_v54 = vrot.slane %v10017_v25, 2 }
 0x16d   : > { %v5083_v44 = vsel %vm1078_vm2, %v5081_v59, %v5082_v34  ;;  %v5080_v56 = vsel %vm1078_vm2, %v5078_v24, %v5079_v45  ;;  %v10832_v42 = vadd.f32 %v10831_v53, %v10830_v31  ;;  %v10833_v28 = vpop.f32.mrb[42].mxu1  ;;  %v10754_v23 = vpop.f32.mrb[43].mxu0  ;;  %v5692_v59 = vld [vmem:[%s13171_s25 + $0x54] sm:$0xf]  ;;  %v4970_v15 = vrot.slane %v12678_v55, 2  ;;  %v12685_v52 = vld [vmem:[%s16678_s8 + $0xa8] sm:$0xff]  }
 0x16e   : > { %5395 = vmatprep.mubr.bf16.mxu0 %v5083_v44  ;;  %v11977_v20 = vadd.f32 %v10752_v35, %v14091_v12  ;;  %v10755_v34 = vadd.f32 %v10754_v23, %v10753_v1  ;;  %v10834_v47 = vpop.f32.mrb[43].mxu1  ;;  %v10133_v45 = vcombine.low %v5707_v16, %v5692_v59  ;;  %v9942_v44 = vld [vmem:[%s13171_s25 + $0xf0] sm:$0xe]  ;;  %11758 = vmatprep.subr.bf16.mxu1 %v12685_v52  ;;  %v12800_v3 = vld [vmem:[%s13171_s25 + $0xdc] ss:$0 sps:$4 sm:$0x33]  }
 0x16f   : > { %5396 = vmatmul.mubr.bf16.gmra.mrb[96].mxu0 %v5080_v56  ;;  %v10835_v27 = vadd.f32 %v10834_v47, %v10833_v28  ;;  %v4971_v31 = vsel %vm1135_vm3, %v4969_v54, %v4970_v15  ;;  %v5091_v62 = vrot.slane %v4970_v15, 1  ;;  %v10001_v36 = vcombine.low %v9942_v44, %v9943_v57  ;;  %v12683_v56 = vld [vmem:[%s13171_s25 + $0xf8] ss:$0 sps:$4 sm:$0x11]   ;;  %v5691_v25 = vld [vmem:[%s13171_s25 + $0x50] sm:$0xf]  ;;  %11759 = vmatpush3.bf16.msra.mxu1 %v12685_v52 }
 0x170   : > { %v11983_v24 = vadd.f32 %v10755_v34, %v14099_v33  ;;  %v14562_v40 = vadd.f32 %v11977_v20, %v10832_v42  ;;  %v5090_v35 = vrot.slane %v4971_v31, 1  ;;  %v5849_v53 = vrot.slane %v10133_v45, 3  ;;  %v9946_v47 = vld [vmem:[%s13171_s25 + $0x104] sm:$0xf]  ;;  %v9963_v54 = vld [vmem:[%s13171_s25 + $0x100] sm:$0x8] }
 0x171   : > { %v5087_v23 = vrot.slane %v10001_v36, 1  ;;  %v5088_v55 = vrot.slane %v12683_v56, 1  ;;  %v10120_v42 = vcombine.low %v5691_v25, %v5692_v59  ;;  %v12687_v44 = vld [vmem:[%s13171_s25 + $0x108] ss:$0 sps:$4 sm:$0x77]  }
 0x172   : > { %6219 = vmatmul.mubr.bf16.gmra.mrb[144].mxu1 %v10119_v37  ;;  %v12681_v37 = vld [vmem:[%s13171_s25 + $0x58] ss:$0 sps:$4 sm:$0x77]   ;;  %v10756_v12 = vpop.f32.mrb[44].mxu0  ;;  %v14567_v28 = vadd.f32 %v11983_v24, %v10835_v27  ;;  %v5092_v29 = vsel %vm1078_vm2, %v5090_v35, %v5091_v62  ;;  %v12688_v31 = vld [vmem:[%s16676_s6 + $0x228] sm:$0xff]  }
 0x173   : > { %v5850_v1 = vrot.slane %v12681_v37, 3  ;;  %v10836_v33 = vpop.f32.mrb[44].mxu1  ;;  %v10757_v57 = vpop.f32.mrb[45].mxu0  ;;  %5403 = vmatprep.mubr.bf16.mxu0 %v5092_v29  ;;  %v5089_v15 = vsel %vm1078_vm2, %v5087_v23, %v5088_v55  ;;  %v10019_v37 = vcombine.low %v9963_v54, %v9946_v47  ;;  %v5709_v35 = vld [vmem:[%s13171_s25 + $0x60] sm:$0x8]  ;;  %11726 = vmatprep.subr.bf16.mxu0 %v12688_v31 }
 0x174   : > { %v10837_v34 = vpop.f32.mrb[45].mxu1  ;;  %v10758_v27 = vadd.f32 %v10757_v57, %v10756_v12  ;;  %v10759_v52 = vpop.f32.mrb[46].mxu0  ;;  %v5694_v12 = vld [vmem:[%s13171_s25 + $0x64] sm:$0xf]  ;;  %11727 = vmatpush3.bf16.msra.mxu0 %v12688_v31 }
 0x175   : > { %v5851_v20 = vsel %vm5833_vm9, %v5849_v53, %v5850_v1  ;;  %v10838_v16 = vadd.f32 %v10837_v34, %v10836_v33  ;;  %v10839_v24 = vpop.f32.mrb[46].mxu1  ;;  %v10760_v59 = vpop.f32.mrb[47].mxu0  ;;  %v4972_v53 = vrot.slane %v10019_v37, 2  ;;  %v4973_v1 = vrot.slane %v12687_v44, 2  ;;  %v9945_v33 = vld [vmem:[%s13171_s25 + $0x100] sm:$0xe] }
 0x176   : > { %6226 = vmatprep.mubr.bf16.mxu1 %v5851_v20  ;;  %v10840_v45 = vpop.f32.mrb[47].mxu1  ;;  %v11974_v62 = vadd.f32 %v10758_v27, %v14135_v39  ;;  %v10761_v36 = vadd.f32 %v10760_v59, %v10759_v52  ;;  %v10135_v25 = vcombine.low %v5709_v35, %v5694_v12  ;;  %v12690_v55 = vld [vmem:[%s13171_s25 + $0x68] ss:$0 sps:$4 sm:$0x77]   ;;  %v12694_v39 = vld [vmem:[%s16678_s8 + $0xb0] sm:$0xff]  }
 0x177   : > { %5404 = vmatmul.mubr.bf16.gmra.mrb[100].mxu0 %v5089_v15  ;;  %v10841_v56 = vadd.f32 %v10840_v45, %v10839_v24  ;;  %v4974_v20 = vsel %vm1135_vm3, %v4972_v53, %v4973_v1  ;;  %v5100_v57 = vrot.slane %v4973_v1, 1  ;;  %v12692_v54 = vld [vmem:[%s13171_s25 + $0x108] ss:$0 sps:$4 sm:$0x11]   ;;  %v5853_v52 = vrot.slane %v12690_v55, 3  ;;  %11760 = vmatprep.subr.bf16.mxu1 %v12694_v39 }
 0x178   : > { %v11980_v23 = vadd.f32 %v10761_v36, %v14143_v60  ;;  %v14587_v29 = vadd.f32 %v11974_v62, %v10838_v16  ;;  %v5852_v34 = vrot.slane %v10135_v25, 3  ;;  %v5099_v27 = vrot.slane %v4974_v20, 1  ;;  %v5693_v24 = vld [vmem:[%s13171_s25 + $0x60] sm:$0xf]  ;;  %11761 = vmatpush3.bf16.msra.mxu1 %v12694_v39  ;;  %v9949_v53 = vld [vmem:[%s13171_s25 + $0x114] sm:$0xf] }
 0x179   : > { %v5097_v45 = vrot.slane %v12692_v54, 1  ;;  %v10121_v37 = vcombine.low %v5693_v24, %v5694_v12  ;;  %v9965_v1 = vld [vmem:[%s13171_s25 + $0x110] sm:$0x8]  ;;  %v12696_v20 = vld [vmem:[%s13171_s25 + $0x118] ss:$0 sps:$4 sm:$0x77]  }
 0x17a   : > { %6227 = vmatmul.mubr.bf16.gmra.mrb[148].mxu1 %v10120_v42  ;;  %v10003_v42 = vcombine.low %v9945_v33, %v9946_v47  ;;  %v10762_v15 = vpop.f32.mrb[48].mxu0  ;;  %v14592_v59 = vadd.f32 %v11980_v23, %v10841_v56  ;;  %v5101_v44 = vsel %vm1078_vm2, %v5099_v27, %v5100_v57  ;;  %v5854_v31 = vsel %vm5833_vm9, %v5852_v34, %v5853_v52  ;;  %v12697_v54 = vld [vmem:[%s16676_s6 + $0x230] sm:$0xff]  }
 0x17b   : > { %v10842_v47 = vpop.f32.mrb[48].mxu1  ;;  %v10763_v16 = vpop.f32.mrb[49].mxu0  ;;  %5411 = vmatprep.mubr.bf16.mxu0 %v5101_v44  ;;  %6234 = vmatprep.mubr.bf16.mxu1 %v5854_v31  ;;  %v10021_v23 = vcombine.low %v9965_v1, %v9949_v53  ;;  %v5711_v27 = vld [vmem:[%s13171_s25 + $0x70] sm:$0x8] }
 0x17c   : > { %v5096_v60 = vrot.slane %v10003_v42, 1  ;;  %v10764_v62 = vadd.f32 %v10763_v16, %v10762_v15  ;;  %v10843_v36 = vpop.f32.mrb[49].mxu1  ;;  %v10765_v35 = vpop.f32.mrb[50].mxu0  ;;  %v5696_v15 = vld [vmem:[%s13171_s25 + $0x74] sm:$0xf]  ;;  %11728 = vmatprep.subr.bf16.mxu0 %v12697_v54 }
 0x17d   : > { %v10844_v25 = vadd.f32 %v10843_v36, %v10842_v47  ;;  %v10845_v12 = vpop.f32.mrb[50].mxu1  ;;  %v10766_v33 = vpop.f32.mrb[51].mxu0  ;;  %v4975_v34 = vrot.slane %v10021_v23, 2  ;;  %v10137_v24 = vcombine.low %v5711_v27, %v5696_v15  ;;  %v12699_v47 = vld [vmem:[%s13171_s25 + $0x78] ss:$0 sps:$4 sm:$0x77]   ;;  %11729 = vmatpush3.bf16.msra.mxu0 %v12697_v54 }
 0x17e   : > { %v5098_v56 = vsel %vm1078_vm2, %v5096_v60, %v5097_v45  ;;  %v11989_v55 = vadd.f32 %v10764_v62, %v14179_v51  ;;  %v10767_v42 = vadd.f32 %v10766_v33, %v10765_v35  ;;  %v10846_v39 = vpop.f32.mrb[51].mxu1  ;;  %v4976_v60 = vrot.slane %v12696_v20, 2  ;;  %v9948_v51 = vld [vmem:[%s13171_s25 + $0x110] sm:$0xe] }
 0x17f   : > { %5412 = vmatmul.mubr.bf16.gmra.mrb[104].mxu0 %v5098_v56  ;;  %v10847_v57 = vadd.f32 %v10846_v39, %v10845_v12  ;;  %v5855_v31 = vrot.slane %v10137_v24, 3  ;;  %v5856_v62 = vrot.slane %v12699_v47, 3  ;;  %v12701_v36 = vld [vmem:[%s13171_s25 + $0x118] ss:$0 sps:$4 sm:$0x11]   ;;  %v10005_v1 = vcombine.low %v9948_v51, %v9949_v53 }
 0x180   : > { %v11995_v52 = vadd.f32 %v10767_v42, %v14187_v2  ;;  %v14608_v45 = vadd.f32 %v11989_v55, %v10844_v25  ;;  %v4977_v16 = vsel %vm1135_vm3, %v4975_v34, %v4976_v60  ;;  %v5109_v44 = vrot.slane %v4976_v60, 1  ;;  %v12703_v2 = vld [vmem:[%s16678_s8 + $0xb8] sm:$0xff]   ;;  %v12705_v51 = vld [vmem:[%s13171_s25 + $0xa4] sm:$0xfe]  }
 0x181   : > { %v5108_v35 = vrot.slane %v4977_v16, 1  ;;  %v5857_v25 = vsel %vm5833_vm9, %v5855_v31, %v5856_v62  ;;  %v5106_v33 = vrot.slane %v12701_v36, 1  ;;  %v12704_v42 = vld [vmem:[%s16676_s6 + $0x238] sm:$0xff]   ;;  %v5105_v53 = vrot.slane %v10005_v1, 1  ;;  %11762 = vmatprep.subr.bf16.mxu1 %v12703_v2  ;;  %v12714_v62 = vld [vmem:[%s16678_s8 + $0x140] sm:$0xff]  }
 0x182   : > { %6235 = vmatmul.mubr.bf16.gmra.mrb[152].mxu1 %v10121_v37  ;;  %v5695_v37 = vld [vmem:[%s13171_s25 + $0x70] sm:$0xf]  ;;  %v14617_v12 = vadd.f32 %v11995_v52, %v10847_v57  ;;  %v10768_v23 = vpop.f32.mrb[52].mxu0  ;;  %v12713_v57 = vld [vmem:[%s16678_s8 + $0x100] sm:$0xff]   ;;  %11730 = vmatprep.subr.bf16.mxu0 %v12704_v42  ;;  %v5048_v36 = vrot.slane %v12705_v51, 1 }
 0x183   : > { %v10122_v56 = vcombine.low %v5695_v37, %v5696_v15  ;;  %v10848_v55 = vpop.f32.mrb[52].mxu1  ;;  %v5110_v39 = vsel %vm1078_vm2, %v5108_v35, %v5109_v44  ;;  %6242 = vmatprep.mubr.bf16.mxu1 %v5857_v25  ;;  %v10769_v20 = vpop.f32.mrb[53].mxu0  ;;  %v5107_v60 = vsel %vm1078_vm2, %v5105_v53, %v5106_v33  ;;  %11763 = vmatpush3.bf16.msra.mxu1 %v12703_v2  ;;  %v12706_v31 = vld [vmem:[%s13171_s25 + $0xac] ss:$0 sps:$4 sm:$0x11]  }
 0x184   : > { %v10849_v34 = vpop.f32.mrb[53].mxu1  ;;  %5419 = vmatprep.mubr.bf16.mxu0 %v5110_v39  ;;  %v10770_v54 = vadd.f32 %v10769_v20, %v10768_v23  ;;  %v10771_v27 = vpop.f32.mrb[54].mxu0  ;;  %11731 = vmatpush3.bf16.msra.mxu0 %v12704_v42  ;;  %v5049_v1 = vrot.slane %v12706_v31, 1  ;;  %v12708_v2 = vld [vmem:[%s13171_s25 + $0xc] ss:$0 sps:$4 sm:$0x33]  }
 0x185   : > { %v10850_v15 = vadd.f32 %v10849_v34, %v10848_v55  ;;  %v10851_v52 = vpop.f32.mrb[54].mxu1  ;;  %v10772_v24 = vpop.f32.mrb[55].mxu0  ;;  %11202 = vmatprep.subr.bf16.mxu0 %v12713_v57  ;;  %11780 = vmatprep.subr.bf16.mxu1 %v12714_v62  ;;  %v5931_v23 = vrot.slane %v12708_v2, 2  ;;  %v12709_v55 = vld [vmem:[%s13171_s25 + $0xb4] sm:$0xfe]   ;;  %v12718_v2 = vld [vmem:[%s16678_s8 + $0xc8] sm:$0xff]  }
 0x186   : > { %v10852_v47 = vpop.f32.mrb[55].mxu1  ;;  %v11986_v37 = vadd.f32 %v10770_v54, %v14216_v46  ;;  %v10773_v16 = vadd.f32 %v10772_v24, %v10771_v27  ;;  %v5050_v25 = vsel %vm1078_vm2, %v5048_v36, %v5049_v1  ;;  %v12710_v42 = vld [vmem:[%s13171_s25 + $0xbc] ss:$0 sps:$4 sm:$0x11]   ;;  %v5057_v34 = vrot.slane %v12709_v55, 1  ;;  %v12716_v36 = vld [vmem:[%s16678_s8 + $0x108] sm:$0xff]  }
 0x187   : > { %5420 = vmatmul.mubr.bf16.gmra.mrb[108].mxu0 %v5107_v60  ;;  %v10853_v44 = vadd.f32 %v10852_v47, %v10851_v52  ;;  %v12711_v57 = vld [vmem:[%s13171_s25 + $0x14] sm:$0xfc]   ;;  %v12712_v27 = vld [vmem:[%s13171_s25 + $0x1c] ss:$0 sps:$4 sm:$0x33]   ;;  %v12717_v1 = vld [vmem:[%s16678_s8 + $0x148] sm:$0xff]  }
 0x188   : > { %v11992_v35 = vadd.f32 %v10773_v16, %v14239_v14  ;;  %v14637_v46 = vadd.f32 %v11986_v37, %v10850_v15  ;;  %11732 = vmatprep.mubr.bf16.mxu0 %v5050_v25  ;;  %v12715_v14 = vld [vmem:[%s16678_s8 + $0xc0] sm:$0xff]   ;;  %v5058_v15 = vrot.slane %v12710_v42, 1  ;;  %v5933_v52 = vrot.slane %v12711_v57, 2  ;;  %v12729_v57 = vld [vmem:[%s16678_s8 + $0xd0] sm:$0xff]  }
 0x189   : > { %v5934_v47 = vrot.slane %v12712_v27, 2  ;;  %v12722_v27 = vld [vmem:[%s13171_s25 + $0x2c] ss:$0 sps:$4 sm:$0x33]  }
 0x18a   : > { %6243 = vmatmul.mubr.bf16.gmra.mrb[156].mxu1 %v10122_v56  ;;  %v12707_v56 = vld [vmem:[%s13171_s25 + $0x4] sm:$0xfc]   ;;  %v14641_v39 = vadd.f32 %v11992_v35, %v10853_v44  ;;  %v10774_v53 = vpop.f32.mrb[56].mxu0  ;;  %v5059_v24 = vsel %vm1078_vm2, %v5057_v34, %v5058_v15 }
 0x18b   : > { %v5930_v33 = vrot.slane %v12707_v56, 2  ;;  %v10854_v54 = vpop.f32.mrb[56].mxu1  ;;  %v10775_v60 = vpop.f32.mrb[57].mxu0  ;;  %v5935_v44 = vsel %vm1135_vm3, %v5933_v52, %v5934_v47  ;;  %v12721_v15 = vld [vmem:[%s13171_s25 + $0x24] sm:$0xfc]  }
 0x18c   : > { %v10776_v51 = vadd.f32 %v10775_v60, %v10774_v53  ;;  %v10855_v37 = vpop.f32.mrb[57].mxu1  ;;  %v10777_v35 = vpop.f32.mrb[58].mxu0  ;;  %v12728_v53 = vld [vmem:[%s16678_s8 + $0x150] sm:$0xff]  }
 0x18d   : > { %v5932_v20 = vsel %vm1135_vm3, %v5930_v33, %v5931_v23  ;;  %v10856_v16 = vadd.f32 %v10855_v37, %v10854_v54  ;;  %v10857_v56 = vpop.f32.mrb[58].mxu1  ;;  %v12727_v33 = vld [vmem:[%s16678_s8 + $0x110] sm:$0xff]  }
 0x18e   : > { %11764 = vmatprep.mubr.bf16.mxu1 %v5932_v20  ;;  %v12001_v31 = vadd.f32 %v10776_v51, %v14306_v19  ;;  %v10778_v19 = vpop.f32.mrb[59].mxu0  ;;  %v10858_v25 = vpop.f32.mrb[59].mxu1  ;;  %v12723_v47 = vld [vmem:[%s13171_s25 + $0xd4] sm:$0xfe]  }
 0x18f   : > { %11733 = vmatmul.mubr.bf16.vlgmr.msra.gmra.mrb[64].mxu0 %v5059_v24  ;;  %v10779_v55 = vadd.f32 %v10778_v19, %v10777_v35  ;;  %v10859_v42 = vadd.f32 %v10858_v25, %v10857_v56  ;;  %v5936_v24 = vrot.slane %v12721_v15, 2  ;;  %v12724_v51 = vld [vmem:[%s13171_s25 + $0xdc] ss:$0 sps:$4 sm:$0x11]  }
 0x190   : > { %11203 = vmatpush3.bf16.msra.mxu0 %v12715_v14  ;;  %v14665_v23 = vadd.f32 %v12001_v31, %v10856_v16  ;;  %v12719_v14 = vld [vmem:[%s13171_s25 + $0xc4] sm:$0xfe]   ;;  %v12725_v31 = vld [vmem:[%s13171_s25 + $0x34] sm:$0xfc]   ;;  %v5076_v35 = vrot.slane %v12724_v51, 1 }
 0x191   : > { %11204 = vmatprep.subr.bf16.mxu0 %v12716_v36  ;;  %v12007_v20 = vadd.f32 %v10779_v55, %v14325_v50  ;;  %v5066_v34 = vrot.slane %v12719_v14, 1  ;;  %v5937_v50 = vrot.slane %v12722_v27, 2  ;;  %v5939_v56 = vrot.slane %v12725_v31, 2  ;;  %v12734_v51 = vld [vmem:[%s13171_s25 + $0xec] ss:$0 sps:$4 sm:$0x11]  }
 0x192   : > { %11765 = vmatmul.mubr.bf16.vlgmr.msra.gmra.mrb[160].mxu1 %v5935_v44  ;;  %v10780_v37 = vpop.f32.mrb[60].mxu0  ;;  %v5075_v44 = vrot.slane %v12723_v47, 1  ;;  %v12733_v47 = vld [vmem:[%s13171_s25 + $0xe4] sm:$0xfe]  }
 0x193   : > { %11781 = vmatpush3.bf16.msra.mxu1 %v12714_v62  ;;  %v12720_v62 = vld [vmem:[%s13171_s25 + $0xcc] ss:$0 sps:$4 sm:$0x11]   ;;  %v14678_v52 = vadd.f32 %v12007_v20, %v10859_v42  ;;  %v5938_v16 = vsel %vm1135_vm3, %v5936_v24, %v5937_v50  ;;  %v10860_v36 = vpop.f32.mrb[60].mxu1  ;;  %v12743_v31 = vld [vmem:[%s16678_s8 + $0xe0] sm:$0xff]  }
 0x194   : > { %11782 = vmatprep.subr.bf16.mxu1 %v12717_v1  ;;  %11205 = vmatpush3.bf16.msra.mxu0 %v12718_v2  ;;  %v5067_v54 = vrot.slane %v12720_v62, 1  ;;  %v10781_v2 = vpop.f32.mrb[61].mxu0  ;;  %v5077_v19 = vsel %vm1078_vm2, %v5075_v44, %v5076_v35  ;;  %v10861_v55 = vpop.f32.mrb[61].mxu1  ;;  %v5084_v44 = vrot.slane %v12733_v47, 1  ;;  %v12735_v35 = vld [vmem:[%s13171_s25 + $0x44] sm:$0xfc]  }
 0x195   : > { %11206 = vmatprep.subr.bf16.mxu0 %v12727_v33  ;;  %11768 = vmatprep.mubr.bf16.mxu1 %v5938_v16  ;;  %v10782_v33 = vadd.f32 %v10781_v2, %v10780_v37  ;;  %v10862_v42 = vadd.f32 %v10861_v55, %v10860_v36  ;;  %v10783_v20 = vpop.f32.mrb[62].mxu0  ;;  %v12742_v37 = vld [vmem:[%s16678_s8 + $0x160] sm:$0xff]   ;;  %v5085_v36 = vrot.slane %v12734_v51, 1  ;;  %v12746_v51 = vld [vmem:[%s16678_s8 + $0xe8] sm:$0xff]  }
 0x196   : > { %v5068_v60 = vsel %vm1078_vm2, %v5066_v34, %v5067_v54  ;;  %v12731_v34 = vld [vmem:[%s16678_s8 + $0x158] sm:$0xff]   ;;  %v10784_v15 = vpop.f32.mrb[63].mxu0 }
 0x197   : > { %11783 = vmatpush3.bf16.msra.mxu1 %v12717_v1  ;;  %11736 = vmatprep.mubr.bf16.mxu0 %v5068_v60  ;;  %v12726_v1 = vld [vmem:[%s13171_s25 + $0x3c] ss:$0 sps:$4 sm:$0x33]   ;;  %v11998_v62 = vadd.f32 %v10782_v33, %v14365_v43  ;;  %v12741_v43 = vld [vmem:[%s16678_s8 + $0x120] sm:$0xff]   ;;  %v10785_v24 = vadd.f32 %v10784_v15, %v10783_v20  ;;  %v5086_v2 = vsel %vm1078_vm2, %v5084_v44, %v5085_v36  ;;  %v12744_v15 = vld [vmem:[%s16678_s8 + $0x128] sm:$0xff]  }
 0x198   : > { %11784 = vmatprep.subr.bf16.mxu1 %v12728_v53  ;;  %11207 = vmatpush3.bf16.msra.mxu0 %v12729_v57  ;;  %v5940_v25 = vrot.slane %v12726_v1, 2  ;;  %v10863_v57 = vpop.f32.mrb[62].mxu1  ;;  %v12732_v54 = vld [vmem:[%s16678_s8 + $0xd8] sm:$0xff]   ;;  %v12736_v1 = vld [vmem:[%s13171_s25 + $0x4c] ss:$0 sps:$4 sm:$0x33]  }
 0x199   : > { %11737 = vmatmul.mubr.bf16.gmra.mrb[68].mxu0 %v5077_v19  ;;  %v10864_v27 = vpop.f32.mrb[63].mxu1  ;;  %v14701_v60 = vadd.f32 %v11998_v62, %v10862_v42  ;;  %v12004_v16 = vadd.f32 %v10785_v24, %v14391_v30  ;;  %v5942_v19 = vrot.slane %v12735_v35, 2  ;;  %v12737_v30 = vld [vmem:[%s13171_s25 + $0xf4] sm:$0xfe]   ;;  %v12745_v24 = vld [vmem:[%s16678_s8 + $0x168] sm:$0xff]  }
 0x19a   : > { %v5941_v14 = vsel %vm1135_vm3, %v5939_v56, %v5940_v25  ;;  %v10865_v50 = vadd.f32 %v10864_v27, %v10863_v57  ;;  %v5943_v25 = vrot.slane %v12736_v1, 2  ;;  %11740 = vmatprep.mubr.bf16.mxu0 %v5086_v2  ;;  %v12738_v33 = vld [vmem:[%s13171_s25 + $0xfc] ss:$0 sps:$4 sm:$0x11]   ;;  %v12739_v62 = vld [vmem:[%s13171_s25 + $0x54] sm:$0xfc]  }
 0x19b   : > { %11785 = vmatpush3.bf16.msra.mxu1 %v12728_v53  ;;  %v12730_v53 = vld [vmem:[%s16678_s8 + $0x118] sm:$0xff]   ;;  %v10898_v55 = vpop.f32.mrb[64].mxu1  ;;  %v5094_v20 = vrot.slane %v12738_v33, 1  ;;  %v12748_v36 = vld [vmem:[%s13171_s25 + $0x10c] ss:$0 sps:$4 sm:$0x11]  }
 0x19c   : > { %11769 = vmatmul.mubr.bf16.gmra.mrb[164].mxu1 %v5941_v14  ;;  %11208 = vmatprep.subr.bf16.mxu0 %v12730_v53  ;;  %v14714_v56 = vadd.f32 %v12004_v16, %v10865_v50  ;;  %v5944_v42 = vsel %vm1135_vm3, %v5942_v19, %v5943_v25  ;;  %v5093_v14 = vrot.slane %v12737_v30, 1  ;;  %v10899_v53 = vpop.f32.mrb[65].mxu1  ;;  %v12755_v16 = vld [vmem:[%s16678_s8 + $0x130] sm:$0xff]   ;;  %v5103_v2 = vrot.slane %v12748_v36, 1  ;;  %v12749_v19 = vld [vmem:[%s13171_s25 + $0x64] sm:$0xfc]  }
 0x19d   : > { %11786 = vmatprep.subr.bf16.mxu1 %v12731_v34  ;;  %11209 = vmatpush3.bf16.msra.mxu0 %v12732_v54  ;;  %v14722_v57 = vadd.f32 %v10899_v53, %v10898_v55  ;;  %v5945_v54 = vrot.slane %v12739_v62, 2  ;;  %v10901_v47 = vpop.f32.mrb[66].mxu1  ;;  %v12756_v35 = vld [vmem:[%s16678_s8 + $0x170] sm:$0xff]   ;;  %v12750_v25 = vld [vmem:[%s13171_s25 + $0x6c] ss:$0 sps:$4 sm:$0x33]  }
 0x19e   : > { %11210 = vmatprep.subr.bf16.mxu0 %v12741_v43  ;;  %11772 = vmatprep.mubr.bf16.mxu1 %v5944_v42  ;;  %v5095_v27 = vsel %vm1078_vm2, %v5093_v14, %v5094_v20  ;;  %v12757_v30 = vld [vmem:[%s16678_s8 + $0xf0] sm:$0xff]   ;;  %v5948_v55 = vrot.slane %v12749_v19, 2  ;;  %v5949_v62 = vrot.slane %v12750_v25, 2  ;;  %v12752_v53 = vld [vmem:[%s13171_s25 + $0x11c] ss:$0 sps:$4 sm:$0x11]  }
 0x19f   : > { %11787 = vmatpush3.bf16.msra.mxu1 %v12731_v34  ;;  %v12740_v34 = vld [vmem:[%s13171_s25 + $0x5c] ss:$0 sps:$4 sm:$0x33]   ;;  %v12751_v42 = vld [vmem:[%s13171_s25 + $0x114] sm:$0xfe]  }
 0x1a0   : > { %11788 = vmatprep.subr.bf16.mxu1 %v12742_v37  ;;  %v5946_v43 = vrot.slane %v12740_v34, 2  ;;  %v5111_v20 = vrot.slane %v12751_v42, 1  ;;  %v12759_v36 = vld [vmem:[%s16678_s8 + $0x178] sm:$0xff]   ;;  %v10179_v19 = vld [vmem:[%s13171_s25 + $0x60] sm:$0xf] }
 0x1a1   : > { %11211 = vmatpush3.bf16.msra.mxu0 %v12743_v31  ;;  %v12747_v31 = vld [vmem:[%s13171_s25 + $0x104] sm:$0xfe]  }
 0x1a2   : > { %11741 = vmatmul.mubr.bf16.gmra.mrb[72].mxu0 %v5095_v27  ;;  %11212 = vmatprep.subr.bf16.mxu0 %v12744_v15  ;;  %v5947_v50 = vsel %vm1135_vm3, %v5945_v54, %v5946_v43  ;;  %v5102_v1 = vrot.slane %v12747_v31, 1  ;;  %v5950_v54 = vsel %vm1135_vm3, %v5948_v55, %v5949_v62  ;;  %v5112_v15 = vrot.slane %v12752_v53, 1  ;;  %v12753_v27 = vld [vmem:[%s13171_s25 + $0x74] sm:$0xfc]   ;;  %v10180_v25 = vld [vmem:[%s13171_s25 + $0x64] sm:$0xf] }
 0x1a3   : > { %11789 = vmatpush3.bf16.msra.mxu1 %v12742_v37  ;;  %v10902_v37 = vpop.f32.mrb[67].mxu1  ;;  %v12754_v43 = vld [vmem:[%s13171_s25 + $0x7c] ss:$0 sps:$4 sm:$0x33]   ;;  %v12764_v62 = vld [vmem:[%s13171_s25 + $0x64] sm:$0xfc]   ;;  %v10235_v53 = vcombine.low %v10179_v19, %v10180_v25 }
 0x1a4   : > { %11790 = vmatprep.subr.bf16.mxu1 %v12745_v24  ;;  %11773 = vmatmul.mubr.bf16.gmra.mrb[168].mxu1 %v5947_v50  ;;  %v14738_v44 = vadd.f32 %v10902_v37, %v10901_v47  ;;  %v5104_v33 = vsel %vm1078_vm2, %v5102_v1, %v5103_v2  ;;  %v10904_v14 = vpop.f32.mrb[68].mxu1  ;;  %v5113_v50 = vsel %vm1078_vm2, %v5111_v20, %v5112_v15  ;;  %v5951_v47 = vrot.slane %v12753_v27, 2  ;;  %v12760_v1 = vld [vmem:[%s16678_s8 + $0xf8] sm:$0xff]   ;;  %v12763_v42 = vld [vmem:[%s13171_s25 + $0x68] ss:$0 sps:$4 sm:$0x77]  }
 0x1a5   : > { %11213 = vmatpush3.bf16.msra.mxu0 %v12746_v51  ;;  %11744 = vmatprep.mubr.bf16.mxu0 %v5104_v33  ;;  %v10905_v34 = vpop.f32.mrb[69].mxu1  ;;  %v5952_v51 = vrot.slane %v12754_v43, 2  ;;  %v10195_v33 = vld [vmem:[%s13171_s25 + $0x60] sm:$0x8]  ;;  %v6612_v15 = vrot.slane %v12764_v62, 2 }
 0x1a6   : > { %11214 = vmatprep.subr.bf16.mxu0 %v12755_v16  ;;  %11776 = vmatprep.mubr.bf16.mxu1 %v5950_v54  ;;  %v12758_v16 = vld [vmem:[%s16678_s8 + $0x138] sm:$0xff]   ;;  %v10907_v31 = vpop.f32.mrb[70].mxu1  ;;  %v10243_v55 = vcombine.low %v10195_v33, %v10180_v25  ;;  %v12765_v54 = vld [vmem:[%s13171_s25 + $0x6c] ss:$0 sps:$4 sm:$0x33]  }
 0x1a7   : > { %11791 = vmatpush3.bf16.msra.mxu1 %v12745_v24  ;;  %v14756_v24 = vadd.f32 %v10905_v34, %v10904_v14  ;;  %v5953_v37 = vsel %vm1135_vm3, %v5951_v47, %v5952_v51  ;;  %v12768_v14 = vld [vmem:[%s16678_s8 + $0x1c0] sm:$0xff]   ;;  %v6517_v34 = vrot.slane %v12763_v42, 3  ;;  %v12766_v47 = vld [vmem:[%s13171_s25 + $0x74] sm:$0xfc]  }
 0x1a8   : > { %11792 = vmatprep.subr.bf16.mxu1 %v12756_v35  ;;  %v6516_v20 = vrot.slane %v10243_v55, 3  ;;  %v12767_v51 = vld [vmem:[%s13171_s25 + $0x7c] ss:$0 sps:$4 sm:$0x33]   ;;  %v10182_v55 = vld [vmem:[%s13171_s25 + $0x74] sm:$0xf] }
 0x1a9   : > { %11215 = vmatpush3.bf16.msra.mxu0 %v12757_v30 }
 0x1aa   : > { %11745 = vmatmul.mubr.bf16.gmra.mrb[76].mxu0 %v5113_v50  ;;  %11216 = vmatprep.subr.bf16.mxu0 %v12758_v16  ;;  %v6518_v43 = vsel %vm5833_vm9, %v6516_v20, %v6517_v34  ;;  %v6613_v50 = vrot.slane %v12765_v54, 2  ;;  %v12774_v20 = vld [vmem:[%s13171_s25 + $0x84] sm:$0xfc]   ;;  %v16687_v34 = vmov 0.0|0.0   ;;  %v10181_v54 = vld [vmem:[%s13171_s25 + $0x70] sm:$0xf] }
 0x1ab   : > { %11793 = vmatpush3.bf16.msra.mxu1 %v12756_v35  ;;  %v10908_v35 = vpop.f32.mrb[71].mxu1  ;;  %6869 = vmatprep.mubr.bf16.mxu0 %v6518_v43  ;;  %v12775_v43 = vld [vmem:[%s13171_s25 + $0x8c] ss:$0 sps:$4 sm:$0x33]  }
 0x1ac   : > { %11777 = vmatmul.mubr.bf16.gmra.mrb[172].mxu1 %v5953_v37  ;;  %v14769_v2 = vadd.f32 %v10908_v35, %v10907_v31  ;;  %v10910_v30 = vpop.f32.mrb[72].mxu1  ;;  %11794 = vmatprep.subr.bf16.mxu1 %v12759_v36  ;;  %v12769_v37 = vld [vmem:[%s16678_s8 + $0x180] sm:$0xff]   ;;  %v6614_v31 = vsel %vm1135_vm3, %v6612_v15, %v6613_v50  ;;  %v6616_v35 = vrot.slane %v12767_v51, 2  ;;  %v10236_v50 = vcombine.low %v10181_v54, %v10182_v55  ;;  %v12781_v54 = vld [vmem:[%s16678_s8 + $0x1d8] sm:$0xff]  }
 0x1ad   : > { %11217 = vmatpush3.bf16.msra.mxu0 %v12760_v1  ;;  %v10911_v27 = vpop.f32.mrb[73].mxu1  ;;  %11796 = vmatprep.mubr.bf16.mxu1 %v6614_v31  ;;  %v12770_v1 = vld [vmem:[%s16678_s8 + $0x1c8] sm:$0xff]   ;;  %v6618_v51 = vrot.slane %v12774_v20, 2 }
 0x1ae   : > { %v14786_v16 = vadd.f32 %v10911_v27, %v10910_v30  ;;  %v10913_v19 = vpop.f32.mrb[74].mxu1  ;;  %v12771_v30 = vld [vmem:[%s16678_s8 + $0x188] sm:$0xff]   ;;  %11914 = vmatprep.subr.bf16.mxu0 %v16687_v34 }
 0x1af   : > { %11795 = vmatpush3.bf16.msra.mxu1 %v12759_v36  ;;  %v6615_v36 = vrot.slane %v12766_v47, 2  ;;  %v10914_v33 = vpop.f32.mrb[75].mxu1  ;;  %v12779_v47 = vld [vmem:[%s16678_s8 + $0x1d0] sm:$0xff]  }
 0x1b0   : > { %11282 = vmatprep.subr.bf16.mxu1 %v12768_v14  ;;  %v14797_v42 = vadd.f32 %v10914_v33, %v10913_v19  ;;  %v10197_v14 = vld [vmem:[%s13171_s25 + $0x70] sm:$0x8]  ;;  %v12778_v19 = vld [vmem:[%s13171_s25 + $0x9c] ss:$0 sps:$4 sm:$0x33]  }
 0x1b1   : > { %v6617_v25 = vsel %vm1135_vm3, %v6615_v36, %v6616_v35  ;;  %v10245_v62 = vcombine.low %v10197_v14, %v10182_v55  ;;  %v6619_v36 = vrot.slane %v12775_v43, 2  ;;  %v12777_v35 = vld [vmem:[%s13171_s25 + $0x94] sm:$0xfc]  }
 0x1b2   : > { %6870 = vmatmul.mubr.bf16.vlgmr.msra.gmra.mrb[112].mxu0 %v10235_v53  ;;  %16766 = vst [vmem:[#allocation26_spill] sm:$0xff] %v14797_v42  ;;  %v12773_v53 = vld [vmem:[%s13171_s25 + $0x78] ss:$0 sps:$4 sm:$0x77]   ;;  %v12780_v33 = vld [vmem:[%s16678_s8 + $0x190] sm:$0xff]  }
 0x1b3   : > { %v6519_v15 = vrot.slane %v10245_v62, 3  ;;  %v6520_v27 = vrot.slane %v12773_v53, 3  ;;  %v6620_v55 = vsel %vm1135_vm3, %v6618_v51, %v6619_v36  ;;  %v6622_v62 = vrot.slane %v12778_v19, 2  ;;  %v12782_v43 = vld [vmem:[%s16678_s8 + $0x198] sm:$0xff]   ;;  %v10183_v19 = vld [vmem:[%s13171_s25 + $0x80] sm:$0xf] }
 0x1b4   : > { %11797 = vmatmul.mubr.bf16.vlgmr.msra.gmra.mrb[160].mxu1 %v6617_v25  ;;  %v10916_v14 = vpop.f32.mrb[76].mxu1  ;;  %v12784_v36 = vld [vmem:[%s13171_s25 + $0x88] ss:$0 sps:$4 sm:$0x77]  }
 0x1b5   : > { %11283 = vmatpush3.bf16.msra.mxu1 %v12769_v37  ;;  %v8214_v37 = vld [vmem:[%s16680_s10] sm:$0xff]  ;;  %v6521_v31 = vsel %vm5833_vm9, %v6519_v15, %v6520_v27  ;;  %11800 = vmatprep.mubr.bf16.mxu1 %v6620_v55  ;;  %v10917_v53 = vpop.f32.mrb[77].mxu1  ;;  %v12786_v55 = vld [vmem:[%s13171_s25 + $0xac] ss:$0 sps:$4 sm:$0x33]  }
 0x1b6   : > { %11284 = vmatprep.subr.bf16.mxu1 %v12770_v1  ;;  %v8215_v1 = vld [vmem:[%s16680_s10 + $0x8] sm:$0xff]  ;;  %6877 = vmatprep.mubr.bf16.mxu0 %v6521_v31  ;;  %v14821_v20 = vadd.f32 %v10917_v53, %v10916_v14  ;;  %v10919_v15 = vpop.f32.mrb[78].mxu1  ;;  %v8216_v14 = vld [vmem:[%s16680_s10 + $0x10] sm:$0xff]  ;;  %v8217_v53 = vld [vmem:[%s16680_s10 + $0x18] sm:$0xff] }
 0x1b7   : > { %v11915_v25 = vpack.c.bf16 %v8215_v1, %v8214_v37  ;;  %v10199_v37 = vld [vmem:[%s13171_s25 + $0x80] sm:$0x8]  ;;  %v12785_v1 = vld [vmem:[%s13171_s25 + $0xa4] sm:$0xfc]  }
 0x1b8   : > { %16767 = vst [vmem:[#allocation27_spill] sm:$0xff] %v14821_v20 }
 0x1b9   : > { %11285 = vmatpush3.bf16.msra.mxu1 %v12771_v30  ;;  %v6621_v30 = vrot.slane %v12777_v35, 2  ;;  %11916 = vmatpush3.bf16.msra.mxu0 %v11915_v25  ;;  %v12790_v35 = vld [vmem:[%s16678_s8 + $0x1e0] sm:$0xff]  }
 0x1ba   : > { %11286 = vmatprep.subr.bf16.mxu1 %v12779_v47  ;;  %6878 = vmatmul.mubr.bf16.gmra.mrb[116].mxu0 %v10236_v50  ;;  %v10920_v50 = vpop.f32.mrb[79].mxu1  ;;  %v10184_v47 = vld [vmem:[%s13171_s25 + $0x84] sm:$0xf] }
 0x1bb   : > { %11917 = vmatprep.subr.bf16.mxu0 %v16687_v34  ;;  %v6623_v27 = vsel %vm1135_vm3, %v6621_v30, %v6622_v62  ;;  %v14832_v51 = vadd.f32 %v10920_v50, %v10919_v15  ;;  %v10247_v31 = vcombine.low %v10199_v37, %v10184_v47  ;;  %v10237_v30 = vcombine.low %v10183_v19, %v10184_v47  ;;  %v12791_v50 = vld [vmem:[%s16678_s8 + $0x1a0] sm:$0xff]   ;;  %v12789_v47 = vld [vmem:[%s13171_s25 + $0xbc] ss:$0 sps:$4 sm:$0x33]   ;;  %v11638_v37 = vpop.f32.mrb[16].mxu0 }
 0x1bc   : > { %11801 = vmatmul.mubr.bf16.gmra.mrb[164].mxu1 %v6623_v27  ;;  %v6624_v62 = vrot.slane %v12785_v1, 2  ;;  %v6625_v15 = vrot.slane %v12786_v55, 2  ;;  %v12788_v27 = vld [vmem:[%s13171_s25 + $0xb4] sm:$0xfc]   ;;  %v10922_v1 = vpop.f32.mrb[80].mxu1  ;;  %v6628_v19 = vrot.slane %v12789_v47, 2 }
 0x1bd   : > { %11287 = vmatpush3.bf16.msra.mxu1 %v12780_v33  ;;  %16768 = vst [vmem:[#allocation28_spill] sm:$0xff] %v14832_v51  ;;  %v6522_v25 = vrot.slane %v10247_v31, 3  ;;  %v6523_v33 = vrot.slane %v12784_v36, 3  ;;  %v6627_v36 = vrot.slane %v12788_v27, 2  ;;  %v15465_v51 = vld [vmem:[%s13158_s29 + $0x120] sm:$0x8] }
 0x1be   : > { %11288 = vmatprep.subr.bf16.mxu1 %v12781_v54  ;;  %v6626_v31 = vsel %vm1135_vm3, %v6624_v62, %v6625_v15  ;;  %16821 = vst [vmem:[#allocation73_spill] sm:$0xff] %v15465_v51 }
 0x1bf   : > { %v6524_v54 = vsel %vm5833_vm9, %v6522_v25, %v6523_v33  ;;  %11804 = vmatprep.mubr.bf16.mxu1 %v6626_v31  ;;  %v2997_v25 = vpop.f32.mrb[17].mxu0  ;;  %v14861_v33 = vld [vmem:[%s16675_s5] ss:$0 sm:$0xff] }
 0x1c0   : > { %6885 = vmatprep.mubr.bf16.mxu0 %v6524_v54  ;;  %v11967_v55 = vadd.f32 %v14460_v13, %v2997_v25  ;;  %v11639_v54 = vpop.f32.mrb[18].mxu0 }
 0x1c1   : > { %11289 = vmatpush3.bf16.msra.mxu1 %v12782_v43  ;;  %v11918_v43 = vpack.c.bf16 %v8217_v53, %v8216_v14  ;;  %v10923_v14 = vpop.f32.mrb[81].mxu1  ;;  %v11970_v27 = vadd.f32 %v14542_v6, %v11639_v54  ;;  %v10201_v6 = vld [vmem:[%s13171_s25 + $0x90] sm:$0x8] }
 0x1c2   : > { %11290 = vmatprep.subr.bf16.mxu1 %v12790_v35  ;;  %6886 = vmatmul.mubr.bf16.gmra.mrb[120].mxu0 %v10237_v30  ;;  %v11964_v35 = vadd.f32 %v14537_v5, %v11638_v37  ;;  %v12792_v30 = vld [vmem:[%s16678_s8 + $0x1e8] sm:$0xff]   ;;  %v6629_v5 = vsel %vm1135_vm3, %v6627_v36, %v6628_v19  ;;  %v14870_v53 = vadd.f32 %v10923_v14, %v10922_v1  ;;  %v10925_v15 = vpop.f32.mrb[82].mxu1  ;;  %v12801_v37 = vld [vmem:[%s16678_s8 + $0x1f0] sm:$0xff]   ;;  %v8218_v1 = vld [vmem:[%s16680_s10 + $0x20] sm:$0xff]  ;;  %v14891_v14 = vstv %s14856_s24 }
 0x1c3   : > { %11919 = vmatpush3.bf16.msra.mxu0 %v11918_v43  ;;  %v3131_v13 = vadd.f32 %v11967_v55, %v14861_v33  ;;  %v12793_v43 = vld [vmem:[%s16678_s8 + $0x1a8] sm:$0xff]   ;;  %v10926_v47 = vpop.f32.mrb[83].mxu1  ;;  %v3134_v19 = vadd.f32 %v11970_v27, %v14861_v33  ;;  %v12795_v55 = vld [vmem:[%s13171_s25 + $0x98] ss:$0 sps:$4 sm:$0x77]  }
 0x1c4   : > { %11920 = vmatprep.subr.bf16.mxu0 %v16687_v34  ;;  %v3133_v62 = vadd.f32 %v11964_v35, %v14861_v33  ;;  %16769 = vst [vmem:[#allocation29_spill] sm:$0xff] %v14870_v53  ;;  %11805 = vmatmul.mubr.bf16.gmra.mrb[168].mxu1 %v6629_v5  ;;  %v14881_v36 = vadd.f32 %v10926_v47, %v10925_v15  ;;  %v10186_v35 = vld [vmem:[%s13171_s25 + $0x94] sm:$0xf]  ;;  %v12796_v15 = vld [vmem:[%s13171_s25 + $0xc4] sm:$0xfc]   ;;  %v6526_v47 = vrot.slane %v12795_v55, 3 }
 0x1c5   : > { %11291 = vmatpush3.bf16.msra.mxu1 %v12791_v50  ;;  %v3000_v50 = vpop.f32.mrb[19].mxu0  ;;  %vm3147_vm10 = vcmp.gt.f32.partialorder %v3131_v13, 0.0  ;;  %v10249_v25 = vcombine.low %v10201_v6, %v10186_v35  ;;  %v3164_v5 = vmul.f32 %v14891_v14, %v3131_v13  ;;  %vm3150_vm11 = vcmp.gt.f32.partialorder %v3134_v19, 0.0  ;;  %v10185_v6 = vld [vmem:[%s13171_s25 + $0x90] sm:$0xf] }
 0x1c6   : > { %11292 = vmatprep.subr.bf16.mxu1 %v12792_v30  ;;  %vm3149_vm2 = vcmp.gt.f32.partialorder %v3133_v62, 0.0  ;;  %v11973_v31 = vadd.f32 %v14487_v61, %v3000_v50  ;;  %16770 = vst [vmem:[#allocation30_spill] sm:$0xff] %v14881_v36  ;;  %v3166_v30 = vmul.f32 %v14891_v14, %v3133_v62  ;;  %v3167_v54 = vmul.f32 %v14891_v14, %v3134_v19  ;;  %v12797_v50 = vld [vmem:[%s13171_s25 + $0xcc] ss:$0 sps:$4 sm:$0x33]  }
 0x1c7   : > { %v6631_v18 = vrot.slane %v12797_v50, 2  ;;  %v10238_v48 = vcombine.low %v10185_v6, %v10186_v35  ;;  %v12799_v34 = vld [vmem:[%s13171_s25 + $0xd4] sm:$0xfc]   ;;  %v14907_v41 = vsel %vm3147_vm10, %v3131_v13, %v3164_v5  ;;  %v16775_v50 = vmov 0.0|0.0   ;;  %v14945_v6 = vld [vmem:[%s16678_s8 + $0x200] sm:$0xff]  }
 0x1c8   : > { %v3132_v61 = vadd.f32 %v11973_v31, %v14861_v33  ;;  %v6630_v31 = vrot.slane %v12796_v15, 2  ;;  %16771 = vst [vmem:[#allocation31_spill] sm:$0xff] %v14907_v41  ;;  %v12802_v35 = vld [vmem:[%s16678_s8 + $0x1b0] sm:$0xff]   ;;  %v14922_v13 = vsel %vm3150_vm11, %v3134_v19, %v3167_v54  ;;  %v12803_v15 = vld [vmem:[%s16678_s8 + $0x1f8] sm:$0xff]   ;;  %v15399_v41 = vld [vmem:[%s13158_s29 + $0xe8] sm:$0x7] }
 0x1c9   : > { %11293 = vmatpush3.bf16.msra.mxu1 %v12793_v43  ;;  %v6525_v43 = vrot.slane %v10249_v25, 3  ;;  %v14912_v25 = vsel %vm3149_vm2, %v3133_v62, %v3166_v30  ;;  %16774 = vst [vmem:[#allocation34_spill] sm:$0xff] %v14922_v13  ;;  %v11642_v62 = vpop.f32.mrb[20].mxu0  ;;  %v10928_v30 = vpop.f32.mrb[84].mxu1 }
 0x1ca   : > { %11294 = vmatprep.subr.bf16.mxu1 %v12801_v37  ;;  %vm3148_vm12 = vcmp.gt.f32.partialorder %v3132_v61, 0.0  ;;  %v3165_v27 = vmul.f32 %v14891_v14, %v3132_v61  ;;  %v8219_v37 = vld [vmem:[%s16680_s10 + $0x28] sm:$0xff]  ;;  %16773 = vst [vmem:[#allocation33_spill] sm:$0xff] %v14912_v25  ;;  %v6632_v55 = vsel %vm1135_vm3, %v6630_v31, %v6631_v18  ;;  %v6634_v18 = vrot.slane %v12800_v3, 2  ;;  %v3013_v5 = vpop.f32.mrb[21].mxu0 }
 0x1cb   : > { %v11921_v58 = vpack.c.bf16 %v8219_v37, %v8218_v1  ;;  %v6527_v10 = vsel %vm5833_vm9, %v6525_v43, %v6526_v47  ;;  %11808 = vmatprep.mubr.bf16.mxu1 %v6632_v55  ;;  %v11979_v19 = vadd.f32 %v14562_v40, %v3013_v5  ;;  %v12804_v40 = vld [vmem:[%s16678_s8 + $0x1b8] sm:$0xff]   ;;  %v10188_v55 = vld [vmem:[%s13171_s25 + $0xa4] sm:$0xf]  ;;  %v10349_v5 = vld [vmem:[%s13171_s25 + $0xc0] sm:$0xf] }
 0x1cc   : > { %v14909_v4 = vsel %vm3148_vm12, %v3132_v61, %v3165_v27  ;;  %6893 = vmatprep.mubr.bf16.mxu0 %v6527_v10  ;;  %v6633_v61 = vrot.slane %v12799_v34, 2  ;;  %v11643_v34 = vpop.f32.mrb[22].mxu0  ;;  %v10187_v10 = vld [vmem:[%s13171_s25 + $0xa0] sm:$0xf]  ;;  %vm12961_vm12 = vmmov 0  }
 0x1cd   : > { %16772 = vst [vmem:[#allocation32_spill] sm:$0xff] %v14909_v4  ;;  %11922 = vmatpush3.bf16.msra.mxu0 %v11921_v58  ;;  %11295 = vmatpush3.bf16.msra.mxu1 %v12802_v35  ;;  %v11976_v58 = vadd.f32 %v14587_v29, %v11642_v62  ;;  %v11982_v27 = vadd.f32 %v14592_v59, %v11643_v34  ;;  %v3016_v47 = vpop.f32.mrb[23].mxu0  ;;  %v10203_v35 = vld [vmem:[%s13171_s25 + $0xa0] sm:$0x8]  ;;  %v15387_v25 = vld [vmem:[%s13158_s29 + $0x104] sm:$0xf] }
 0x1ce   : > { %6894 = vmatmul.mubr.bf16.gmra.mrb[124].mxu0 %v10238_v48  ;;  %11923 = vmatprep.subr.bf16.mxu0 %v16775_v50  ;;  %v10929_v48 = vpop.f32.mrb[85].mxu1  ;;  %v6635_v54 = vsel %vm1135_vm3, %v6633_v61, %v6634_v18  ;;  %v14948_v37 = vadd.f32 %v11979_v19, %v14861_v33  ;;  %v11985_v31 = vadd.f32 %v14567_v28, %v3016_v47  ;;  %v12806_v18 = vld [vmem:[%s13171_s25 + $0xa8] ss:$0 sps:$4 sm:$0x77]   ;;  %v8221_v19 = vld [vmem:[%s16680_s10 + $0x38] sm:$0xff] }
 0x1cf   : > { %v14934_v3 = vadd.f32 %v11976_v58, %v14861_v33  ;;  %v14936_v29 = vadd.f32 %v10929_v48, %v10928_v30  ;;  %11296 = vmatprep.subr.bf16.mxu1 %v12803_v15  ;;  %v10931_v43 = vpop.f32.mrb[86].mxu1  ;;  %11809 = vmatmul.mubr.bf16.gmra.mrb[172].mxu1 %v6635_v54  ;;  %v14954_v61 = vadd.f32 %v11982_v27, %v14861_v33  ;;  %v8220_v58 = vld [vmem:[%s16680_s10 + $0x30] sm:$0xff]  ;;  %v10350_v15 = vld [vmem:[%s13171_s25 + $0xc4] sm:$0xf]  ;;  %v6529_v34 = vrot.slane %v12806_v18, 3 }
 0x1d0   : > { %v10932_v59 = vpop.f32.mrb[87].mxu1  ;;  %v14964_v28 = vadd.f32 %v11985_v31, %v14861_v33  ;;  %v10251_v30 = vcombine.low %v10203_v35, %v10188_v55  ;;  %vm3151_vm14 = vcmp.gt.f32.partialorder %v14948_v37, 0.0  ;;  %v10365_v54 = vld [vmem:[%s13171_s25 + $0xc0] sm:$0x8]  ;;  %v3168_v27 = vmul.f32 %v14891_v14, %v14948_v37  ;;  %v11646_v31 = vpop.f32.mrb[24].mxu0  ;;  %16804 = vst [vmem:[#allocation61_spill] sm:$0xff] %v15387_v25 }
 0x1d1   : > { %16776 = vst [vmem:[#allocation35_spill] sm:$0xff] %v14936_v29  ;;  %11297 = vmatpush3.bf16.msra.mxu1 %v12804_v40  ;;  %v14956_v62 = vadd.f32 %v10932_v59, %v10931_v43  ;;  %vm3153_vm13 = vcmp.gt.f32.partialorder %v14934_v3, 0.0  ;;  %v14974_v48 = vmul.f32 %v14891_v14, %v14934_v3  ;;  %v10413_v40 = vcombine.low %v10365_v54, %v10350_v15  ;;  %v12809_v47 = vld [vmem:[%s13171_s25 + $0xc8] ss:$0 sps:$4 sm:$0x77]   ;;  %v10934_v21 = vpop.f32.mrb[88].mxu1 }
 0x1d2   : > { %11812 = vmatprep.subr.bf16.mxu1 %v14945_v6  ;;  %vm3152_vm15 = vcmp.gt.f32.partialorder %v14964_v28, 0.0  ;;  %v6528_v43 = vrot.slane %v10251_v30, 3  ;;  %v14984_v59 = vmul.f32 %v14891_v14, %v14954_v61  ;;  %v10405_v35 = vcombine.low %v10349_v5, %v10350_v15  ;;  %v3029_v30 = vpop.f32.mrb[25].mxu0  ;;  %v14990_v54 = vld [vmem:[%s13171_s25 + $0xb4] sm:$0xf]  ;;  %v10935_v5 = vpop.f32.mrb[89].mxu1 }
 0x1d3   : > { %16777 = vst [vmem:[#allocation36_spill] sm:$0xff] %v14956_v62  ;;  %v11924_v1 = vpack.c.bf16 %v8221_v19, %v8220_v58  ;;  %v11988_v18 = vadd.f32 %v14637_v46, %v11646_v31  ;;  %v7235_v17 = vrot.slane %v10413_v40, 3  ;;  %v7236_v49 = vrot.slane %v12809_v47, 3  ;;  %v11647_v15 = vpop.f32.mrb[26].mxu0  ;;  %v10205_v19 = vld [vmem:[%s13171_s25 + $0xb0] sm:$0x8] }
 0x1d4   : > { %v6530_v38 = vsel %vm5833_vm9, %v6528_v43, %v6529_v34  ;;  %v10239_v22 = vcombine.low %v10187_v10, %v10188_v55  ;;  %v3169_v32 = vmul.f32 %v14891_v14, %v14964_v28  ;;  %v11991_v46 = vadd.f32 %v14608_v45, %v3029_v30  ;;  %v10937_v43 = vpop.f32.mrb[90].mxu1  ;;  %v12813_v40 = vld [vmem:[%s13171_s25 + $0xb8] ss:$0 sps:$4 sm:$0x77]   ;;  %v12818_v45 = vld [vmem:[%s16678_s8 + $0x208] sm:$0xff]  }
 0x1d5   : > { %6901 = vmatprep.mubr.bf16.mxu0 %v6530_v38  ;;  %11925 = vmatpush3.bf16.msra.mxu0 %v11924_v1  ;;  %v14995_v58 = vadd.f32 %v11988_v18, %v14861_v33  ;;  %v7237_v10 = vsel %vm5833_vm9, %v7235_v17, %v7236_v49  ;;  %v15000_v55 = vadd.f32 %v10935_v5, %v10934_v21  ;;  %v3032_v38 = vpop.f32.mrb[27].mxu0  ;;  %vm3154_vm0 = vcmp.gt.f32.partialorder %v14954_v61, 0.0  ;;  %v10938_v49 = vpop.f32.mrb[91].mxu1  ;;  %v10367_v47 = vld [vmem:[%s13171_s25 + $0xd0] sm:$0x8] }
 0x1d6   : > { %6902 = vmatmul.mubr.bf16.gmra.mrb[128].mxu0 %v10239_v22  ;;  %v11994_v34 = vadd.f32 %v14641_v39, %v11647_v15  ;;  %v10253_v1 = vcombine.low %v10205_v19, %v14990_v54  ;;  %7588 = vmatprep.mubr.bf16.mxu1 %v7237_v10  ;;  %v15014_v21 = vadd.f32 %v11991_v46, %v14861_v33  ;;  %v15018_v39 = vld [vmem:[%s13171_s25 + $0xd4] sm:$0xf]  ;;  %v6532_v5 = vrot.slane %v12813_v40, 3  ;;  %v10189_v15 = vld [vmem:[%s13171_s25 + $0xb0] sm:$0xf]  ;;  %v10940_v40 = vpop.f32.mrb[92].mxu1 }
 0x1d7   : > { %16778 = vst [vmem:[#allocation37_spill] sm:$0xff] %v15000_v55  ;;  %v15011_v22 = vmul.f32 %v14891_v14, %v14995_v58  ;;  %v11997_v17 = vadd.f32 %v14617_v12, %v3032_v38  ;;  %11926 = vmatprep.subr.bf16.mxu0 %v16775_v50  ;;  %7589 = vmatmul.mubr.bf16.vlgmr.msra.gmra.mrb[176].mxu1 %v10405_v35  ;;  %v12815_v19 = vld [vmem:[%s13171_s25 + $0xd8] ss:$0 sps:$4 sm:$0x77]   ;;  %v10351_v10 = vld [vmem:[%s13171_s25 + $0xd0] sm:$0xf] }
 0x1d8   : > { %v15023_v31 = vadd.f32 %v11994_v34, %v14861_v33  ;;  %v15025_v18 = vadd.f32 %v10938_v49, %v10937_v43  ;;  %v6531_v30 = vrot.slane %v10253_v1, 3  ;;  %11813 = vmatpush3.bf16.msra.mxu1 %v14945_v6  ;;  %v10415_v12 = vcombine.low %v10367_v47, %v15018_v39  ;;  %v11650_v1 = vpop.f32.mrb[28].mxu0  ;;  %v15438_v62 = vld [vmem:[%s13158_s29 + $0x100] sm:$0x8] }
 0x1d9   : > { %v15030_v46 = vadd.f32 %v11997_v17, %v14861_v33  ;;  %v15038_v35 = vsel %vm3151_vm14, %v14948_v37, %v3168_v27  ;;  %v15043_v34 = vsel %vm3152_vm15, %v14964_v28, %v3169_v32  ;;  %vm3155_vm1 = vcmp.gt.f32.partialorder %v15014_v21, 0.0  ;;  %11814 = vmatprep.subr.bf16.mxu1 %v12818_v45  ;;  %v8222_v37 = vld [vmem:[%s16680_s10 + $0x40] sm:$0xff]  ;;  %v8223_v27 = vld [vmem:[%s16680_s10 + $0x48] sm:$0xff]  ;;  %16814 = vst [vmem:[#allocation68_spill] sm:$0xff] %v15438_v62 }
 0x1da   : > { %16779 = vst [vmem:[#allocation38_spill] sm:$0xff] %v15025_v18  ;;  %16780 = vst [vmem:[#allocation39_spill] sm:$0xff] %v15038_v35  ;;  %v15048_v6 = vmul.f32 %v14891_v14, %v15023_v31  ;;  %v6533_v43 = vsel %vm5833_vm9, %v6531_v30, %v6532_v5  ;;  %v10240_v38 = vcombine.low %v10189_v15, %v14990_v54  ;;  %v7238_v32 = vrot.slane %v10415_v12, 3  ;;  %v3045_v30 = vpop.f32.mrb[29].mxu0  ;;  %v10941_v5 = vpop.f32.mrb[93].mxu1 }
 0x1db   : > { %16781 = vst [vmem:[#allocation40_spill] sm:$0xff] %v15043_v34  ;;  %vm3156_vm5 = vcmp.gt.f32.partialorder %v15030_v46, 0.0  ;;  %6909 = vmatprep.mubr.bf16.mxu0 %v6533_v43  ;;  %v7239_v28 = vrot.slane %v12815_v19, 3  ;;  %v15063_v54 = vsel %vm3153_vm13, %v14934_v3, %v14974_v48  ;;  %v10406_v17 = vcombine.low %v10351_v10, %v15018_v39  ;;  %v15068_v15 = vld [vmem:[%s13171_s25 + $0xc4] sm:$0xf]  ;;  %v11651_v10 = vpop.f32.mrb[30].mxu0 }
 0x1dc   : > { %16782 = vst [vmem:[#allocation41_spill] sm:$0xff] %v15063_v54  ;;  %v11927_v49 = vpack.c.bf16 %v8223_v27, %v8222_v37  ;;  %v12000_v47 = vadd.f32 %v14701_v60, %v11650_v1  ;;  %v10207_v12 = vld [vmem:[%s13171_s25 + $0xc0] sm:$0x8]  ;;  %vm3157_vm6 = vcmp.gt.f32.partialorder %v14995_v58, 0.0  ;;  %11815 = vmatpush3.bf16.msra.mxu1 %v12818_v45  ;;  %v12003_v48 = vadd.f32 %v14665_v23, %v3045_v30  ;;  %v10943_v60 = vpop.f32.mrb[94].mxu1  ;;  %v3048_v23 = vpop.f32.mrb[31].mxu0 }
 0x1dd   : > { %v7240_v3 = vsel %vm5833_vm9, %v7238_v32, %v7239_v28  ;;  %v15076_v39 = vadd.f32 %v10941_v5, %v10940_v40  ;;  %v10255_v43 = vcombine.low %v10207_v12, %v15068_v15  ;;  %v15080_v37 = vld [vmem:[%s13171_s25 + $0xe4] sm:$0xf]  ;;  %v3172_v27 = vmul.f32 %v14891_v14, %v15014_v21  ;;  %v10944_v32 = vpop.f32.mrb[95].mxu1  ;;  %v12820_v28 = vld [vmem:[%s13171_s25 + $0xc8] ss:$0 sps:$4 sm:$0x77]  }
 0x1de   : > { %7596 = vmatprep.mubr.bf16.mxu1 %v7240_v3  ;;  %6910 = vmatmul.mubr.bf16.gmra.mrb[132].mxu0 %v10240_v38  ;;  %v15085_v1 = vadd.f32 %v12000_v47, %v14861_v33  ;;  %v12006_v45 = vadd.f32 %v14714_v56, %v11651_v10  ;;  %v12825_v40 = vld [vmem:[%s16678_s8 + $0x210] sm:$0xff]   ;;  %vm3158_vm7 = vcmp.gt.f32.partialorder %v15023_v31, 0.0  ;;  %v15094_v30 = vadd.f32 %v12003_v48, %v14861_v33  ;;  %v10369_v5 = vld [vmem:[%s13171_s25 + $0xe0] sm:$0x8]  ;;  %v15431_v18 = vld [vmem:[%s13158_s29 + $0x124] sm:$0xf] }
 0x1df   : > { %16783 = vst [vmem:[#allocation42_spill] sm:$0xff] %v15076_v39  ;;  %11928 = vmatpush3.bf16.msra.mxu0 %v11927_v49  ;;  %v12009_v38 = vadd.f32 %v14678_v52, %v3048_v23  ;;  %v15097_v47 = vadd.f32 %v10944_v32, %v10943_v60  ;;  %v6534_v56 = vrot.slane %v10255_v43, 3  ;;  %v3173_v12 = vmul.f32 %v14891_v14, %v15030_v46  ;;  %v12822_v10 = vld [vmem:[%s13171_s25 + $0xe8] ss:$0 sps:$4 sm:$0x77]   ;;  %v8224_v52 = vld [vmem:[%s16680_s10 + $0x50] sm:$0xff] }
 0x1e0   : > { %7597 = vmatmul.mubr.bf16.gmra.mrb[180].mxu1 %v10406_v17  ;;  %v15104_v3 = vmul.f32 %v14891_v14, %v15085_v1  ;;  %v15107_v49 = vadd.f32 %v12006_v45, %v14861_v33  ;;  %v6535_v48 = vrot.slane %v12820_v28, 3  ;;  %11929 = vmatprep.subr.bf16.mxu0 %v16775_v50  ;;  %vm3161_vm8 = vcmp.gt.f32.partialorder %v15085_v1, 0.0  ;;  %v10191_v45 = vld [vmem:[%s13171_s25 + $0xc0] sm:$0xf]  ;;  %v8225_v32 = vld [vmem:[%s16680_s10 + $0x58] sm:$0xff]  ;;  %v10978_v28 = vpop.f32.mrb[96].mxu1 }
 0x1e1   : > { %16784 = vst [vmem:[#allocation43_spill] sm:$0xff] %v15097_v47  ;;  %v15117_v17 = vmul.f32 %v14891_v14, %v15094_v30  ;;  %v15120_v60 = vadd.f32 %v12009_v38, %v14861_v33  ;;  %v10417_v43 = vcombine.low %v10369_v5, %v15080_v37  ;;  %v10353_v23 = vld [vmem:[%s13171_s25 + $0xe0] sm:$0xf]  ;;  %11816 = vmatprep.subr.bf16.mxu1 %v12825_v40  ;;  %vm3159_vm2 = vcmp.gt.f32.partialorder %v15094_v30, 0.0  ;;  %v10979_v8 = vpop.f32.mrb[97].mxu1 }
 0x1e2   : > { %v15132_v19 = vsel %vm3154_vm0, %v14954_v61, %v14984_v59  ;;  %v15137_v33 = vmul.f32 %v14891_v14, %v15107_v49  ;;  %v6536_v38 = vsel %vm5833_vm9, %v6534_v56, %v6535_v48  ;;  %v7242_v5 = vrot.slane %v12822_v10, 3  ;;  %11817 = vmatpush3.bf16.msra.mxu1 %v12825_v40  ;;  %v15148_v35 = vld [vmem:[%s13171_s25 + $0xd4] sm:$0xf]  ;;  %v12832_v40 = vld [vmem:[%s16678_s8 + $0x218] sm:$0xff]   ;;  %v10981_v34 = vpop.f32.mrb[98].mxu1  ;;  %16813 = vst [vmem:[#allocation67_spill] sm:$0xff] %v15431_v18 }
 0x1e3   : > { %16785 = vst [vmem:[#allocation44_spill] sm:$0xff] %v15132_v19  ;;  %vm3162_vm10 = vcmp.gt.f32.partialorder %v15107_v49, 0.0  ;;  %vm3160_vm11 = vcmp.gt.f32.partialorder %v15120_v60, 0.0  ;;  %v15144_v63 = vmul.f32 %v14891_v14, %v15120_v60  ;;  %6917 = vmatprep.mubr.bf16.mxu0 %v6536_v38  ;;  %v7241_v61 = vrot.slane %v10417_v43, 3  ;;  %v10209_v14 = vld [vmem:[%s13171_s25 + $0xd0] sm:$0x8]  ;;  %11818 = vmatprep.subr.bf16.mxu1 %v12832_v40 }
 0x1e4   : > { %v10241_v59 = vcombine.low %v10191_v45, %v15068_v15  ;;  %v10407_v56 = vcombine.low %v10353_v23, %v15080_v37  ;;  %v11930_v48 = vpack.c.bf16 %v8225_v32, %v8224_v52  ;;  %v10980_v10 = vadd.f32 %v10979_v8, %v10978_v28  ;;  %v8226_v43 = vld [vmem:[%s16680_s10 + $0x60] sm:$0xff]  ;;  %v10982_v38 = vpop.f32.mrb[99].mxu1  ;;  %v15164_v37 = vld [vmem:[%s13171_s25 + $0xf4] sm:$0xf]  ;;  %v10371_v28 = vld [vmem:[%s13171_s25 + $0xf0] sm:$0x8] }
 0x1e5   : > { %v7243_v45 = vsel %vm5833_vm9, %v7241_v61, %v7242_v5  ;;  %v10257_v9 = vcombine.low %v10209_v14, %v15148_v35  ;;  %v15169_v8 = vsel %vm3155_vm1, %v15014_v21, %v3172_v27  ;;  %v15174_v52 = vsel %vm3156_vm5, %v15030_v46, %v3173_v12  ;;  %v10193_v5 = vld [vmem:[%s13171_s25 + $0xd0] sm:$0xf]  ;;  %v12829_v15 = vld [vmem:[%s13171_s25 + $0xf8] ss:$0 sps:$4 sm:$0x77]  }
 0x1e6   : > { %16786 = vst [vmem:[#allocation45_spill] sm:$0xff] %v15169_v8  ;;  %16787 = vst [vmem:[#allocation46_spill] sm:$0xff] %v15174_v52  ;;  %7604 = vmatprep.mubr.bf16.mxu1 %v7243_v45  ;;  %6918 = vmatmul.mubr.bf16.gmra.mrb[136].mxu0 %v10241_v59  ;;  %v15177_v23 = vadd.f32 %v10980_v10, %v14722_v57  ;;  %v10983_v32 = vadd.f32 %v10982_v38, %v10981_v34  ;;  %v6538_v27 = vrot.slane %v12827_v7, 3  ;;  %v8227_v57 = vld [vmem:[%s16680_s10 + $0x68] sm:$0xff]  ;;  %v8229_v10 = vld [vmem:[%s16680_s10 + $0x78] sm:$0xff] }
 0x1e7   : > { %11931 = vmatpush3.bf16.msra.mxu0 %v11930_v48  ;;  %v6537_v21 = vrot.slane %v10257_v9, 3  ;;  %v10419_v14 = vcombine.low %v10371_v28, %v15164_v37  ;;  %v10242_v46 = vcombine.low %v10193_v5, %v15148_v35  ;;  %11819 = vmatpush3.bf16.msra.mxu1 %v12832_v40  ;;  %v10355_v9 = vld [vmem:[%s13171_s25 + $0xf0] sm:$0xf]  ;;  %v11933_v7 = vpack.c.bf16 %v8227_v57, %v8226_v43  ;;  %v10373_v45 = vld [vmem:[%s13171_s25 + $0x100] sm:$0x8] }
 0x1e8   : > { %16788 = vst [vmem:[#allocation47_spill] sm:$0xff] %v15177_v23  ;;  %7605 = vmatmul.mubr.bf16.gmra.mrb[184].mxu1 %v10407_v56  ;;  %v15190_v34 = vadd.f32 %v10983_v32, %v14738_v44  ;;  %11932 = vmatprep.subr.bf16.mxu0 %v16775_v50  ;;  %v15198_v35 = vsel %vm3157_vm6, %v14995_v58, %v15011_v22  ;;  %v7245_v40 = vrot.slane %v12829_v15, 3  ;;  %v10984_v44 = vpop.f32.mrb[100].mxu1  ;;  %v8228_v48 = vld [vmem:[%s16680_s10 + $0x70] sm:$0xff]  ;;  %v12836_v58 = vld [vmem:[%s16678_s8 + $0x220] sm:$0xff]  }
 0x1e9   : > { %16790 = vst [vmem:[#allocation49_spill] sm:$0xff] %v15198_v35  ;;  %v6539_v12 = vsel %vm5833_vm9, %v6537_v21, %v6538_v27  ;;  %v7244_v59 = vrot.slane %v10419_v14, 3  ;;  %v10408_v56 = vcombine.low %v10355_v9, %v15164_v37  ;;  %v10985_v22 = vpop.f32.mrb[101].mxu1  ;;  %v11936_v43 = vpack.c.bf16 %v8229_v10, %v8228_v48  ;;  %v10358_v15 = vld [vmem:[%s13171_s25 + $0x104] sm:$0xf]  ;;  %11820 = vmatprep.subr.bf16.mxu1 %v12836_v58 }
 0x1ea   : > { %16789 = vst [vmem:[#allocation48_spill] sm:$0xff] %v15190_v34  ;;  %6925 = vmatprep.mubr.bf16.mxu0 %v6539_v12  ;;  %v15217_v38 = vsel %vm3158_vm7, %v15023_v31, %v15048_v6  ;;  %v15223_v37 = vsel %vm3159_vm2, %v15094_v30, %v15117_v17  ;;  %v10986_v28 = vadd.f32 %v10985_v22, %v10984_v44  ;;  %v10987_v5 = vpop.f32.mrb[102].mxu1  ;;  %v12834_v27 = vld [vmem:[%s13171_s25 + $0x108] ss:$0 sps:$4 sm:$0x77]   ;;  %v12844_v44 = vld [vmem:[%s16678_s8 + $0x230] sm:$0xff]  }
 0x1eb   : > { %16791 = vst [vmem:[#allocation50_spill] sm:$0xff] %v15217_v38  ;;  %16792 = vst [vmem:[#allocation51_spill] sm:$0xff] %v15223_v37  ;;  %v7246_v32 = vsel %vm5833_vm9, %v7244_v59, %v7245_v40  ;;  %11934 = vmatpush3.bf16.msra.mxu0 %v11933_v7  ;;  %v10421_v21 = vcombine.low %v10373_v45, %v10358_v15  ;;  %v10988_v14 = vpop.f32.mrb[103].mxu1  ;;  %v15234_v6 = vsel %vm3160_vm11, %v15120_v60, %v15144_v63  ;;  %v15278_v48 = vld [vmem:[%s13158_s29 + $0x60] sm:$0x8] }
 0x1ec   : > { %7612 = vmatprep.mubr.bf16.mxu1 %v7246_v32  ;;  %11935 = vmatprep.subr.bf16.mxu0 %v16775_v50  ;;  %16793 = vst [vmem:[#allocation52_spill] sm:$0xff] %v15234_v6  ;;  %v15240_v30 = vsel %vm3161_vm8, %v15085_v1, %v15104_v3  ;;  %v15243_v17 = vadd.f32 %v10986_v28, %v14756_v24  ;;  %v7248_v7 = vrot.slane %v12834_v27, 3  ;;  %v16704_v3 = vmov 0.0   ;;  %v15281_v10 = vld [vmem:[%s13158_s29 + $0x64] sm:$0xf] }
 0x1ed   : > { %16794 = vst [vmem:[#allocation53_spill] sm:$0xff] %v15240_v30  ;;  %v10989_v57 = vadd.f32 %v10988_v14, %v10987_v5  ;;  %v7247_v9 = vrot.slane %v10421_v21, 3  ;;  %11821 = vmatpush3.bf16.msra.mxu1 %v12836_v58  ;;  %v15251_v63 = vsel %vm3162_vm10, %v15107_v49, %v15137_v33  ;;  %v15284_v58 = vld [vmem:[%s13158_s29 + $0x74] sm:$0xf]  ;;  %v15287_v22 = vld [vmem:[%s13158_s29 + $0x68] sm:$0x7] }
 0x1ee   : > { %16795 = vst [vmem:[#allocation54_spill] sm:$0xff] %v15243_v17  ;;  %6926 = vmatmul.mubr.bf16.gmra.mrb[140].mxu0 %v10242_v46  ;;  %16796 = vst [vmem:[#allocation55_spill] sm:$0xff] %v15251_v63  ;;  %v12840_v46 = vld [vmem:[%s16678_s8 + $0x228] sm:$0xff]   ;;  %v15296_v45 = vld [vmem:[%s13158_s29 + $0x84] sm:$0xf]  ;;  %v16801_v52 = vrot.slane %v15281_v10, 7 }
 0x1ef   : > { %11937 = vmatpush3.bf16.msra.mxu0 %v11936_v43  ;;  %v15254_v1 = vadd.f32 %v10989_v57, %v14769_v2  ;;  %v7249_v24 = vsel %vm5833_vm9, %v7247_v9, %v7248_v7  ;;  %11876 = vmatprep.mubr.msk.f32.mxu0 %vm12961_vm12, %v16704_v3  ;;  %v10357_v2 = vld [vmem:[%s13171_s25 + $0x100] sm:$0xf]  ;;  %v15290_v43 = vld [vmem:[%s13158_s29 + $0x70] sm:$0x8]  ;;  %v15304_v5 = vld [vmem:[%s13158_s29 + $0x94] sm:$0xf] }
 0x1f0   : > { %7613 = vmatmul.mubr.bf16.gmra.mrb[188].mxu1 %v10408_v56  ;;  %11938 = vmatprep.subr.bf16.mxu0 %v16775_v50  ;;  %v10409_v49 = vcombine.low %v10357_v2, %v10358_v15  ;;  %v15293_v15 = vld [vmem:[%s13158_s29 + $0x78] sm:$0x7]  ;;  %v15301_v28 = vld [vmem:[%s13158_s29 + $0x80] sm:$0x8]  ;;  %v15307_v21 = vld [vmem:[%s13158_s29 + $0xa4] sm:$0xf] }
 0x1f1   : > { %16797 = vst [vmem:[#allocation56_spill] sm:$0xff] %v15254_v1  ;;  %7620 = vmatprep.mubr.bf16.mxu1 %v7249_v24  ;;  %11822 = vmatprep.subr.bf16.mxu1 %v12840_v46  ;;  %v15312_v14 = vld [vmem:[%s13158_s29 + $0x88] sm:$0x7]  ;;  %v15315_v57 = vld [vmem:[%s13158_s29 + $0x90] sm:$0x8]  ;;  %v10567_v3 = vrot.slane %v15290_v43, 11 }
 0x1f2   : > { %11823 = vmatpush3.bf16.msra.mxu1 %v12840_v46  ;;  %v15318_v9 = vld [vmem:[%s13158_s29 + $0xb4] sm:$0xf]  ;;  %v15328_v46 = vld [vmem:[%s13158_s29 + $0x98] sm:$0x7]  ;;  %v15334_v60 = vld [vmem:[%s13158_s29 + $0xc4] sm:$0xf] }
 0x1f3   : > { %11824 = vmatprep.subr.bf16.mxu1 %v12844_v44  ;;  %v15339_v31 = vld [vmem:[%s13158_s29 + $0xa8] sm:$0x7]  ;;  %v15342_v61 = vld [vmem:[%s13158_s29 + $0xd4] sm:$0xf]  ;;  %v15348_v30 = vld [vmem:[%s13158_s29 + $0xb0] sm:$0x8] }
 0x1f4   : > { %v15351_v63 = vld [vmem:[%s13158_s29 + $0xb8] sm:$0x7]  ;;  %v15354_v37 = vld [vmem:[%s13158_s29 + $0xc0] sm:$0x8]  ;;  %v15357_v6 = vld [vmem:[%s13158_s29 + $0xe4] sm:$0xf] }
 0x1f5   : > { %v15263_v33 = vpop.f32.mrb[104].mxu1  ;;  %v15364_v38 = vld [vmem:[%s13158_s29 + $0xc8] sm:$0x7]  ;;  %v15367_v8 = vld [vmem:[%s13158_s29 + $0xd0] sm:$0x8]  ;;  %v15371_v54 = vrot.slane %v16801_v52, 4 }
 0x1f6   : > { %v15268_v59 = vpop.f32.mrb[105].mxu1  ;;  %11825 = vmatpush3.bf16.msra.mxu1 %v12844_v44  ;;  %v15331_v44 = vld [vmem:[%s13158_s29 + $0xa0] sm:$0x8]  ;;  %v16802_v19 = vrot.slane %v15284_v58, 7  ;;  %v15381_v7 = vld [vmem:[%s13158_s29 + $0xd8] sm:$0x7] }
 0x1f7   : > { %v15270_v40 = vpop.f32.mrb[106].mxu1  ;;  %v16806_v4 = vrot.slane %v15296_v45, 7  ;;  %v16807_v13 = vrot.slane %v15304_v5, 7  ;;  %v15414_v23 = vld [vmem:[%s13158_s29 + $0xf0] sm:$0x8]  ;;  %v16810_v17 = vrot.slane %v15307_v21, 7 }
 0x1f8   : > { %7621 = vmatmul.mubr.bf16.gmra.mrb[192].mxu1 %v10409_v49  ;;  %v15272_v56 = vpop.f32.mrb[107].mxu1  ;;  %v12848_v49 = vld [vmem:[%s16678_s8 + $0x238] sm:$0xff]   ;;  %v15375_v35 = vrot.slane %v16802_v19, 4  ;;  %v15428_v19 = vld [vmem:[%s13158_s29 + $0x114] sm:$0xf]  ;;  %v10572_v55 = vrot.slane %v15354_v37, 11 }
 0x1f9   : > { %11826 = vmatprep.subr.bf16.mxu1 %v12848_v49  ;;  %v8017_v50 = vrot.slane %v16806_v4, 4  ;;  %v15405_v34 = vrot.slane %v16807_v13, 4  ;;  %v15418_v47 = vrot.slane %v16810_v17, 4  ;;  %v15425_v39 = vld [vmem:[%s13158_s29 + $0xf8] sm:$0x7]  ;;  %16812 = vst [vmem:[#allocation66_spill] sm:$0xff] %v15428_v19 }
 0x1fa   : > { %11827 = vmatpush3.bf16.msra.mxu1 %v12848_v49  ;;  %v15384_v49 = vld [vmem:[%s13158_s29 + $0xf4] sm:$0xf]  ;;  %v15441_v13 = vld [vmem:[%s13158_s29 + $0x108] sm:$0x7]  ;;  %v16816_v29 = vrot.slane %v15318_v9, 7  ;;  %v16817_v53 = vrot.slane %v15334_v60, 7 }
 0x1fb   : > { %16815 = vst [vmem:[#allocation69_spill] sm:$0xff] %v15441_v13  ;;  %v15454_v37 = vld [vmem:[%s13158_s29 + $0x110] sm:$0x8]  ;;  %v10574_v17 = vrot.slane %v15396_v11, 11  ;;  %v16847_v13 = vrot.slane %v15307_v21, 7 }
 0x1fc   : > { %v15445_v36 = vrot.slane %v16816_v29, 4  ;;  %16818 = vst [vmem:[#allocation70_spill] sm:$0xff] %v15454_v37  ;;  %v15462_v29 = vld [vmem:[%s13158_s29 + $0x118] sm:$0x7] }
 0x1fd   : > { %v15298_v32 = vpop.f32.mrb[108].mxu1  ;;  %16820 = vst [vmem:[#allocation72_spill] sm:$0xff] %v15462_v29 }
 0x1fe   : > { %v15309_v27 = vpop.f32.mrb[109].mxu1 }
 0x1ff   : > { %16798 = vst [vmem:[#allocation57_spill] sm:$0xff] %v15309_v27  ;;  %v15322_v2 = vpop.f32.mrb[110].mxu1  ;;  %v16837_v27 = vrot.slane %v15287_v22, 7 }
 0x200   : > { %16799 = vst [vmem:[#allocation58_spill] sm:$0xff] %v15322_v2  ;;  %v15336_v12 = vpop.f32.mrb[111].mxu1  ;;  %v10575_v2 = vrot.slane %v15414_v23, 11 }
 0x201   : > { %16800 = vst [vmem:[#allocation59_spill] sm:$0xff] %v15336_v12 }
 0x205   : > { %v15378_v24 = vpop.f32.mrb[112].mxu1 }
 0x206   : > { %16803 = vst [vmem:[#allocation60_spill] sm:$0xff] %v15378_v24  ;;  %v15393_v43 = vpop.f32.mrb[113].mxu1 }
 0x207   : > { %16805 = vst [vmem:[#allocation62_spill] sm:$0xff] %v15393_v43  ;;  %v15409_v0 = vpop.f32.mrb[114].mxu1  ;;  %v16825_v43 = vrot.slane %v15281_v10, 7 }
 0x208   : > { %16808 = vst [vmem:[#allocation63_spill] sm:$0xff] %v15409_v0  ;;  %v15422_v52 = vpop.f32.mrb[115].mxu1  ;;  %v15476_v0 = vld [vmem:[%s13158_s29 + $0x128] sm:$0x7] }
 0x209   : > { %16811 = vst [vmem:[#allocation65_spill] sm:$0xff] %v15422_v52  ;;  %v15449_v52 = vrot.slane %v16817_v53, 4  ;;  %v16822_v53 = vrot.slane %v15342_v61, 7  ;;  %16824 = vst [vmem:[#allocation75_spill] sm:$0xff] %v15476_v0 }
 0x20d   : > { %v15459_v24 = vpop.f32.mrb[116].mxu1 }
 0x20e   : > { %16819 = vst [vmem:[#allocation71_spill] sm:$0xff] %v15459_v24  ;;  %v15473_v20 = vpop.f32.mrb[117].mxu1  ;;  %v16826_v24 = vrot.slane %v15278_v48, 11  ;;  %v8067_v48 = vrot.slane %v15425_v39, 7 }
 0x20f   : > { %16823 = vst [vmem:[#allocation74_spill] sm:$0xff] %v15473_v20  ;;  %v15489_v11 = vpop.f32.mrb[118].mxu1  ;;  %v16830_v20 = vrot.slane %v15284_v58, 7  ;;  %v16834_v58 = vrot.slane %v15384_v49, 7 }
 0x210   : > { %v15484_v42 = vsel %vm13186_vm4, %v16826_v24, %v16825_v43  ;;  %16828 = vst [vmem:[#allocation76_spill] sm:$0xff] %v15489_v11  ;;  %v15502_v23 = vpop.f32.mrb[119].mxu1  ;;  %v8005_v43 = vsel %vm13186_vm4, %v15371_v54, %v16837_v27  ;;  %v15542_v54 = vld [vmem:[%s13158_s29 + $0x138] sm:$0x7]  ;;  %v15548_v27 = vld [vmem:[%s13158_s29 + $0x144] sm:$0xf] }
 0x211   : > { %v15497_v10 = vsel %vm13186_vm4, %v10567_v3, %v16830_v20  ;;  %16831 = vst [vmem:[#allocation78_spill] sm:$0xff] %v15502_v23  ;;  %v8066_v11 = vrot.slane %v16834_v58, 4  ;;  %v16835_v3 = vrot.slane %v15387_v25, 7  ;;  %v16838_v23 = vrot.slane %v15293_v15, 7  ;;  %16841 = vst [vmem:[#allocation82_spill] sm:$0xff] %v15542_v54  ;;  %v16870_v54 = vld [vmem:[#allocation59_spill] sm:$0xff] }
 0x212   : > { %v16839_v20 = vrot.slane %v15296_v45, 7  ;;  %v15545_v15 = vld [vmem:[%s13158_s29 + $0x140] sm:$0x8]  ;;  %16843 = vst [vmem:[#allocation84_spill] sm:$0xff] %v15548_v27  ;;  %v15833_v25 = vld [vmem:[%s13171_s25 + $0xf4] sm:$0xfc]  }
 0x213   : > { %v15515_v39 = vrot.slane %v16835_v3, 4  ;;  %v15528_v58 = vsel %vm13186_vm4, %v15375_v35, %v16838_v23  ;;  %v16840_v3 = vrot.slane %v15301_v28, 11  ;;  %16842 = vst [vmem:[#allocation83_spill] sm:$0xff] %v15545_v15  ;;  %v16844_v35 = vrot.slane %v15312_v14, 7  ;;  %v15709_v15 = vld [vmem:[%s13171_s25 + $0x134] sm:$0xf] }
 0x214   : > { %v16845_v28 = vrot.slane %v15304_v5, 7  ;;  %v16846_v23 = vrot.slane %v15315_v57, 11  ;;  %v16849_v57 = vrot.slane %v15428_v19, 7 }
 0x215   : > { %16836 = vst [vmem:[#allocation81_spill] sm:$0xff] %v15515_v39  ;;  %v15536_v24 = vsel %vm13186_vm4, %v16840_v3, %v16839_v20  ;;  %v15539_v39 = vpop.f32.mrb[120].mxu1  ;;  %v15554_v45 = vsel %vm13186_vm4, %v8017_v50, %v16844_v35  ;;  %v16848_v50 = vrot.slane %v15331_v44, 11  ;;  %v16853_v44 = vrot.slane %v15328_v46, 7 }
 0x216   : > { %v15562_v20 = vsel %vm13186_vm4, %v16846_v23, %v16845_v28  ;;  %v15566_v37 = vpop.f32.mrb[121].mxu1  ;;  %v15580_v35 = vrot.slane %v16849_v57, 4  ;;  %v16851_v28 = vrot.slane %v15431_v18, 7  ;;  %v16856_v46 = vrot.slane %v15334_v60, 7  ;;  %v10375_v60 = vld [vmem:[%s13171_s25 + $0x110] sm:$0x8] }
 0x217   : > { %v15576_v5 = vsel %vm13186_vm4, %v16848_v50, %v16847_v13  ;;  %v15587_v21 = vpop.f32.mrb[122].mxu1  ;;  %v15594_v13 = vsel %vm13186_vm4, %v15405_v34, %v16853_v44  ;;  %v16854_v50 = vrot.slane %v15339_v31, 7  ;;  %v12838_v34 = vld [vmem:[%s13171_s25 + $0x118] ss:$0 sps:$4 sm:$0x77]  }
 0x218   : > { %16850 = vst [vmem:[#allocation85_spill] sm:$0xff] %v15580_v35  ;;  %v15584_v23 = vrot.slane %v16851_v28, 4  ;;  %v16855_v28 = vrot.slane %v15318_v9, 7  ;;  %v15613_v3 = vsel %vm13186_vm4, %v10572_v55, %v16856_v46  ;;  %v15616_v31 = vpop.f32.mrb[123].mxu1  ;;  %v16857_v46 = vrot.slane %v15351_v63, 7  ;;  %v16876_v35 = vld [vmem:[#allocation62_spill] sm:$0xff] }
 0x219   : > { %v15601_v57 = vsel %vm13186_vm4, %v15418_v47, %v16854_v50  ;;  %v8144_v50 = vunpack.c.l.bf16 %v8005_v43  ;;  %v16858_v47 = vrot.slane %v15364_v38, 7  ;;  %v16859_v43 = vrot.slane %v15342_v61, 7  ;;  %v12842_v38 = vld [vmem:[%s13171_s25 + $0x128] ss:$0 sps:$4 sm:$0x77]  }
 0x21a   : > { %16852 = vst [vmem:[#allocation86_spill] sm:$0xff] %v15584_v23  ;;  %v10359_v23 = vld [vmem:[%s13171_s25 + $0x110] sm:$0xf]  ;;  %v15635_v0 = vsel %vm13186_vm4, %v15445_v36, %v16857_v46  ;;  %v16860_v9 = vrot.slane %v15367_v8, 11  ;;  %v16861_v63 = vrot.slane %v15357_v6, 7  ;;  %v8145_v8 = vunpack.c.l.bf16 %v15497_v10  ;;  %v16887_v19 = vld [vmem:[#allocation78_spill] sm:$0xff] }
 0x21b   : > { %v7251_v61 = vrot.slane %v12838_v34, 3  ;;  %v10379_v18 = vld [vmem:[%s13171_s25 + $0x130] sm:$0x8] }
 0x21c   : > { %v15656_v36 = vsel %vm13186_vm4, %v10574_v17, %v16861_v63 }
 0x21d   : > { %v15628_v55 = vpop.f32.mrb[124].mxu1  ;;  %16862 = vst [vmem:[#allocation87_spill] sm:$0xff] %v15656_v36 }
 0x221   : > { %v15411_v1 = vpop.f32.mrb[80].mxu0 }
 0x222   : > { %16809 = vst [vmem:[#allocation64_spill] sm:$0xff] %v15411_v1  ;;  %v10571_v1 = vrot.slane %v15348_v30, 11  ;;  %v15469_v30 = vrot.slane %v16822_v53, 4  ;;  %v16827_v53 = vrot.slane %v15357_v6, 7  ;;  %v15491_v4 = vpop.f32.mrb[81].mxu0  ;;  %v16863_v6 = vrot.slane %v15381_v7, 7 }
 0x223   : > { %16829 = vst [vmem:[#allocation77_spill] sm:$0xff] %v15491_v4  ;;  %v15508_v4 = vld [vmem:[%s13158_s29 + $0x134] sm:$0xf]  ;;  %v15568_v14 = vpop.f32.mrb[82].mxu0  ;;  %v15689_v7 = vsel %vm13186_vm4, %v8066_v11, %v8067_v48  ;;  %v10995_v11 = vadd.f32 %v15272_v56, %v15270_v40  ;;  %v16871_v40 = vld [vmem:[#allocation26_spill] sm:$0xff] }
 0x224   : > { %v8059_v12 = vrot.slane %v16827_v53, 4  ;;  %v15505_v53 = vld [vmem:[%s13158_s29 + $0x130] sm:$0x8]  ;;  %16833 = vst [vmem:[#allocation80_spill] sm:$0xff] %v15508_v4  ;;  %v15607_v22 = vsel %vm13186_vm4, %v10571_v1, %v16855_v28  ;;  %v15618_v44 = vpop.f32.mrb[83].mxu0  ;;  %v8143_v1 = vunpack.c.l.bf16 %v15484_v42  ;;  %v15642_v42 = vsel %vm13186_vm4, %v15449_v52, %v16858_v47  ;;  %16867 = vst [vmem:[#allocation89_spill] sm:$0xff] %v15689_v7 }
 0x225   : > { %16832 = vst [vmem:[#allocation79_spill] sm:$0xff] %v15505_v53  ;;  %v15624_v28 = vld [vmem:[%s13171_s25 + $0x114] sm:$0xf]  ;;  %v15650_v53 = vsel %vm13186_vm4, %v16860_v9, %v16859_v43  ;;  %v15664_v47 = vld [vmem:[%s13171_s25 + $0x124] sm:$0xf]  ;;  %v15666_v9 = vpop.f32.mrb[125].mxu1  ;;  %v15673_v17 = vsel %vm13186_vm4, %v15469_v30, %v16863_v6  ;;  %v15720_v56 = vadd.f32 %v10995_v11, %v16871_v40 }
 0x226   : > { %v16864_v43 = vrot.slane %v15399_v41, 7  ;;  %v16865_v52 = vrot.slane %v15384_v49, 7  ;;  %v15691_v46 = vpop.f32.mrb[126].mxu1  ;;  %v8146_v41 = vunpack.c.l.bf16 %v15528_v58  ;;  %v8175_v6 = vadd.f32 %v8144_v50, %v8143_v1  ;;  %v16869_v50 = vld [vmem:[#allocation58_spill] sm:$0xff]  ;;  %v16875_v40 = vld [vmem:[#allocation60_spill] sm:$0xff] }
 0x227   : > { %v10992_v49 = vadd.f32 %v15268_v59, %v15263_v33  ;;  %v10423_v48 = vcombine.low %v10375_v60, %v15624_v28  ;;  %v10410_v58 = vcombine.low %v10359_v23, %v15624_v28  ;;  %v16868_v33 = vld [vmem:[#allocation57_spill] sm:$0xff]  ;;  %v11001_v51 = vadd.f32 %v16870_v54, %v16869_v50  ;;  %v15724_v60 = vld [vmem:[%s13171_s25 + $0x138] ss:$0 sps:$4 sm:$0x77]  }
 0x228   : > { %v15679_v63 = vsel %vm13186_vm4, %v8059_v12, %v16864_v43  ;;  %v15685_v10 = vsel %vm13186_vm4, %v10575_v2, %v16865_v52  ;;  %v8147_v12 = vunpack.c.l.bf16 %v15536_v24  ;;  %v10377_v43 = vld [vmem:[%s13171_s25 + $0x120] sm:$0x8]  ;;  %v15700_v2 = vpop.f32.mrb[127].mxu1  ;;  %v8176_v24 = vadd.f32 %v8175_v6, %v8145_v8 }
 0x229   : > { %16866 = vst [vmem:[#allocation88_spill] sm:$0xff] %v15685_v10  ;;  %v15693_v30 = vpop.f32.mrb[84].mxu0  ;;  %v15712_v1 = vadd.f32 %v10992_v49, %v14786_v16  ;;  %v10998_v59 = vadd.f32 %v16868_v33, %v15298_v32  ;;  %v7250_v34 = vrot.slane %v10423_v48, 3  ;;  %v10425_v23 = vcombine.low %v10377_v43, %v15664_v47  ;;  %v15726_v8 = vpop.f32.mrb[128].mxu1  ;;  %v16872_v49 = vld [vmem:[#allocation27_spill] sm:$0xff]  ;;  %v16873_v33 = vld [vmem:[#allocation28_spill] sm:$0xff] }
 0x22a   : > { %v15702_v52 = vpop.f32.mrb[85].mxu0  ;;  %v7254_v28 = vrot.slane %v12842_v38, 3  ;;  %v8148_v16 = vunpack.c.l.bf16 %v15554_v45  ;;  %v8177_v6 = vadd.f32 %v8176_v24, %v8146_v41  ;;  %v15733_v54 = vadd.f32 %v11001_v51, %v16873_v33  ;;  %v15735_v50 = vpop.f32.mrb[129].mxu1  ;;  %v15740_v48 = vld [vmem:[%s13158_s29 + $0x148] sm:$0x7]  ;;  %v16877_v45 = vld [vmem:[#allocation63_spill] sm:$0xff] }
 0x22b   : > { %v15730_v32 = vadd.f32 %v10998_v59, %v16872_v49  ;;  %v15737_v11 = vpop.f32.mrb[86].mxu0  ;;  %16874 = vst [vmem:[#allocation57_spill] sm:$0xff] %v15740_v48  ;;  %v7252_v38 = vsel %vm5833_vm9, %v7250_v34, %v7251_v61  ;;  %v7253_v43 = vrot.slane %v10425_v23, 3  ;;  %v11004_v29 = vadd.f32 %v16876_v35, %v16875_v40  ;;  %v16878_v41 = vld [vmem:[#allocation65_spill] sm:$0xff]  ;;  %v15747_v59 = vpop.f32.mrb[130].mxu1 }
 0x22c   : > { %v11007_v24 = vadd.f32 %v16878_v41, %v16877_v45  ;;  %v16879_v51 = vrot.slane %v15508_v4, 7  ;;  %v8149_v33 = vunpack.c.l.bf16 %v15562_v20  ;;  %v8178_v27 = vadd.f32 %v8177_v6, %v8147_v12  ;;  %7628 = vmatprep.mubr.bf16.mxu1 %v7252_v38  ;;  %v15755_v34 = vpop.f32.mrb[131].mxu1  ;;  %v15757_v23 = vpop.f32.mrb[87].mxu0  ;;  %v16881_v40 = vld [vmem:[#allocation29_spill] sm:$0xff]  ;;  %v16882_v41 = vld [vmem:[#allocation30_spill] sm:$0xff] }
 0x22d   : > { %v10427_v61 = vcombine.low %v10379_v18, %v15709_v15  ;;  %7629 = vmatmul.mubr.bf16.gmra.mrb[196].mxu1 %v10410_v58  ;;  %v7255_v35 = vsel %vm5833_vm9, %v7253_v43, %v7254_v28  ;;  %v15761_v45 = vadd.f32 %v11004_v29, %v16881_v40  ;;  %v16885_v4 = vld [vmem:[#allocation74_spill] sm:$0xff]  ;;  %v8150_v18 = vunpack.c.l.bf16 %v15594_v13  ;;  %v10361_v38 = vld [vmem:[%s13171_s25 + $0x120] sm:$0xf]  ;;  %v16886_v58 = vld [vmem:[#allocation76_spill] sm:$0xff]  ;;  %v15773_v43 = vpop.f32.mrb[132].mxu1 }
 0x22e   : > { %v15751_v49 = vrot.slane %v16879_v51, 4  ;;  %v15764_v51 = vadd.f32 %v11007_v24, %v16882_v41  ;;  %v8179_v6 = vadd.f32 %v8178_v27, %v8148_v16  ;;  %7636 = vmatprep.mubr.bf16.mxu1 %v7255_v35  ;;  %v11013_v28 = vadd.f32 %v16887_v19, %v16886_v58  ;;  %v16888_v40 = vld [vmem:[#allocation35_spill] sm:$0xff]  ;;  %v16889_v16 = vld [vmem:[#allocation36_spill] sm:$0xff]  ;;  %v15787_v19 = vld [vmem:[%s13171_s25 + $0xcc] ss:$0 sps:$4 sm:$0x33]  }
 0x22f   : > { %v8151_v24 = vunpack.c.l.bf16 %v15576_v5  ;;  %v8152_v27 = vunpack.c.l.bf16 %v15601_v57  ;;  %v11016_v58 = vadd.f32 %v15566_v37, %v15539_v39  ;;  %v11145_v5 = vpop.f32.mrb[133].mxu1  ;;  %v10411_v57 = vcombine.low %v10361_v38, %v15664_v47  ;;  %v16891_v12 = vld [vmem:[#allocation37_spill] sm:$0xff]  ;;  %v15813_v47 = vld [vmem:[%s13171_s25 + $0xec] ss:$0 sps:$4 sm:$0x33]  }
 0x230   : > { %16880 = vst [vmem:[#allocation58_spill] sm:$0xff] %v15751_v49  ;;  %16883 = vst [vmem:[#allocation59_spill] sm:$0xff] %v15764_v51  ;;  %v16884_v49 = vld [vmem:[#allocation71_spill] sm:$0xff]  ;;  %v8180_v13 = vadd.f32 %v8179_v6, %v8149_v33  ;;  %v15784_v35 = vadd.f32 %v11013_v28, %v16889_v16  ;;  %v15797_v33 = vld [vmem:[%s13171_s25 + $0xc4] sm:$0xfc]   ;;  %v11019_v28 = vadd.f32 %v15616_v31, %v15587_v21  ;;  %v11147_v37 = vpop.f32.mrb[134].mxu1 }
 0x231   : > { %v11010_v20 = vadd.f32 %v16885_v4, %v16884_v49  ;;  %v7256_v4 = vrot.slane %v10427_v61, 3  ;;  %v7257_v49 = vrot.slane %v15724_v60, 3  ;;  %v8153_v60 = vunpack.c.l.bf16 %v15607_v22  ;;  %v15800_v6 = vld [vmem:[%s13171_s25 + $0xdc] ss:$0 sps:$4 sm:$0x33]   ;;  %v11148_v38 = vpop.f32.mrb[135].mxu1 }
 0x232   : > { %v15775_v29 = vpop.f32.mrb[88].mxu0  ;;  %16890 = vst [vmem:[#allocation26_spill] sm:$0xff] %v15784_v35  ;;  %v8181_v16 = vadd.f32 %v8180_v13, %v8150_v18  ;;  %v15810_v48 = vadd.f32 %v11016_v58, %v16891_v12  ;;  %v15817_v21 = vld [vmem:[%s13171_s25 + $0x130] sm:$0xf]  ;;  %v16893_v31 = vld [vmem:[#allocation38_spill] sm:$0xff]  ;;  %v11022_v18 = vadd.f32 %v15666_v9, %v15628_v55  ;;  %v11025_v12 = vadd.f32 %v15700_v2, %v15691_v46  ;;  %v16898_v36 = vld [vmem:[#allocation77_spill] sm:$0xff] }
 0x233   : > { %v15780_v41 = vadd.f32 %v11010_v20, %v16888_v40  ;;  %v15791_v61 = vpop.f32.mrb[89].mxu0  ;;  %v8154_v20 = vunpack.c.l.bf16 %v15635_v0  ;;  %v12851_v0 = vld [vmem:[%s13171_s25 + $0xd4] sm:$0xfc]   ;;  %v7258_v10 = vsel %vm5833_vm9, %v7256_v4, %v7257_v49  ;;  %v15820_v26 = vadd.f32 %v11019_v28, %v16893_v31  ;;  %v15823_v40 = vld [vmem:[%s13171_s25 + $0xe4] sm:$0xfc]  }
 0x234   : > { %v15804_v39 = vpop.f32.mrb[90].mxu0  ;;  %16892 = vst [vmem:[#allocation27_spill] sm:$0xff] %v15810_v48  ;;  %v8182_v49 = vadd.f32 %v8181_v16, %v8151_v24  ;;  %v7331_v55 = vrot.slane %v15797_v33, 2  ;;  %v16895_v9 = vld [vmem:[#allocation42_spill] sm:$0xff]  ;;  %v16896_v2 = vld [vmem:[#allocation43_spill] sm:$0xff]  ;;  %v7332_v24 = vrot.slane %v15787_v19, 2 }
 0x235   : > { %v11074_v7 = vpop.f32.mrb[91].mxu0  ;;  %16894 = vst [vmem:[#allocation28_spill] sm:$0xff] %v15820_v26  ;;  %v11150_v13 = vpop.f32.mrb[136].mxu1  ;;  %7637 = vmatmul.mubr.bf16.gmra.mrb[200].mxu1 %v10411_v57  ;;  %v15838_v46 = vadd.f32 %v11022_v18, %v16895_v9  ;;  %v15841_v48 = vadd.f32 %v11025_v12, %v16896_v2  ;;  %v7334_v16 = vrot.slane %v12851_v0, 2  ;;  %v16897_v4 = vld [vmem:[#allocation64_spill] sm:$0xff]  ;;  %v7335_v33 = vrot.slane %v15800_v6, 2 }
 0x236   : > { %v11151_v28 = vpop.f32.mrb[137].mxu1  ;;  %v8183_v51 = vadd.f32 %v8182_v49, %v8152_v27  ;;  %7644 = vmatprep.mubr.bf16.mxu1 %v7258_v10  ;;  %v11060_v35 = vadd.f32 %v16898_v36, %v16897_v4  ;;  %v15849_v18 = vadd.f32 %v15735_v50, %v15726_v8  ;;  %v11063_v12 = vadd.f32 %v15618_v44, %v15568_v14 }
 0x237   : > { %v11153_v22 = vpop.f32.mrb[138].mxu1  ;;  %v15855_v10 = vadd.f32 %v15755_v34, %v15747_v59  ;;  %v10412_v36 = vcombine.low %v15817_v21, %v15709_v15  ;;  %v7337_v4 = vrot.slane %v15823_v40, 2  ;;  %v7338_v6 = vrot.slane %v15813_v47, 2 }
 0x238   : > { %v11154_v26 = vpop.f32.mrb[139].mxu1  ;;  %v8184_v0 = vadd.f32 %v8183_v51, %v8153_v60  ;;  %v7340_v50 = vrot.slane %v15833_v25, 2  ;;  %v11066_v14 = vadd.f32 %v15702_v52, %v15693_v30  ;;  %v15865_v44 = vadd.f32 %v11145_v5, %v15773_v43 }
 0x239   : > { %v11069_v59 = vadd.f32 %v15757_v23, %v15737_v11  ;;  %v7333_v60 = vsel %vm1135_vm3, %v7331_v55, %v7332_v24  ;;  %v15870_v40 = vadd.f32 %v11148_v38, %v11147_v37  ;;  %v11072_v47 = vadd.f32 %v15791_v61, %v15775_v29 }
 0x23a   : > { %v11076_v58 = vpop.f32.mrb[92].mxu0  ;;  %v8185_v15 = vadd.f32 %v8184_v0, %v8154_v20  ;;  %v15875_v30 = vsel %vm1135_vm3, %v7334_v16, %v7335_v33  ;;  %v15877_v52 = vadd.f32 %v11151_v28, %v11150_v13  ;;  %v11075_v43 = vadd.f32 %v11074_v7, %v15804_v39 }
 0x23b   : > { %v11077_v31 = vpop.f32.mrb[93].mxu0  ;;  %v15880_v11 = vadd.f32 %v11154_v26, %v11153_v22  ;;  %v16899_v20 = vunpack.c.l.bf16 %v15613_v3  ;;  %v16900_v22 = vunpack.c.l.bf16 %v15642_v42  ;;  %v16903_v42 = vld [vmem:[#allocation56_spill] sm:$0xff] }
 0x23c   : > { %v11079_v62 = vpop.f32.mrb[94].mxu0  ;;  %v11078_v38 = vadd.f32 %v11077_v31, %v11076_v58  ;;  %v7339_v58 = vsel %vm1135_vm3, %v7337_v4, %v7338_v6  ;;  %v16904_v4 = vunpack.c.l.bf16 %v15650_v53 }
 0x23d   : > { %v11080_v57 = vpop.f32.mrb[95].mxu0  ;;  %v11156_v27 = vpop.f32.mrb[140].mxu1  ;;  %v8186_v37 = vadd.f32 %v8185_v15, %v16899_v20  ;;  %7645 = vmatmul.mubr.bf16.gmra.mrb[204].mxu1 %v10412_v36  ;;  %v15910_v15 = vld [vmem:[%s13171_s25 + $0x104] sm:$0xfc]  }
 0x23e   : > { %v11157_v49 = vpop.f32.mrb[141].mxu1  ;;  %v11081_v29 = vadd.f32 %v11080_v57, %v11079_v62  ;;  %11828 = vmatprep.mubr.bf16.mxu1 %v7333_v60  ;;  %v16901_v57 = vld [vmem:[#allocation54_spill] sm:$0xff] }
 0x23f   : > { %v11159_v34 = vpop.f32.mrb[142].mxu1  ;;  %v15884_v55 = vadd.f32 %v11157_v49, %v11156_v27  ;;  %v8187_v3 = vadd.f32 %v8186_v37, %v16900_v22  ;;  %v15894_v33 = vadd.f32 %v16901_v57, %v11066_v14  ;;  %v16902_v49 = vld [vmem:[#allocation47_spill] sm:$0xff] }
 0x240   : > { %v11160_v21 = vpop.f32.mrb[143].mxu1  ;;  %v15952_v57 = vld [vmem:[%s13158_s29 + $0x150] sm:$0x8] }
 0x241   : > { %v15886_v24 = vadd.f32 %v11160_v21, %v11159_v34  ;;  %v15902_v34 = vadd.f32 %v16903_v42, %v11069_v59  ;;  %v8188_v6 = vadd.f32 %v8187_v3, %v16904_v4  ;;  %v16905_v21 = vld [vmem:[#allocation48_spill] sm:$0xff]  ;;  %v15922_v59 = vld [vmem:[%s13171_s25 + $0x10c] ss:$0 sps:$4 sm:$0x33]   ;;  %v16908_v3 = vld [vmem:[#allocation59_spill] sm:$0xff] }
 0x242   : > { %v11082_v19 = vpop.f32.mrb[96].mxu0  ;;  %v16916_v42 = vld [vmem:[#allocation87_spill] sm:$0xff] }
 0x243   : > { %v11083_v8 = vpop.f32.mrb[97].mxu0  ;;  %v16917_v4 = vunpack.c.l.bf16 %v16916_v42  ;;  %v12859_v42 = vld [vmem:[%s13171_s25 + $0x114] sm:$0xfc]  }
 0x244   : > { %v11085_v51 = vpop.f32.mrb[98].mxu0  ;;  %v11084_v13 = vadd.f32 %v11083_v8, %v11082_v19  ;;  %v15899_v8 = vadd.f32 %v16902_v49, %v11060_v35  ;;  %v15919_v35 = vadd.f32 %v15712_v1, %v11072_v47 }
 0x245   : > { %v11086_v9 = vpop.f32.mrb[99].mxu0  ;;  %v11162_v23 = vpop.f32.mrb[144].mxu1  ;;  %11829 = vmatmul.mubr.bf16.vlgmr.msra.gmra.mrb[160].mxu1 %v15875_v30  ;;  %v7343_v30 = vrot.slane %v15910_v15, 2  ;;  %v16929_v15 = vld [vmem:[#allocation84_spill] sm:$0xff] }
 0x246   : > { %v11163_v61 = vpop.f32.mrb[145].mxu1  ;;  %v11087_v26 = vadd.f32 %v11086_v9, %v11085_v51  ;;  %v15907_v51 = vld [vmem:[%s13171_s25 + $0xfc] ss:$0 sps:$4 sm:$0x33]   ;;  %v15913_v9 = vadd.f32 %v16905_v21, %v11063_v12  ;;  %v15930_v12 = vadd.f32 %v15720_v56, %v11075_v43  ;;  %v16918_v21 = vld [vmem:[#allocation69_spill] sm:$0xff]  ;;  %11832 = vmatprep.mubr.bf16.mxu1 %v7339_v58 }
 0x247   : > { %v15888_v28 = vadd.f32 %v11163_v61, %v11162_v23  ;;  %v11165_v7 = vpop.f32.mrb[146].mxu1  ;;  %v15916_v23 = vadd.f32 %v15730_v32, %v11078_v38  ;;  %v15927_v61 = vadd.f32 %v15733_v54, %v11081_v29  ;;  %v16906_v32 = vunpack.c.l.bf16 %v15673_v17 }
 0x248   : > { %v11166_v62 = vpop.f32.mrb[147].mxu1  ;;  %v15946_v17 = vadd.f32 %v16908_v3, %v11087_v26  ;;  %v16921_v3 = vld [vmem:[#allocation28_spill] sm:$0xff] }
 0x249   : > { %v15896_v27 = vadd.f32 %v11166_v62, %v11165_v7  ;;  %v8189_v38 = vadd.f32 %v8188_v6, %v16906_v32  ;;  %v15938_v7 = vadd.f32 %v15761_v45, %v11084_v13  ;;  %v16909_v62 = vld [vmem:[#allocation27_spill] sm:$0xff]  ;;  %v16912_v45 = vld [vmem:[#allocation68_spill] sm:$0xff] }
 0x24a   : > { %v11088_v5 = vpop.f32.mrb[100].mxu0  ;;  %v16913_v13 = vrot.slane %v16912_v45, 11 }
 0x24b   : > { %v11089_v2 = vpop.f32.mrb[101].mxu0  ;;  %v8190_v6 = vadd.f32 %v8189_v38, %v16917_v4 }
 0x24c   : > { %v11091_v39 = vpop.f32.mrb[102].mxu0  ;;  %v11090_v31 = vadd.f32 %v11089_v2, %v11088_v5 }
 0x24d   : > { %v11092_v16 = vpop.f32.mrb[103].mxu0  ;;  %v11168_v19 = vpop.f32.mrb[148].mxu1 }
 0x24e   : > { %v11093_v0 = vadd.f32 %v11092_v16, %v11091_v39  ;;  %v11169_v14 = vpop.f32.mrb[149].mxu1  ;;  %v15935_v47 = vadd.f32 %v15780_v41, %v11090_v31  ;;  %v16907_v39 = vld [vmem:[#allocation26_spill] sm:$0xff]  ;;  %v16910_v41 = vld [vmem:[#allocation61_spill] sm:$0xff] }
 0x24f   : > { %v15924_v5 = vadd.f32 %v11169_v14, %v11168_v19  ;;  %v11171_v53 = vpop.f32.mrb[150].mxu1  ;;  %v16911_v31 = vrot.slane %v16910_v41, 7 }
 0x250   : > { %v11172_v2 = vpop.f32.mrb[151].mxu1  ;;  %v15941_v22 = vadd.f32 %v16907_v39, %v11093_v0 }
 0x251   : > { %v15943_v54 = vadd.f32 %v11172_v2, %v11171_v53  ;;  %v8072_v0 = vsel %vm13186_vm4, %v16913_v13, %v16911_v31  ;;  %v16919_v53 = vrot.slane %v16918_v21, 7  ;;  %v16923_v31 = vunpack.c.l.bf16 %v15679_v63 }
 0x252   : > { %v11094_v36 = vpop.f32.mrb[104].mxu0  ;;  %v7341_v13 = vrot.slane %v15907_v51, 2 }
 0x253   : > { %v11095_v60 = vpop.f32.mrb[105].mxu0  ;;  %v8191_v45 = vadd.f32 %v8190_v6, %v16923_v31  ;;  %v16925_v6 = vld [vmem:[#allocation66_spill] sm:$0xff] }
 0x254   : > { %v11096_v20 = vadd.f32 %v11095_v60, %v11094_v36  ;;  %v11097_v37 = vpop.f32.mrb[106].mxu0  ;;  %v16915_v36 = vld [vmem:[#allocation88_spill] sm:$0xff]  ;;  %v15964_v60 = vld [vmem:[%s13158_s29 + $0x154] sm:$0xf]  ;;  %v16926_v58 = vrot.slane %v16925_v6, 7 }
 0x255   : > { %v11098_v1 = vpop.f32.mrb[107].mxu0  ;;  %v11174_v29 = vpop.f32.mrb[152].mxu1  ;;  %v8161_v49 = vunpack.c.l.bf16 %v16915_v36  ;;  %v12862_v6 = vld [vmem:[%s13171_s25 + $0x12c] ss:$0 sps:$4 sm:$0x33]  }
 0x256   : > { %v11099_v56 = vadd.f32 %v11098_v1, %v11097_v37  ;;  %v15949_v16 = vadd.f32 %v16909_v62, %v11096_v20  ;;  %v11175_v14 = vpop.f32.mrb[153].mxu1  ;;  %v16920_v20 = vld [vmem:[#allocation81_spill] sm:$0xff] }
 0x257   : > { %v8075_v37 = vsel %vm13186_vm4, %v16920_v20, %v16919_v53  ;;  %v15972_v32 = vadd.f32 %v11175_v14, %v11174_v29  ;;  %v11177_v2 = vpop.f32.mrb[154].mxu1  ;;  %v16922_v62 = vld [vmem:[#allocation89_spill] sm:$0xff]  ;;  %v16930_v53 = vrot.slane %v16929_v15, 7 }
 0x258   : > { %v15975_v38 = vadd.f32 %v16921_v3, %v11099_v56  ;;  %v8162_v41 = vunpack.c.l.bf16 %v16922_v62  ;;  %v11178_v29 = vpop.f32.mrb[155].mxu1  ;;  %v8192_v3 = vadd.f32 %v8191_v45, %v8161_v49  ;;  %v12861_v62 = vld [vmem:[%s13171_s25 + $0x124] sm:$0xfc]   ;;  %v8164_v45 = vunpack.c.l.bf16 %v8075_v37 }
 0x259   : > { %v15984_v56 = vadd.f32 %v11178_v29, %v11177_v2  ;;  %v15997_v20 = vrot.slane %v16930_v53, 4  ;;  %v12860_v2 = vld [vmem:[%s13171_s25 + $0x11c] ss:$0 sps:$4 sm:$0x33]   ;;  %v7342_v53 = vsel %vm1135_vm3, %v7340_v50, %v7341_v13  ;;  %v7346_v13 = vrot.slane %v12859_v42, 2  ;;  %v16942_v49 = vld [vmem:[#allocation86_spill] sm:$0xff] }
 0x25a   : > { %v11100_v43 = vpop.f32.mrb[108].mxu0  ;;  %11833 = vmatmul.mubr.bf16.gmra.mrb[164].mxu1 %v7342_v53  ;;  %v7350_v42 = vrot.slane %v12862_v6, 2  ;;  %v16947_v6 = vld [vmem:[#allocation82_spill] sm:$0xff] }
 0x25b   : > { %v11101_v26 = vpop.f32.mrb[109].mxu0  ;;  %16924 = vst [vmem:[#allocation60_spill] sm:$0xff] %v15984_v56 }
 0x25c   : > { %v11102_v1 = vadd.f32 %v11101_v26, %v11100_v43  ;;  %v11103_v39 = vpop.f32.mrb[110].mxu0  ;;  %v7344_v43 = vrot.slane %v15922_v59, 2  ;;  %v16927_v26 = vld [vmem:[#allocation70_spill] sm:$0xff]  ;;  %v8163_v59 = vunpack.c.l.bf16 %v8072_v0 }
 0x25d   : > { %v11104_v36 = vpop.f32.mrb[111].mxu0  ;;  %v11180_v4 = vpop.f32.mrb[156].mxu1  ;;  %v16928_v21 = vrot.slane %v16927_v26, 11 }
 0x25e   : > { %v11105_v14 = vadd.f32 %v11104_v36, %v11103_v39  ;;  %v15987_v63 = vadd.f32 %v15838_v46, %v11102_v1  ;;  %v11181_v31 = vpop.f32.mrb[157].mxu1  ;;  %v16931_v46 = vld [vmem:[#allocation72_spill] sm:$0xff]  ;;  %v16933_v39 = vld [vmem:[#allocation85_spill] sm:$0xff] }
 0x25f   : > { %v8079_v51 = vsel %vm13186_vm4, %v16928_v21, %v16926_v58  ;;  %v16932_v1 = vrot.slane %v16931_v46, 7  ;;  %v16010_v58 = vadd.f32 %v11181_v31, %v11180_v4  ;;  %v11183_v26 = vpop.f32.mrb[158].mxu1  ;;  %v8193_v21 = vadd.f32 %v8192_v3, %v8162_v41  ;;  %v16938_v41 = vld [vmem:[#allocation73_spill] sm:$0xff] }
 0x260   : > { %v16013_v0 = vadd.f32 %v15841_v48, %v11105_v14  ;;  %v11184_v46 = vpop.f32.mrb[159].mxu1  ;;  %v8165_v4 = vunpack.c.l.bf16 %v8079_v51  ;;  %v16025_v48 = vld [vmem:[%s16677_s7] ss:$0 sm:$0xff]  ;;  %v16936_v14 = vld [vmem:[#allocation67_spill] sm:$0xff]  ;;  %v16939_v3 = vrot.slane %v16938_v41, 11 }
 0x261   : > { %v8082_v29 = vsel %vm13186_vm4, %v16933_v39, %v16932_v1  ;;  %16934 = vst [vmem:[#allocation62_spill] sm:$0xff] %v16010_v58  ;;  %v7345_v1 = vsel %vm1135_vm3, %v7343_v30, %v7344_v43  ;;  %v16020_v39 = vadd.f32 %v11184_v46, %v11183_v26  ;;  %v8194_v31 = vadd.f32 %v8193_v21, %v8163_v59  ;;  %v10565_v43 = vld [vmem:[%s13158_s29 + $0x158] sm:$0x7]  ;;  %v16940_v41 = vld [vmem:[#allocation75_spill] sm:$0xff]  ;;  %s10112_s29 = sld [smem:[#allocation4 + $0x3]] }
 0x262   : > { %v16937_v37 = vrot.slane %v16936_v14, 7  ;;  %v8166_v50 = vunpack.c.l.bf16 %v8082_v29  ;;  %v11734_v30 = vpop.f32.mrb[64].mxu0  ;;  %11836 = vmatprep.mubr.bf16.mxu1 %v7345_v1  ;;  %v7347_v59 = vrot.slane %v12860_v2, 2  ;;  %v7349_v26 = vrot.slane %v12861_v62, 2  ;;  %v12863_v21 = vld [vmem:[%s13171_s25 + $0x134] sm:$0xfc]  }
 0x263   : > { %16935 = vst [vmem:[#allocation63_spill] sm:$0xff] %v16020_v39  ;;  %v8195_v51 = vadd.f32 %v8194_v31, %v8164_v45  ;;  %v16036_v46 = vadd.f32 %v15894_v33, %v11734_v30  ;;  %v5462_v14 = vpop.f32.mrb[65].mxu0  ;;  %v16941_v36 = vrot.slane %v16940_v41, 7  ;;  %v12864_v1 = vld [vmem:[%s13171_s25 + $0x13c] ss:$0 sps:$4 sm:$0x33]   ;;  %v16046_v2 = vstv %s16001_s17 }
 0x264   : > { %v8086_v25 = vsel %vm13186_vm4, %v16939_v3, %v16937_v37  ;;  %v12015_v53 = vadd.f32 %v15899_v8, %v5462_v14  ;;  %v11735_v37 = vpop.f32.mrb[66].mxu0  ;;  %v16943_v31 = vld [vmem:[#allocation80_spill] sm:$0xff]  ;;  %v16945_v39 = vld [vmem:[#allocation79_spill] sm:$0xff]  ;;  %v7348_v14 = vsel %vm1135_vm3, %v7346_v13, %v7347_v59  ;;  %v7353_v13 = vrot.slane %v12864_v1, 2 }
 0x265   : > { %v8089_v29 = vsel %vm13186_vm4, %v16942_v49, %v16941_v36  ;;  %v8167_v3 = vunpack.c.l.bf16 %v8086_v25  ;;  %v8196_v45 = vadd.f32 %v8195_v51, %v8165_v4  ;;  %v12018_v62 = vadd.f32 %v15902_v34, %v11735_v37  ;;  %v5465_v33 = vpop.f32.mrb[67].mxu0  ;;  %v16949_v4 = vld [vmem:[#allocation58_spill] sm:$0xff]  ;;  %11837 = vmatmul.mubr.bf16.gmra.mrb[168].mxu1 %v7348_v14 }
 0x266   : > { %v16944_v30 = vrot.slane %v16943_v31, 7  ;;  %v16946_v41 = vrot.slane %v16945_v39, 11  ;;  %v5596_v36 = vadd.f32 %v12015_v53, %v16025_v48  ;;  %v12021_v8 = vadd.f32 %v15913_v9, %v5465_v33 }
 0x267   : > { %v16948_v49 = vrot.slane %v16947_v6, 7  ;;  %v8168_v51 = vunpack.c.l.bf16 %v8089_v29  ;;  %v8197_v34 = vadd.f32 %v8196_v45, %v8166_v50  ;;  %v8109_v37 = vrot.slane %v10565_v43, 7  ;;  %v16951_v6 = vld [vmem:[#allocation83_spill] sm:$0xff]  ;;  %v16953_v29 = vld [vmem:[#allocation57_spill] sm:$0xff] }
 0x268   : > { %v8093_v58 = vsel %vm13186_vm4, %v16946_v41, %v16944_v30  ;;  %v7351_v39 = vsel %vm1135_vm3, %v7349_v26, %v7350_v42  ;;  %v5629_v31 = vmul.f32 %v16046_v2, %v5596_v36  ;;  %v5597_v30 = vadd.f32 %v12021_v8, %v16025_v48 }
 0x269   : > { %v8096_v25 = vsel %vm13186_vm4, %v16949_v4, %v16948_v49  ;;  %v8169_v53 = vunpack.c.l.bf16 %v8093_v58  ;;  %v8198_v41 = vadd.f32 %v8197_v34, %v8167_v3  ;;  %v7352_v9 = vrot.slane %v12863_v21, 2  ;;  %11840 = vmatprep.mubr.bf16.mxu1 %v7351_v39 }
 0x26a   : > { %vm5612_vm9 = vcmp.gt.f32.partialorder %v5596_v36, 0.0  ;;  %v16950_v33 = vrot.slane %v16929_v15, 7  ;;  %v16952_v56 = vrot.slane %v16951_v6, 11  ;;  %vm5613_vm13 = vcmp.gt.f32.partialorder %v5597_v30, 0.0 }
 0x26b   : > { %v5630_v43 = vmul.f32 %v16046_v2, %v5597_v30  ;;  %v8170_v59 = vunpack.c.l.bf16 %v8096_v25  ;;  %v8199_v26 = vadd.f32 %v8198_v41, %v8168_v51  ;;  %v16954_v58 = vrot.slane %v16953_v29, 7 }
 0x26c   : > { %v8100_v50 = vsel %vm13186_vm4, %v16952_v56, %v16950_v33  ;;  %v16955_v15 = vrot.slane %v15964_v60, 7  ;;  %v16080_v3 = vsel %vm5612_vm9, %v5596_v36, %v5629_v31  ;;  %v16957_v4 = vrot.slane %v15952_v57, 11  ;;  %v11738_v31 = vpop.f32.mrb[68].mxu0 }
 0x26d   : > { %v8103_v21 = vsel %vm13186_vm4, %v15997_v20, %v16954_v58  ;;  %v16082_v56 = vsel %vm5613_vm13, %v5597_v30, %v5630_v43  ;;  %v8171_v45 = vunpack.c.l.bf16 %v8100_v50  ;;  %v8200_v1 = vadd.f32 %v8199_v26, %v8169_v53  ;;  %v5478_v53 = vpop.f32.mrb[69].mxu0 }
 0x26e   : > { %v8108_v42 = vrot.slane %v16955_v15, 4  ;;  %v5661_v8 = vpack.c.bf16 %v16082_v56, %v16080_v3  ;;  %v16956_v49 = vmov %v16955_v15  ;;  %v8172_v20 = vunpack.c.l.bf16 %v8103_v21  ;;  %v11739_v33 = vpop.f32.mrb[70].mxu0 }
 0x26f   : > { %v8107_v25 = vsel %vm13186_vm4, %v16957_v4, %v16956_v49  ;;  %v8201_v51 = vadd.f32 %v8200_v1, %v8170_v59  ;;  %v7354_v34 = vsel %vm1135_vm3, %v7352_v9, %v7353_v13  ;;  %v12024_v30 = vadd.f32 %v15916_v23, %v11738_v31  ;;  %v5481_v50 = vpop.f32.mrb[71].mxu0 }
 0x270   : > { %v8110_v36 = vsel %vm13186_vm4, %v8108_v42, %v8109_v37  ;;  %v8173_v14 = vunpack.c.l.bf16 %v8107_v25  ;;  %11841 = vmatmul.mubr.bf16.gmra.mrb[172].mxu1 %v7354_v34  ;;  %v12027_v57 = vadd.f32 %v15919_v35, %v5478_v53  ;;  %v12030_v6 = vadd.f32 %v15927_v61, %v11739_v33  ;;  %v8307_v61 = vld [vmem:[%s16683_s13] sm:$0xff] }
 0x271   : > { %v8202_v39 = vadd.f32 %v8201_v51, %v8171_v45  ;;  %v8174_v60 = vunpack.c.l.bf16 %v8110_v36  ;;  %v12033_v9 = vadd.f32 %v15930_v12, %v5481_v50  ;;  %v5599_v59 = vadd.f32 %v12018_v62, %v16025_v48  ;;  %v8308_v12 = vld [vmem:[%s16683_s13 + $0x8] sm:$0xff] }
 0x272   : > { %v5598_v23 = vadd.f32 %v16036_v46, %v16025_v48  ;;  %v11939_v25 = vpack.c.bf16 %v8308_v12, %v8307_v61  ;;  %v5603_v51 = vadd.f32 %v12030_v6, %v16025_v48  ;;  %v16958_v33 = vmov 0.0  }
 0x273   : > { %v8203_v41 = vadd.f32 %v8202_v39, %v8172_v20  ;;  %v5632_v58 = vmul.f32 %v16046_v2, %v5599_v59  ;;  %vm5615_vm3 = vcmp.gt.f32.partialorder %v5599_v59, 0.0  ;;  %v5602_v20 = vadd.f32 %v12024_v30, %v16025_v48 }
 0x274   : > { %v5631_v15 = vmul.f32 %v16046_v2, %v5598_v23  ;;  %vm5614_vm4 = vcmp.gt.f32.partialorder %v5598_v23, 0.0  ;;  %v5601_v39 = vadd.f32 %v12033_v9, %v16025_v48  ;;  %v5636_v53 = vmul.f32 %v16046_v2, %v5603_v51 }
 0x275   : > { %v8204_v43 = vadd.f32 %v8203_v41, %v8173_v14  ;;  %v11742_v35 = vpop.f32.mrb[72].mxu0  ;;  %v16116_v36 = vsel %vm5615_vm3, %v5599_v59, %v5632_v58  ;;  %v5635_v30 = vmul.f32 %v16046_v2, %v5602_v20  ;;  %v8311_v41 = vld [vmem:[%s16683_s13 + $0x20] sm:$0xff]  ;;  %vm5618_vm14 = vcmp.gt.f32.partialorder %v5602_v20, 0.0  ;;  %v8313_v59 = vld [vmem:[%s16683_s13 + $0x30] sm:$0xff] }
 0x276   : > { %v12036_v62 = vadd.f32 %v15935_v47, %v11742_v35  ;;  %v5494_v42 = vpop.f32.mrb[73].mxu0  ;;  %v5600_v47 = vadd.f32 %v12027_v57, %v16025_v48  ;;  %v16127_v31 = vsel %vm5614_vm4, %v5598_v23, %v5631_v15  ;;  %v8312_v57 = vld [vmem:[%s16683_s13 + $0x28] sm:$0xff]  ;;  %vm5619_vm15 = vcmp.gt.f32.partialorder %v5603_v51, 0.0 }
 0x277   : > { %v8205_v19 = vadd.f32 %v8204_v43, %v8174_v60  ;;  %v12039_v46 = vadd.f32 %v15938_v7, %v5494_v42  ;;  %v11743_v45 = vpop.f32.mrb[74].mxu0  ;;  %v8309_v7 = vld [vmem:[%s16683_s13 + $0x10] sm:$0xff]  ;;  %v5634_v50 = vmul.f32 %v16046_v2, %v5601_v39  ;;  %v16959_v43 = vmov 0.0|0.0  }
 0x278   : > { %v12042_v49 = vadd.f32 %v15941_v22, %v11743_v45  ;;  %v5497_v4 = vpop.f32.mrb[75].mxu0  ;;  %v8310_v22 = vld [vmem:[%s16683_s13 + $0x18] sm:$0xff]  ;;  %v5633_v6 = vmul.f32 %v16046_v2, %v5600_v47  ;;  %vm5616_vm0 = vcmp.gt.f32.partialorder %v5600_v47, 0.0  ;;  %vm5617_vm1 = vcmp.gt.f32.partialorder %v5601_v39, 0.0 }
 0x279   : > { %v8206_v37 = vrot.slane %v8205_v19, 4  ;;  %v12045_v34 = vadd.f32 %v15946_v17, %v5497_v4  ;;  %v5662_v17 = vpack.c.bf16 %v16116_v36, %v16127_v31  ;;  %v11942_v60 = vpack.c.bf16 %v8310_v22, %v8309_v7 }
 0x27a   : > { %v5606_v9 = vadd.f32 %v12036_v62, %v16025_v48  ;;  %v16153_v23 = vsel %vm5618_vm14, %v5602_v20, %v5635_v30  ;;  %v16159_v35 = vsel %vm5616_vm0, %v5600_v47, %v5633_v6  ;;  %v16161_v61 = vsel %vm5617_vm1, %v5601_v39, %v5634_v50  ;;  %v8316_v20 = vld [vmem:[%s16683_s13 + $0x48] sm:$0xff] }
 0x27b   : > { %v8207_v13 = vadd.f32 %v8206_v37, %v8205_v19  ;;  %v11945_v19 = vpack.c.bf16 %v8312_v57, %v8311_v41  ;;  %v5604_v37 = vadd.f32 %v12039_v46, %v16025_v48  ;;  %v5605_v58 = vadd.f32 %v12045_v34, %v16025_v48 }
 0x27c   : > { %v5663_v15 = vpack.c.bf16 %v16161_v61, %v16159_v35  ;;  %vm5622_vm5 = vcmp.gt.f32.partialorder %v5606_v9, 0.0  ;;  %v5639_v45 = vmul.f32 %v16046_v2, %v5606_v9  ;;  %v8230_v35 = vld [vmem:[%s16681_s11] sm:$0x1] }
 0x27d   : > { %v8208_v26 = vrot.slane %v8207_v13, 2  ;;  %vm5620_vm7 = vcmp.gt.f32.partialorder %v5604_v37, 0.0  ;;  %vm5621_vm8 = vcmp.gt.f32.partialorder %v5605_v58, 0.0 }
 0x27e   : > { %v16186_v30 = vsel %vm5622_vm5, %v5606_v9, %v5639_v45 }
 0x27f   : > { %v8209_v29 = vadd.f32 %v8208_v26, %v8207_v13  ;;  %v5607_v13 = vadd.f32 %v12042_v49, %v16025_v48  ;;  %v8314_v26 = vld [vmem:[%s16683_s13 + $0x38] sm:$0xff] }
 0x280   : > { %v11948_v46 = vpack.c.bf16 %v8314_v26, %v8313_v59  ;;  %v8319_v59 = vld [vmem:[%s16683_s13 + $0x60] sm:$0xff]  ;;  %v8320_v26 = vld [vmem:[%s16683_s13 + $0x68] sm:$0xff] }
 0x281   : > { %v8210_v21 = vrot.slane %v8209_v29, 1  ;;  %vm5623_vm6 = vcmp.gt.f32.partialorder %v5607_v13, 0.0 }
 0x283   : > { %v8211_v1 = vadd.f32 %v8210_v21, %v8209_v29  ;;  %v16155_v29 = vsel %vm5619_vm15, %v5603_v51, %v5636_v53  ;;  %v11746_v21 = vpop.f32.mrb[76].mxu0  ;;  %v5638_v51 = vmul.f32 %v16046_v2, %v5605_v58 }
 0x284   : > { %v5664_v12 = vpack.c.bf16 %v16155_v29, %v16153_v23  ;;  %v12048_v62 = vadd.f32 %v15987_v63, %v11746_v21  ;;  %v5510_v42 = vpop.f32.mrb[77].mxu0  ;;  %v5637_v63 = vmul.f32 %v16046_v2, %v5604_v37  ;;  %v12866_v23 = vld [vmem:[%s16682_s12] sm:$0xff]   ;;  %v12867_v29 = vld [vmem:[%s16682_s12 + $0x48] sm:$0xff]  }
 0x285   : > { %v8213_v14 = vmul.f32 0.00390625, %v8211_v1  ;;  %v5640_v1 = vmul.f32 %v16046_v2, %v5607_v13  ;;  %v12051_v49 = vadd.f32 %v15949_v16, %v5510_v42  ;;  %v11747_v4 = vpop.f32.mrb[78].mxu0  ;;  %v16200_v57 = vsel %vm5621_vm8, %v5605_v58, %v5638_v51 }
 0x286   : > { %v12054_v34 = vadd.f32 %v16013_v0, %v11747_v4  ;;  %v5610_v47 = vadd.f32 %v12048_v62, %v16025_v48  ;;  %v16198_v41 = vsel %vm5620_vm7, %v5604_v37, %v5637_v63 }
 0x287   : > { %11877 = vmatmul.mubr.f32.vlgmr.msra.gmra.mrb[144].mxu0 %v8213_v14  ;;  %v5513_v14 = vpop.f32.mrb[79].mxu0  ;;  %v5608_v7 = vadd.f32 %v12051_v49, %v16025_v48  ;;  %v16188_v53 = vsel %vm5623_vm6, %v5607_v13, %v5640_v1 }
 0x288   : > { %11940 = vmatpush3.bf16.msra.mxu0 %v11939_v25  ;;  %11911 = vmatprep.mubr.msk.f32.mxu0 %vm12961_vm12, %v16958_v33  ;;  %v8315_v25 = vld [vmem:[%s16683_s13 + $0x40] sm:$0xff]  ;;  %v12057_v16 = vadd.f32 %v15975_v38, %v5513_v14  ;;  %v5611_v22 = vadd.f32 %v12054_v34, %v16025_v48  ;;  %v8317_v38 = vld [vmem:[%s16683_s13 + $0x50] sm:$0xff]  ;;  %v5666_v33 = vpack.c.bf16 %v16188_v53, %v16186_v30  ;;  %vm5626_vm2 = vcmp.gt.f32.partialorder %v5610_v47, 0.0  ;;  %v11218_v13 = vpop.f32.mrb[112].mxu0 }
 0x289   : > { %11941 = vmatprep.subr.bf16.mxu0 %v16959_v43  ;;  %v11951_v39 = vpack.c.bf16 %v8316_v20, %v8315_v25  ;;  %v5643_v6 = vmul.f32 %v16046_v2, %v5610_v47  ;;  %v5641_v50 = vmul.f32 %v16046_v2, %v5608_v7  ;;  %vm5624_vm10 = vcmp.gt.f32.partialorder %v5608_v7, 0.0  ;;  %v11219_v58 = vpop.f32.mrb[113].mxu0  ;;  %v12877_v30 = vld [vmem:[%s16682_s12 + $0x60] sm:$0xff]  }
 0x28a   : > { %v5609_v0 = vadd.f32 %v12057_v16, %v16025_v48  ;;  %v5665_v48 = vpack.c.bf16 %v16200_v57, %v16198_v41  ;;  %v5644_v9 = vmul.f32 %v16046_v2, %v5611_v22  ;;  %vm5627_vm11 = vcmp.gt.f32.partialorder %v5611_v22, 0.0  ;;  %v11221_v62 = vpop.f32.mrb[114].mxu0  ;;  %v12868_v41 = vld [vmem:[%s16682_s12 + $0x8] sm:$0xff]   ;;  %v12869_v57 = vld [vmem:[%s16682_s12 + $0x50] sm:$0xff]   ;;  %v12878_v53 = vld [vmem:[%s16682_s12 + $0x20] sm:$0xff]  }
 0x28b   : > { %v11220_v21 = vadd.f32 %v11219_v58, %v11218_v13  ;;  %v11222_v42 = vpop.f32.mrb[115].mxu0  ;;  %v16217_v45 = vsel %vm5624_vm10, %v5608_v7, %v5641_v50 }
 0x28c   : > { %11943 = vmatpush3.bf16.msra.mxu0 %v11942_v60  ;;  %v8318_v60 = vld [vmem:[%s16683_s13 + $0x58] sm:$0xff]  ;;  %v5642_v37 = vmul.f32 %v16046_v2, %v5609_v0  ;;  %vm5625_vm12 = vcmp.gt.f32.partialorder %v5609_v0, 0.0  ;;  %v16220_v2 = vsel %vm5626_vm2, %v5610_v47, %v5643_v6  ;;  %v16222_v1 = vsel %vm5627_vm11, %v5611_v22, %v5644_v9 }
 0x28d   : > { %11944 = vmatprep.subr.bf16.mxu0 %v16959_v43  ;;  %v12061_v49 = vadd.f32 %v11220_v21, %v15849_v18  ;;  %v11223_v4 = vadd.f32 %v11222_v42, %v11221_v62  ;;  %v5668_v20 = vpack.c.bf16 %v16222_v1, %v16220_v2  ;;  %v11224_v34 = vpop.f32.mrb[116].mxu0  ;;  %v16967_v2 = vld [vmem:[#allocation10_spill] sm:$0xff] }
 0x28e   : > { %v16226_v25 = vsel %vm5625_vm12, %v5609_v0, %v5642_v37  ;;  %v11225_v14 = vpop.f32.mrb[117].mxu0 }
 0x28f   : > { %v5667_v63 = vpack.c.bf16 %v16226_v25, %v16217_v45  ;;  %v12067_v51 = vadd.f32 %v11223_v4, %v15855_v10  ;;  %v11226_v16 = vadd.f32 %v11225_v14, %v11224_v34  ;;  %v11227_v18 = vpop.f32.mrb[118].mxu0  ;;  %v12885_v45 = vld [vmem:[%s16682_s12 + $0x70] sm:$0xff]  }
 0x290   : > { %11946 = vmatpush3.bf16.msra.mxu0 %v11945_v19  ;;  %v11954_v19 = vpack.c.bf16 %v8318_v60, %v8317_v38  ;;  %v11228_v47 = vpop.f32.mrb[119].mxu0  ;;  %v12886_v25 = vld [vmem:[%s16682_s12 + $0x30] sm:$0xff]  }
 0x291   : > { %11947 = vmatprep.subr.bf16.mxu0 %v16959_v43  ;;  %v11229_v7 = vadd.f32 %v11228_v47, %v11227_v18 }
 0x293   : > { %v12064_v22 = vadd.f32 %v11229_v7, %v15870_v40 }
 0x294   : > { %11949 = vmatpush3.bf16.msra.mxu0 %v11948_v46  ;;  %v11957_v46 = vpack.c.bf16 %v8320_v26, %v8319_v59 }
 0x295   : > { %11950 = vmatprep.subr.bf16.mxu0 %v16959_v43  ;;  %v11230_v0 = vpop.f32.mrb[120].mxu0 }
 0x296   : > { %v11231_v38 = vpop.f32.mrb[121].mxu0 }
 0x297   : > { %v11232_v60 = vadd.f32 %v11231_v38, %v11230_v0  ;;  %v11233_v6 = vpop.f32.mrb[122].mxu0 }
 0x298   : > { %11952 = vmatpush3.bf16.msra.mxu0 %v11951_v39  ;;  %v12058_v39 = vadd.f32 %v11226_v16, %v15865_v44  ;;  %v11234_v50 = vpop.f32.mrb[123].mxu0 }
 0x299   : > { %11953 = vmatprep.subr.bf16.mxu0 %v16959_v43  ;;  %v12073_v10 = vadd.f32 %v11232_v60, %v15877_v52  ;;  %v11235_v9 = vadd.f32 %v11234_v50, %v11233_v6 }
 0x29c   : > { %11955 = vmatpush3.bf16.msra.mxu0 %v11954_v19 }
 0x29d   : > { %11956 = vmatprep.subr.bf16.mxu0 %v16959_v43 }
 0x2a0   : > { %11958 = vmatpush3.bf16.msra.mxu0 %v11957_v46 }
 0x2a1   : > { %11959 = vmatprep.subr.bf16.mxu0 %v16959_v43  ;;  %v16238_v43 = vadd.f32 %v11235_v9, %v15880_v11  ;;  %v11236_v19 = vpop.f32.mrb[124].mxu0 }
 0x2a2   : > { %v11237_v37 = vpop.f32.mrb[125].mxu0 }
 0x2a3   : > { %v11238_v13 = vadd.f32 %v11237_v37, %v11236_v19  ;;  %v11239_v59 = vpop.f32.mrb[126].mxu0 }
 0x2a4   : > { %v11240_v26 = vpop.f32.mrb[127].mxu0 }
 0x2a5   : > { %v16241_v44 = vadd.f32 %v11238_v13, %v15884_v55  ;;  %v11241_v40 = vadd.f32 %v11240_v26, %v11239_v59 }
 0x2a7   : > { %v16244_v58 = vadd.f32 %v11241_v40, %v15886_v24 }
 0x2a9   : > { %v11242_v21 = vpop.f32.mrb[128].mxu0 }
 0x2aa   : > { %v11243_v62 = vpop.f32.mrb[129].mxu0  ;;  %v11298_v42 = vpop.f32.mrb[176].mxu1 }
 0x2ab   : > { %v11244_v52 = vadd.f32 %v11243_v62, %v11242_v21  ;;  %v11245_v46 = vpop.f32.mrb[130].mxu0  ;;  %v11299_v4 = vpop.f32.mrb[177].mxu1 }
 0x2ac   : > { %v11246_v11 = vpop.f32.mrb[131].mxu0  ;;  %v11300_v14 = vadd.f32 %v11299_v4, %v11298_v42  ;;  %v11301_v16 = vpop.f32.mrb[178].mxu1 }
 0x2ad   : > { %v16247_v34 = vadd.f32 %v11244_v52, %v15888_v28  ;;  %v11247_v18 = vadd.f32 %v11246_v11, %v11245_v46  ;;  %v11302_v47 = vpop.f32.mrb[179].mxu1  ;;  %v8322_v11 = vld [vmem:[%s16683_s13 + $0x78] sm:$0xff] }
 0x2ae   : > { %v11303_v7 = vadd.f32 %v11302_v47, %v11301_v16  ;;  %v16252_v24 = vadd.f32 %v12061_v49, %v11300_v14 }
 0x2af   : > { %v16250_v55 = vadd.f32 %v11247_v18, %v15896_v27 }
 0x2b0   : > { %v16254_v38 = vadd.f32 %v12067_v51, %v11303_v7 }
 0x2b1   : > { %v11248_v0 = vpop.f32.mrb[132].mxu0 }
 0x2b2   : > { %v11249_v60 = vpop.f32.mrb[133].mxu0 }
 0x2b3   : > { %v11304_v6 = vpop.f32.mrb[180].mxu1  ;;  %v11250_v50 = vadd.f32 %v11249_v60, %v11248_v0  ;;  %v11251_v9 = vpop.f32.mrb[134].mxu0  ;;  %v16960_v0 = vld [vmem:[#allocation60_spill] sm:$0xff] }
 0x2b4   : > { %v11305_v19 = vpop.f32.mrb[181].mxu1  ;;  %v11252_v28 = vpop.f32.mrb[135].mxu0 }
 0x2b5   : > { %v16257_v37 = vadd.f32 %v11250_v50, %v15924_v5  ;;  %v11306_v13 = vadd.f32 %v11305_v19, %v11304_v6  ;;  %v11307_v59 = vpop.f32.mrb[182].mxu1  ;;  %v11253_v26 = vadd.f32 %v11252_v28, %v11251_v9  ;;  %v8321_v5 = vld [vmem:[%s16683_s13 + $0x70] sm:$0xff]  ;;  %v12865_v50 = vld [vmem:[%s16682_s12 + $0x40] sm:$0xff]  }
 0x2b6   : > { %v11308_v27 = vpop.f32.mrb[183].mxu1  ;;  %v11960_v16 = vpack.c.bf16 %v8322_v11, %v8321_v5 }
 0x2b7   : > { %v16260_v40 = vadd.f32 %v11253_v26, %v15943_v54  ;;  %v11309_v49 = vadd.f32 %v11308_v27, %v11307_v59  ;;  %v16262_v21 = vadd.f32 %v12058_v39, %v11306_v13 }
 0x2b8   : > { %11961 = vmatpush3.bf16.msra.mxu0 %v11960_v16 }
 0x2b9   : > { %v11254_v51 = vpop.f32.mrb[136].mxu0  ;;  %v16264_v62 = vadd.f32 %v12064_v22, %v11309_v49  ;;  %11396 = vmatprep.subr.bf16.mxu0 %v12865_v50 }
 0x2ba   : > { %v11255_v42 = vpop.f32.mrb[137].mxu0 }
 0x2bb   : > { %v11310_v52 = vpop.f32.mrb[184].mxu1  ;;  %v11256_v46 = vadd.f32 %v11255_v42, %v11254_v51  ;;  %v11257_v4 = vpop.f32.mrb[138].mxu0  ;;  %v16961_v51 = vld [vmem:[#allocation62_spill] sm:$0xff] }
 0x2bc   : > { %v11311_v54 = vpop.f32.mrb[185].mxu1  ;;  %v11258_v14 = vpop.f32.mrb[139].mxu0 }
 0x2bd   : > { %v16273_v39 = vadd.f32 %v11256_v46, %v15972_v32  ;;  %v11312_v22 = vadd.f32 %v11311_v54, %v11310_v52  ;;  %v11313_v18 = vpop.f32.mrb[186].mxu1  ;;  %v11259_v47 = vadd.f32 %v11258_v14, %v11257_v4  ;;  %v12871_v14 = vld [vmem:[%s16682_s12 + $0xc0] sm:$0xff]  }
 0x2be   : > { %v11314_v7 = vpop.f32.mrb[187].mxu1  ;;  %11460 = vmatprep.subr.bf16.mxu1 %v12871_v14 }
 0x2bf   : > { %v16276_v60 = vadd.f32 %v11259_v47, %v16960_v0  ;;  %v11315_v6 = vadd.f32 %v11314_v7, %v11313_v18  ;;  %v16281_v9 = vadd.f32 %v12073_v10, %v11312_v22  ;;  %v16962_v10 = vld [vmem:[#allocation63_spill] sm:$0xff]  ;;  %v12872_v22 = vld [vmem:[%s16682_s12 + $0x80] sm:$0xff]  }
 0x2c0   : > { %11461 = vmatpush3.bf16.msra.mxu1 %v12872_v22 }
 0x2c1   : > { %v11260_v19 = vpop.f32.mrb[140].mxu0  ;;  %v16284_v32 = vadd.f32 %v16238_v43, %v11315_v6 }
 0x2c2   : > { %v11261_v28 = vpop.f32.mrb[141].mxu0 }
 0x2c3   : > { %v11316_v13 = vpop.f32.mrb[188].mxu1  ;;  %v11262_v59 = vadd.f32 %v11261_v28, %v11260_v19  ;;  %v11263_v26 = vpop.f32.mrb[142].mxu0  ;;  %v12879_v28 = vld [vmem:[%s16682_s12 + $0xd0] sm:$0xff]  }
 0x2c4   : > { %v11317_v27 = vpop.f32.mrb[189].mxu1  ;;  %v11264_v49 = vpop.f32.mrb[143].mxu0 }
 0x2c5   : > { %v16287_v42 = vadd.f32 %v11262_v59, %v16961_v51  ;;  %v11318_v52 = vadd.f32 %v11317_v27, %v11316_v13  ;;  %v11319_v46 = vpop.f32.mrb[190].mxu1  ;;  %v11265_v4 = vadd.f32 %v11264_v49, %v11263_v26  ;;  %v12880_v59 = vld [vmem:[%s16682_s12 + $0x90] sm:$0xff]   ;;  %v12883_v26 = vld [vmem:[%s16682_s12 + $0xd8] sm:$0xff]   ;;  %v12888_v27 = vld [vmem:[%s16682_s12 + $0xa0] sm:$0xff]  }
 0x2c6   : > { %v11320_v5 = vpop.f32.mrb[191].mxu1  ;;  %v12891_v49 = vld [vmem:[%s16682_s12 + $0xe8] sm:$0xff]  }
 0x2c7   : > { %v16290_v11 = vadd.f32 %v11265_v4, %v16962_v10  ;;  %v11321_v54 = vadd.f32 %v11320_v5, %v11319_v46  ;;  %v16293_v43 = vadd.f32 %v16241_v44, %v11318_v52  ;;  %v12875_v44 = vld [vmem:[%s16682_s12 + $0xc8] sm:$0xff]   ;;  %v12893_v52 = vld [vmem:[%s16682_s12 + $0xf0] sm:$0xff]   ;;  %v12895_v4 = vld [vmem:[%s16682_s12 + $0xf8] sm:$0xff]  }
 0x2c8   : > { %11462 = vmatprep.subr.bf16.mxu1 %v12875_v44  ;;  %v12892_v51 = vld [vmem:[%s16682_s12 + $0xa8] sm:$0xff]   ;;  %v12894_v46 = vld [vmem:[%s16682_s12 + $0xb0] sm:$0xff]   ;;  %v12896_v5 = vld [vmem:[%s16682_s12 + $0xb8] sm:$0xff]  }
 0x2c9   : > { %v16299_v16 = vadd.f32 %v16244_v58, %v11321_v54  ;;  %v12876_v58 = vld [vmem:[%s16682_s12 + $0x88] sm:$0xff]  }
 0x2ca   : > { %11463 = vmatpush3.bf16.msra.mxu1 %v12876_v58 }
 0x2cb   : > { %v11322_v18 = vpop.f32.mrb[192].mxu1  ;;  %11464 = vmatprep.subr.bf16.mxu1 %v12879_v28 }
 0x2cc   : > { %v11323_v47 = vpop.f32.mrb[193].mxu1 }
 0x2cd   : > { %v11324_v7 = vadd.f32 %v11323_v47, %v11322_v18  ;;  %v11325_v0 = vpop.f32.mrb[194].mxu1 }
 0x2ce   : > { %v11326_v6 = vpop.f32.mrb[195].mxu1  ;;  %11465 = vmatpush3.bf16.msra.mxu1 %v12880_v59 }
 0x2cf   : > { %v11327_v50 = vadd.f32 %v11326_v6, %v11325_v0  ;;  %v16311_v19 = vadd.f32 %v16247_v34, %v11324_v7  ;;  %v12884_v34 = vld [vmem:[%s16682_s12 + $0x98] sm:$0xff]   ;;  %11466 = vmatprep.subr.bf16.mxu1 %v12883_v26 }
 0x2d1   : > { %v16317_v13 = vadd.f32 %v16250_v55, %v11327_v50  ;;  %v12887_v55 = vld [vmem:[%s16682_s12 + $0xe0] sm:$0xff]  }
 0x2d2   : > { %11467 = vmatpush3.bf16.msra.mxu1 %v12884_v34 }
 0x2d3   : > { %11468 = vmatprep.subr.bf16.mxu1 %v12887_v55 }
 0x2d6   : > { %11469 = vmatpush3.bf16.msra.mxu1 %v12888_v27 }
 0x2d7   : > { %11470 = vmatprep.subr.bf16.mxu1 %v12891_v49 }
 0x2da   : > { %11471 = vmatpush3.bf16.msra.mxu1 %v12892_v51 }
 0x2db   : > { %11472 = vmatprep.subr.bf16.mxu1 %v12893_v52 }
 0x2de   : > { %11473 = vmatpush3.bf16.msra.mxu1 %v12894_v46 }
 0x2df   : > { %11474 = vmatprep.subr.bf16.mxu1 %v12895_v4 }
 0x2e2   : > { %11475 = vmatpush3.bf16.msra.mxu1 %v12896_v5 }
 0x300   : > { %v11328_v10 = vpop.f32.mrb[196].mxu1 }
 0x301   : > { %v11329_v54 = vpop.f32.mrb[197].mxu1 }
 0x302   : > { %v11330_v14 = vadd.f32 %v11329_v54, %v11328_v10  ;;  %v11331_v22 = vpop.f32.mrb[198].mxu1  ;;  %v16376_v10 = vstv %s10112_s29 }
 0x303   : > { %v11332_v18 = vpop.f32.mrb[199].mxu1 }
 0x304   : > { %v11333_v47 = vadd.f32 %v11332_v18, %v11331_v22  ;;  %v16353_v7 = vadd.f32 %v16257_v37, %v11330_v14 }
 0x306   : > { %v16356_v0 = vadd.f32 %v16260_v40, %v11333_v47 }
 0x308   : > { %v11334_v44 = vpop.f32.mrb[200].mxu1 }
 0x309   : > { %v11335_v6 = vpop.f32.mrb[201].mxu1 }
 0x30a   : > { %v11336_v58 = vadd.f32 %v11335_v6, %v11334_v44  ;;  %v11337_v50 = vpop.f32.mrb[202].mxu1 }
 0x30b   : > { %v11338_v28 = vpop.f32.mrb[203].mxu1 }
 0x30c   : > { %v11339_v59 = vadd.f32 %v11338_v28, %v11337_v50  ;;  %v16359_v26 = vadd.f32 %v16273_v39, %v11336_v58  ;;  %v16373_v39 = vld [vmem:[%s16679_s9] ss:$0 sm:$0xff] }
 0x30e   : > { %v16362_v34 = vadd.f32 %v16276_v60, %v11339_v59 }
 0x310   : > { %v11340_v55 = vpop.f32.mrb[204].mxu1 }
 0x311   : > { %v11341_v27 = vpop.f32.mrb[205].mxu1 }
 0x312   : > { %v11342_v49 = vadd.f32 %v11341_v27, %v11340_v55  ;;  %v11343_v37 = vpop.f32.mrb[206].mxu1 }
 0x313   : > { %v11344_v51 = vpop.f32.mrb[207].mxu1 }
 0x314   : > { %v11345_v40 = vadd.f32 %v11344_v51, %v11343_v37  ;;  %v16365_v52 = vadd.f32 %v16287_v42, %v11342_v49 }
 0x316   : > { %v16368_v46 = vadd.f32 %v16290_v11, %v11345_v40 }
 0x318   : > { %v11830_v4 = vpop.f32.mrb[160].mxu1 }
 0x319   : > { %v12060_v60 = vadd.f32 %v16262_v21, %v11830_v4  ;;  %v7687_v5 = vpop.f32.mrb[161].mxu1 }
 0x31a   : > { %v12063_v54 = vadd.f32 %v16252_v24, %v7687_v5  ;;  %v11831_v14 = vpop.f32.mrb[162].mxu1 }
 0x31b   : > { %v7823_v42 = vadd.f32 %v12060_v60, %v16373_v39  ;;  %v12066_v22 = vadd.f32 %v16264_v62, %v11831_v14  ;;  %v7690_v11 = vpop.f32.mrb[163].mxu1 }
 0x31c   : > { %v7821_v18 = vadd.f32 %v12063_v54, %v16373_v39  ;;  %v12069_v47 = vadd.f32 %v16254_v38, %v7690_v11 }
 0x31d   : > { %v7856_v44 = vmul.f32 %v16376_v10, %v7823_v42  ;;  %v7824_v6 = vadd.f32 %v12066_v22, %v16373_v39  ;;  %vm7839_vm9 = vcmp.gt.f32.partialorder %v7823_v42, 0.0 }
 0x31e   : > { %v7854_v21 = vmul.f32 %v16376_v10, %v7821_v18  ;;  %v7822_v58 = vadd.f32 %v12069_v47, %v16373_v39  ;;  %vm7837_vm13 = vcmp.gt.f32.partialorder %v7821_v18, 0.0 }
 0x31f   : > { %vm7840_vm3 = vcmp.gt.f32.partialorder %v7824_v6, 0.0  ;;  %v7857_v24 = vmul.f32 %v16376_v10, %v7824_v6  ;;  %v7872_v59 = vsel %vm7839_vm9, %v7823_v42, %v7856_v44 }
 0x320   : > { %vm7838_vm4 = vcmp.gt.f32.partialorder %v7822_v58, 0.0  ;;  %v7855_v62 = vmul.f32 %v16376_v10, %v7822_v58  ;;  %v7870_v37 = vsel %vm7837_vm13, %v7821_v18, %v7854_v21 }
 0x321   : > { %v7873_v55 = vsel %vm7840_vm3, %v7824_v6, %v7857_v24 }
 0x322   : > { %v7871_v51 = vsel %vm7838_vm4, %v7822_v58, %v7855_v62  ;;  %v7887_v40 = vpack.c.bf16 %v7873_v55, %v7872_v59 }
 0x323   : > { %v7886_v54 = vpack.c.bf16 %v7871_v51, %v7870_v37 }
 0x325   : > { %8817 = vmatprep.mubr.bf16.mxu1 %v7886_v54 }
 0x326   : > { %8818 = vmatmul.mubr.bf16.vlgmr.msra.gmra.mrb[208].mxu1 %v5661_v8 }
 0x327   : > { %8825 = vmatprep.mubr.bf16.mxu1 %v7887_v40 }
 0x32d   : > { %v11834_v50 = vpop.f32.mrb[164].mxu1 }
 0x32e   : > { %v12072_v28 = vadd.f32 %v16293_v43, %v11834_v50  ;;  %v7703_v38 = vpop.f32.mrb[165].mxu1  ;;  %8826 = vmatmul.mubr.bf16.gmra.mrb[212].mxu1 %v5662_v17 }
 0x32f   : > { %v12075_v27 = vadd.f32 %v16281_v9, %v7703_v38  ;;  %v11835_v49 = vpop.f32.mrb[166].mxu1 }
 0x330   : > { %v7827_v4 = vadd.f32 %v12072_v28, %v16373_v39  ;;  %v12078_v60 = vadd.f32 %v16299_v16, %v11835_v49  ;;  %v7706_v5 = vpop.f32.mrb[167].mxu1 }
 0x331   : > { %v7825_v14 = vadd.f32 %v12075_v27, %v16373_v39  ;;  %v12081_v22 = vadd.f32 %v16284_v32, %v7706_v5 }
 0x332   : > { %v7860_v43 = vmul.f32 %v16376_v10, %v7827_v4  ;;  %v7828_v42 = vadd.f32 %v12078_v60, %v16373_v39  ;;  %vm7843_vm14 = vcmp.gt.f32.partialorder %v7827_v4, 0.0 }
 0x333   : > { %v7858_v9 = vmul.f32 %v16376_v10, %v7825_v14  ;;  %v7826_v11 = vadd.f32 %v12081_v22, %v16373_v39  ;;  %vm7841_vm15 = vcmp.gt.f32.partialorder %v7825_v14, 0.0 }
 0x334   : > { %vm7844_vm0 = vcmp.gt.f32.partialorder %v7828_v42, 0.0  ;;  %v7861_v16 = vmul.f32 %v16376_v10, %v7828_v42  ;;  %v7876_v6 = vsel %vm7843_vm14, %v7827_v4, %v7860_v43 }
 0x335   : > { %vm7842_vm1 = vcmp.gt.f32.partialorder %v7826_v11, 0.0  ;;  %v7859_v32 = vmul.f32 %v16376_v10, %v7826_v11  ;;  %v7874_v62 = vsel %vm7841_vm15, %v7825_v14, %v7858_v9 }
 0x336   : > { %v7877_v21 = vsel %vm7844_vm0, %v7828_v42, %v7861_v16 }
 0x337   : > { %v7875_v3 = vsel %vm7842_vm1, %v7826_v11, %v7859_v32  ;;  %v7889_v56 = vpack.c.bf16 %v7877_v21, %v7876_v6 }
 0x338   : > { %v11838_v18 = vpop.f32.mrb[168].mxu1  ;;  %v7888_v38 = vpack.c.bf16 %v7875_v3, %v7874_v62  ;;  %v16963_v62 = vld [vmem:[#allocation32_spill] sm:$0xff]  ;;  %v16964_v3 = vld [vmem:[#allocation31_spill] sm:$0xff] }
 0x339   : > { %v12084_v47 = vadd.f32 %v16353_v7, %v11838_v18  ;;  %v7719_v44 = vpop.f32.mrb[169].mxu1 }
 0x33a   : > { %v12087_v58 = vadd.f32 %v16311_v19, %v7719_v44  ;;  %v11839_v24 = vpop.f32.mrb[170].mxu1  ;;  %8833 = vmatprep.mubr.bf16.mxu1 %v7888_v38  ;;  %v12890_v38 = vld [vmem:[%s16682_s12 + $0x38] sm:$0xff]  }
 0x33b   : > { %v7831_v8 = vadd.f32 %v12084_v47, %v16373_v39  ;;  %v12090_v50 = vadd.f32 %v16356_v0, %v11839_v24  ;;  %v7722_v28 = vpop.f32.mrb[171].mxu1  ;;  %8834 = vmatmul.mubr.bf16.gmra.mrb[216].mxu1 %v5663_v15  ;;  %v8303_v15 = vstv %s10582_s0  ;;  %s9084_s0 = sshll.u32 %s12941_s18, 3  ;;  %s9086_s18 = sshll.u32 %s17024_s19, 5 }
 0x33c   : > { %v7829_v59 = vadd.f32 %v12087_v58, %v16373_v39  ;;  %v12093_v55 = vadd.f32 %v16317_v13, %v7722_v28  ;;  %8841 = vmatprep.mubr.bf16.mxu1 %v7889_v56  ;;  %v16965_v56 = vpack.c.bf16 %v16963_v62, %v16964_v3  ;;  %v12882_v28 = vld [vmem:[%s16682_s12 + $0x28] sm:$0xff]   ;;  %p526_p3 = scmp.lt.s32.totalorder %s9084_s0, 15 }
 0x33d   : > { %v7864_v7 = vmul.f32 %v16376_v10, %v7831_v8  ;;  %v7832_v27 = vadd.f32 %v12090_v50, %v16373_v39  ;;  %vm7847_vm5 = vcmp.gt.f32.partialorder %v7831_v8, 0.0  ;;  %v12874_v50 = vld [vmem:[%s16682_s12 + $0x18] sm:$0xff]  }
 0x33e   : > { %v7862_v19 = vmul.f32 %v16376_v10, %v7829_v59  ;;  %v7830_v49 = vadd.f32 %v12093_v55, %v16373_v39  ;;  %vm7845_vm6 = vcmp.gt.f32.partialorder %v7829_v59, 0.0  ;;  %v16970_v55 = vld [vmem:[#allocation33_spill] sm:$0xff]  ;;  %s17026_s0 = smov (!%p526_p3, %s9084_s0), 15 }
 0x33f   : > { %vm7848_vm7 = vcmp.gt.f32.partialorder %v7832_v27, 0.0  ;;  %v7865_v0 = vmul.f32 %v16376_v10, %v7832_v27  ;;  %v7880_v4 = vsel %vm7847_vm5, %v7831_v8, %v7864_v7  ;;  %v12873_v8 = vld [vmem:[%s16682_s12 + $0x58] sm:$0xff]   ;;  %s9085_s26 = sshll.u32 %s17026_s0, 1 }
 0x340   : > { %vm7846_vm8 = vcmp.gt.f32.partialorder %v7830_v49, 0.0  ;;  %v7863_v13 = vmul.f32 %v16376_v10, %v7830_v49  ;;  %v7878_v14 = vsel %vm7845_vm6, %v7829_v59, %v7862_v19  ;;  %v16966_v59 = vld [vmem:[#allocation11_spill] sm:$0xff]  ;;  %v16973_v19 = vld [vmem:[#allocation12_spill] sm:$0xff]  ;;  %s530_s17 = sadd.s32 %s9086_s18, %s9085_s26 }
 0x341   : > { %v7881_v60 = vsel %vm7848_vm7, %v7832_v27, %v7865_v0  ;;  %v16968_v1 = vpack.c.bf16 %v16966_v59, %v16967_v2  ;;  %v16972_v27 = vld [vmem:[#allocation13_spill] sm:$0xff]  ;;  %v16975_v0 = vld [vmem:[#allocation40_spill] sm:$0xff]  ;;  %s9087_s24 = sshll.u32 %s530_s17, 3 }
 0x342   : > { %v7879_v36 = vsel %vm7846_vm8, %v7830_v49, %v7863_v13  ;;  %v7891_v31 = vpack.c.bf16 %v7881_v60, %v7880_v4  ;;  %v16974_v49 = vpack.c.bf16 %v16972_v27, %v16973_v19  ;;  %v16976_v13 = vld [vmem:[#allocation39_spill] sm:$0xff]  ;;  %v16981_v60 = vld [vmem:[#allocation44_spill] sm:$0xff]  ;;  %s16592_s29 = scalar_lea.vmem %s16685_s15, %s9087_s24 }
 0x343   : > { %v11842_v37 = vpop.f32.mrb[172].mxu1  ;;  %v7890_v42 = vpack.c.bf16 %v7879_v36, %v7878_v14  ;;  %8842 = vmatmul.mubr.bf16.gmra.mrb[220].mxu1 %v5664_v12  ;;  %v16984_v14 = vld [vmem:[#allocation17_spill] sm:$0xff]  ;;  %v16985_v36 = vld [vmem:[#allocation16_spill] sm:$0xff] }
 0x344   : > { %v12096_v51 = vadd.f32 %v16365_v52, %v11842_v37  ;;  %v7735_v40 = vpop.f32.mrb[173].mxu1  ;;  %v16977_v37 = vpack.c.bf16 %v16975_v0, %v16976_v13 }
 0x345   : > { %v12099_v5 = vadd.f32 %v16359_v26, %v7735_v40  ;;  %v11843_v54 = vpop.f32.mrb[174].mxu1  ;;  %8849 = vmatprep.mubr.bf16.mxu1 %v7890_v42  ;;  %v16979_v40 = vld [vmem:[#allocation14_spill] sm:$0xff]  ;;  %v16990_v42 = vld [vmem:[#allocation19_spill] sm:$0xff] }
 0x346   : > { %v7835_v17 = vadd.f32 %v12096_v51, %v16373_v39  ;;  %v12102_v22 = vadd.f32 %v16368_v46, %v11843_v54  ;;  %v7738_v43 = vpop.f32.mrb[175].mxu1  ;;  %v16978_v51 = vld [vmem:[#allocation15_spill] sm:$0xff] }
 0x347   : > { %v7833_v9 = vadd.f32 %v12099_v5, %v16373_v39  ;;  %v12105_v11 = vadd.f32 %v16362_v34, %v7738_v43  ;;  %v16980_v4 = vpack.c.bf16 %v16978_v51, %v16979_v40  ;;  %v16982_v5 = vld [vmem:[#allocation41_spill] sm:$0xff] }
 0x348   : > { %v7868_v52 = vmul.f32 %v16376_v10, %v7835_v17  ;;  %v7836_v16 = vadd.f32 %v12102_v22, %v16373_v39  ;;  %vm7851_vm2 = vcmp.gt.f32.partialorder %v7835_v17, 0.0  ;;  %v16983_v54 = vpack.c.bf16 %v16981_v60, %v16982_v5  ;;  %v16988_v22 = vld [vmem:[#allocation45_spill] sm:$0xff] }
 0x349   : > { %v7866_v26 = vmul.f32 %v16376_v10, %v7833_v9  ;;  %v7834_v32 = vadd.f32 %v12105_v11, %v16373_v39  ;;  %vm7849_vm10 = vcmp.gt.f32.partialorder %v7833_v9, 0.0 }
 0x34a   : > { %vm7852_vm11 = vcmp.gt.f32.partialorder %v7836_v16, 0.0  ;;  %v7869_v46 = vmul.f32 %v16376_v10, %v7836_v16  ;;  %v7884_v18 = vsel %vm7851_vm2, %v7835_v17, %v7868_v52  ;;  %v16987_v17 = vld [vmem:[#allocation46_spill] sm:$0xff] }
 0x34b   : > { %vm7850_vm12 = vcmp.gt.f32.partialorder %v7834_v32, 0.0  ;;  %v7867_v34 = vmul.f32 %v16376_v10, %v7834_v32  ;;  %v7882_v44 = vsel %vm7849_vm10, %v7833_v9, %v7866_v26  ;;  %8850 = vmatmul.mubr.bf16.gmra.mrb[224].mxu1 %v5665_v48  ;;  %v12870_v48 = vld [vmem:[%s16682_s12 + $0x10] sm:$0xff]   ;;  %v16989_v43 = vpack.c.bf16 %v16987_v17, %v16988_v22  ;;  %v16991_v9 = vld [vmem:[#allocation18_spill] sm:$0xff] }
 0x34c   : > { %v7885_v47 = vsel %vm7852_vm11, %v7836_v16, %v7869_v46  ;;  %8857 = vmatprep.mubr.bf16.mxu1 %v7891_v31  ;;  %v16986_v31 = vpack.c.bf16 %v16984_v14, %v16985_v36  ;;  %v16992_v11 = vpack.c.bf16 %v16990_v42, %v16991_v9  ;;  %v16993_v52 = vld [vmem:[#allocation50_spill] sm:$0xff]  ;;  %v16994_v16 = vld [vmem:[#allocation49_spill] sm:$0xff]  ;;  %v16997_v46 = vld [vmem:[#allocation20_spill] sm:$0xff] }
 0x34d   : > { %v7883_v6 = vsel %vm7850_vm12, %v7834_v32, %v7867_v34  ;;  %v7893_v21 = vpack.c.bf16 %v7885_v47, %v7884_v18  ;;  %v16995_v26 = vpack.c.bf16 %v16993_v52, %v16994_v16  ;;  %v16996_v32 = vld [vmem:[#allocation21_spill] sm:$0xff]  ;;  %v16999_v18 = vld [vmem:[#allocation52_spill] sm:$0xff]  ;;  %v17000_v47 = vld [vmem:[#allocation51_spill] sm:$0xff] }
 0x34e   : > { %v7892_v58 = vpack.c.bf16 %v7883_v6, %v7882_v44  ;;  %v16998_v34 = vpack.c.bf16 %v16996_v32, %v16997_v46  ;;  %v17001_v44 = vpack.c.bf16 %v16999_v18, %v17000_v47  ;;  %v17002_v6 = vld [vmem:[#allocation23_spill] sm:$0xff]  ;;  %v8306_v18 = vld [vmem:[%s16684_s14] sm:$0x1] }
 0x353   : > { %8858 = vmatmul.mubr.bf16.gmra.mrb[228].mxu1 %v5666_v33  ;;  %v12881_v33 = vld [vmem:[%s16682_s12 + $0x68] sm:$0xff]  }
 0x354   : > { %8865 = vmatprep.mubr.bf16.mxu1 %v7892_v58 }
 0x35a   : > { %v8297_v61 = vpop.f32.mrb[144].mxu0 }
 0x35b   : > { %v8298_v39 = vadd.f32 %v8297_v61, %v8230_v35  ;;  %v11878_v10 = vpop.f32.mrb[145].mxu0  ;;  %8866 = vmatmul.mubr.bf16.gmra.mrb[232].mxu1 %v5667_v63  ;;  %v12889_v63 = vld [vmem:[%s16682_s12 + $0x78] sm:$0xff]   ;;  %v17005_v35 = vld [vmem:[#allocation55_spill] sm:$0xff]  ;;  %v17006_v61 = vld [vmem:[#allocation53_spill] sm:$0xff] }
 0x35c   : > { %8873 = vmatprep.mubr.bf16.mxu1 %v7893_v21  ;;  %v17003_v21 = vld [vmem:[#allocation22_spill] sm:$0xff]  ;;  %v17009_v10 = vld [vmem:[#allocation24_spill] sm:$0xff] }
 0x35d   : > { %vm8302_vm9 = vcmp.gt.f32.partialorder %v8298_v39, 0.0  ;;  %v8304_v24 = vmul.f32 %v8303_v15, %v8298_v39  ;;  %v17004_v58 = vpack.c.bf16 %v17002_v6, %v17003_v21  ;;  %v17007_v15 = vpack.c.bf16 %v17005_v35, %v17006_v61 }
 0x35f   : > { %v8305_v12 = vsel %vm8302_vm9, %v8298_v39, %v8304_v24  ;;  %v17008_v39 = vld [vmem:[#allocation25_spill] sm:$0xff] }
 0x360   : > { %11912 = vmatmul.mubr.f32.vlgmr.msra.gmra.mrb[146].mxu0 %v8305_v12  ;;  %v17010_v24 = vpack.c.bf16 %v17008_v39, %v17009_v10 }
 0x361   : > { %11397 = vmatpush3.bf16.msra.mxu0 %v12866_v23  ;;  %8720 = vmatprep.mubr.bf16.mxu0 %v16965_v56 }
 0x362   : > { %11398 = vmatprep.subr.bf16.mxu0 %v12867_v29 }
 0x363   : > { %8874 = vmatmul.mubr.bf16.gmra.mrb[236].mxu1 %v5668_v20  ;;  %v16969_v20 = vld [vmem:[#allocation34_spill] sm:$0xff] }
 0x364   : > { %v16971_v7 = vpack.c.bf16 %v16969_v20, %v16970_v55 }
 0x365   : > { %11399 = vmatpush3.bf16.msra.mxu0 %v12868_v41 }
 0x366   : > { %11400 = vmatprep.subr.bf16.mxu0 %v12869_v57 }
 0x369   : > { %11401 = vmatpush3.bf16.msra.mxu0 %v12870_v48 }
 0x36a   : > { %11402 = vmatprep.subr.bf16.mxu0 %v12873_v8 }
 0x36d   : > { %11403 = vmatpush3.bf16.msra.mxu0 %v12874_v50 }
 0x36e   : > { %11404 = vmatprep.subr.bf16.mxu0 %v12877_v30 }
 0x371   : > { %11405 = vmatpush3.bf16.msra.mxu0 %v12878_v53 }
 0x372   : > { %11406 = vmatprep.subr.bf16.mxu0 %v12881_v33 }
 0x375   : > { %11407 = vmatpush3.bf16.msra.mxu0 %v12882_v28 }
 0x376   : > { %11408 = vmatprep.subr.bf16.mxu0 %v12885_v45 }
 0x379   : > { %11409 = vmatpush3.bf16.msra.mxu0 %v12886_v25 }
 0x37a   : > { %11410 = vmatprep.subr.bf16.mxu0 %v12889_v63 }
 0x37d   : > { %11411 = vmatpush3.bf16.msra.mxu0 %v12890_v38 }
 0x380   : > { %8721 = vmatmul.mubr.bf16.vlgmr.msra.gmra.mrb[148].mxu0 %v16968_v1 }
 0x381   : > { %8728 = vmatprep.mubr.bf16.mxu0 %v16971_v7 }
 0x388   : > { %8729 = vmatmul.mubr.bf16.gmra.mrb[152].mxu0 %v16974_v49 }
 0x389   : > { %8736 = vmatprep.mubr.bf16.mxu0 %v16977_v37 }
 0x390   : > { %8737 = vmatmul.mubr.bf16.gmra.mrb[156].mxu0 %v16980_v4 }
 0x391   : > { %8744 = vmatprep.mubr.bf16.mxu0 %v16983_v54 }
 0x398   : > { %8745 = vmatmul.mubr.bf16.gmra.mrb[160].mxu0 %v16986_v31 }
 0x399   : > { %8752 = vmatprep.mubr.bf16.mxu0 %v16989_v43 }
 0x3a0   : > { %8753 = vmatmul.mubr.bf16.gmra.mrb[164].mxu0 %v16992_v11 }
 0x3a1   : > { %8760 = vmatprep.mubr.bf16.mxu0 %v16995_v26  ;;  %v8491_v26 = vlaneseq }
 0x3a8   : > { %8761 = vmatmul.mubr.bf16.gmra.mrb[168].mxu0 %v16998_v34  ;;  %v8492_v34 = vshrl.u32 %v8491_v26, 7 }
 0x3a9   : > { %8768 = vmatprep.mubr.bf16.mxu0 %v17001_v44 }
 0x3aa   : > { %v8493_v44 = vsub.s32 0, %v8492_v34 }
 0x3b0   : > { %8769 = vmatmul.mubr.bf16.gmra.mrb[172].mxu0 %v17004_v58 }
 0x3b1   : > { %8776 = vmatprep.mubr.bf16.mxu0 %v17007_v15 }
 0x3b8   : > { %8777 = vmatmul.mubr.bf16.gmra.mrb[176].mxu0 %v17010_v24  ;;  %v16585_v24 = vstv %s10615_s30 }
 0x3f9   : > { %v11476_v23 = vpop.f32.mrb[208].mxu1 }
 0x3fa   : > { %v11477_v29 = vpop.f32.mrb[209].mxu1 }
 0x3fb   : > { %v16545_v12 = vadd.f32 %v11477_v29, %v11476_v23  ;;  %v11479_v62 = vpop.f32.mrb[210].mxu1 }
 0x3fc   : > { %v11480_v3 = vpop.f32.mrb[211].mxu1 }
 0x3fd   : > { %v16547_v56 = vadd.f32 %v11480_v3, %v11479_v62 }
 0x401   : > { %v11482_v41 = vpop.f32.mrb[212].mxu1 }
 0x402   : > { %v11483_v57 = vpop.f32.mrb[213].mxu1 }
 0x403   : > { %v16549_v48 = vadd.f32 %v11483_v57, %v11482_v41  ;;  %v11485_v8 = vpop.f32.mrb[214].mxu1 }
 0x404   : > { %v11486_v50 = vpop.f32.mrb[215].mxu1 }
 0x405   : > { %v16551_v30 = vadd.f32 %v11486_v50, %v11485_v8 }
 0x40e   : > { %v11488_v53 = vpop.f32.mrb[216].mxu1 }
 0x40f   : > { %v11489_v33 = vpop.f32.mrb[217].mxu1 }
 0x410   : > { %v16553_v28 = vadd.f32 %v11489_v33, %v11488_v53  ;;  %v11491_v45 = vpop.f32.mrb[218].mxu1 }
 0x411   : > { %v11492_v25 = vpop.f32.mrb[219].mxu1 }
 0x412   : > { %v16555_v63 = vadd.f32 %v11492_v25, %v11491_v45 }
 0x416   : > { %v11494_v38 = vpop.f32.mrb[220].mxu1 }
 0x417   : > { %v11495_v59 = vpop.f32.mrb[221].mxu1 }
 0x418   : > { %v16557_v2 = vadd.f32 %v11495_v59, %v11494_v38  ;;  %v11497_v1 = vpop.f32.mrb[222].mxu1 }
 0x419   : > { %v11498_v20 = vpop.f32.mrb[223].mxu1 }
 0x41a   : > { %v16559_v55 = vadd.f32 %v11498_v20, %v11497_v1 }
 0x41e   : > { %v11500_v7 = vpop.f32.mrb[224].mxu1 }
 0x41f   : > { %v11501_v27 = vpop.f32.mrb[225].mxu1 }
 0x420   : > { %v16561_v19 = vadd.f32 %v11501_v27, %v11500_v7  ;;  %v11503_v49 = vpop.f32.mrb[226].mxu1 }
 0x421   : > { %v11504_v0 = vpop.f32.mrb[227].mxu1 }
 0x422   : > { %v16563_v13 = vadd.f32 %v11504_v0, %v11503_v49 }
 0x426   : > { %v11506_v40 = vpop.f32.mrb[228].mxu1 }
 0x427   : > { %v11507_v4 = vpop.f32.mrb[229].mxu1 }
 0x428   : > { %v16565_v60 = vadd.f32 %v11507_v4, %v11506_v40  ;;  %v11509_v5 = vpop.f32.mrb[230].mxu1 }
 0x429   : > { %v11510_v54 = vpop.f32.mrb[231].mxu1 }
 0x42a   : > { %v16567_v14 = vadd.f32 %v11510_v54, %v11509_v5 }
 0x42e   : > { %v11512_v36 = vpop.f32.mrb[232].mxu1 }
 0x42f   : > { %v11513_v31 = vpop.f32.mrb[233].mxu1 }
 0x430   : > { %v16569_v17 = vadd.f32 %v11513_v31, %v11512_v36  ;;  %v11515_v22 = vpop.f32.mrb[234].mxu1 }
 0x431   : > { %v11516_v43 = vpop.f32.mrb[235].mxu1 }
 0x432   : > { %v16571_v42 = vadd.f32 %v11516_v43, %v11515_v22 }
 0x433   : > { %v8389_v37 = vpop.f32.mrb[146].mxu0 }
 0x434   : > { %v11913_v51 = vpop.f32.mrb[147].mxu0  ;;  %v8393_v47 = vadd.f32 %v8389_v37, %v8306_v18 }
 0x436   : > { %v11518_v9 = vpop.f32.mrb[236].mxu1  ;;  %v16582_v58 = vrot.slane %v8393_v47, %v8493_v44 }
 0x437   : > { %v11519_v11 = vpop.f32.mrb[237].mxu1 }
 0x438   : > { %v16574_v52 = vadd.f32 %v11519_v11, %v11518_v9  ;;  %v11521_v16 = vpop.f32.mrb[238].mxu1 }
 0x439   : > { %v11522_v32 = vpop.f32.mrb[239].mxu1 }
 0x43a   : > { %v16576_v46 = vadd.f32 %v11522_v32, %v11521_v16 }
 0x453   : > { %v11412_v6 = vpop.f32.mrb[148].mxu0 }
 0x454   : > { %v11413_v21 = vpop.f32.mrb[149].mxu0 }
 0x455   : > { %v11414_v35 = vadd.f32 %v11413_v21, %v11412_v6  ;;  %v11415_v61 = vpop.f32.mrb[150].mxu0 }
 0x456   : > { %v11416_v15 = vpop.f32.mrb[151].mxu0 }
 0x457   : > { %v8723_v39 = vadd.f32 %v11414_v35, %v16582_v58  ;;  %v11417_v10 = vadd.f32 %v11416_v15, %v11415_v61 }
 0x459   : > { %v8726_v23 = vadd.f32 %v11417_v10, %v16582_v58  ;;  %v8820_v29 = vadd.f32 %v16545_v12, %v8723_v39 }
 0x45b   : > { %v11418_v62 = vpop.f32.mrb[152].mxu0  ;;  %vm8883_vm13 = vcmp.gt.f32.partialorder %v8820_v29, 0.0  ;;  %v8900_v3 = vmul.f32 %v16585_v24, %v8820_v29  ;;  %v8823_v41 = vadd.f32 %v16547_v56, %v8726_v23 }
 0x45c   : > { %v11419_v57 = vpop.f32.mrb[153].mxu0 }
 0x45d   : > { %v11420_v8 = vadd.f32 %v11419_v57, %v11418_v62  ;;  %v11421_v50 = vpop.f32.mrb[154].mxu0  ;;  %v8916_v53 = vsel %vm8883_vm13, %v8820_v29, %v8900_v3  ;;  %vm8884_vm3 = vcmp.gt.f32.partialorder %v8823_v41, 0.0  ;;  %v8901_v12 = vmul.f32 %v16585_v24, %v8823_v41 }
 0x45e   : > { %8932 = vst [vmem:[%s16592_s29] sm:$0xff] %v8916_v53  ;;  %v11422_v33 = vpop.f32.mrb[155].mxu0 }
 0x45f   : > { %v8731_v45 = vadd.f32 %v11420_v8, %v16582_v58  ;;  %v11423_v25 = vadd.f32 %v11422_v33, %v11421_v50  ;;  %v8917_v38 = vsel %vm8884_vm3, %v8823_v41, %v8901_v12 }
 0x460   : > { %8933 = vst [vmem:[%s16592_s29 + $0x8] sm:$0xff] %v8917_v38 }
 0x461   : > { %v8734_v59 = vadd.f32 %v11423_v25, %v16582_v58  ;;  %v8828_v1 = vadd.f32 %v16549_v48, %v8731_v45 }
 0x463   : > { %v11424_v56 = vpop.f32.mrb[156].mxu0  ;;  %vm8885_vm4 = vcmp.gt.f32.partialorder %v8828_v1, 0.0  ;;  %v8902_v20 = vmul.f32 %v16585_v24, %v8828_v1  ;;  %v8831_v7 = vadd.f32 %v16551_v30, %v8734_v59 }
 0x464   : > { %v11425_v27 = vpop.f32.mrb[157].mxu0 }
 0x465   : > { %v11426_v49 = vadd.f32 %v11425_v27, %v11424_v56  ;;  %v11427_v0 = vpop.f32.mrb[158].mxu0  ;;  %v8918_v37 = vsel %vm8885_vm4, %v8828_v1, %v8902_v20  ;;  %vm8886_vm14 = vcmp.gt.f32.partialorder %v8831_v7, 0.0  ;;  %v8903_v51 = vmul.f32 %v16585_v24, %v8831_v7 }
 0x466   : > { %8934 = vst [vmem:[%s16592_s29 + $0x10] sm:$0xff] %v8918_v37  ;;  %v11428_v40 = vpop.f32.mrb[159].mxu0 }
 0x467   : > { %v8739_v4 = vadd.f32 %v11426_v49, %v16582_v58  ;;  %v11429_v48 = vadd.f32 %v11428_v40, %v11427_v0  ;;  %v8919_v5 = vsel %vm8886_vm14, %v8831_v7, %v8903_v51 }
 0x468   : > { %8935 = vst [vmem:[%s16592_s29 + $0x18] sm:$0xff] %v8919_v5 }
 0x469   : > { %v8742_v54 = vadd.f32 %v11429_v48, %v16582_v58  ;;  %v8836_v36 = vadd.f32 %v16553_v28, %v8739_v4 }
 0x46b   : > { %v11430_v30 = vpop.f32.mrb[160].mxu0  ;;  %vm8887_vm15 = vcmp.gt.f32.partialorder %v8836_v36, 0.0  ;;  %v8904_v31 = vmul.f32 %v16585_v24, %v8836_v36  ;;  %v8839_v22 = vadd.f32 %v16555_v63, %v8742_v54 }
 0x46c   : > { %v11431_v43 = vpop.f32.mrb[161].mxu0 }
 0x46d   : > { %v11432_v9 = vadd.f32 %v11431_v43, %v11430_v30  ;;  %v11433_v11 = vpop.f32.mrb[162].mxu0  ;;  %v8920_v16 = vsel %vm8887_vm15, %v8836_v36, %v8904_v31  ;;  %vm8888_vm0 = vcmp.gt.f32.partialorder %v8839_v22, 0.0  ;;  %v8905_v26 = vmul.f32 %v16585_v24, %v8839_v22 }
 0x46e   : > { %8936 = vst [vmem:[%s16592_s29 + $0x20] sm:$0xff] %v8920_v16  ;;  %v11434_v32 = vpop.f32.mrb[163].mxu0 }
 0x46f   : > { %v8747_v34 = vadd.f32 %v11432_v9, %v16582_v58  ;;  %v11435_v28 = vadd.f32 %v11434_v32, %v11433_v11  ;;  %v8921_v18 = vsel %vm8888_vm0, %v8839_v22, %v8905_v26 }
 0x470   : > { %8937 = vst [vmem:[%s16592_s29 + $0x28] sm:$0xff] %v8921_v18 }
 0x471   : > { %v8750_v47 = vadd.f32 %v11435_v28, %v16582_v58  ;;  %v8844_v44 = vadd.f32 %v16557_v2, %v8747_v34 }
 0x473   : > { %v11436_v63 = vpop.f32.mrb[164].mxu0  ;;  %vm8889_vm1 = vcmp.gt.f32.partialorder %v8844_v44, 0.0  ;;  %v8906_v6 = vmul.f32 %v16585_v24, %v8844_v44  ;;  %v8847_v21 = vadd.f32 %v16559_v55, %v8750_v47 }
 0x474   : > { %v11437_v35 = vpop.f32.mrb[165].mxu0 }
 0x475   : > { %v11438_v61 = vadd.f32 %v11437_v35, %v11436_v63  ;;  %v11439_v15 = vpop.f32.mrb[166].mxu0  ;;  %v8922_v39 = vsel %vm8889_vm1, %v8844_v44, %v8906_v6  ;;  %vm8890_vm5 = vcmp.gt.f32.partialorder %v8847_v21, 0.0  ;;  %v8907_v10 = vmul.f32 %v16585_v24, %v8847_v21 }
 0x476   : > { %8938 = vst [vmem:[%s16592_s29 + $0x30] sm:$0xff] %v8922_v39  ;;  %v11440_v23 = vpop.f32.mrb[167].mxu0 }
 0x477   : > { %v8755_v29 = vadd.f32 %v11438_v61, %v16582_v58  ;;  %v11441_v2 = vadd.f32 %v11440_v23, %v11439_v15  ;;  %v8923_v62 = vsel %vm8890_vm5, %v8847_v21, %v8907_v10 }
 0x478   : > { %8939 = vst [vmem:[%s16592_s29 + $0x38] sm:$0xff] %v8923_v62 }
 0x479   : > { %v8758_v3 = vadd.f32 %v11441_v2, %v16582_v58  ;;  %v8852_v41 = vadd.f32 %v16561_v19, %v8755_v29 }
 0x47b   : > { %v11442_v55 = vpop.f32.mrb[168].mxu0  ;;  %vm8891_vm6 = vcmp.gt.f32.partialorder %v8852_v41, 0.0  ;;  %v8908_v57 = vmul.f32 %v16585_v24, %v8852_v41  ;;  %v8855_v8 = vadd.f32 %v16563_v13, %v8758_v3 }
 0x47c   : > { %v11443_v50 = vpop.f32.mrb[169].mxu0 }
 0x47d   : > { %v11444_v53 = vadd.f32 %v11443_v50, %v11442_v55  ;;  %v11445_v12 = vpop.f32.mrb[170].mxu0  ;;  %v8924_v33 = vsel %vm8891_vm6, %v8852_v41, %v8908_v57  ;;  %vm8892_vm7 = vcmp.gt.f32.partialorder %v8855_v8, 0.0  ;;  %v8909_v45 = vmul.f32 %v16585_v24, %v8855_v8 }
 0x47e   : > { %8940 = vst [vmem:[%s16592_s29 + $0x40] sm:$0xff] %v8924_v33  ;;  %v11446_v25 = vpop.f32.mrb[171].mxu0 }
 0x47f   : > { %v8763_v38 = vadd.f32 %v11444_v53, %v16582_v58  ;;  %v11447_v19 = vadd.f32 %v11446_v25, %v11445_v12  ;;  %v8925_v59 = vsel %vm8892_vm7, %v8855_v8, %v8909_v45 }
 0x480   : > { %8941 = vst [vmem:[%s16592_s29 + $0x48] sm:$0xff] %v8925_v59 }
 0x481   : > { %v8766_v1 = vadd.f32 %v11447_v19, %v16582_v58  ;;  %v8860_v56 = vadd.f32 %v16565_v60, %v8763_v38 }
 0x483   : > { %v11448_v13 = vpop.f32.mrb[172].mxu0  ;;  %vm8893_vm8 = vcmp.gt.f32.partialorder %v8860_v56, 0.0  ;;  %v8910_v20 = vmul.f32 %v16585_v24, %v8860_v56  ;;  %v8863_v7 = vadd.f32 %v16567_v14, %v8766_v1 }
 0x484   : > { %v11449_v27 = vpop.f32.mrb[173].mxu0 }
 0x485   : > { %v11450_v49 = vadd.f32 %v11449_v27, %v11448_v13  ;;  %v11451_v0 = vpop.f32.mrb[174].mxu0  ;;  %v8926_v37 = vsel %vm8893_vm8, %v8860_v56, %v8910_v20  ;;  %vm8894_vm2 = vcmp.gt.f32.partialorder %v8863_v7, 0.0  ;;  %v8911_v51 = vmul.f32 %v16585_v24, %v8863_v7 }
 0x486   : > { %8942 = vst [vmem:[%s16592_s29 + $0x50] sm:$0xff] %v8926_v37  ;;  %v11452_v40 = vpop.f32.mrb[175].mxu0 }
 0x487   : > { %v8771_v4 = vadd.f32 %v11450_v49, %v16582_v58  ;;  %v11453_v60 = vadd.f32 %v11452_v40, %v11451_v0  ;;  %v8927_v48 = vsel %vm8894_vm2, %v8863_v7, %v8911_v51 }
 0x488   : > { %8943 = vst [vmem:[%s16592_s29 + $0x58] sm:$0xff] %v8927_v48 }
 0x489   : > { %v8774_v5 = vadd.f32 %v11453_v60, %v16582_v58  ;;  %v8868_v54 = vadd.f32 %v16569_v17, %v8771_v4 }
 0x48b   : > { %v11454_v14 = vpop.f32.mrb[176].mxu0  ;;  %vm8895_vm10 = vcmp.gt.f32.partialorder %v8868_v54, 0.0  ;;  %v8912_v36 = vmul.f32 %v16585_v24, %v8868_v54  ;;  %v8871_v30 = vadd.f32 %v16571_v42, %v8774_v5 }
 0x48c   : > { %v11455_v31 = vpop.f32.mrb[177].mxu0 }
 0x48d   : > { %v11456_v22 = vadd.f32 %v11455_v31, %v11454_v14  ;;  %v11457_v43 = vpop.f32.mrb[178].mxu0  ;;  %v8928_v9 = vsel %vm8895_vm10, %v8868_v54, %v8912_v36  ;;  %vm8896_vm11 = vcmp.gt.f32.partialorder %v8871_v30, 0.0  ;;  %v8913_v11 = vmul.f32 %v16585_v24, %v8871_v30 }
 0x48e   : > { %8944 = vst [vmem:[%s16592_s29 + $0x60] sm:$0xff] %v8928_v9  ;;  %v11458_v16 = vpop.f32.mrb[179].mxu0 }
 0x48f   : > { %v8779_v17 = vadd.f32 %v11456_v22, %v16582_v58  ;;  %v11459_v26 = vadd.f32 %v11458_v16, %v11457_v43  ;;  %v8929_v32 = vsel %vm8896_vm11, %v8871_v30, %v8913_v11 }
 0x490   : > { %8945 = vst [vmem:[%s16592_s29 + $0x68] sm:$0xff] %v8929_v32 }
 0x491   : > { %v8782_v34 = vadd.f32 %v11459_v26, %v16582_v58  ;;  %v8876_v42 = vadd.f32 %v16574_v52, %v8779_v17 }
 0x493   : > { %vm8897_vm12 = vcmp.gt.f32.partialorder %v8876_v42, 0.0  ;;  %v8914_v28 = vmul.f32 %v16585_v24, %v8876_v42  ;;  %v8879_v18 = vadd.f32 %v16576_v46, %v8782_v34 }
 0x495   : > { %v8930_v47 = vsel %vm8897_vm12, %v8876_v42, %v8914_v28  ;;  %vm8898_vm9 = vcmp.gt.f32.partialorder %v8879_v18, 0.0  ;;  %v8915_v44 = vmul.f32 %v16585_v24, %v8879_v18 }
 0x496   : > { %8946 = vst [vmem:[%s16592_s29 + $0x70] sm:$0xff] %v8930_v47 }
 0x497   : > { %v8931_v63 = vsel %vm8898_vm9, %v8879_v18, %v8915_v44 }
 0x498   : > { %8947 = vst [vmem:[%s16592_s29 + $0x78] sm:$0xff] %v8931_v63 }
 0x499 PF: > { %s26_s22 = sadd.s32 1, %s12957_s22   ;;  %s17011_s25 = sld [smem:[#allocation7_spill]] }
 0x49a   : > { %p23_p4 = scmp.ge.s32.totalorder %s26_s22, 6   ;;  %s17012_s23 = sld [smem:[#allocation8_spill]] }
 0x49b   : > { %s17013_s18 = smov %s12949_s20  ;;  %s17014_s19 = smov %s12953_s21 }
 0x49c   :  { %25 = sbr.rel (!%p23_p4) target bundleno = 5 (0x5), region = 129 }
 0x49f   : > { %s17015_s20 = smov %s17011_s25 }
 0x4a0   : > { %s17016_s21 = smov %s17012_s23 }
 0x4a3   :  { %8980 = vsyncpa [#allocation5], 1 }
 0x4a4   :  { %8982 = vsyncpa [#allocation5 + $0x1], 1 }

</bundles_post_ra>
